<compile_context>
chip_gen: v7x
topology: tpu7x:2x2x1
jax: 0.10.0
libtpu: 0.0.40
codegen_flags: <defaults>
</compile_context>

<pallas_src>
import functools
import numpy as np
import jax
import jax.numpy as jnp
from jax.experimental import pallas as pl
from jax.experimental.pallas import tpu as pltpu

# ---- small-scale Cnn14 config (real: win=1024, hop=320, mel=64, ch=64..2048) ----
WIN = 64                  # STFT window / n_fft
HOP = 64                  # hop (non-overlapping, center=False in this small version)
NBINS = WIN // 2 + 1      # rfft bins
PBINS = 64                # rfft bins padded to a lane-friendly width
NMELS = 32
CHANNELS = [1, 8, 16, 16, 32, 32, 64]        # conv block channels (scaled down)
POOLS = [(2, 2)] * 5 + [(1, 1)]              # same pooling schedule as Cnn14
EMBED = 2048                                 # kept at 2048 (asserted by the module)
RS_TAPS = 16                                 # resample FIR taps
HOP16 = HOP // 2                             # hop measured in 16 kHz samples
CTX = HOP16 + RS_TAPS                        # 16 kHz context feeding one 32 kHz frame
PAD_OFF = 16                                 # bf16-sublane-aligned LHS read offset


# ============================== static shape config ==============================

def make_config(t16, bpg):
    t32 = 2 * t16
    nfr = (t32 - WIN) // HOP + 1
    assert HOP == WIN and nfr * HOP == t32    # non-overlapping frames cover wave32
    assert nfr * HOP16 == t16
    layers = []                               # per conv layer: (h, wcin, wcout, pool_idx)
    h, w = nfr, NMELS
    pend_w = None                             # width before a pending (folded) horiz pool
    n_pool = 0
    for blk in range(6):
        cin, cout = CHANNELS[blk], CHANNELS[blk + 1]
        for ci in range(2):
            c_in = cin if ci == 0 else cout
            wcin = (pend_w if (ci == 0 and pend_w is not None) else w) * c_in
            layers.append([h, wcin, w * cout, -1])
        ph_, pw_ = POOLS[blk]
        if (ph_, pw_) != (1, 1):
            layers[-1][3] = n_pool            # vertical pool applied after this conv2
            n_pool += 1
            pend_w = w                        # horizontal pool folded into next conv1
            h, w = h // ph_, w // pw_
        else:
            pend_w = None
    layers = tuple(tuple(l) for l in layers)
    pad_rows = PAD_OFF + max(bpg * l[0] for l in layers) + 2
    pad_rows = ((pad_rows + 15) // 16) * 16
    pad_cols = ((max(3 * l[1] for l in layers) + 127) // 128) * 128
    return dict(nfr=nfr, bpg=bpg, layers=layers, final=(h, w, CHANNELS[-1]),
                pad_rows=pad_rows, pad_cols=pad_cols)


def _tpu_num_tensorcores():
    """Best-effort guess of TensorCores sharing a 'parallel' pallas grid axis.

    v7x has 2 TensorCores per chip (grid parallelism pays off); v5e/v6e have a
    single core, where folding the batch into the matmul M dimension is better.
    """
    try:
        kind = str(jax.devices()[0].device_kind).lower()
    except Exception:
        return 1
    if 'v7' in kind or 'tpu7' in kind:
        return 2
    return 1


# ================================ fused Pallas kernel =============================

def _fused_kernel(layers, bpg, fw, *refs):
    n_layers = len(layers)
    n_pool = sum(1 for l in layers if l[3] >= 0)
    cf_ref, dft_ref, mel_ref, bns_ref, bnb_ref = refs[:5]
    off = 5
    conv_refs = refs[off:off + 2 * n_layers]
    off += 2 * n_layers
    pool_refs = refs[off:off + n_pool]
    off += n_pool
    pmel_ref, fcw_ref, fcb_ref, o_ref, pad_ref = refs[off:off + 5]

    # --- fused resample + Hann-windowed rDFT + power + mel + log + bn0 ---
    cf = cf_ref[...]                                                  # [bpg*nfr, CTX]
    re = jnp.dot(cf, dft_ref[0], preferred_element_type=jnp.float32)  # [bpg*nfr, PBINS]
    im = jnp.dot(cf, dft_ref[1], preferred_element_type=jnp.float32)
    power = re * re + im * im                                         # power spectrum
    mel = jnp.dot(power, mel_ref[...], preferred_element_type=jnp.float32)
    x = 10.0 * jnp.log10(jnp.maximum(mel, 1e-10))                     # power_to_db
    x = x * bns_ref[...] + bnb_ref[...]                               # bn0 (folded)
    # x: [bpg*H, W*C] with C=1 -- the lane-dense layout used by every conv layer;
    # the bpg batch samples are stacked along the row (M) dimension.

    # --- 12 conv layers (3x3 conv + BN + ReLU), one merged-tap matmul each ---
    for li, (h, wcin, wcout, pool_idx) in enumerate(layers):
        m = bpg * h
        wb_ref = conv_refs[2 * li]                  # [3*wcin, wcout] bf16, taps merged
        b_ref = conv_refs[2 * li + 1]               # [1, wcout]
        xb = x.astype(jnp.bfloat16)                 # single f32->bf16 cast per layer
        # Assemble the LHS [m, 3*wcin] in the bf16 slab: three row-shifted copies of
        # xb side-by-side (taps dh=0/1/2).  The aligned read below is fully covered
        # by these writes + the border zero rows, so no full-slab zeroing is needed.
        pad_ref[PAD_OFF + 1:PAD_OFF + 1 + m, 0:wcin] = xb                 # dh=0 (row above)
        pad_ref[PAD_OFF:PAD_OFF + m, wcin:2 * wcin] = xb                  # dh=1 (center)
        pad_ref[PAD_OFF - 1:PAD_OFF - 1 + m, 2 * wcin:3 * wcin] = xb      # dh=2 (row below)
        zrow = jnp.zeros((1, wcin), jnp.bfloat16)
        for s in range(bpg):                        # vertical zero padding per sample
            pad_ref[PAD_OFF + s * h:PAD_OFF + s * h + 1, 0:wcin] = zrow
            pad_ref[PAD_OFF + (s + 1) * h - 1:PAD_OFF + (s + 1) * h,
                    2 * wcin:3 * wcin] = zrow
        lhs = pad_ref[PAD_OFF:PAD_OFF + m, 0:3 * wcin]                    # aligned read
        acc = jnp.dot(lhs, wb_ref[...], preferred_element_type=jnp.float32) + b_ref[...]
        x = jnp.maximum(acc, 0.0)                   # [m, wcout]  (conv + BN + ReLU)
        if pool_idx >= 0:                           # vertical half of the 2x2 avg-pool
            x = jnp.dot(pool_refs[pool_idx][...], x, preferred_element_type=jnp.float32)
        # (the horizontal half of the pool is folded into the next conv1's weights)

    # --- global pooling (mean over mel, max+mean over time) + fc1 + ReLU ---
    th = layers[-1][0]                              # time rows per sample at the end
    if fw > 1:                                      # mean over mel width (no-op if fw==1)
        x = jnp.dot(x, pmel_ref[...], preferred_element_type=jnp.float32)
    feats = []
    for s in range(bpg):
        xs = x[s * th:(s + 1) * th, :]
        feats.append(jnp.max(xs, axis=0, keepdims=True) +
                     jnp.mean(xs, axis=0, keepdims=True))
    feat = feats[0] if bpg == 1 else jnp.concatenate(feats, axis=0)       # [bpg, C]
    emb = jnp.dot(feat.astype(jnp.bfloat16), fcw_ref[...],
                  preferred_element_type=jnp.float32) + fcb_ref[...]
    o_ref[...] = jnp.maximum(emb, 0.0).reshape(1, bpg, EMBED)


# ================================== parameters ====================================

def mel_filterbank(nbins, nmels):
    # simple triangular filterbank (deterministic synthetic stand-in for librosa mel)
    pts = np.linspace(0.0, nbins - 1.0, nmels + 2)
    fb = np.zeros((nbins, nmels), np.float32)
    k = np.arange(nbins, dtype=np.float64)
    for m in range(nmels):
        l, c, r = pts[m], pts[m + 1], pts[m + 2]
        up = (k - l) / max(c - l, 1e-6)
        down = (r - k) / max(r - c, 1e-6)
        fb[:, m] = np.maximum(0.0, np.minimum(up, down))
    return fb


def _pool_matrices(h, w, c, ph, pw):
    pv = np.zeros((h // ph, h), np.float32)
    for i in range(h // ph):
        pv[i, i * ph:(i + 1) * ph] = 1.0 / ph
    phm = np.zeros((w * c, (w // pw) * c), np.float32)
    for jo in range(w // pw):
        for r in range(pw):
            for ch in range(c):
                phm[(jo * pw + r) * c + ch, jo * c + ch] = 1.0 / pw
    return pv, phm


def init_params(key, cfg):
    """Deterministic synthetic parameters.
    TODO(synk): the real module loads pretrained Cnn14 checkpoint weights."""
    kit = iter(jax.random.split(key, 64))
    nk = lambda: next(kit)
    p = {}
    bpg = cfg['bpg']

    # fused resample(16k->32k, polyphase kaiser sinc) + framing + Hann rDFT matrices
    # TODO(synk): resampy 'kaiser_best' uses a much longer kaiser FIR; approximated
    # here with a 16-tap-per-output kaiser-windowed sinc, folded into the DFT matrix.
    kk = np.arange(RS_TAPS, dtype=np.float64) - (RS_TAPS // 2 - 1)
    kwin = np.kaiser(RS_TAPS, 8.0)
    h0 = np.sinc(kk) * kwin
    h1 = np.sinc(kk - 0.5) * kwin
    h0 /= h0.sum()
    h1 /= h1.sum()
    R = np.zeros((CTX, WIN), np.float64)      # 16 kHz context window -> 32 kHz frame
    for u in range(HOP16):
        for j in range(RS_TAPS):
            R[u + j, 2 * u] += h0[j]
            R[u + j, 2 * u + 1] += h1[j]
    t = np.arange(WIN, dtype=np.float64)
    k = np.arange(NBINS, dtype=np.float64)
    hann = 0.5 - 0.5 * np.cos(2.0 * np.pi * t / WIN)
    ang = 2.0 * np.pi * np.outer(t, k) / WIN
    dft = np.zeros((2, CTX, PBINS), np.float32)
    dft[0, :, :NBINS] = R @ (hann[:, None] * np.cos(ang))
    dft[1, :, :NBINS] = R @ (hann[:, None] * np.sin(ang))
    p['dftW'] = jnp.asarray(dft)

    melp = np.zeros((PBINS, NMELS), np.float32)
    melp[:NBINS] = mel_filterbank(NBINS, NMELS)
    p['melW'] = jnp.asarray(melp)

    # bn0 over mel bins (eval mode: running_mean=0, running_var=1, eps=1e-5, folded)
    gamma0 = 1.0 + 0.1 * jax.random.uniform(nk(), (NMELS,), jnp.float32)
    beta0 = 0.05 * jax.random.normal(nk(), (NMELS,), jnp.float32)
    p['bn0_scale'] = (gamma0 / np.sqrt(1.0 + 1e-5)).reshape(1, NMELS)
    p['bn0_bias'] = beta0.reshape(1, NMELS)

    # conv blocks: conv3x3 (bias-free) + eval BN folded, re-expressed as banded
    # matrices over the lane-dense [rows, W*C] layout (horizontal taps + horizontal
    # zero padding folded into the band).  The previous block's horizontal avg-pool
    # is folded into each conv1's K side, and the 3 vertical taps are stacked along
    # K so each conv layer is a single MXU matmul.  Weights are bf16 (f32 accum).
    # TODO(synk): bf16 band weights vs f32 PyTorch convs - tolerance-check vs ref.
    convs, pvs = [], []
    pend_ph = None
    h, w = cfg['nfr'], NMELS
    for blk in range(6):
        cin, cout = CHANNELS[blk], CHANNELS[blk + 1]
        for ci in range(2):
            c_in = cin if ci == 0 else cout
            wraw = np.asarray(jax.random.normal(nk(), (9 * c_in, cout), jnp.float32))
            wraw = wraw / np.sqrt(9 * c_in)
            gamma = np.asarray(1.0 + 0.1 * jax.random.uniform(nk(), (cout,), jnp.float32))
            beta = np.asarray(0.05 * jax.random.normal(nk(), (cout,), jnp.float32))
            scale = gamma / np.sqrt(1.0 + 1e-5)           # running_var=1, mean=0
            w9 = (wraw * scale[None, :]).astype(np.float32)   # folded conv+BN weight
            wband = np.zeros((3, w * c_in, w * cout), np.float32)
            for dh in range(3):
                for dw in range(3):
                    wt = w9[(dh * 3 + dw) * c_in:(dh * 3 + dw + 1) * c_in, :]
                    for j in range(w):
                        ji = j + dw - 1
                        if 0 <= ji < w:
                            wband[dh, ji * c_in:(ji + 1) * c_in,
                                  j * cout:(j + 1) * cout] = wt
            if ci == 0 and pend_ph is not None:
                # fold previous block's horizontal avg-pool into this conv1 (exact)
                wband = np.einsum('pk,dkn->dpn', pend_ph, wband)
            wmerged = wband.reshape(3 * wband.shape[1], wband.shape[2])
            convs.append(dict(w=jnp.asarray(wmerged, jnp.bfloat16),
                              b=jnp.asarray(np.tile(beta, w).reshape(1, w * cout))))
        ph_, pw_ = POOLS[blk]
        if (ph_, pw_) != (1, 1):
            pv, phm = _pool_matrices(h, w, cout, ph_, pw_)
            # vertical pooling stays in-kernel; block-diagonal over stacked samples
            pvs.append(jnp.asarray(np.kron(np.eye(bpg, dtype=np.float32), pv)))
            pend_ph = phm
            h, w = h // ph_, w // pw_
        else:
            pend_ph = None
    p['convs'] = convs
    p['pools'] = pvs

    fh, fw, fc = cfg['final']
    pmel = np.zeros((fw * fc, fc), np.float32)        # mean over mel width within lanes
    for j in range(fw):
        for ch in range(fc):
            pmel[j * fc + ch, ch] = 1.0 / fw
    p['pmel'] = jnp.asarray(pmel)

    p['fc1_w'] = jnp.asarray(
        np.asarray(jax.random.normal(nk(), (fc, EMBED), jnp.float32)) / np.sqrt(fc),
        jnp.bfloat16)                                 # bf16 weights, f32 accumulation
    p['fc1_b'] = (0.05 * jax.random.normal(nk(), (EMBED,), jnp.float32)).reshape(1, EMBED)
    return p


# ================================== forward pass ==================================

def panns_forward(wave16, params, cfg):
    b, t16 = wave16.shape
    nfr, bpg = cfg['nfr'], cfg['bpg']
    assert nfr * HOP16 == t16
    assert b % bpg == 0
    grid_b = b // bpg

    # 16 kHz context frames: cf[b, f, m] = wave16[b, HOP16*f - (RS_TAPS//2 - 1) + m]
    # (resample + framing + windowed DFT are folded into params['dftW'])
    xp = jnp.pad(wave16, ((0, 0), (RS_TAPS // 2 - 1, CTX)))
    base = xp[:, :HOP16 * nfr].reshape(b, nfr, HOP16)
    nxt = xp[:, HOP16:HOP16 * (nfr + 1)].reshape(b, nfr, HOP16)
    cf = jnp.concatenate([base, nxt[:, :, :CTX - HOP16]], axis=-1)    # [B, nfr, CTX]
    cf = cf.reshape(b * nfr, CTX)                     # batch folded into rows (M dim)

    flat = [params['dftW'], params['melW'], params['bn0_scale'], params['bn0_bias']]
    for c in params['convs']:
        flat += [c['w'], c['b']]
    flat += list(params['pools'])
    flat += [params['pmel'], params['fc1_w'], params['fc1_b']]

    in_specs = [pl.BlockSpec((bpg * nfr, CTX), lambda i: (i, 0))]
    for a in flat:                                    # full-array, VMEM-resident params
        in_specs.append(pl.BlockSpec(a.shape, lambda i, _n=a.ndim: (0,) * _n))

    kern = functools.partial(_fused_kernel, cfg['layers'], bpg, cfg['final'][1])
    out = pl.pallas_call(
        kern,
        out_shape=jax.ShapeDtypeStruct((grid_b, bpg, EMBED), jnp.float32),
        grid_spec=pltpu.PrefetchScalarGridSpec(
            num_scalar_prefetch=0,
            grid=(grid_b,),                           # 1 step (single TC) or 2 (v7x)
            in_specs=in_specs,
            out_specs=pl.BlockSpec((1, bpg, EMBED), lambda i: (i, 0, 0)),
            scratch_shapes=[pltpu.VMEM((cfg['pad_rows'], cfg['pad_cols']),
                                       jnp.bfloat16)]),
        compiler_params=pltpu.CompilerParams(
            dimension_semantics=("parallel",),
            vmem_limit_bytes=32 * 1024 * 1024),
    )(cf, *flat)
    return {'embedding': out.reshape(b, EMBED)}


if __name__ == "__main__":
    T16 = 2048
    B = 2
    # grid across TensorCores on v7x; fold the whole batch into M on v5e/v6e.
    n_tc = _tpu_num_tensorcores()
    grid_b = n_tc if (n_tc > 1 and B % n_tc == 0) else 1
    cfg = make_config(T16, bpg=B // grid_b)
    params = init_params(jax.random.PRNGKey(42), cfg)
    # synthetic "16 kHz" waveform batch: B=2, T=2048
    wave = 0.1 * jax.random.normal(jax.random.PRNGKey(0), (B, T16), jnp.float32)

    fwd = jax.jit(functools.partial(panns_forward, cfg=cfg))
    out = fwd(wave, params)
    emb = out['embedding']
    jax.block_until_ready(emb)

    assert emb.shape == (B, EMBED), emb.shape
    assert emb.shape[-1] == 2048                      # mirrors the module's assert
    assert bool(jnp.all(jnp.isfinite(emb)))
    print("KERNEL_OK")
</pallas_src>

<mosaic_0001>
module attributes {stable_mosaic.version = 11 : i64} {
  func.func @_fused_kernel(%arg0: i32, %arg1: memref<128x48xf32, #tpu.memory_space<vmem>>, %arg2: memref<2x48x64xf32, #tpu.memory_space<vmem>>, %arg3: memref<64x32xf32, #tpu.memory_space<vmem>>, %arg4: memref<1x32xf32, #tpu.memory_space<vmem>>, %arg5: memref<1x32xf32, #tpu.memory_space<vmem>>, %arg6: memref<96x256xbf16, #tpu.memory_space<vmem>>, %arg7: memref<1x256xf32, #tpu.memory_space<vmem>>, %arg8: memref<768x256xbf16, #tpu.memory_space<vmem>>, %arg9: memref<1x256xf32, #tpu.memory_space<vmem>>, %arg10: memref<768x256xbf16, #tpu.memory_space<vmem>>, %arg11: memref<1x256xf32, #tpu.memory_space<vmem>>, %arg12: memref<768x256xbf16, #tpu.memory_space<vmem>>, %arg13: memref<1x256xf32, #tpu.memory_space<vmem>>, %arg14: memref<768x128xbf16, #tpu.memory_space<vmem>>, %arg15: memref<1x128xf32, #tpu.memory_space<vmem>>, %arg16: memref<384x128xbf16, #tpu.memory_space<vmem>>, %arg17: memref<1x128xf32, #tpu.memory_space<vmem>>, %arg18: memref<384x128xbf16, #tpu.memory_space<vmem>>, %arg19: memref<1x128xf32, #tpu.memory_space<vmem>>, %arg20: memref<384x128xbf16, #tpu.memory_space<vmem>>, %arg21: memref<1x128xf32, #tpu.memory_space<vmem>>, %arg22: memref<384x64xbf16, #tpu.memory_space<vmem>>, %arg23: memref<1x64xf32, #tpu.memory_space<vmem>>, %arg24: memref<192x64xbf16, #tpu.memory_space<vmem>>, %arg25: memref<1x64xf32, #tpu.memory_space<vmem>>, %arg26: memref<192x64xbf16, #tpu.memory_space<vmem>>, %arg27: memref<1x64xf32, #tpu.memory_space<vmem>>, %arg28: memref<192x64xbf16, #tpu.memory_space<vmem>>, %arg29: memref<1x64xf32, #tpu.memory_space<vmem>>, %arg30: memref<64x128xf32, #tpu.memory_space<vmem>>, %arg31: memref<32x64xf32, #tpu.memory_space<vmem>>, %arg32: memref<16x32xf32, #tpu.memory_space<vmem>>, %arg33: memref<8x16xf32, #tpu.memory_space<vmem>>, %arg34: memref<4x8xf32, #tpu.memory_space<vmem>>, %arg35: memref<64x64xf32, #tpu.memory_space<vmem>>, %arg36: memref<64x2048xbf16, #tpu.memory_space<vmem>>, %arg37: memref<1x2048xf32, #tpu.memory_space<vmem>>, %arg38: memref<1x2x2048xf32, #tpu.memory_space<vmem>>, %arg39: memref<160x768xbf16, #tpu.memory_space<vmem>>) attributes {dimension_semantics = [#tpu.dimension_semantics<parallel>], iteration_bounds = array<i64: 1>, scalar_prefetch = 0 : i64, scratch_operands = 1 : i64, tpu.core_type = #tpu.core_type<tc>, window_params = [{transform_indices = @transform_0, window_bounds = array<i64: 128, 48>}, {pipeline_mode = #tpu.pipeline_mode<synchronous>, transform_indices = @transform_1, window_bounds = array<i64: 2, 48, 64>}, {pipeline_mode = #tpu.pipeline_mode<synchronous>, transform_indices = @transform_2, window_bounds = array<i64: 64, 32>}, {pipeline_mode = #tpu.pipeline_mode<synchronous>, transform_indices = @transform_3, window_bounds = array<i64: 1, 32>}, {pipeline_mode = #tpu.pipeline_mode<synchronous>, transform_indices = @transform_4, window_bounds = array<i64: 1, 32>}, {pipeline_mode = #tpu.pipeline_mode<synchronous>, transform_indices = @transform_5, window_bounds = array<i64: 96, 256>}, {pipeline_mode = #tpu.pipeline_mode<synchronous>, transform_indices = @transform_6, window_bounds = array<i64: 1, 256>}, {pipeline_mode = #tpu.pipeline_mode<synchronous>, transform_indices = @transform_7, window_bounds = array<i64: 768, 256>}, {pipeline_mode = #tpu.pipeline_mode<synchronous>, transform_indices = @transform_8, window_bounds = array<i64: 1, 256>}, {pipeline_mode = #tpu.pipeline_mode<synchronous>, transform_indices = @transform_9, window_bounds = array<i64: 768, 256>}, {pipeline_mode = #tpu.pipeline_mode<synchronous>, transform_indices = @transform_10, window_bounds = array<i64: 1, 256>}, {pipeline_mode = #tpu.pipeline_mode<synchronous>, transform_indices = @transform_11, window_bounds = array<i64: 768, 256>}, {pipeline_mode = #tpu.pipeline_mode<synchronous>, transform_indices = @transform_12, window_bounds = array<i64: 1, 256>}, {pipeline_mode = #tpu.pipeline_mode<synchronous>, transform_indices = @transform_13, window_bounds = array<i64: 768, 128>}, {pipeline_mode = #tpu.pipeline_mode<synchronous>, transform_indices = @transform_14, window_bounds = array<i64: 1, 128>}, {pipeline_mode = #tpu.pipeline_mode<synchronous>, transform_indices = @transform_15, window_bounds = array<i64: 384, 128>}, {pipeline_mode = #tpu.pipeline_mode<synchronous>, transform_indices = @transform_16, window_bounds = array<i64: 1, 128>}, {pipeline_mode = #tpu.pipeline_mode<synchronous>, transform_indices = @transform_17, window_bounds = array<i64: 384, 128>}, {pipeline_mode = #tpu.pipeline_mode<synchronous>, transform_indices = @transform_18, window_bounds = array<i64: 1, 128>}, {pipeline_mode = #tpu.pipeline_mode<synchronous>, transform_indices = @transform_19, window_bounds = array<i64: 384, 128>}, {pipeline_mode = #tpu.pipeline_mode<synchronous>, transform_indices = @transform_20, window_bounds = array<i64: 1, 128>}, {pipeline_mode = #tpu.pipeline_mode<synchronous>, transform_indices = @transform_21, window_bounds = array<i64: 384, 64>}, {pipeline_mode = #tpu.pipeline_mode<synchronous>, transform_indices = @transform_22, window_bounds = array<i64: 1, 64>}, {pipeline_mode = #tpu.pipeline_mode<synchronous>, transform_indices = @transform_23, window_bounds = array<i64: 192, 64>}, {pipeline_mode = #tpu.pipeline_mode<synchronous>, transform_indices = @transform_24, window_bounds = array<i64: 1, 64>}, {pipeline_mode = #tpu.pipeline_mode<synchronous>, transform_indices = @transform_25, window_bounds = array<i64: 192, 64>}, {pipeline_mode = #tpu.pipeline_mode<synchronous>, transform_indices = @transform_26, window_bounds = array<i64: 1, 64>}, {pipeline_mode = #tpu.pipeline_mode<synchronous>, transform_indices = @transform_27, window_bounds = array<i64: 192, 64>}, {pipeline_mode = #tpu.pipeline_mode<synchronous>, transform_indices = @transform_28, window_bounds = array<i64: 1, 64>}, {pipeline_mode = #tpu.pipeline_mode<synchronous>, transform_indices = @transform_29, window_bounds = array<i64: 64, 128>}, {pipeline_mode = #tpu.pipeline_mode<synchronous>, transform_indices = @transform_30, window_bounds = array<i64: 32, 64>}, {pipeline_mode = #tpu.pipeline_mode<synchronous>, transform_indices = @transform_31, window_bounds = array<i64: 16, 32>}, {pipeline_mode = #tpu.pipeline_mode<synchronous>, transform_indices = @transform_32, window_bounds = array<i64: 8, 16>}, {pipeline_mode = #tpu.pipeline_mode<synchronous>, transform_indices = @transform_33, window_bounds = array<i64: 4, 8>}, {pipeline_mode = #tpu.pipeline_mode<synchronous>, transform_indices = @transform_34, window_bounds = array<i64: 64, 64>}, {pipeline_mode = #tpu.pipeline_mode<synchronous>, transform_indices = @transform_35, window_bounds = array<i64: 64, 2048>}, {pipeline_mode = #tpu.pipeline_mode<synchronous>, transform_indices = @transform_36, window_bounds = array<i64: 1, 2048>}, {transform_indices = @transform_37, window_bounds = array<i64: 1, 2, 2048>}]} {
    %c0 = arith.constant 0 : index
    %c0_0 = arith.constant 0 : index
    %0 = vector.load %arg1[%c0, %c0_0] : memref<128x48xf32, #tpu.memory_space<vmem>>, vector<128x48xf32>
    %c0_1 = arith.constant 0 : index
    %c0_2 = arith.constant 0 : index
    %c0_3 = arith.constant 0 : index
    %1 = vector.load %arg2[%c0_1, %c0_2, %c0_3] : memref<2x48x64xf32, #tpu.memory_space<vmem>>, vector<1x48x64xf32>
    %2 = vector.shape_cast %1 : vector<1x48x64xf32> to vector<48x64xf32>
    %cst = arith.constant dense<0.000000e+00> : vector<128x64xf32>
    %3 = tpu.matmul %0, %2, %cst {dimension_numbers = #tpu.dot_dimension_numbers<[1], [0], [0], [1], [0, 0, 1, 1], [], []>} : vector<128x48xf32>, vector<48x64xf32>, vector<128x64xf32> -> vector<128x64xf32>
    %c1 = arith.constant 1 : index
    %c0_4 = arith.constant 0 : index
    %c0_5 = arith.constant 0 : index
    %4 = vector.load %arg2[%c1, %c0_4, %c0_5] : memref<2x48x64xf32, #tpu.memory_space<vmem>>, vector<1x48x64xf32>
    %5 = vector.shape_cast %4 : vector<1x48x64xf32> to vector<48x64xf32>
    %cst_6 = arith.constant dense<0.000000e+00> : vector<128x64xf32>
    %6 = tpu.matmul %0, %5, %cst_6 {dimension_numbers = #tpu.dot_dimension_numbers<[1], [0], [0], [1], [0, 0, 1, 1], [], []>} : vector<128x48xf32>, vector<48x64xf32>, vector<128x64xf32> -> vector<128x64xf32>
    %7 = arith.mulf %3, %3 : vector<128x64xf32>
    %8 = arith.mulf %6, %6 : vector<128x64xf32>
    %9 = arith.addf %7, %8 : vector<128x64xf32>
    %c0_7 = arith.constant 0 : index
    %c0_8 = arith.constant 0 : index
    %10 = vector.load %arg3[%c0_7, %c0_8] : memref<64x32xf32, #tpu.memory_space<vmem>>, vector<64x32xf32>
    %cst_9 = arith.constant dense<0.000000e+00> : vector<128x32xf32>
    %11 = tpu.matmul %9, %10, %cst_9 {dimension_numbers = #tpu.dot_dimension_numbers<[1], [0], [0], [1], [0, 0, 1, 1], [], []>} : vector<128x64xf32>, vector<64x32xf32>, vector<128x32xf32> -> vector<128x32xf32>
    %cst_10 = arith.constant 1.000000e-10 : f32
    %12 = vector.broadcast %cst_10 : f32 to vector<128x32xf32>
    %13 = arith.maximumf %11, %12 : vector<128x32xf32>
    %14 = math.log %13 : vector<128x32xf32>
    %cst_11 = arith.constant 0.434294492 : f32
    %15 = vector.broadcast %cst_11 : f32 to vector<128x32xf32>
    %16 = arith.mulf %14, %15 : vector<128x32xf32>
    %cst_12 = arith.constant 1.000000e+01 : f32
    %17 = vector.broadcast %cst_12 : f32 to vector<128x32xf32>
    %18 = arith.mulf %17, %16 : vector<128x32xf32>
    %c0_13 = arith.constant 0 : index
    %c0_14 = arith.constant 0 : index
    %19 = vector.load %arg4[%c0_13, %c0_14] : memref<1x32xf32, #tpu.memory_space<vmem>>, vector<1x32xf32>
    %20 = vector.broadcast %19 : vector<1x32xf32> to vector<128x32xf32>
    %21 = arith.mulf %18, %20 : vector<128x32xf32>
    %c0_15 = arith.constant 0 : index
    %c0_16 = arith.constant 0 : index
    %22 = vector.load %arg5[%c0_15, %c0_16] : memref<1x32xf32, #tpu.memory_space<vmem>>, vector<1x32xf32>
    %23 = vector.broadcast %22 : vector<1x32xf32> to vector<128x32xf32>
    %24 = arith.addf %21, %23 : vector<128x32xf32>
    %25 = arith.truncf %24 : vector<128x32xf32> to vector<128x32xbf16>
    %c17 = arith.constant 17 : index
    %c0_17 = arith.constant 0 : index
    %26 = vector.load %arg39[%c17, %c0_17] : memref<160x768xbf16, #tpu.memory_space<vmem>>, vector<128x32xbf16>
    tpu.vector_store %arg39[%c17, %c0_17], %25 {strides = array<i32>} : memref<160x768xbf16, #tpu.memory_space<vmem>>, vector<128x32xbf16>,
    %c16 = arith.constant 16 : index
    %c32 = arith.constant 32 : index
    %27 = vector.load %arg39[%c16, %c32] : memref<160x768xbf16, #tpu.memory_space<vmem>>, vector<128x32xbf16>
    tpu.vector_store %arg39[%c16, %c32], %25 {strides = array<i32>} : memref<160x768xbf16, #tpu.memory_space<vmem>>, vector<128x32xbf16>,
    %c15 = arith.constant 15 : index
    %c64 = arith.constant 64 : index
    %28 = vector.load %arg39[%c15, %c64] : memref<160x768xbf16, #tpu.memory_space<vmem>>, vector<128x32xbf16>
    tpu.vector_store %arg39[%c15, %c64], %25 {strides = array<i32>} : memref<160x768xbf16, #tpu.memory_space<vmem>>, vector<128x32xbf16>,
    %cst_18 = arith.constant 0.000000e+00 : bf16
    %29 = vector.broadcast %cst_18 : bf16 to vector<1x32xbf16>
    %c16_19 = arith.constant 16 : index
    %c0_20 = arith.constant 0 : index
    %30 = vector.load %arg39[%c16_19, %c0_20] : memref<160x768xbf16, #tpu.memory_space<vmem>>, vector<1x32xbf16>
    tpu.vector_store %arg39[%c16_19, %c0_20], %29 {strides = array<i32>} : memref<160x768xbf16, #tpu.memory_space<vmem>>, vector<1x32xbf16>,
    %c79 = arith.constant 79 : index
    %c64_21 = arith.constant 64 : index
    %31 = vector.load %arg39[%c79, %c64_21] : memref<160x768xbf16, #tpu.memory_space<vmem>>, vector<1x32xbf16>
    tpu.vector_store %arg39[%c79, %c64_21], %29 {strides = array<i32>} : memref<160x768xbf16, #tpu.memory_space<vmem>>, vector<1x32xbf16>,
    %c80 = arith.constant 80 : index
    %c0_22 = arith.constant 0 : index
    %32 = vector.load %arg39[%c80, %c0_22] : memref<160x768xbf16, #tpu.memory_space<vmem>>, vector<1x32xbf16>
    tpu.vector_store %arg39[%c80, %c0_22], %29 {strides = array<i32>} : memref<160x768xbf16, #tpu.memory_space<vmem>>, vector<1x32xbf16>,
    %c143 = arith.constant 143 : index
    %c64_23 = arith.constant 64 : index
    %33 = vector.load %arg39[%c143, %c64_23] : memref<160x768xbf16, #tpu.memory_space<vmem>>, vector<1x32xbf16>
    tpu.vector_store %arg39[%c143, %c64_23], %29 {strides = array<i32>} : memref<160x768xbf16, #tpu.memory_space<vmem>>, vector<1x32xbf16>,
    %c16_24 = arith.constant 16 : index
    %c0_25 = arith.constant 0 : index
    %34 = vector.load %arg39[%c16_24, %c0_25] : memref<160x768xbf16, #tpu.memory_space<vmem>>, vector<128x96xbf16>
    %c0_26 = arith.constant 0 : index
    %c0_27 = arith.constant 0 : index
    %35 = vector.load %arg6[%c0_26, %c0_27] : memref<96x256xbf16, #tpu.memory_space<vmem>>, vector<96x256xbf16>
    %cst_28 = arith.constant dense<0.000000e+00> : vector<128x256xf32>
    %36 = tpu.matmul %34, %35, %cst_28 {dimension_numbers = #tpu.dot_dimension_numbers<[1], [0], [0], [1], [0, 0, 1, 1], [], []>} : vector<128x96xbf16>, vector<96x256xbf16>, vector<128x256xf32> -> vector<128x256xf32>
    %c0_29 = arith.constant 0 : index
    %c0_30 = arith.constant 0 : index
    %37 = vector.load %arg7[%c0_29, %c0_30] : memref<1x256xf32, #tpu.memory_space<vmem>>, vector<1x256xf32>
    %38 = vector.broadcast %37 : vector<1x256xf32> to vector<128x256xf32>
    %39 = arith.addf %36, %38 : vector<128x256xf32>
    %cst_31 = arith.constant 0.000000e+00 : f32
    %40 = vector.broadcast %cst_31 : f32 to vector<128x256xf32>
    %41 = arith.maximumf %39, %40 : vector<128x256xf32>
    %42 = arith.truncf %41 : vector<128x256xf32> to vector<128x256xbf16>
    %c17_32 = arith.constant 17 : index
    %c0_33 = arith.constant 0 : index
    %43 = vector.load %arg39[%c17_32, %c0_33] : memref<160x768xbf16, #tpu.memory_space<vmem>>, vector<128x256xbf16>
    tpu.vector_store %arg39[%c17_32, %c0_33], %42 {strides = array<i32>} : memref<160x768xbf16, #tpu.memory_space<vmem>>, vector<128x256xbf16>,
    %c16_34 = arith.constant 16 : index
    %c256 = arith.constant 256 : index
    %44 = vector.load %arg39[%c16_34, %c256] : memref<160x768xbf16, #tpu.memory_space<vmem>>, vector<128x256xbf16>
    tpu.vector_store %arg39[%c16_34, %c256], %42 {strides = array<i32>} : memref<160x768xbf16, #tpu.memory_space<vmem>>, vector<128x256xbf16>,
    %c15_35 = arith.constant 15 : index
    %c512 = arith.constant 512 : index
    %45 = vector.load %arg39[%c15_35, %c512] : memref<160x768xbf16, #tpu.memory_space<vmem>>, vector<128x256xbf16>
    tpu.vector_store %arg39[%c15_35, %c512], %42 {strides = array<i32>} : memref<160x768xbf16, #tpu.memory_space<vmem>>, vector<128x256xbf16>,
    %cst_36 = arith.constant 0.000000e+00 : bf16
    %46 = vector.broadcast %cst_36 : bf16 to vector<1x256xbf16>
    %c16_37 = arith.constant 16 : index
    %c0_38 = arith.constant 0 : index
    %47 = vector.load %arg39[%c16_37, %c0_38] : memref<160x768xbf16, #tpu.memory_space<vmem>>, vector<1x256xbf16>
    tpu.vector_store %arg39[%c16_37, %c0_38], %46 {strides = array<i32>} : memref<160x768xbf16, #tpu.memory_space<vmem>>, vector<1x256xbf16>,
    %c79_39 = arith.constant 79 : index
    %c512_40 = arith.constant 512 : index
    %48 = vector.load %arg39[%c79_39, %c512_40] : memref<160x768xbf16, #tpu.memory_space<vmem>>, vector<1x256xbf16>
    tpu.vector_store %arg39[%c79_39, %c512_40], %46 {strides = array<i32>} : memref<160x768xbf16, #tpu.memory_space<vmem>>, vector<1x256xbf16>,
    %c80_41 = arith.constant 80 : index
    %c0_42 = arith.constant 0 : index
    %49 = vector.load %arg39[%c80_41, %c0_42] : memref<160x768xbf16, #tpu.memory_space<vmem>>, vector<1x256xbf16>
    tpu.vector_store %arg39[%c80_41, %c0_42], %46 {strides = array<i32>} : memref<160x768xbf16, #tpu.memory_space<vmem>>, vector<1x256xbf16>,
    %c143_43 = arith.constant 143 : index
    %c512_44 = arith.constant 512 : index
    %50 = vector.load %arg39[%c143_43, %c512_44] : memref<160x768xbf16, #tpu.memory_space<vmem>>, vector<1x256xbf16>
    tpu.vector_store %arg39[%c143_43, %c512_44], %46 {strides = array<i32>} : memref<160x768xbf16, #tpu.memory_space<vmem>>, vector<1x256xbf16>,
    %c16_45 = arith.constant 16 : index
    %c0_46 = arith.constant 0 : index
    %51 = vector.load %arg39[%c16_45, %c0_46] : memref<160x768xbf16, #tpu.memory_space<vmem>>, vector<128x768xbf16>
    %c0_47 = arith.constant 0 : index
    %c0_48 = arith.constant 0 : index
    %52 = vector.load %arg8[%c0_47, %c0_48] : memref<768x256xbf16, #tpu.memory_space<vmem>>, vector<768x256xbf16>
    %cst_49 = arith.constant dense<0.000000e+00> : vector<128x256xf32>
    %53 = tpu.matmul %51, %52, %cst_49 {dimension_numbers = #tpu.dot_dimension_numbers<[1], [0], [0], [1], [0, 0, 1, 1], [], []>} : vector<128x768xbf16>, vector<768x256xbf16>, vector<128x256xf32> -> vector<128x256xf32>
    %c0_50 = arith.constant 0 : index
    %c0_51 = arith.constant 0 : index
    %54 = vector.load %arg9[%c0_50, %c0_51] : memref<1x256xf32, #tpu.memory_space<vmem>>, vector<1x256xf32>
    %55 = vector.broadcast %54 : vector<1x256xf32> to vector<128x256xf32>
    %56 = arith.addf %53, %55 : vector<128x256xf32>
    %cst_52 = arith.constant 0.000000e+00 : f32
    %57 = vector.broadcast %cst_52 : f32 to vector<128x256xf32>
    %58 = arith.maximumf %56, %57 : vector<128x256xf32>
    %c0_53 = arith.constant 0 : index
    %c0_54 = arith.constant 0 : index
    %59 = vector.load %arg30[%c0_53, %c0_54] : memref<64x128xf32, #tpu.memory_space<vmem>>, vector<64x128xf32>
    %cst_55 = arith.constant dense<0.000000e+00> : vector<64x256xf32>
    %60 = tpu.matmul %59, %58, %cst_55 {dimension_numbers = #tpu.dot_dimension_numbers<[1], [0], [0], [1], [0, 0, 1, 1], [], []>} : vector<64x128xf32>, vector<128x256xf32>, vector<64x256xf32> -> vector<64x256xf32>
    %61 = arith.truncf %60 : vector<64x256xf32> to vector<64x256xbf16>
    %c17_56 = arith.constant 17 : index
    %c0_57 = arith.constant 0 : index
    %62 = vector.load %arg39[%c17_56, %c0_57] : memref<160x768xbf16, #tpu.memory_space<vmem>>, vector<64x256xbf16>
    tpu.vector_store %arg39[%c17_56, %c0_57], %61 {strides = array<i32>} : memref<160x768xbf16, #tpu.memory_space<vmem>>, vector<64x256xbf16>,
    %c16_58 = arith.constant 16 : index
    %c256_59 = arith.constant 256 : index
    %63 = vector.load %arg39[%c16_58, %c256_59] : memref<160x768xbf16, #tpu.memory_space<vmem>>, vector<64x256xbf16>
    tpu.vector_store %arg39[%c16_58, %c256_59], %61 {strides = array<i32>} : memref<160x768xbf16, #tpu.memory_space<vmem>>, vector<64x256xbf16>,
    %c15_60 = arith.constant 15 : index
    %c512_61 = arith.constant 512 : index
    %64 = vector.load %arg39[%c15_60, %c512_61] : memref<160x768xbf16, #tpu.memory_space<vmem>>, vector<64x256xbf16>
    tpu.vector_store %arg39[%c15_60, %c512_61], %61 {strides = array<i32>} : memref<160x768xbf16, #tpu.memory_space<vmem>>, vector<64x256xbf16>,
    %cst_62 = arith.constant 0.000000e+00 : bf16
    %65 = vector.broadcast %cst_62 : bf16 to vector<1x256xbf16>
    %c16_63 = arith.constant 16 : index
    %c0_64 = arith.constant 0 : index
    %66 = vector.load %arg39[%c16_63, %c0_64] : memref<160x768xbf16, #tpu.memory_space<vmem>>, vector<1x256xbf16>
    tpu.vector_store %arg39[%c16_63, %c0_64], %65 {strides = array<i32>} : memref<160x768xbf16, #tpu.memory_space<vmem>>, vector<1x256xbf16>,
    %c47 = arith.constant 47 : index
    %c512_65 = arith.constant 512 : index
    %67 = vector.load %arg39[%c47, %c512_65] : memref<160x768xbf16, #tpu.memory_space<vmem>>, vector<1x256xbf16>
    tpu.vector_store %arg39[%c47, %c512_65], %65 {strides = array<i32>} : memref<160x768xbf16, #tpu.memory_space<vmem>>, vector<1x256xbf16>,
    %c48 = arith.constant 48 : index
    %c0_66 = arith.constant 0 : index
    %68 = vector.load %arg39[%c48, %c0_66] : memref<160x768xbf16, #tpu.memory_space<vmem>>, vector<1x256xbf16>
    tpu.vector_store %arg39[%c48, %c0_66], %65 {strides = array<i32>} : memref<160x768xbf16, #tpu.memory_space<vmem>>, vector<1x256xbf16>,
    %c79_67 = arith.constant 79 : index
    %c512_68 = arith.constant 512 : index
    %69 = vector.load %arg39[%c79_67, %c512_68] : memref<160x768xbf16, #tpu.memory_space<vmem>>, vector<1x256xbf16>
    tpu.vector_store %arg39[%c79_67, %c512_68], %65 {strides = array<i32>} : memref<160x768xbf16, #tpu.memory_space<vmem>>, vector<1x256xbf16>,
    %c16_69 = arith.constant 16 : index
    %c0_70 = arith.constant 0 : index
    %70 = vector.load %arg39[%c16_69, %c0_70] : memref<160x768xbf16, #tpu.memory_space<vmem>>, vector<64x768xbf16>
    %c0_71 = arith.constant 0 : index
    %c0_72 = arith.constant 0 : index
    %71 = vector.load %arg10[%c0_71, %c0_72] : memref<768x256xbf16, #tpu.memory_space<vmem>>, vector<768x256xbf16>
    %cst_73 = arith.constant dense<0.000000e+00> : vector<64x256xf32>
    %72 = tpu.matmul %70, %71, %cst_73 {dimension_numbers = #tpu.dot_dimension_numbers<[1], [0], [0], [1], [0, 0, 1, 1], [], []>} : vector<64x768xbf16>, vector<768x256xbf16>, vector<64x256xf32> -> vector<64x256xf32>
    %c0_74 = arith.constant 0 : index
    %c0_75 = arith.constant 0 : index
    %73 = vector.load %arg11[%c0_74, %c0_75] : memref<1x256xf32, #tpu.memory_space<vmem>>, vector<1x256xf32>
    %74 = vector.broadcast %73 : vector<1x256xf32> to vector<64x256xf32>
    %75 = arith.addf %72, %74 : vector<64x256xf32>
    %cst_76 = arith.constant 0.000000e+00 : f32
    %76 = vector.broadcast %cst_76 : f32 to vector<64x256xf32>
    %77 = arith.maximumf %75, %76 : vector<64x256xf32>
    %78 = arith.truncf %77 : vector<64x256xf32> to vector<64x256xbf16>
    %c17_77 = arith.constant 17 : index
    %c0_78 = arith.constant 0 : index
    %79 = vector.load %arg39[%c17_77, %c0_78] : memref<160x768xbf16, #tpu.memory_space<vmem>>, vector<64x256xbf16>
    tpu.vector_store %arg39[%c17_77, %c0_78], %78 {strides = array<i32>} : memref<160x768xbf16, #tpu.memory_space<vmem>>, vector<64x256xbf16>,
    %c16_79 = arith.constant 16 : index
    %c256_80 = arith.constant 256 : index
    %80 = vector.load %arg39[%c16_79, %c256_80] : memref<160x768xbf16, #tpu.memory_space<vmem>>, vector<64x256xbf16>
    tpu.vector_store %arg39[%c16_79, %c256_80], %78 {strides = array<i32>} : memref<160x768xbf16, #tpu.memory_space<vmem>>, vector<64x256xbf16>,
    %c15_81 = arith.constant 15 : index
    %c512_82 = arith.constant 512 : index
    %81 = vector.load %arg39[%c15_81, %c512_82] : memref<160x768xbf16, #tpu.memory_space<vmem>>, vector<64x256xbf16>
    tpu.vector_store %arg39[%c15_81, %c512_82], %78 {strides = array<i32>} : memref<160x768xbf16, #tpu.memory_space<vmem>>, vector<64x256xbf16>,
    %cst_83 = arith.constant 0.000000e+00 : bf16
    %82 = vector.broadcast %cst_83 : bf16 to vector<1x256xbf16>
    %c16_84 = arith.constant 16 : index
    %c0_85 = arith.constant 0 : index
    %83 = vector.load %arg39[%c16_84, %c0_85] : memref<160x768xbf16, #tpu.memory_space<vmem>>, vector<1x256xbf16>
    tpu.vector_store %arg39[%c16_84, %c0_85], %82 {strides = array<i32>} : memref<160x768xbf16, #tpu.memory_space<vmem>>, vector<1x256xbf16>,
    %c47_86 = arith.constant 47 : index
    %c512_87 = arith.constant 512 : index
    %84 = vector.load %arg39[%c47_86, %c512_87] : memref<160x768xbf16, #tpu.memory_space<vmem>>, vector<1x256xbf16>
    tpu.vector_store %arg39[%c47_86, %c512_87], %82 {strides = array<i32>} : memref<160x768xbf16, #tpu.memory_space<vmem>>, vector<1x256xbf16>,
    %c48_88 = arith.constant 48 : index
    %c0_89 = arith.constant 0 : index
    %85 = vector.load %arg39[%c48_88, %c0_89] : memref<160x768xbf16, #tpu.memory_space<vmem>>, vector<1x256xbf16>
    tpu.vector_store %arg39[%c48_88, %c0_89], %82 {strides = array<i32>} : memref<160x768xbf16, #tpu.memory_space<vmem>>, vector<1x256xbf16>,
    %c79_90 = arith.constant 79 : index
    %c512_91 = arith.constant 512 : index
    %86 = vector.load %arg39[%c79_90, %c512_91] : memref<160x768xbf16, #tpu.memory_space<vmem>>, vector<1x256xbf16>
    tpu.vector_store %arg39[%c79_90, %c512_91], %82 {strides = array<i32>} : memref<160x768xbf16, #tpu.memory_space<vmem>>, vector<1x256xbf16>,
    %c16_92 = arith.constant 16 : index
    %c0_93 = arith.constant 0 : index
    %87 = vector.load %arg39[%c16_92, %c0_93] : memref<160x768xbf16, #tpu.memory_space<vmem>>, vector<64x768xbf16>
    %c0_94 = arith.constant 0 : index
    %c0_95 = arith.constant 0 : index
    %88 = vector.load %arg12[%c0_94, %c0_95] : memref<768x256xbf16, #tpu.memory_space<vmem>>, vector<768x256xbf16>
    %cst_96 = arith.constant dense<0.000000e+00> : vector<64x256xf32>
    %89 = tpu.matmul %87, %88, %cst_96 {dimension_numbers = #tpu.dot_dimension_numbers<[1], [0], [0], [1], [0, 0, 1, 1], [], []>} : vector<64x768xbf16>, vector<768x256xbf16>, vector<64x256xf32> -> vector<64x256xf32>
    %c0_97 = arith.constant 0 : index
    %c0_98 = arith.constant 0 : index
    %90 = vector.load %arg13[%c0_97, %c0_98] : memref<1x256xf32, #tpu.memory_space<vmem>>, vector<1x256xf32>
    %91 = vector.broadcast %90 : vector<1x256xf32> to vector<64x256xf32>
    %92 = arith.addf %89, %91 : vector<64x256xf32>
    %cst_99 = arith.constant 0.000000e+00 : f32
    %93 = vector.broadcast %cst_99 : f32 to vector<64x256xf32>
    %94 = arith.maximumf %92, %93 : vector<64x256xf32>
    %c0_100 = arith.constant 0 : index
    %c0_101 = arith.constant 0 : index
    %95 = vector.load %arg31[%c0_100, %c0_101] : memref<32x64xf32, #tpu.memory_space<vmem>>, vector<32x64xf32>
    %cst_102 = arith.constant dense<0.000000e+00> : vector<32x256xf32>
    %96 = tpu.matmul %95, %94, %cst_102 {dimension_numbers = #tpu.dot_dimension_numbers<[1], [0], [0], [1], [0, 0, 1, 1], [], []>} : vector<32x64xf32>, vector<64x256xf32>, vector<32x256xf32> -> vector<32x256xf32>
    %97 = arith.truncf %96 : vector<32x256xf32> to vector<32x256xbf16>
    %c17_103 = arith.constant 17 : index
    %c0_104 = arith.constant 0 : index
    %98 = vector.load %arg39[%c17_103, %c0_104] : memref<160x768xbf16, #tpu.memory_space<vmem>>, vector<32x256xbf16>
    tpu.vector_store %arg39[%c17_103, %c0_104], %97 {strides = array<i32>} : memref<160x768xbf16, #tpu.memory_space<vmem>>, vector<32x256xbf16>,
    %c16_105 = arith.constant 16 : index
    %c256_106 = arith.constant 256 : index
    %99 = vector.load %arg39[%c16_105, %c256_106] : memref<160x768xbf16, #tpu.memory_space<vmem>>, vector<32x256xbf16>
    tpu.vector_store %arg39[%c16_105, %c256_106], %97 {strides = array<i32>} : memref<160x768xbf16, #tpu.memory_space<vmem>>, vector<32x256xbf16>,
    %c15_107 = arith.constant 15 : index
    %c512_108 = arith.constant 512 : index
    %100 = vector.load %arg39[%c15_107, %c512_108] : memref<160x768xbf16, #tpu.memory_space<vmem>>, vector<32x256xbf16>
    tpu.vector_store %arg39[%c15_107, %c512_108], %97 {strides = array<i32>} : memref<160x768xbf16, #tpu.memory_space<vmem>>, vector<32x256xbf16>,
    %cst_109 = arith.constant 0.000000e+00 : bf16
    %101 = vector.broadcast %cst_109 : bf16 to vector<1x256xbf16>
    %c16_110 = arith.constant 16 : index
    %c0_111 = arith.constant 0 : index
    %102 = vector.load %arg39[%c16_110, %c0_111] : memref<160x768xbf16, #tpu.memory_space<vmem>>, vector<1x256xbf16>
    tpu.vector_store %arg39[%c16_110, %c0_111], %101 {strides = array<i32>} : memref<160x768xbf16, #tpu.memory_space<vmem>>, vector<1x256xbf16>,
    %c31 = arith.constant 31 : index
    %c512_112 = arith.constant 512 : index
    %103 = vector.load %arg39[%c31, %c512_112] : memref<160x768xbf16, #tpu.memory_space<vmem>>, vector<1x256xbf16>
    tpu.vector_store %arg39[%c31, %c512_112], %101 {strides = array<i32>} : memref<160x768xbf16, #tpu.memory_space<vmem>>, vector<1x256xbf16>,
    %c32_113 = arith.constant 32 : index
    %c0_114 = arith.constant 0 : index
    %104 = vector.load %arg39[%c32_113, %c0_114] : memref<160x768xbf16, #tpu.memory_space<vmem>>, vector<1x256xbf16>
    tpu.vector_store %arg39[%c32_113, %c0_114], %101 {strides = array<i32>} : memref<160x768xbf16, #tpu.memory_space<vmem>>, vector<1x256xbf16>,
    %c47_115 = arith.constant 47 : index
    %c512_116 = arith.constant 512 : index
    %105 = vector.load %arg39[%c47_115, %c512_116] : memref<160x768xbf16, #tpu.memory_space<vmem>>, vector<1x256xbf16>
    tpu.vector_store %arg39[%c47_115, %c512_116], %101 {strides = array<i32>} : memref<160x768xbf16, #tpu.memory_space<vmem>>, vector<1x256xbf16>,
    %c16_117 = arith.constant 16 : index
    %c0_118 = arith.constant 0 : index
    %106 = vector.load %arg39[%c16_117, %c0_118] : memref<160x768xbf16, #tpu.memory_space<vmem>>, vector<32x768xbf16>
    %c0_119 = arith.constant 0 : index
    %c0_120 = arith.constant 0 : index
    %107 = vector.load %arg14[%c0_119, %c0_120] : memref<768x128xbf16, #tpu.memory_space<vmem>>, vector<768x128xbf16>
    %cst_121 = arith.constant dense<0.000000e+00> : vector<32x128xf32>
    %108 = tpu.matmul %106, %107, %cst_121 {dimension_numbers = #tpu.dot_dimension_numbers<[1], [0], [0], [1], [0, 0, 1, 1], [], []>} : vector<32x768xbf16>, vector<768x128xbf16>, vector<32x128xf32> -> vector<32x128xf32>
    %c0_122 = arith.constant 0 : index
    %c0_123 = arith.constant 0 : index
    %109 = vector.load %arg15[%c0_122, %c0_123] : memref<1x128xf32, #tpu.memory_space<vmem>>, vector<1x128xf32>
    %110 = vector.broadcast %109 : vector<1x128xf32> to vector<32x128xf32>
    %111 = arith.addf %108, %110 : vector<32x128xf32>
    %cst_124 = arith.constant 0.000000e+00 : f32
    %112 = vector.broadcast %cst_124 : f32 to vector<32x128xf32>
    %113 = arith.maximumf %111, %112 : vector<32x128xf32>
    %114 = arith.truncf %113 : vector<32x128xf32> to vector<32x128xbf16>
    %c17_125 = arith.constant 17 : index
    %c0_126 = arith.constant 0 : index
    %115 = vector.load %arg39[%c17_125, %c0_126] : memref<160x768xbf16, #tpu.memory_space<vmem>>, vector<32x128xbf16>
    tpu.vector_store %arg39[%c17_125, %c0_126], %114 {strides = array<i32>} : memref<160x768xbf16, #tpu.memory_space<vmem>>, vector<32x128xbf16>,
    %c16_127 = arith.constant 16 : index
    %c128 = arith.constant 128 : index
    %116 = vector.load %arg39[%c16_127, %c128] : memref<160x768xbf16, #tpu.memory_space<vmem>>, vector<32x128xbf16>
    tpu.vector_store %arg39[%c16_127, %c128], %114 {strides = array<i32>} : memref<160x768xbf16, #tpu.memory_space<vmem>>, vector<32x128xbf16>,
    %c15_128 = arith.constant 15 : index
    %c256_129 = arith.constant 256 : index
    %117 = vector.load %arg39[%c15_128, %c256_129] : memref<160x768xbf16, #tpu.memory_space<vmem>>, vector<32x128xbf16>
    tpu.vector_store %arg39[%c15_128, %c256_129], %114 {strides = array<i32>} : memref<160x768xbf16, #tpu.memory_space<vmem>>, vector<32x128xbf16>,
    %cst_130 = arith.constant 0.000000e+00 : bf16
    %118 = vector.broadcast %cst_130 : bf16 to vector<1x128xbf16>
    %c16_131 = arith.constant 16 : index
    %c0_132 = arith.constant 0 : index
    %119 = vector.load %arg39[%c16_131, %c0_132] : memref<160x768xbf16, #tpu.memory_space<vmem>>, vector<1x128xbf16>
    tpu.vector_store %arg39[%c16_131, %c0_132], %118 {strides = array<i32>} : memref<160x768xbf16, #tpu.memory_space<vmem>>, vector<1x128xbf16>,
    %c31_133 = arith.constant 31 : index
    %c256_134 = arith.constant 256 : index
    %120 = vector.load %arg39[%c31_133, %c256_134] : memref<160x768xbf16, #tpu.memory_space<vmem>>, vector<1x128xbf16>
    tpu.vector_store %arg39[%c31_133, %c256_134], %118 {strides = array<i32>} : memref<160x768xbf16, #tpu.memory_space<vmem>>, vector<1x128xbf16>,
    %c32_135 = arith.constant 32 : index
    %c0_136 = arith.constant 0 : index
    %121 = vector.load %arg39[%c32_135, %c0_136] : memref<160x768xbf16, #tpu.memory_space<vmem>>, vector<1x128xbf16>
    tpu.vector_store %arg39[%c32_135, %c0_136], %118 {strides = array<i32>} : memref<160x768xbf16, #tpu.memory_space<vmem>>, vector<1x128xbf16>,
    %c47_137 = arith.constant 47 : index
    %c256_138 = arith.constant 256 : index
    %122 = vector.load %arg39[%c47_137, %c256_138] : memref<160x768xbf16, #tpu.memory_space<vmem>>, vector<1x128xbf16>
    tpu.vector_store %arg39[%c47_137, %c256_138], %118 {strides = array<i32>} : memref<160x768xbf16, #tpu.memory_space<vmem>>, vector<1x128xbf16>,
    %c16_139 = arith.constant 16 : index
    %c0_140 = arith.constant 0 : index
    %123 = vector.load %arg39[%c16_139, %c0_140] : memref<160x768xbf16, #tpu.memory_space<vmem>>, vector<32x384xbf16>
    %c0_141 = arith.constant 0 : index
    %c0_142 = arith.constant 0 : index
    %124 = vector.load %arg16[%c0_141, %c0_142] : memref<384x128xbf16, #tpu.memory_space<vmem>>, vector<384x128xbf16>
    %cst_143 = arith.constant dense<0.000000e+00> : vector<32x128xf32>
    %125 = tpu.matmul %123, %124, %cst_143 {dimension_numbers = #tpu.dot_dimension_numbers<[1], [0], [0], [1], [0, 0, 1, 1], [], []>} : vector<32x384xbf16>, vector<384x128xbf16>, vector<32x128xf32> -> vector<32x128xf32>
    %c0_144 = arith.constant 0 : index
    %c0_145 = arith.constant 0 : index
    %126 = vector.load %arg17[%c0_144, %c0_145] : memref<1x128xf32, #tpu.memory_space<vmem>>, vector<1x128xf32>
    %127 = vector.broadcast %126 : vector<1x128xf32> to vector<32x128xf32>
    %128 = arith.addf %125, %127 : vector<32x128xf32>
    %cst_146 = arith.constant 0.000000e+00 : f32
    %129 = vector.broadcast %cst_146 : f32 to vector<32x128xf32>
    %130 = arith.maximumf %128, %129 : vector<32x128xf32>
    %c0_147 = arith.constant 0 : index
    %c0_148 = arith.constant 0 : index
    %131 = vector.load %arg32[%c0_147, %c0_148] : memref<16x32xf32, #tpu.memory_space<vmem>>, vector<16x32xf32>
    %cst_149 = arith.constant dense<0.000000e+00> : vector<16x128xf32>
    %132 = tpu.matmul %131, %130, %cst_149 {dimension_numbers = #tpu.dot_dimension_numbers<[1], [0], [0], [1], [0, 0, 1, 1], [], []>} : vector<16x32xf32>, vector<32x128xf32>, vector<16x128xf32> -> vector<16x128xf32>
    %133 = arith.truncf %132 : vector<16x128xf32> to vector<16x128xbf16>
    %c17_150 = arith.constant 17 : index
    %c0_151 = arith.constant 0 : index
    %134 = vector.load %arg39[%c17_150, %c0_151] : memref<160x768xbf16, #tpu.memory_space<vmem>>, vector<16x128xbf16>
    tpu.vector_store %arg39[%c17_150, %c0_151], %133 {strides = array<i32>} : memref<160x768xbf16, #tpu.memory_space<vmem>>, vector<16x128xbf16>,
    %c16_152 = arith.constant 16 : index
    %c128_153 = arith.constant 128 : index
    %135 = vector.load %arg39[%c16_152, %c128_153] : memref<160x768xbf16, #tpu.memory_space<vmem>>, vector<16x128xbf16>
    tpu.vector_store %arg39[%c16_152, %c128_153], %133 {strides = array<i32>} : memref<160x768xbf16, #tpu.memory_space<vmem>>, vector<16x128xbf16>,
    %c15_154 = arith.constant 15 : index
    %c256_155 = arith.constant 256 : index
    %136 = vector.load %arg39[%c15_154, %c256_155] : memref<160x768xbf16, #tpu.memory_space<vmem>>, vector<16x128xbf16>
    tpu.vector_store %arg39[%c15_154, %c256_155], %133 {strides = array<i32>} : memref<160x768xbf16, #tpu.memory_space<vmem>>, vector<16x128xbf16>,
    %cst_156 = arith.constant 0.000000e+00 : bf16
    %137 = vector.broadcast %cst_156 : bf16 to vector<1x128xbf16>
    %c16_157 = arith.constant 16 : index
    %c0_158 = arith.constant 0 : index
    %138 = vector.load %arg39[%c16_157, %c0_158] : memref<160x768xbf16, #tpu.memory_space<vmem>>, vector<1x128xbf16>
    tpu.vector_store %arg39[%c16_157, %c0_158], %137 {strides = array<i32>} : memref<160x768xbf16, #tpu.memory_space<vmem>>, vector<1x128xbf16>,
    %c23 = arith.constant 23 : index
    %c256_159 = arith.constant 256 : index
    %139 = vector.load %arg39[%c23, %c256_159] : memref<160x768xbf16, #tpu.memory_space<vmem>>, vector<1x128xbf16>
    tpu.vector_store %arg39[%c23, %c256_159], %137 {strides = array<i32>} : memref<160x768xbf16, #tpu.memory_space<vmem>>, vector<1x128xbf16>,
    %c24 = arith.constant 24 : index
    %c0_160 = arith.constant 0 : index
    %140 = vector.load %arg39[%c24, %c0_160] : memref<160x768xbf16, #tpu.memory_space<vmem>>, vector<1x128xbf16>
    tpu.vector_store %arg39[%c24, %c0_160], %137 {strides = array<i32>} : memref<160x768xbf16, #tpu.memory_space<vmem>>, vector<1x128xbf16>,
    %c31_161 = arith.constant 31 : index
    %c256_162 = arith.constant 256 : index
    %141 = vector.load %arg39[%c31_161, %c256_162] : memref<160x768xbf16, #tpu.memory_space<vmem>>, vector<1x128xbf16>
    tpu.vector_store %arg39[%c31_161, %c256_162], %137 {strides = array<i32>} : memref<160x768xbf16, #tpu.memory_space<vmem>>, vector<1x128xbf16>,
    %c16_163 = arith.constant 16 : index
    %c0_164 = arith.constant 0 : index
    %142 = vector.load %arg39[%c16_163, %c0_164] : memref<160x768xbf16, #tpu.memory_space<vmem>>, vector<16x384xbf16>
    %c0_165 = arith.constant 0 : index
    %c0_166 = arith.constant 0 : index
    %143 = vector.load %arg18[%c0_165, %c0_166] : memref<384x128xbf16, #tpu.memory_space<vmem>>, vector<384x128xbf16>
    %cst_167 = arith.constant dense<0.000000e+00> : vector<16x128xf32>
    %144 = tpu.matmul %142, %143, %cst_167 {dimension_numbers = #tpu.dot_dimension_numbers<[1], [0], [0], [1], [0, 0, 1, 1], [], []>} : vector<16x384xbf16>, vector<384x128xbf16>, vector<16x128xf32> -> vector<16x128xf32>
    %c0_168 = arith.constant 0 : index
    %c0_169 = arith.constant 0 : index
    %145 = vector.load %arg19[%c0_168, %c0_169] : memref<1x128xf32, #tpu.memory_space<vmem>>, vector<1x128xf32>
    %146 = vector.broadcast %145 : vector<1x128xf32> to vector<16x128xf32>
    %147 = arith.addf %144, %146 : vector<16x128xf32>
    %cst_170 = arith.constant 0.000000e+00 : f32
    %148 = vector.broadcast %cst_170 : f32 to vector<16x128xf32>
    %149 = arith.maximumf %147, %148 : vector<16x128xf32>
    %150 = arith.truncf %149 : vector<16x128xf32> to vector<16x128xbf16>
    %c17_171 = arith.constant 17 : index
    %c0_172 = arith.constant 0 : index
    %151 = vector.load %arg39[%c17_171, %c0_172] : memref<160x768xbf16, #tpu.memory_space<vmem>>, vector<16x128xbf16>
    tpu.vector_store %arg39[%c17_171, %c0_172], %150 {strides = array<i32>} : memref<160x768xbf16, #tpu.memory_space<vmem>>, vector<16x128xbf16>,
    %c16_173 = arith.constant 16 : index
    %c128_174 = arith.constant 128 : index
    %152 = vector.load %arg39[%c16_173, %c128_174] : memref<160x768xbf16, #tpu.memory_space<vmem>>, vector<16x128xbf16>
    tpu.vector_store %arg39[%c16_173, %c128_174], %150 {strides = array<i32>} : memref<160x768xbf16, #tpu.memory_space<vmem>>, vector<16x128xbf16>,
    %c15_175 = arith.constant 15 : index
    %c256_176 = arith.constant 256 : index
    %153 = vector.load %arg39[%c15_175, %c256_176] : memref<160x768xbf16, #tpu.memory_space<vmem>>, vector<16x128xbf16>
    tpu.vector_store %arg39[%c15_175, %c256_176], %150 {strides = array<i32>} : memref<160x768xbf16, #tpu.memory_space<vmem>>, vector<16x128xbf16>,
    %cst_177 = arith.constant 0.000000e+00 : bf16
    %154 = vector.broadcast %cst_177 : bf16 to vector<1x128xbf16>
    %c16_178 = arith.constant 16 : index
    %c0_179 = arith.constant 0 : index
    %155 = vector.load %arg39[%c16_178, %c0_179] : memref<160x768xbf16, #tpu.memory_space<vmem>>, vector<1x128xbf16>
    tpu.vector_store %arg39[%c16_178, %c0_179], %154 {strides = array<i32>} : memref<160x768xbf16, #tpu.memory_space<vmem>>, vector<1x128xbf16>,
    %c23_180 = arith.constant 23 : index
    %c256_181 = arith.constant 256 : index
    %156 = vector.load %arg39[%c23_180, %c256_181] : memref<160x768xbf16, #tpu.memory_space<vmem>>, vector<1x128xbf16>
    tpu.vector_store %arg39[%c23_180, %c256_181], %154 {strides = array<i32>} : memref<160x768xbf16, #tpu.memory_space<vmem>>, vector<1x128xbf16>,
    %c24_182 = arith.constant 24 : index
    %c0_183 = arith.constant 0 : index
    %157 = vector.load %arg39[%c24_182, %c0_183] : memref<160x768xbf16, #tpu.memory_space<vmem>>, vector<1x128xbf16>
    tpu.vector_store %arg39[%c24_182, %c0_183], %154 {strides = array<i32>} : memref<160x768xbf16, #tpu.memory_space<vmem>>, vector<1x128xbf16>,
    %c31_184 = arith.constant 31 : index
    %c256_185 = arith.constant 256 : index
    %158 = vector.load %arg39[%c31_184, %c256_185] : memref<160x768xbf16, #tpu.memory_space<vmem>>, vector<1x128xbf16>
    tpu.vector_store %arg39[%c31_184, %c256_185], %154 {strides = array<i32>} : memref<160x768xbf16, #tpu.memory_space<vmem>>, vector<1x128xbf16>,
    %c16_186 = arith.constant 16 : index
    %c0_187 = arith.constant 0 : index
    %159 = vector.load %arg39[%c16_186, %c0_187] : memref<160x768xbf16, #tpu.memory_space<vmem>>, vector<16x384xbf16>
    %c0_188 = arith.constant 0 : index
    %c0_189 = arith.constant 0 : index
    %160 = vector.load %arg20[%c0_188, %c0_189] : memref<384x128xbf16, #tpu.memory_space<vmem>>, vector<384x128xbf16>
    %cst_190 = arith.constant dense<0.000000e+00> : vector<16x128xf32>
    %161 = tpu.matmul %159, %160, %cst_190 {dimension_numbers = #tpu.dot_dimension_numbers<[1], [0], [0], [1], [0, 0, 1, 1], [], []>} : vector<16x384xbf16>, vector<384x128xbf16>, vector<16x128xf32> -> vector<16x128xf32>
    %c0_191 = arith.constant 0 : index
    %c0_192 = arith.constant 0 : index
    %162 = vector.load %arg21[%c0_191, %c0_192] : memref<1x128xf32, #tpu.memory_space<vmem>>, vector<1x128xf32>
    %163 = vector.broadcast %162 : vector<1x128xf32> to vector<16x128xf32>
    %164 = arith.addf %161, %163 : vector<16x128xf32>
    %cst_193 = arith.constant 0.000000e+00 : f32
    %165 = vector.broadcast %cst_193 : f32 to vector<16x128xf32>
    %166 = arith.maximumf %164, %165 : vector<16x128xf32>
    %c0_194 = arith.constant 0 : index
    %c0_195 = arith.constant 0 : index
    %167 = vector.load %arg33[%c0_194, %c0_195] : memref<8x16xf32, #tpu.memory_space<vmem>>, vector<8x16xf32>
    %cst_196 = arith.constant dense<0.000000e+00> : vector<8x128xf32>
    %168 = tpu.matmul %167, %166, %cst_196 {dimension_numbers = #tpu.dot_dimension_numbers<[1], [0], [0], [1], [0, 0, 1, 1], [], []>} : vector<8x16xf32>, vector<16x128xf32>, vector<8x128xf32> -> vector<8x128xf32>
    %169 = arith.truncf %168 : vector<8x128xf32> to vector<8x128xbf16>
    %c17_197 = arith.constant 17 : index
    %c0_198 = arith.constant 0 : index
    %170 = vector.load %arg39[%c17_197, %c0_198] : memref<160x768xbf16, #tpu.memory_space<vmem>>, vector<8x128xbf16>
    tpu.vector_store %arg39[%c17_197, %c0_198], %169 {strides = array<i32>} : memref<160x768xbf16, #tpu.memory_space<vmem>>, vector<8x128xbf16>,
    %c16_199 = arith.constant 16 : index
    %c128_200 = arith.constant 128 : index
    %171 = vector.load %arg39[%c16_199, %c128_200] : memref<160x768xbf16, #tpu.memory_space<vmem>>, vector<8x128xbf16>
    tpu.vector_store %arg39[%c16_199, %c128_200], %169 {strides = array<i32>} : memref<160x768xbf16, #tpu.memory_space<vmem>>, vector<8x128xbf16>,
    %c15_201 = arith.constant 15 : index
    %c256_202 = arith.constant 256 : index
    %172 = vector.load %arg39[%c15_201, %c256_202] : memref<160x768xbf16, #tpu.memory_space<vmem>>, vector<8x128xbf16>
    tpu.vector_store %arg39[%c15_201, %c256_202], %169 {strides = array<i32>} : memref<160x768xbf16, #tpu.memory_space<vmem>>, vector<8x128xbf16>,
    %cst_203 = arith.constant 0.000000e+00 : bf16
    %173 = vector.broadcast %cst_203 : bf16 to vector<1x128xbf16>
    %c16_204 = arith.constant 16 : index
    %c0_205 = arith.constant 0 : index
    %174 = vector.load %arg39[%c16_204, %c0_205] : memref<160x768xbf16, #tpu.memory_space<vmem>>, vector<1x128xbf16>
    tpu.vector_store %arg39[%c16_204, %c0_205], %173 {strides = array<i32>} : memref<160x768xbf16, #tpu.memory_space<vmem>>, vector<1x128xbf16>,
    %c19 = arith.constant 19 : index
    %c256_206 = arith.constant 256 : index
    %175 = vector.load %arg39[%c19, %c256_206] : memref<160x768xbf16, #tpu.memory_space<vmem>>, vector<1x128xbf16>
    tpu.vector_store %arg39[%c19, %c256_206], %173 {strides = array<i32>} : memref<160x768xbf16, #tpu.memory_space<vmem>>, vector<1x128xbf16>,
    %c20 = arith.constant 20 : index
    %c0_207 = arith.constant 0 : index
    %176 = vector.load %arg39[%c20, %c0_207] : memref<160x768xbf16, #tpu.memory_space<vmem>>, vector<1x128xbf16>
    tpu.vector_store %arg39[%c20, %c0_207], %173 {strides = array<i32>} : memref<160x768xbf16, #tpu.memory_space<vmem>>, vector<1x128xbf16>,
    %c23_208 = arith.constant 23 : index
    %c256_209 = arith.constant 256 : index
    %177 = vector.load %arg39[%c23_208, %c256_209] : memref<160x768xbf16, #tpu.memory_space<vmem>>, vector<1x128xbf16>
    tpu.vector_store %arg39[%c23_208, %c256_209], %173 {strides = array<i32>} : memref<160x768xbf16, #tpu.memory_space<vmem>>, vector<1x128xbf16>,
    %c16_210 = arith.constant 16 : index
    %c0_211 = arith.constant 0 : index
    %178 = vector.load %arg39[%c16_210, %c0_211] : memref<160x768xbf16, #tpu.memory_space<vmem>>, vector<8x384xbf16>
    %c0_212 = arith.constant 0 : index
    %c0_213 = arith.constant 0 : index
    %179 = vector.load %arg22[%c0_212, %c0_213] : memref<384x64xbf16, #tpu.memory_space<vmem>>, vector<384x64xbf16>
    %cst_214 = arith.constant dense<0.000000e+00> : vector<8x64xf32>
    %180 = tpu.matmul %178, %179, %cst_214 {dimension_numbers = #tpu.dot_dimension_numbers<[1], [0], [0], [1], [0, 0, 1, 1], [], []>} : vector<8x384xbf16>, vector<384x64xbf16>, vector<8x64xf32> -> vector<8x64xf32>
    %c0_215 = arith.constant 0 : index
    %c0_216 = arith.constant 0 : index
    %181 = vector.load %arg23[%c0_215, %c0_216] : memref<1x64xf32, #tpu.memory_space<vmem>>, vector<1x64xf32>
    %182 = vector.broadcast %181 : vector<1x64xf32> to vector<8x64xf32>
    %183 = arith.addf %180, %182 : vector<8x64xf32>
    %cst_217 = arith.constant 0.000000e+00 : f32
    %184 = vector.broadcast %cst_217 : f32 to vector<8x64xf32>
    %185 = arith.maximumf %183, %184 : vector<8x64xf32>
    %186 = arith.truncf %185 : vector<8x64xf32> to vector<8x64xbf16>
    %c17_218 = arith.constant 17 : index
    %c0_219 = arith.constant 0 : index
    %187 = vector.load %arg39[%c17_218, %c0_219] : memref<160x768xbf16, #tpu.memory_space<vmem>>, vector<8x64xbf16>
    tpu.vector_store %arg39[%c17_218, %c0_219], %186 {strides = array<i32>} : memref<160x768xbf16, #tpu.memory_space<vmem>>, vector<8x64xbf16>,
    %c16_220 = arith.constant 16 : index
    %c64_221 = arith.constant 64 : index
    %188 = vector.load %arg39[%c16_220, %c64_221] : memref<160x768xbf16, #tpu.memory_space<vmem>>, vector<8x64xbf16>
    tpu.vector_store %arg39[%c16_220, %c64_221], %186 {strides = array<i32>} : memref<160x768xbf16, #tpu.memory_space<vmem>>, vector<8x64xbf16>,
    %c15_222 = arith.constant 15 : index
    %c128_223 = arith.constant 128 : index
    %189 = vector.load %arg39[%c15_222, %c128_223] : memref<160x768xbf16, #tpu.memory_space<vmem>>, vector<8x64xbf16>
    tpu.vector_store %arg39[%c15_222, %c128_223], %186 {strides = array<i32>} : memref<160x768xbf16, #tpu.memory_space<vmem>>, vector<8x64xbf16>,
    %cst_224 = arith.constant 0.000000e+00 : bf16
    %190 = vector.broadcast %cst_224 : bf16 to vector<1x64xbf16>
    %c16_225 = arith.constant 16 : index
    %c0_226 = arith.constant 0 : index
    %191 = vector.load %arg39[%c16_225, %c0_226] : memref<160x768xbf16, #tpu.memory_space<vmem>>, vector<1x64xbf16>
    tpu.vector_store %arg39[%c16_225, %c0_226], %190 {strides = array<i32>} : memref<160x768xbf16, #tpu.memory_space<vmem>>, vector<1x64xbf16>,
    %c19_227 = arith.constant 19 : index
    %c128_228 = arith.constant 128 : index
    %192 = vector.load %arg39[%c19_227, %c128_228] : memref<160x768xbf16, #tpu.memory_space<vmem>>, vector<1x64xbf16>
    tpu.vector_store %arg39[%c19_227, %c128_228], %190 {strides = array<i32>} : memref<160x768xbf16, #tpu.memory_space<vmem>>, vector<1x64xbf16>,
    %c20_229 = arith.constant 20 : index
    %c0_230 = arith.constant 0 : index
    %193 = vector.load %arg39[%c20_229, %c0_230] : memref<160x768xbf16, #tpu.memory_space<vmem>>, vector<1x64xbf16>
    tpu.vector_store %arg39[%c20_229, %c0_230], %190 {strides = array<i32>} : memref<160x768xbf16, #tpu.memory_space<vmem>>, vector<1x64xbf16>,
    %c23_231 = arith.constant 23 : index
    %c128_232 = arith.constant 128 : index
    %194 = vector.load %arg39[%c23_231, %c128_232] : memref<160x768xbf16, #tpu.memory_space<vmem>>, vector<1x64xbf16>
    tpu.vector_store %arg39[%c23_231, %c128_232], %190 {strides = array<i32>} : memref<160x768xbf16, #tpu.memory_space<vmem>>, vector<1x64xbf16>,
    %c16_233 = arith.constant 16 : index
    %c0_234 = arith.constant 0 : index
    %195 = vector.load %arg39[%c16_233, %c0_234] : memref<160x768xbf16, #tpu.memory_space<vmem>>, vector<8x192xbf16>
    %c0_235 = arith.constant 0 : index
    %c0_236 = arith.constant 0 : index
    %196 = vector.load %arg24[%c0_235, %c0_236] : memref<192x64xbf16, #tpu.memory_space<vmem>>, vector<192x64xbf16>
    %cst_237 = arith.constant dense<0.000000e+00> : vector<8x64xf32>
    %197 = tpu.matmul %195, %196, %cst_237 {dimension_numbers = #tpu.dot_dimension_numbers<[1], [0], [0], [1], [0, 0, 1, 1], [], []>} : vector<8x192xbf16>, vector<192x64xbf16>, vector<8x64xf32> -> vector<8x64xf32>
    %c0_238 = arith.constant 0 : index
    %c0_239 = arith.constant 0 : index
    %198 = vector.load %arg25[%c0_238, %c0_239] : memref<1x64xf32, #tpu.memory_space<vmem>>, vector<1x64xf32>
    %199 = vector.broadcast %198 : vector<1x64xf32> to vector<8x64xf32>
    %200 = arith.addf %197, %199 : vector<8x64xf32>
    %cst_240 = arith.constant 0.000000e+00 : f32
    %201 = vector.broadcast %cst_240 : f32 to vector<8x64xf32>
    %202 = arith.maximumf %200, %201 : vector<8x64xf32>
    %c0_241 = arith.constant 0 : index
    %c0_242 = arith.constant 0 : index
    %203 = vector.load %arg34[%c0_241, %c0_242] : memref<4x8xf32, #tpu.memory_space<vmem>>, vector<4x8xf32>
    %cst_243 = arith.constant dense<0.000000e+00> : vector<4x64xf32>
    %204 = tpu.matmul %203, %202, %cst_243 {dimension_numbers = #tpu.dot_dimension_numbers<[1], [0], [0], [1], [0, 0, 1, 1], [], []>} : vector<4x8xf32>, vector<8x64xf32>, vector<4x64xf32> -> vector<4x64xf32>
    %205 = arith.truncf %204 : vector<4x64xf32> to vector<4x64xbf16>
    %c17_244 = arith.constant 17 : index
    %c0_245 = arith.constant 0 : index
    %206 = vector.load %arg39[%c17_244, %c0_245] : memref<160x768xbf16, #tpu.memory_space<vmem>>, vector<4x64xbf16>
    tpu.vector_store %arg39[%c17_244, %c0_245], %205 {strides = array<i32>} : memref<160x768xbf16, #tpu.memory_space<vmem>>, vector<4x64xbf16>,
    %c16_246 = arith.constant 16 : index
    %c64_247 = arith.constant 64 : index
    %207 = vector.load %arg39[%c16_246, %c64_247] : memref<160x768xbf16, #tpu.memory_space<vmem>>, vector<4x64xbf16>
    tpu.vector_store %arg39[%c16_246, %c64_247], %205 {strides = array<i32>} : memref<160x768xbf16, #tpu.memory_space<vmem>>, vector<4x64xbf16>,
    %c15_248 = arith.constant 15 : index
    %c128_249 = arith.constant 128 : index
    %208 = vector.load %arg39[%c15_248, %c128_249] : memref<160x768xbf16, #tpu.memory_space<vmem>>, vector<4x64xbf16>
    tpu.vector_store %arg39[%c15_248, %c128_249], %205 {strides = array<i32>} : memref<160x768xbf16, #tpu.memory_space<vmem>>, vector<4x64xbf16>,
    %cst_250 = arith.constant 0.000000e+00 : bf16
    %209 = vector.broadcast %cst_250 : bf16 to vector<1x64xbf16>
    %c16_251 = arith.constant 16 : index
    %c0_252 = arith.constant 0 : index
    %210 = vector.load %arg39[%c16_251, %c0_252] : memref<160x768xbf16, #tpu.memory_space<vmem>>, vector<1x64xbf16>
    tpu.vector_store %arg39[%c16_251, %c0_252], %209 {strides = array<i32>} : memref<160x768xbf16, #tpu.memory_space<vmem>>, vector<1x64xbf16>,
    %c17_253 = arith.constant 17 : index
    %c128_254 = arith.constant 128 : index
    %211 = vector.load %arg39[%c17_253, %c128_254] : memref<160x768xbf16, #tpu.memory_space<vmem>>, vector<1x64xbf16>
    tpu.vector_store %arg39[%c17_253, %c128_254], %209 {strides = array<i32>} : memref<160x768xbf16, #tpu.memory_space<vmem>>, vector<1x64xbf16>,
    %c18 = arith.constant 18 : index
    %c0_255 = arith.constant 0 : index
    %212 = vector.load %arg39[%c18, %c0_255] : memref<160x768xbf16, #tpu.memory_space<vmem>>, vector<1x64xbf16>
    tpu.vector_store %arg39[%c18, %c0_255], %209 {strides = array<i32>} : memref<160x768xbf16, #tpu.memory_space<vmem>>, vector<1x64xbf16>,
    %c19_256 = arith.constant 19 : index
    %c128_257 = arith.constant 128 : index
    %213 = vector.load %arg39[%c19_256, %c128_257] : memref<160x768xbf16, #tpu.memory_space<vmem>>, vector<1x64xbf16>
    tpu.vector_store %arg39[%c19_256, %c128_257], %209 {strides = array<i32>} : memref<160x768xbf16, #tpu.memory_space<vmem>>, vector<1x64xbf16>,
    %c16_258 = arith.constant 16 : index
    %c0_259 = arith.constant 0 : index
    %214 = vector.load %arg39[%c16_258, %c0_259] : memref<160x768xbf16, #tpu.memory_space<vmem>>, vector<4x192xbf16>
    %c0_260 = arith.constant 0 : index
    %c0_261 = arith.constant 0 : index
    %215 = vector.load %arg26[%c0_260, %c0_261] : memref<192x64xbf16, #tpu.memory_space<vmem>>, vector<192x64xbf16>
    %cst_262 = arith.constant dense<0.000000e+00> : vector<4x64xf32>
    %216 = tpu.matmul %214, %215, %cst_262 {dimension_numbers = #tpu.dot_dimension_numbers<[1], [0], [0], [1], [0, 0, 1, 1], [], []>} : vector<4x192xbf16>, vector<192x64xbf16>, vector<4x64xf32> -> vector<4x64xf32>
    %c0_263 = arith.constant 0 : index
    %c0_264 = arith.constant 0 : index
    %217 = vector.load %arg27[%c0_263, %c0_264] : memref<1x64xf32, #tpu.memory_space<vmem>>, vector<1x64xf32>
    %218 = vector.broadcast %217 : vector<1x64xf32> to vector<4x64xf32>
    %219 = arith.addf %216, %218 : vector<4x64xf32>
    %cst_265 = arith.constant 0.000000e+00 : f32
    %220 = vector.broadcast %cst_265 : f32 to vector<4x64xf32>
    %221 = arith.maximumf %219, %220 : vector<4x64xf32>
    %222 = arith.truncf %221 : vector<4x64xf32> to vector<4x64xbf16>
    %c17_266 = arith.constant 17 : index
    %c0_267 = arith.constant 0 : index
    %223 = vector.load %arg39[%c17_266, %c0_267] : memref<160x768xbf16, #tpu.memory_space<vmem>>, vector<4x64xbf16>
    tpu.vector_store %arg39[%c17_266, %c0_267], %222 {strides = array<i32>} : memref<160x768xbf16, #tpu.memory_space<vmem>>, vector<4x64xbf16>,
    %c16_268 = arith.constant 16 : index
    %c64_269 = arith.constant 64 : index
    %224 = vector.load %arg39[%c16_268, %c64_269] : memref<160x768xbf16, #tpu.memory_space<vmem>>, vector<4x64xbf16>
    tpu.vector_store %arg39[%c16_268, %c64_269], %222 {strides = array<i32>} : memref<160x768xbf16, #tpu.memory_space<vmem>>, vector<4x64xbf16>,
    %c15_270 = arith.constant 15 : index
    %c128_271 = arith.constant 128 : index
    %225 = vector.load %arg39[%c15_270, %c128_271] : memref<160x768xbf16, #tpu.memory_space<vmem>>, vector<4x64xbf16>
    tpu.vector_store %arg39[%c15_270, %c128_271], %222 {strides = array<i32>} : memref<160x768xbf16, #tpu.memory_space<vmem>>, vector<4x64xbf16>,
    %cst_272 = arith.constant 0.000000e+00 : bf16
    %226 = vector.broadcast %cst_272 : bf16 to vector<1x64xbf16>
    %c16_273 = arith.constant 16 : index
    %c0_274 = arith.constant 0 : index
    %227 = vector.load %arg39[%c16_273, %c0_274] : memref<160x768xbf16, #tpu.memory_space<vmem>>, vector<1x64xbf16>
    tpu.vector_store %arg39[%c16_273, %c0_274], %226 {strides = array<i32>} : memref<160x768xbf16, #tpu.memory_space<vmem>>, vector<1x64xbf16>,
    %c17_275 = arith.constant 17 : index
    %c128_276 = arith.constant 128 : index
    %228 = vector.load %arg39[%c17_275, %c128_276] : memref<160x768xbf16, #tpu.memory_space<vmem>>, vector<1x64xbf16>
    tpu.vector_store %arg39[%c17_275, %c128_276], %226 {strides = array<i32>} : memref<160x768xbf16, #tpu.memory_space<vmem>>, vector<1x64xbf16>,
    %c18_277 = arith.constant 18 : index
    %c0_278 = arith.constant 0 : index
    %229 = vector.load %arg39[%c18_277, %c0_278] : memref<160x768xbf16, #tpu.memory_space<vmem>>, vector<1x64xbf16>
    tpu.vector_store %arg39[%c18_277, %c0_278], %226 {strides = array<i32>} : memref<160x768xbf16, #tpu.memory_space<vmem>>, vector<1x64xbf16>,
    %c19_279 = arith.constant 19 : index
    %c128_280 = arith.constant 128 : index
    %230 = vector.load %arg39[%c19_279, %c128_280] : memref<160x768xbf16, #tpu.memory_space<vmem>>, vector<1x64xbf16>
    tpu.vector_store %arg39[%c19_279, %c128_280], %226 {strides = array<i32>} : memref<160x768xbf16, #tpu.memory_space<vmem>>, vector<1x64xbf16>,
    %c16_281 = arith.constant 16 : index
    %c0_282 = arith.constant 0 : index
    %231 = vector.load %arg39[%c16_281, %c0_282] : memref<160x768xbf16, #tpu.memory_space<vmem>>, vector<4x192xbf16>
    %c0_283 = arith.constant 0 : index
    %c0_284 = arith.constant 0 : index
    %232 = vector.load %arg28[%c0_283, %c0_284] : memref<192x64xbf16, #tpu.memory_space<vmem>>, vector<192x64xbf16>
    %cst_285 = arith.constant dense<0.000000e+00> : vector<4x64xf32>
    %233 = tpu.matmul %231, %232, %cst_285 {dimension_numbers = #tpu.dot_dimension_numbers<[1], [0], [0], [1], [0, 0, 1, 1], [], []>} : vector<4x192xbf16>, vector<192x64xbf16>, vector<4x64xf32> -> vector<4x64xf32>
    %c0_286 = arith.constant 0 : index
    %c0_287 = arith.constant 0 : index
    %234 = vector.load %arg29[%c0_286, %c0_287] : memref<1x64xf32, #tpu.memory_space<vmem>>, vector<1x64xf32>
    %235 = vector.broadcast %234 : vector<1x64xf32> to vector<4x64xf32>
    %236 = arith.addf %233, %235 : vector<4x64xf32>
    %cst_288 = arith.constant 0.000000e+00 : f32
    %237 = vector.broadcast %cst_288 : f32 to vector<4x64xf32>
    %238 = arith.maximumf %236, %237 : vector<4x64xf32>
    %239 = vector.extract_strided_slice %238 {offsets = [0, 0], sizes = [2, 64], strides = [1, 1]} : vector<4x64xf32> to vector<2x64xf32>
    %cst_289 = arith.constant dense<0xFF800000> : vector<64xf32>
    %240 = vector.multi_reduction <maximumf>, %239, %cst_289 [0] : vector<2x64xf32> to vector<64xf32>
    %241 = vector.shape_cast %240 : vector<64xf32> to vector<1x64xf32>
    %cst_290 = arith.constant dense<0.000000e+00> : vector<64xf32>
    %242 = vector.multi_reduction <add>, %239, %cst_290 [0] : vector<2x64xf32> to vector<64xf32>
    %243 = vector.shape_cast %242 : vector<64xf32> to vector<1x64xf32>
    %cst_291 = arith.constant 2.000000e+00 : f32
    %244 = vector.broadcast %cst_291 : f32 to vector<1x64xf32>
    %245 = arith.divf %243, %244 : vector<1x64xf32>
    %246 = arith.addf %241, %245 : vector<1x64xf32>
    %247 = vector.extract_strided_slice %238 {offsets = [2, 0], sizes = [2, 64], strides = [1, 1]} : vector<4x64xf32> to vector<2x64xf32>
    %cst_292 = arith.constant dense<0xFF800000> : vector<64xf32>
    %248 = vector.multi_reduction <maximumf>, %247, %cst_292 [0] : vector<2x64xf32> to vector<64xf32>
    %249 = vector.shape_cast %248 : vector<64xf32> to vector<1x64xf32>
    %cst_293 = arith.constant dense<0.000000e+00> : vector<64xf32>
    %250 = vector.multi_reduction <add>, %247, %cst_293 [0] : vector<2x64xf32> to vector<64xf32>
    %251 = vector.shape_cast %250 : vector<64xf32> to vector<1x64xf32>
    %cst_294 = arith.constant 2.000000e+00 : f32
    %252 = vector.broadcast %cst_294 : f32 to vector<1x64xf32>
    %253 = arith.divf %251, %252 : vector<1x64xf32>
    %254 = arith.addf %249, %253 : vector<1x64xf32>
    %255 = tpu.concatenate %246, %254 in 0 : vector<1x64xf32>, vector<1x64xf32> -> vector<2x64xf32>
    %256 = arith.truncf %255 : vector<2x64xf32> to vector<2x64xbf16>
    %c0_295 = arith.constant 0 : index
    %c0_296 = arith.constant 0 : index
    %257 = vector.load %arg36[%c0_295, %c0_296] : memref<64x2048xbf16, #tpu.memory_space<vmem>>, vector<64x2048xbf16>
    %cst_297 = arith.constant dense<0.000000e+00> : vector<2x2048xf32>
    %258 = tpu.matmul %256, %257, %cst_297 {dimension_numbers = #tpu.dot_dimension_numbers<[1], [0], [0], [1], [0, 0, 1, 1], [], []>} : vector<2x64xbf16>, vector<64x2048xbf16>, vector<2x2048xf32> -> vector<2x2048xf32>
    %c0_298 = arith.constant 0 : index
    %c0_299 = arith.constant 0 : index
    %259 = vector.load %arg37[%c0_298, %c0_299] : memref<1x2048xf32, #tpu.memory_space<vmem>>, vector<1x2048xf32>
    %260 = vector.broadcast %259 : vector<1x2048xf32> to vector<2x2048xf32>
    %261 = arith.addf %258, %260 : vector<2x2048xf32>
    %cst_300 = arith.constant 0.000000e+00 : f32
    %262 = vector.broadcast %cst_300 : f32 to vector<2x2048xf32>
    %263 = arith.maximumf %261, %262 : vector<2x2048xf32>
    %264 = vector.shape_cast %263 : vector<2x2048xf32> to vector<1x2x2048xf32>
    %c0_301 = arith.constant 0 : index
    %c0_302 = arith.constant 0 : index
    %c0_303 = arith.constant 0 : index
    %265 = vector.load %arg38[%c0_301, %c0_302, %c0_303] : memref<1x2x2048xf32, #tpu.memory_space<vmem>>, vector<1x2x2048xf32>
    tpu.vector_store %arg38[%c0_301, %c0_302, %c0_303], %264 {strides = array<i32>} : memref<1x2x2048xf32, #tpu.memory_space<vmem>>, vector<1x2x2048xf32>,
    return
  }
  func.func @transform_0(%arg0: i32) -> (i32, i32) {
    %c0_i32 = arith.constant 0 : i32
    %c0_i32_0 = arith.constant 0 : i32
    return %arg0, %c0_i32 : i32, i32
  }
  func.func @transform_1(%arg0: i32) -> (i32, i32, i32) {
    %c0_i32 = arith.constant 0 : i32
    %c0_i32_0 = arith.constant 0 : i32
    %c0_i32_1 = arith.constant 0 : i32
    %c0_i32_2 = arith.constant 0 : i32
    return %c0_i32, %c0_i32_0, %c0_i32_1 : i32, i32, i32
  }
  func.func @transform_2(%arg0: i32) -> (i32, i32) {
    %c0_i32 = arith.constant 0 : i32
    %c0_i32_0 = arith.constant 0 : i32
    %c0_i32_1 = arith.constant 0 : i32
    return %c0_i32, %c0_i32_0 : i32, i32
  }
  func.func @transform_3(%arg0: i32) -> (i32, i32) {
    %c0_i32 = arith.constant 0 : i32
    %c0_i32_0 = arith.constant 0 : i32
    %c0_i32_1 = arith.constant 0 : i32
    return %c0_i32, %c0_i32_0 : i32, i32
  }
  func.func @transform_4(%arg0: i32) -> (i32, i32) {
    %c0_i32 = arith.constant 0 : i32
    %c0_i32_0 = arith.constant 0 : i32
    %c0_i32_1 = arith.constant 0 : i32
    return %c0_i32, %c0_i32_0 : i32, i32
  }
  func.func @transform_5(%arg0: i32) -> (i32, i32) {
    %c0_i32 = arith.constant 0 : i32
    %c0_i32_0 = arith.constant 0 : i32
    %c0_i32_1 = arith.constant 0 : i32
    return %c0_i32, %c0_i32_0 : i32, i32
  }
  func.func @transform_6(%arg0: i32) -> (i32, i32) {
    %c0_i32 = arith.constant 0 : i32
    %c0_i32_0 = arith.constant 0 : i32
    %c0_i32_1 = arith.constant 0 : i32
    return %c0_i32, %c0_i32_0 : i32, i32
  }
  func.func @transform_7(%arg0: i32) -> (i32, i32) {
    %c0_i32 = arith.constant 0 : i32
    %c0_i32_0 = arith.constant 0 : i32
    %c0_i32_1 = arith.constant 0 : i32
    return %c0_i32, %c0_i32_0 : i32, i32
  }
  func.func @transform_8(%arg0: i32) -> (i32, i32) {
    %c0_i32 = arith.constant 0 : i32
    %c0_i32_0 = arith.constant 0 : i32
    %c0_i32_1 = arith.constant 0 : i32
    return %c0_i32, %c0_i32_0 : i32, i32
  }
  func.func @transform_9(%arg0: i32) -> (i32, i32) {
    %c0_i32 = arith.constant 0 : i32
    %c0_i32_0 = arith.constant 0 : i32
    %c0_i32_1 = arith.constant 0 : i32
    return %c0_i32, %c0_i32_0 : i32, i32
  }
  func.func @transform_10(%arg0: i32) -> (i32, i32) {
    %c0_i32 = arith.constant 0 : i32
    %c0_i32_0 = arith.constant 0 : i32
    %c0_i32_1 = arith.constant 0 : i32
    return %c0_i32, %c0_i32_0 : i32, i32
  }
  func.func @transform_11(%arg0: i32) -> (i32, i32) {
    %c0_i32 = arith.constant 0 : i32
    %c0_i32_0 = arith.constant 0 : i32
    %c0_i32_1 = arith.constant 0 : i32
    return %c0_i32, %c0_i32_0 : i32, i32
  }
  func.func @transform_12(%arg0: i32) -> (i32, i32) {
    %c0_i32 = arith.constant 0 : i32
    %c0_i32_0 = arith.constant 0 : i32
    %c0_i32_1 = arith.constant 0 : i32
    return %c0_i32, %c0_i32_0 : i32, i32
  }
  func.func @transform_13(%arg0: i32) -> (i32, i32) {
    %c0_i32 = arith.constant 0 : i32
    %c0_i32_0 = arith.constant 0 : i32
    %c0_i32_1 = arith.constant 0 : i32
    return %c0_i32, %c0_i32_0 : i32, i32
  }
  func.func @transform_14(%arg0: i32) -> (i32, i32) {
    %c0_i32 = arith.constant 0 : i32
    %c0_i32_0 = arith.constant 0 : i32
    %c0_i32_1 = arith.constant 0 : i32
    return %c0_i32, %c0_i32_0 : i32, i32
  }
  func.func @transform_15(%arg0: i32) -> (i32, i32) {
    %c0_i32 = arith.constant 0 : i32
    %c0_i32_0 = arith.constant 0 : i32
    %c0_i32_1 = arith.constant 0 : i32
    return %c0_i32, %c0_i32_0 : i32, i32
  }
  func.func @transform_16(%arg0: i32) -> (i32, i32) {
    %c0_i32 = arith.constant 0 : i32
    %c0_i32_0 = arith.constant 0 : i32
    %c0_i32_1 = arith.constant 0 : i32
    return %c0_i32, %c0_i32_0 : i32, i32
  }
  func.func @transform_17(%arg0: i32) -> (i32, i32) {
    %c0_i32 = arith.constant 0 : i32
    %c0_i32_0 = arith.constant 0 : i32
    %c0_i32_1 = arith.constant 0 : i32
    return %c0_i32, %c0_i32_0 : i32, i32
  }
  func.func @transform_18(%arg0: i32) -> (i32, i32) {
    %c0_i32 = arith.constant 0 : i32
    %c0_i32_0 = arith.constant 0 : i32
    %c0_i32_1 = arith.constant 0 : i32
    return %c0_i32, %c0_i32_0 : i32, i32
  }
  func.func @transform_19(%arg0: i32) -> (i32, i32) {
    %c0_i32 = arith.constant 0 : i32
    %c0_i32_0 = arith.constant 0 : i32
    %c0_i32_1 = arith.constant 0 : i32
    return %c0_i32, %c0_i32_0 : i32, i32
  }
  func.func @transform_20(%arg0: i32) -> (i32, i32) {
    %c0_i32 = arith.constant 0 : i32
    %c0_i32_0 = arith.constant 0 : i32
    %c0_i32_1 = arith.constant 0 : i32
    return %c0_i32, %c0_i32_0 : i32, i32
  }
  func.func @transform_21(%arg0: i32) -> (i32, i32) {
    %c0_i32 = arith.constant 0 : i32
    %c0_i32_0 = arith.constant 0 : i32
    %c0_i32_1 = arith.constant 0 : i32
    return %c0_i32, %c0_i32_0 : i32, i32
  }
  func.func @transform_22(%arg0: i32) -> (i32, i32) {
    %c0_i32 = arith.constant 0 : i32
    %c0_i32_0 = arith.constant 0 : i32
    %c0_i32_1 = arith.constant 0 : i32
    return %c0_i32, %c0_i32_0 : i32, i32
  }
  func.func @transform_23(%arg0: i32) -> (i32, i32) {
    %c0_i32 = arith.constant 0 : i32
    %c0_i32_0 = arith.constant 0 : i32
    %c0_i32_1 = arith.constant 0 : i32
    return %c0_i32, %c0_i32_0 : i32, i32
  }
  func.func @transform_24(%arg0: i32) -> (i32, i32) {
    %c0_i32 = arith.constant 0 : i32
    %c0_i32_0 = arith.constant 0 : i32
    %c0_i32_1 = arith.constant 0 : i32
    return %c0_i32, %c0_i32_0 : i32, i32
  }
  func.func @transform_25(%arg0: i32) -> (i32, i32) {
    %c0_i32 = arith.constant 0 : i32
    %c0_i32_0 = arith.constant 0 : i32
    %c0_i32_1 = arith.constant 0 : i32
    return %c0_i32, %c0_i32_0 : i32, i32
  }
  func.func @transform_26(%arg0: i32) -> (i32, i32) {
    %c0_i32 = arith.constant 0 : i32
    %c0_i32_0 = arith.constant 0 : i32
    %c0_i32_1 = arith.constant 0 : i32
    return %c0_i32, %c0_i32_0 : i32, i32
  }
  func.func @transform_27(%arg0: i32) -> (i32, i32) {
    %c0_i32 = arith.constant 0 : i32
    %c0_i32_0 = arith.constant 0 : i32
    %c0_i32_1 = arith.constant 0 : i32
    return %c0_i32, %c0_i32_0 : i32, i32
  }
  func.func @transform_28(%arg0: i32) -> (i32, i32) {
    %c0_i32 = arith.constant 0 : i32
    %c0_i32_0 = arith.constant 0 : i32
    %c0_i32_1 = arith.constant 0 : i32
    return %c0_i32, %c0_i32_0 : i32, i32
  }
  func.func @transform_29(%arg0: i32) -> (i32, i32) {
    %c0_i32 = arith.constant 0 : i32
    %c0_i32_0 = arith.constant 0 : i32
    %c0_i32_1 = arith.constant 0 : i32
    return %c0_i32, %c0_i32_0 : i32, i32
  }
  func.func @transform_30(%arg0: i32) -> (i32, i32) {
    %c0_i32 = arith.constant 0 : i32
    %c0_i32_0 = arith.constant 0 : i32
    %c0_i32_1 = arith.constant 0 : i32
    return %c0_i32, %c0_i32_0 : i32, i32
  }
  func.func @transform_31(%arg0: i32) -> (i32, i32) {
    %c0_i32 = arith.constant 0 : i32
    %c0_i32_0 = arith.constant 0 : i32
    %c0_i32_1 = arith.constant 0 : i32
    return %c0_i32, %c0_i32_0 : i32, i32
  }
  func.func @transform_32(%arg0: i32) -> (i32, i32) {
    %c0_i32 = arith.constant 0 : i32
    %c0_i32_0 = arith.constant 0 : i32
    %c0_i32_1 = arith.constant 0 : i32
    return %c0_i32, %c0_i32_0 : i32, i32
  }
  func.func @transform_33(%arg0: i32) -> (i32, i32) {
    %c0_i32 = arith.constant 0 : i32
    %c0_i32_0 = arith.constant 0 : i32
    %c0_i32_1 = arith.constant 0 : i32
    return %c0_i32, %c0_i32_0 : i32, i32
  }
  func.func @transform_34(%arg0: i32) -> (i32, i32) {
    %c0_i32 = arith.constant 0 : i32
    %c0_i32_0 = arith.constant 0 : i32
    %c0_i32_1 = arith.constant 0 : i32
    return %c0_i32, %c0_i32_0 : i32, i32
  }
  func.func @transform_35(%arg0: i32) -> (i32, i32) {
    %c0_i32 = arith.constant 0 : i32
    %c0_i32_0 = arith.constant 0 : i32
    %c0_i32_1 = arith.constant 0 : i32
    return %c0_i32, %c0_i32_0 : i32, i32
  }
  func.func @transform_36(%arg0: i32) -> (i32, i32) {
    %c0_i32 = arith.constant 0 : i32
    %c0_i32_0 = arith.constant 0 : i32
    %c0_i32_1 = arith.constant 0 : i32
    return %c0_i32, %c0_i32_0 : i32, i32
  }
  func.func @transform_37(%arg0: i32) -> (i32, i32, i32) {
    %c0_i32 = arith.constant 0 : i32
    %c0_i32_0 = arith.constant 0 : i32
    %c0_i32_1 = arith.constant 0 : i32
    return %arg0, %c0_i32, %c0_i32_0 : i32, i32, i32
  }
}

</mosaic_0001>

<bundles_post_ra>
// kernel: panns_forward.1
= control target key start
LH: loop header
LB: loop body
LE: loop exit
PB: predicated region body
PF: predicated region fallthrough
CT: control target
= control target key end

     0   :  { %s11918_s6 = smov 1   ;;  %s11919_s10 = smov 2   ;;  %s13932_s0 = inlined_call_operand.smem [shape: u32[38], index: -1, kind: input, shape index: {}] }
   0x1   :  { %s12000_s5 = sld [smem:[%s13932_s0]]   ;;  %s11920_s14 = smov 3  }
   0x2   :  { %s12005_s9 = sld [smem:[%s13932_s0 + %s11918_s6]]   ;;  %s11921_s18 = smov 4  }
   0x3   :  { %s12010_s13 = sld [smem:[%s13932_s0 + %s11919_s10]]   ;;  %s11922_s22 = smov 5  }
   0x4   :  { %s12015_s17 = sld [smem:[%s13932_s0 + %s11920_s14]]   ;;  %s11923_s26 = smov 6  }
   0x5   :  { %s12020_s21 = sld [smem:[%s13932_s0 + %s11921_s18]]   ;;  %s11924_s30 = smov 7  }
   0x6   :  { %s12025_s25 = sld [smem:[%s13932_s0 + %s11922_s22]]   ;;  %s11925_s4 = smov 8  }
   0x7   :  { %13958 = sst [smem:[#allocation57_spill]] %s12000_s5  ;;  %s11926_s10 = smov 9  }
   0x8   :  { %s12030_s29 = sld [smem:[%s13932_s0 + %s11923_s26]]   ;;  %s11927_s15 = smov 10  }
   0x9   :  { %13959 = sst [smem:[#allocation58_spill]] %s12010_s13  ;;  %s11928_s20 = smov 11  }
   0xa   :  { %s12035_s3 = sld [smem:[%s13932_s0 + %s11924_s30]]   ;;  %s11929_s26 = smov 12  }
   0xb   :  { %s12040_s8 = sld [smem:[%s13932_s0 + %s11925_s4]]   ;;  %s11930_s1 = smov 13  }
   0xc   :  { %s12045_s14 = sld [smem:[%s13932_s0 + %s11926_s10]]   ;;  %s11931_s7 = smov 14  }
   0xd   :  { %s12050_s19 = sld [smem:[%s13932_s0 + %s11927_s15]]   ;;  %s11932_s15 = smov 15  }
   0xe   :  { %13960 = sst [smem:[#allocation59_spill]] %s12030_s29  ;;  %s11933_s22 = smov 16  }
   0xf   :  { %s12055_s24 = sld [smem:[%s13932_s0 + %s11928_s20]]   ;;  %s11934_s28 = smov 17  }
  0x10   :  { %13961 = sst [smem:[#allocation60_spill]] %s12035_s3 }
  0x11   :  { %13962 = sst [smem:[#allocation61_spill]] %s12040_s8 }
  0x12   :  { %13963 = sst [smem:[#allocation62_spill]] %s12045_s14 }
  0x13   :  { %s12060_s30 = sld [smem:[%s13932_s0 + %s11929_s26]]  }
  0x14   :  { %s12065_s6 = sld [smem:[%s13932_s0 + %s11930_s1]]  }
  0x15   :  { %s12070_s12 = sld [smem:[%s13932_s0 + %s11931_s7]]   ;;  %s11935_s7 = smov 18  }
  0x16   :  { %s12075_s20 = sld [smem:[%s13932_s0 + %s11932_s15]]   ;;  %s11936_s15 = smov 19  }
  0x17   :  { %s12080_s27 = sld [smem:[%s13932_s0 + %s11933_s22]]   ;;  %s11937_s22 = smov 20  }
  0x18   :  { %s12085_s4 = sld [smem:[%s13932_s0 + %s11934_s28]]   ;;  %s11938_s28 = smov 21  }
  0x19   :  { %13964 = sst [smem:[#allocation63_spill]] %s12060_s30 }
  0x1a   :  { %s12090_s14 = sld [smem:[%s13932_s0 + %s11935_s7]]   ;;  %s11939_s7 = smov 22  }
  0x1b   :  { %13965 = sst [smem:[#allocation64_spill]] %s12070_s12 }
  0x1c   :  { %13966 = sst [smem:[#allocation65_spill]] %s12075_s20 }
  0x1d   :  { %s12095_s20 = sld [smem:[%s13932_s0 + %s11936_s15]]   ;;  %s11940_s15 = smov 23  }
  0x1e   :  { %13967 = sst [smem:[#allocation66_spill]] %s12085_s4 }
  0x1f   :  { %s12100_s8 = sld [smem:[%s13932_s0 + %s11937_s22]]   ;;  %s11941_s22 = smov 24  }
  0x20   :  { %s12105_s29 = sld [smem:[%s13932_s0 + %s11938_s28]]   ;;  %s11942_s28 = smov 25  }
  0x21   :  { %s12110_s3 = sld [smem:[%s13932_s0 + %s11939_s7]]   ;;  %s11943_s7 = smov 26  }
  0x22   :  { %s12115_s13 = sld [smem:[%s13932_s0 + %s11940_s15]]   ;;  %s11944_s15 = smov 27  }
  0x23   :  { %13968 = sst [smem:[#allocation67_spill]] %s12095_s20 }
  0x24   :  { %s12120_s5 = sld [smem:[%s13932_s0 + %s11941_s22]]   ;;  %s11945_s22 = smov 28  }
  0x25   :  { %s12140_s20 = sld [smem:[%s13932_s0 + %s11945_s22]]   ;;  %s11949_s22 = smov 32  }
  0x26   :  { %13969 = sst [smem:[#allocation68_spill]] %s12105_s29 }
  0x27   :  { %13970 = sst [smem:[#allocation69_spill]] %s12110_s3 }
  0x28   :  { %13971 = sst [smem:[#allocation70_spill]] %s12115_s13 }
  0x29   :  { %s12125_s29 = sld [smem:[%s13932_s0 + %s11942_s28]]   ;;  %s11946_s28 = smov 29  }
  0x2a   :  { %s12130_s3 = sld [smem:[%s13932_s0 + %s11943_s7]]   ;;  %s11947_s7 = smov 30  }
  0x2b   :  { %s12135_s13 = sld [smem:[%s13932_s0 + %s11944_s15]]   ;;  %s11948_s15 = smov 31  }
  0x2c   :  { %s12160_s4 = sld [smem:[%s13932_s0 + %s11949_s22]]   ;;  %s11953_s22 = smov 36  }
  0x2d   :  { %s12180_s30 = sld [smem:[%s13932_s0 + %s11953_s22]]  }
  0x2f   :  { %13972 = sst [smem:[#allocation71_spill]] %s12125_s29 }
  0x30   :  { %13973 = sst [smem:[#allocation72_spill]] %s12130_s3 }
  0x31   :  { %13974 = sst [smem:[#allocation73_spill]] %s12135_s13 }
  0x32   :  { %s12145_s29 = sld [smem:[%s13932_s0 + %s11946_s28]]   ;;  %s11950_s28 = smov 33  }
  0x33   :  { %s12150_s3 = sld [smem:[%s13932_s0 + %s11947_s7]]   ;;  %s11951_s7 = smov 34  }
  0x34   :  { %s12155_s13 = sld [smem:[%s13932_s0 + %s11948_s15]]   ;;  %s11952_s15 = smov 35  }
  0x35   :  { %s12170_s12 = sld [smem:[%s13932_s0 + %s11951_s7]]  }
  0x38   :  { %13975 = sst [smem:[#allocation74_spill]] %s12145_s29 }
  0x39   :  { %s12165_s29 = sld [smem:[%s13932_s0 + %s11950_s28]]   ;;  %s11954_s28 = smov 37  }
  0x3a   :  { %13976 = sst [smem:[#allocation75_spill]] %s12155_s13 }
  0x3b   :  { %s12175_s13 = sld [smem:[%s13932_s0 + %s11952_s15]]  }
  0x3f   :  { %13977 = sst [smem:[#allocation76_spill]] %s12165_s29 }
  0x40   :  { %s12185_s29 = sld [smem:[%s13932_s0 + %s11954_s28]]  }
  0x41   :  { %80 = vsyncpa [#allocation4], 0 }
  0x42   :  { %81 = vsyncpa [#allocation7], 0 }
  0x43   :  { %82 = vsyncpa [#allocation10], 0 }
  0x44   :  { %83 = vsyncpa [#allocation13], 0 }
  0x45   :  { %84 = vsyncpa [#allocation16], 0 }
  0x46   :  { %85 = vsyncpa [#allocation19], 0 }
  0x47   :  { %86 = vsyncpa [#allocation22], 0 }
  0x48   :  { %87 = vsyncpa [#allocation25], 0 }
  0x49   :  { %88 = vsyncpa [#allocation28], 0 }
  0x4a   :  { %89 = vsyncpa [#allocation31], 0 }
  0x4b   :  { %90 = vsyncpa [#allocation34], 0 }
  0x4c   :  { %91 = vsyncpa [#allocation37], 0 }
  0x4d   :  { %92 = vsyncpa [#allocation40], 0 }
  0x4e   :  { %93 = vsyncpa [#allocation5], 0  ;;  %s11955_s7 = smov [#allocation6]   ;;  %s11318_s10 = scalar_lea.hbm %s12015_s17, 16 }
  0x4f   :  { %s116_s0 = sshll.u32 %s11955_s7, 4  ;;  %p11319_p0 = scmp.ne.s32.totalorder %s12015_s17, %s11318_s10  ;;  %s117_s0 = int_to_ptr.vmem [resolvable:$true] %s116_s0 }
  0x50   :  { %p11322_p1 = scmp.lt.u32.totalorder %s11318_s10, %s12015_s17 }
  0x52   :  { %p11324_p2 = pnand %p11322_p1, %p11319_p0 }
  0x54   :  { %11327 = shalt.err (!%p11324_p2)
}
  0x55   :  { %s11328_s11 = scalar_lea.vmem %s117_s0, 16  ;;  %s11332_s15 = scalar_lea.vmem %s117_s0, 32 }
  0x56   :  { %p11329_p3 = scmp.ne.s32.totalorder %s117_s0, %s11328_s11  ;;  %p11333_p4 = scmp.lt.s32.totalorder %s117_s0, %s117_s0 }
  0x57   :  { %p11334_p5 = scmp.lt.s32.totalorder %s11332_s15, %s11328_s11 }
  0x59   :  { %p11335_p6 = por %p11334_p5, %p11333_p4 }
  0x5b   :  { %p11336_p7 = pnand %p11335_p6, %p11329_p3 }
  0x5d   :  { %11339 = shalt.err (!%p11336_p7)
}
  0x5e   :  { %119 = dma.hbm_to_vmem [thread:$0]  %s12015_s17, 16, %s117_s0, [#allocation7]  }
  0x5f   :  { %s11956_s16 = smov [#allocation9]   ;;  %s11957_s22 = smov [#allocation12]  }
  0x60   :  { %s135_s18 = sshll.u32 %s11956_s16, 4  ;;  %s165_s23 = sshll.u32 %s11957_s22, 4  ;;  %s136_s18 = int_to_ptr.vmem [resolvable:$true] %s135_s18  ;;  %s166_s23 = int_to_ptr.vmem [resolvable:$true] %s165_s23 }
  0x61   :  { %s11340_s26 = scalar_lea.hbm %s12025_s25, 1536 }
  0x62   :  { %p11341_p8 = scmp.ne.s32.totalorder %s12025_s25, %s11340_s26  ;;  %p11344_p9 = scmp.lt.u32.totalorder %s11340_s26, %s12025_s25 }
  0x64   :  { %p11346_p10 = pnand %p11344_p9, %p11341_p8 }
  0x66   :  { %11349 = shalt.err (!%p11346_p10)
}
  0x67   :  { %s11350_s28 = scalar_lea.vmem %s136_s18, 1536  ;;  %p11355_p12 = scmp.lt.s32.totalorder %s136_s18, %s136_s18 }
  0x68   :  { %p11351_p11 = scmp.ne.s32.totalorder %s136_s18, %s11350_s28  ;;  %p11356_p13 = scmp.lt.s32.totalorder %s11350_s28, %s11350_s28 }
  0x6a   :  { %p11357_p0 = por %p11356_p13, %p11355_p12 }
  0x6c   :  { %p11358_p1 = pnand %p11357_p0, %p11351_p11 }
  0x6e   :  { %11361 = shalt.err (!%p11358_p1)
}
  0x6f   :  { %s11958_s1 = smov 128   ;;  %s11959_s17 = smov 8  }
  0x70   :  { %141 = dma.hbm_to_vmem [thread:$0]  %s12025_s25, 1536, %s136_s18, [#allocation10], %s11958_s1, %s11958_s1, %s11959_s17  }
  0x71   :  { %s11362_s2 = scalar_lea.hbm %s12055_s24, 12288 }
  0x72   :  { %p11363_p2 = scmp.ne.s32.totalorder %s12055_s24, %s11362_s2  ;;  %p11366_p3 = scmp.lt.u32.totalorder %s11362_s2, %s12055_s24 }
  0x74   :  { %p11368_p4 = pnand %p11366_p3, %p11363_p2 }
  0x76   :  { %11371 = shalt.err (!%p11368_p4)
}
  0x77   :  { %s11372_s7 = scalar_lea.vmem %s166_s23, 12288  ;;  %p11377_p6 = scmp.lt.s32.totalorder %s166_s23, %s166_s23 }
  0x78   :  { %p11373_p5 = scmp.ne.s32.totalorder %s166_s23, %s11372_s7  ;;  %p11378_p7 = scmp.lt.s32.totalorder %s11372_s7, %s11372_s7 }
  0x7a   :  { %p11379_p8 = por %p11378_p7, %p11377_p6 }
  0x7c   :  { %p11380_p9 = pnand %p11379_p8, %p11373_p5 }
  0x7e   :  { %11383 = shalt.err (!%p11380_p9)
}
  0x7f   :  { %171 = dma.hbm_to_vmem [thread:$0]  %s12055_s24, 12288, %s166_s23, [#allocation13], %s11958_s1, %s11958_s1, %s11959_s17  }
  0x80   :  { %s11960_s25 = smov [#allocation15]   ;;  %s11384_s10 = scalar_lea.hbm %s12065_s6, 6144 }
  0x81   :  { %s187_s0 = sshll.u32 %s11960_s25, 4  ;;  %p11385_p10 = scmp.ne.s32.totalorder %s12065_s6, %s11384_s10  ;;  %s188_s0 = int_to_ptr.vmem [resolvable:$true] %s187_s0 }
  0x82   :  { %p11388_p11 = scmp.lt.u32.totalorder %s11384_s10, %s12065_s6 }
  0x84   :  { %p11390_p12 = pnand %p11388_p11, %p11385_p10 }
  0x86   :  { %11393 = shalt.err (!%p11390_p12)
}
  0x87   :  { %s11394_s11 = scalar_lea.vmem %s188_s0, 6144  ;;  %p11399_p0 = scmp.lt.s32.totalorder %s188_s0, %s188_s0 }
  0x88   :  { %p11395_p13 = scmp.ne.s32.totalorder %s188_s0, %s11394_s11  ;;  %p11400_p1 = scmp.lt.s32.totalorder %s11394_s11, %s11394_s11 }
  0x8a   :  { %p11401_p2 = por %p11400_p1, %p11399_p0 }
  0x8c   :  { %p11402_p3 = pnand %p11401_p2, %p11395_p13 }
  0x8e   :  { %11405 = shalt.err (!%p11402_p3)
}
  0x8f   :  { %s11961_s15 = smov 64   ;;  %s11962_s24 = smov 4  }
  0x90   :  { %193 = dma.hbm_to_vmem [thread:$0]  %s12065_s6, 6144, %s188_s0, [#allocation16], %s11961_s15, %s11961_s15, %s11962_s24  }
  0x91   :  { %s11963_s16 = smov [#allocation18]   ;;  %s11964_s22 = smov [#allocation21]  }
  0x92   :  { %s212_s18 = sshll.u32 %s11963_s16, 4  ;;  %s234_s23 = sshll.u32 %s11964_s22, 4  ;;  %s213_s18 = int_to_ptr.vmem [resolvable:$true] %s212_s18  ;;  %s235_s23 = int_to_ptr.vmem [resolvable:$true] %s234_s23 }
  0x93   :  { %s11406_s26 = scalar_lea.hbm %s12080_s27, 16 }
  0x94   :  { %p11407_p4 = scmp.ne.s32.totalorder %s12080_s27, %s11406_s26  ;;  %p11410_p5 = scmp.lt.u32.totalorder %s11406_s26, %s12080_s27 }
  0x96   :  { %p11412_p6 = pnand %p11410_p5, %p11407_p4 }
  0x98   :  { %11415 = shalt.err (!%p11412_p6)
}
  0x99   :  { %s11416_s28 = scalar_lea.vmem %s213_s18, 16  ;;  %s11420_s2 = scalar_lea.vmem %s213_s18, 32 }
  0x9a   :  { %p11417_p7 = scmp.ne.s32.totalorder %s213_s18, %s11416_s28  ;;  %p11421_p8 = scmp.lt.s32.totalorder %s213_s18, %s213_s18 }
  0x9b   :  { %p11422_p9 = scmp.lt.s32.totalorder %s11420_s2, %s11416_s28 }
  0x9d   :  { %p11423_p10 = por %p11422_p9, %p11421_p8 }
  0x9f   :  { %p11424_p11 = pnand %p11423_p10, %p11417_p7 }
  0xa1   :  { %11427 = shalt.err (!%p11424_p11)
}
  0xa2   :  { %215 = dma.hbm_to_vmem [thread:$0]  %s12080_s27, 16, %s213_s18, [#allocation19]  }
  0xa3   :  { %s11428_s6 = scalar_lea.hbm %s12090_s14, 16 }
  0xa4   :  { %p11429_p12 = scmp.ne.s32.totalorder %s12090_s14, %s11428_s6  ;;  %p11432_p13 = scmp.lt.u32.totalorder %s11428_s6, %s12090_s14 }
  0xa6   :  { %p11434_p0 = pnand %p11432_p13, %p11429_p12 }
  0xa8   :  { %11437 = shalt.err (!%p11434_p0)
}
  0xa9   :  { %s11438_s7 = scalar_lea.vmem %s235_s23, 16  ;;  %s11442_s25 = scalar_lea.vmem %s235_s23, 32 }
  0xaa   :  { %p11439_p1 = scmp.ne.s32.totalorder %s235_s23, %s11438_s7  ;;  %p11443_p2 = scmp.lt.s32.totalorder %s235_s23, %s235_s23 }
  0xab   :  { %p11444_p3 = scmp.lt.s32.totalorder %s11442_s25, %s11438_s7 }
  0xad   :  { %p11445_p4 = por %p11444_p3, %p11443_p2 }
  0xaf   :  { %p11446_p5 = pnand %p11445_p4, %p11439_p1 }
  0xb1   :  { %11449 = shalt.err (!%p11446_p5)
}
  0xb2   :  { %237 = dma.hbm_to_vmem [thread:$0]  %s12090_s14, 16, %s235_s23, [#allocation22]  }
  0xb3   :  { %s11965_s0 = smov [#allocation24]   ;;  %s11966_s10 = smov [#allocation27]  }
  0xb4   :  { %s256_s27 = sshll.u32 %s11965_s0, 4  ;;  %s280_s11 = sshll.u32 %s11966_s10, 4  ;;  %s257_s27 = int_to_ptr.vmem [resolvable:$true] %s256_s27  ;;  %s281_s11 = int_to_ptr.vmem [resolvable:$true] %s280_s11 }
  0xb5   :  { %s11450_s16 = scalar_lea.hbm %s12100_s8, 16 }
  0xb6   :  { %p11451_p6 = scmp.ne.s32.totalorder %s12100_s8, %s11450_s16  ;;  %p11454_p7 = scmp.lt.u32.totalorder %s11450_s16, %s12100_s8 }
  0xb8   :  { %p11456_p8 = pnand %p11454_p7, %p11451_p6 }
  0xba   :  { %11459 = shalt.err (!%p11456_p8)
}
  0xbb   :  { %s11460_s18 = scalar_lea.vmem %s257_s27, 16  ;;  %s11464_s22 = scalar_lea.vmem %s257_s27, 32 }
  0xbc   :  { %p11461_p9 = scmp.ne.s32.totalorder %s257_s27, %s11460_s18  ;;  %p11465_p10 = scmp.lt.s32.totalorder %s257_s27, %s257_s27 }
  0xbd   :  { %p11466_p11 = scmp.lt.s32.totalorder %s11464_s22, %s11460_s18 }
  0xbf   :  { %p11467_p12 = por %p11466_p11, %p11465_p10 }
  0xc1   :  { %p11468_p13 = pnand %p11467_p12, %p11461_p9 }
  0xc3   :  { %11471 = shalt.err (!%p11468_p13)
}
  0xc4   :  { %259 = dma.hbm_to_vmem [thread:$0]  %s12100_s8, 16, %s257_s27, [#allocation25]  }
  0xc5   :  { %s11472_s14 = scalar_lea.hbm %s12120_s5, 16 }
  0xc6   :  { %p11473_p0 = scmp.ne.s32.totalorder %s12120_s5, %s11472_s14  ;;  %p11476_p1 = scmp.lt.u32.totalorder %s11472_s14, %s12120_s5 }
  0xc8   :  { %p11478_p2 = pnand %p11476_p1, %p11473_p0 }
  0xca   :  { %11481 = shalt.err (!%p11478_p2)
}
  0xcb   :  { %s11482_s23 = scalar_lea.vmem %s281_s11, 16  ;;  %s11486_s26 = scalar_lea.vmem %s281_s11, 32 }
  0xcc   :  { %p11483_p3 = scmp.ne.s32.totalorder %s281_s11, %s11482_s23  ;;  %p11487_p4 = scmp.lt.s32.totalorder %s281_s11, %s281_s11 }
  0xcd   :  { %p11488_p5 = scmp.lt.s32.totalorder %s11486_s26, %s11482_s23 }
  0xcf   :  { %p11489_p6 = por %p11488_p5, %p11487_p4 }
  0xd1   :  { %p11490_p7 = pnand %p11489_p6, %p11483_p3 }
  0xd3   :  { %11493 = shalt.err (!%p11490_p7)
}
  0xd4   :  { %283 = dma.hbm_to_vmem [thread:$0]  %s12120_s5, 16, %s281_s11, [#allocation28]  }
  0xd5   :  { %s11967_s28 = smov [#allocation30]   ;;  %s11968_s2 = smov [#allocation33]  }
  0xd6   :  { %s304_s8 = sshll.u32 %s11967_s28, 4  ;;  %s325_s6 = sshll.u32 %s11968_s2, 4  ;;  %s305_s8 = int_to_ptr.vmem [resolvable:$true] %s304_s8  ;;  %s12228_s6 = int_to_ptr.vmem [resolvable:$true] %s325_s6 }
  0xd7   :  { %s11494_s7 = scalar_lea.hbm %s12140_s20, 16 }
  0xd8   :  { %p11495_p8 = scmp.ne.s32.totalorder %s12140_s20, %s11494_s7  ;;  %p11498_p9 = scmp.lt.u32.totalorder %s11494_s7, %s12140_s20 }
  0xda   :  { %p11500_p10 = pnand %p11498_p9, %p11495_p8 }
  0xdc   :  { %11503 = shalt.err (!%p11500_p10)
}
  0xdd   :  { %s11504_s25 = scalar_lea.vmem %s305_s8, 16  ;;  %s11508_s0 = scalar_lea.vmem %s305_s8, 32 }
  0xde   :  { %p11505_p11 = scmp.ne.s32.totalorder %s305_s8, %s11504_s25  ;;  %p11509_p12 = scmp.lt.s32.totalorder %s305_s8, %s305_s8 }
  0xdf   :  { %p11510_p13 = scmp.lt.s32.totalorder %s11508_s0, %s11504_s25 }
  0xe1   :  { %p11511_p0 = por %p11510_p13, %p11509_p12 }
  0xe3   :  { %p11512_p1 = pnand %p11511_p0, %p11505_p11 }
  0xe5   :  { %11515 = shalt.err (!%p11512_p1)
}
  0xe6   :  { %307 = dma.hbm_to_vmem [thread:$0]  %s12140_s20, 16, %s305_s8, [#allocation31]  }
  0xe7   :  { %s11516_s5 = scalar_lea.hbm %s12150_s3, 512 }
  0xe8   :  { %p11517_p2 = scmp.ne.s32.totalorder %s12150_s3, %s11516_s5  ;;  %p11520_p3 = scmp.lt.u32.totalorder %s11516_s5, %s12150_s3 }
  0xea   :  { %p11522_p4 = pnand %p11520_p3, %p11517_p2 }
  0xec   :  { %11525 = shalt.err (!%p11522_p4)
}
  0xed   :  { %s11526_s27 = scalar_lea.vmem %s12228_s6, 512  ;;  %p11531_p6 = scmp.lt.s32.totalorder %s12228_s6, %s12228_s6 }
  0xee   :  { %p11527_p5 = scmp.ne.s32.totalorder %s12228_s6, %s11526_s27  ;;  %p11532_p7 = scmp.lt.s32.totalorder %s11526_s27, %s11526_s27 }
  0xf0   :  { %p11533_p8 = por %p11532_p7, %p11531_p6 }
  0xf2   :  { %p11534_p9 = pnand %p11533_p8, %p11527_p5 }
  0xf4   :  { %11537 = shalt.err (!%p11534_p9)
}
  0xf5   :  { %331 = dma.hbm_to_vmem [thread:$0]  %s12150_s3, 512, %s12228_s6, [#allocation34], %s11958_s1, %s11958_s1, %s11959_s17  }
  0xf6   :  { %s11969_s20 = smov [#allocation36]   ;;  %s11970_s11 = smov [#allocation39]  }
  0xf7   :  { %s350_s10 = sshll.u32 %s11969_s20, 4  ;;  %s373_s16 = sshll.u32 %s11970_s11, 4  ;;  %s351_s10 = int_to_ptr.vmem [resolvable:$true] %s350_s10  ;;  %s12246_s16 = int_to_ptr.vmem [resolvable:$true] %s373_s16 }
  0xf8   :  { %s11538_s18 = scalar_lea.hbm %s12160_s4, 128 }
  0xf9   :  { %p11539_p10 = scmp.ne.s32.totalorder %s12160_s4, %s11538_s18  ;;  %p11542_p11 = scmp.lt.u32.totalorder %s11538_s18, %s12160_s4 }
  0xfb   :  { %p11544_p12 = pnand %p11542_p11, %p11539_p10 }
  0xfd   :  { %11547 = shalt.err (!%p11544_p12)
}
  0xfe   :  { %s11548_s22 = scalar_lea.vmem %s351_s10, 128  ;;  %p11553_p0 = scmp.lt.s32.totalorder %s351_s10, %s351_s10 }
  0xff   :  { %p11549_p13 = scmp.ne.s32.totalorder %s351_s10, %s11548_s22  ;;  %p11554_p1 = scmp.lt.s32.totalorder %s11548_s22, %s11548_s22 }
 0x101   :  { %p11555_p2 = por %p11554_p1, %p11553_p0 }
 0x103   :  { %p11556_p3 = pnand %p11555_p2, %p11549_p13 }
 0x105   :  { %11559 = shalt.err (!%p11556_p3)
}
 0x106   :  { %353 = dma.hbm_to_vmem [thread:$0]  %s12160_s4, 128, %s351_s10, [#allocation37]  }
 0x107   :  { %s11560_s3 = scalar_lea.hbm %s12175_s13, 8192 }
 0x108   :  { %p11561_p4 = scmp.ne.s32.totalorder %s12175_s13, %s11560_s3  ;;  %p11564_p5 = scmp.lt.u32.totalorder %s11560_s3, %s12175_s13 }
 0x10a   :  { %p11566_p6 = pnand %p11564_p5, %p11561_p4 }
 0x10c   :  { %11569 = shalt.err (!%p11566_p6)
}
 0x10d   :  { %s11570_s14 = scalar_lea.vmem %s12246_s16, 8192  ;;  %p11575_p8 = scmp.lt.s32.totalorder %s12246_s16, %s12246_s16 }
 0x10e   :  { %p11571_p7 = scmp.ne.s32.totalorder %s12246_s16, %s11570_s14  ;;  %p11576_p9 = scmp.lt.s32.totalorder %s11570_s14, %s11570_s14 }
 0x110   :  { %p11577_p10 = por %p11576_p9, %p11575_p8 }
 0x112   :  { %p11578_p11 = pnand %p11577_p10, %p11571_p7 }
 0x114   :  { %11581 = shalt.err (!%p11578_p11)
}
 0x115   :  { %s11971_s23 = smov 1024   ;;  %s11972_s4 = smov [#allocation3]  }
 0x116   :  { %379 = dma.hbm_to_vmem [thread:$0]  %s12175_s13, 8192, %s12246_s16, [#allocation40], %s11971_s23, %s11971_s23, %s11961_s15  }
 0x117   :  { %s101_s26 = sshll.u32 %s11972_s4, 4  ;;  %s11973_s28 = smov [#allocation8]   ;;  %s102_s26 = int_to_ptr.vmem [resolvable:$true] %s101_s26 }
 0x118   :  { %s126_s8 = sshll.u32 %s11973_s28, 4  ;;  %s11582_s2 = scalar_lea.hbm %s12005_s9, 1536  ;;  %s127_s8 = int_to_ptr.vmem [resolvable:$true] %s126_s8 }
 0x119   :  { %p11583_p12 = scmp.ne.s32.totalorder %s12005_s9, %s11582_s2  ;;  %p11586_p13 = scmp.lt.u32.totalorder %s11582_s2, %s12005_s9 }
 0x11b   :  { %p11588_p0 = pnand %p11586_p13, %p11583_p12 }
 0x11d   :  { %11591 = shalt.err (!%p11588_p0)
}
 0x11e   :  { %s11592_s6 = scalar_lea.vmem %s102_s26, 1536  ;;  %p11597_p2 = scmp.lt.s32.totalorder %s102_s26, %s102_s26 }
 0x11f   :  { %p11593_p1 = scmp.ne.s32.totalorder %s102_s26, %s11592_s6  ;;  %p11598_p3 = scmp.lt.s32.totalorder %s11592_s6, %s11592_s6 }
 0x121   :  { %p11599_p4 = por %p11598_p3, %p11597_p2 }
 0x123   :  { %p11600_p5 = pnand %p11599_p4, %p11593_p1 }
 0x125   :  { %11603 = shalt.err (!%p11600_p5)
}
 0x126   :  { %107 = dma.hbm_to_vmem [thread:$0]  %s12005_s9, 1536, %s102_s26, [#allocation4], %s11958_s1, %s11958_s1, %s11959_s17  }
 0x127   :  { %s11604_s13 = scalar_lea.hbm %s12020_s21, 16 }
 0x128   :  { %p11605_p6 = scmp.ne.s32.totalorder %s12020_s21, %s11604_s13  ;;  %p11608_p7 = scmp.lt.u32.totalorder %s11604_s13, %s12020_s21 }
 0x12a   :  { %p11610_p8 = pnand %p11608_p7, %p11605_p6 }
 0x12c   :  { %11613 = shalt.err (!%p11610_p8)
}
 0x12d   :  { %s11614_s7 = scalar_lea.vmem %s127_s8, 16  ;;  %s11618_s25 = scalar_lea.vmem %s127_s8, 32 }
 0x12e   :  { %p11615_p9 = scmp.ne.s32.totalorder %s127_s8, %s11614_s7  ;;  %p11619_p10 = scmp.lt.s32.totalorder %s127_s8, %s127_s8 }
 0x12f   :  { %p11620_p11 = scmp.lt.s32.totalorder %s11618_s25, %s11614_s7 }
 0x131   :  { %p11621_p12 = por %p11620_p11, %p11619_p10 }
 0x133   :  { %p11622_p13 = pnand %p11621_p12, %p11615_p9 }
 0x135   :  { %11625 = shalt.err (!%p11622_p13)
}
 0x136   :  { %129 = dma.hbm_to_vmem [thread:$0]  %s12020_s21, 16, %s127_s8, [#allocation7]  }
 0x137   :  { %s11974_s9 = smov [#allocation11]   ;;  %s11975_s5 = smov [#allocation14]  }
 0x138   :  { %s156_s0 = sshll.u32 %s11974_s9, 4  ;;  %s178_s27 = sshll.u32 %s11975_s5, 4  ;;  %s157_s0 = int_to_ptr.vmem [resolvable:$true] %s156_s0  ;;  %s179_s27 = int_to_ptr.vmem [resolvable:$true] %s178_s27 }
 0x139   :  { %s11626_s20 = scalar_lea.hbm %s12050_s19, 32 }
 0x13a   :  { %p11627_p0 = scmp.ne.s32.totalorder %s12050_s19, %s11626_s20  ;;  %p11630_p1 = scmp.lt.u32.totalorder %s11626_s20, %s12050_s19 }
 0x13c   :  { %p11632_p2 = pnand %p11630_p1, %p11627_p0 }
 0x13e   :  { %11635 = shalt.err (!%p11632_p2)
}
 0x13f   :  { %s11636_s10 = scalar_lea.vmem %s157_s0, 32  ;;  %p11641_p4 = scmp.lt.s32.totalorder %s157_s0, %s157_s0 }
 0x140   :  { %p11637_p3 = scmp.ne.s32.totalorder %s157_s0, %s11636_s10  ;;  %p11642_p5 = scmp.lt.s32.totalorder %s11636_s10, %s11636_s10 }
 0x142   :  { %p11643_p6 = por %p11642_p5, %p11641_p4 }
 0x144   :  { %p11644_p7 = pnand %p11643_p6, %p11637_p3 }
 0x146   :  { %11647 = shalt.err (!%p11644_p7)
}
 0x147   :  { %s13978_s11 = sld [smem:[#allocation63_spill]] }
 0x148   :  { %159 = dma.hbm_to_vmem [thread:$0]  %s12050_s19, 32, %s157_s0, [#allocation10]  }
 0x14d   :  { %s11648_s21 = scalar_lea.hbm %s13978_s11, 32 }
 0x14e   :  { %p11649_p8 = scmp.ne.s32.totalorder %s13978_s11, %s11648_s21  ;;  %p11652_p9 = scmp.lt.u32.totalorder %s11648_s21, %s13978_s11 }
 0x150   :  { %p11654_p10 = pnand %p11652_p9, %p11649_p8 }
 0x152   :  { %11657 = shalt.err (!%p11654_p10)
}
 0x153   :  { %s11658_s16 = scalar_lea.vmem %s179_s27, 32  ;;  %p11663_p12 = scmp.lt.s32.totalorder %s179_s27, %s179_s27 }
 0x154   :  { %p11659_p11 = scmp.ne.s32.totalorder %s179_s27, %s11658_s16  ;;  %p11664_p13 = scmp.lt.s32.totalorder %s11658_s16, %s11658_s16 }
 0x156   :  { %p11665_p0 = por %p11664_p13, %p11663_p12 }
 0x158   :  { %p11666_p1 = pnand %p11665_p0, %p11659_p11 }
 0x15a   :  { %11669 = shalt.err (!%p11666_p1)
}
 0x15b   :  { %s13979_s18 = sld [smem:[#allocation64_spill]]  ;;  %s11976_s22 = smov [#allocation17]  }
 0x15c   :  { %181 = dma.hbm_to_vmem [thread:$0]  %s13978_s11, 32, %s179_s27, [#allocation13]  }
 0x15d   :  { %s200_s19 = sshll.u32 %s11976_s22, 4  ;;  %s11977_s3 = smov [#allocation20]   ;;  %s201_s19 = int_to_ptr.vmem [resolvable:$true] %s200_s19 }
 0x15e   :  { %s221_s14 = sshll.u32 %s11977_s3, 4  ;;  %s222_s14 = int_to_ptr.vmem [resolvable:$true] %s221_s14 }
 0x161   :  { %s11670_s23 = scalar_lea.hbm %s13979_s18, 16 }
 0x162   :  { %p11671_p2 = scmp.ne.s32.totalorder %s13979_s18, %s11670_s23  ;;  %p11674_p3 = scmp.lt.u32.totalorder %s11670_s23, %s13979_s18 }
 0x164   :  { %p11676_p4 = pnand %p11674_p3, %p11671_p2 }
 0x166   :  { %11679 = shalt.err (!%p11676_p4)
}
 0x167   :  { %s11680_s4 = scalar_lea.vmem %s201_s19, 16  ;;  %s11684_s26 = scalar_lea.vmem %s201_s19, 32 }
 0x168   :  { %p11681_p5 = scmp.ne.s32.totalorder %s201_s19, %s11680_s4  ;;  %p11685_p6 = scmp.lt.s32.totalorder %s201_s19, %s201_s19 }
 0x169   :  { %p11686_p7 = scmp.lt.s32.totalorder %s11684_s26, %s11680_s4 }
 0x16b   :  { %p11687_p8 = por %p11686_p7, %p11685_p6 }
 0x16d   :  { %p11688_p9 = pnand %p11687_p8, %p11681_p5 }
 0x16f   :  { %11691 = shalt.err (!%p11688_p9)
}
 0x170   :  { %s13980_s28 = sld [smem:[#allocation66_spill]] }
 0x171   :  { %203 = dma.hbm_to_vmem [thread:$0]  %s13979_s18, 16, %s201_s19, [#allocation16]  }
 0x176   :  { %s11692_s8 = scalar_lea.hbm %s13980_s28, 3072 }
 0x177   :  { %p11693_p10 = scmp.ne.s32.totalorder %s13980_s28, %s11692_s8  ;;  %p11696_p11 = scmp.lt.u32.totalorder %s11692_s8, %s13980_s28 }
 0x179   :  { %p11698_p12 = pnand %p11696_p11, %p11693_p10 }
 0x17b   :  { %11701 = shalt.err (!%p11698_p12)
}
 0x17c   :  { %s11702_s2 = scalar_lea.vmem %s222_s14, 3072  ;;  %p11707_p0 = scmp.lt.s32.totalorder %s222_s14, %s222_s14 }
 0x17d   :  { %p11703_p13 = scmp.ne.s32.totalorder %s222_s14, %s11702_s2  ;;  %p11708_p1 = scmp.lt.s32.totalorder %s11702_s2, %s11702_s2 }
 0x17f   :  { %p11709_p2 = por %p11708_p1, %p11707_p0 }
 0x181   :  { %p11710_p3 = pnand %p11709_p2, %p11703_p13 }
 0x183   :  { %11713 = shalt.err (!%p11710_p3)
}
 0x184   :  { %s13981_s6 = sld [smem:[#allocation67_spill]]  ;;  %s11978_s13 = smov [#allocation23]  }
 0x185   :  { %227 = dma.hbm_to_vmem [thread:$0]  %s13980_s28, 3072, %s222_s14, [#allocation19], %s11961_s15, %s11961_s15, %s11962_s24  }
 0x186   :  { %s243_s7 = sshll.u32 %s11978_s13, 4  ;;  %s11979_s25 = smov [#allocation26]   ;;  %s244_s7 = int_to_ptr.vmem [resolvable:$true] %s243_s7 }
 0x187   :  { %s268_s9 = sshll.u32 %s11979_s25, 4  ;;  %s269_s9 = int_to_ptr.vmem [resolvable:$true] %s268_s9 }
 0x18a   :  { %s11714_s0 = scalar_lea.hbm %s13981_s6, 3072 }
 0x18b   :  { %p11715_p4 = scmp.ne.s32.totalorder %s13981_s6, %s11714_s0  ;;  %p11718_p5 = scmp.lt.u32.totalorder %s11714_s0, %s13981_s6 }
 0x18d   :  { %p11720_p6 = pnand %p11718_p5, %p11715_p4 }
 0x18f   :  { %11723 = shalt.err (!%p11720_p6)
}
 0x190   :  { %s11724_s5 = scalar_lea.vmem %s244_s7, 3072  ;;  %p11729_p8 = scmp.lt.s32.totalorder %s244_s7, %s244_s7 }
 0x191   :  { %p11725_p7 = scmp.ne.s32.totalorder %s244_s7, %s11724_s5  ;;  %p11730_p9 = scmp.lt.s32.totalorder %s11724_s5, %s11724_s5 }
 0x193   :  { %p11731_p10 = por %p11730_p9, %p11729_p8 }
 0x195   :  { %p11732_p11 = pnand %p11731_p10, %p11725_p7 }
 0x197   :  { %11735 = shalt.err (!%p11732_p11)
}
 0x198   :  { %s13982_s27 = sld [smem:[#allocation69_spill]] }
 0x199   :  { %249 = dma.hbm_to_vmem [thread:$0]  %s13981_s6, 3072, %s244_s7, [#allocation22], %s11961_s15, %s11961_s15, %s11962_s24  }
 0x19e   :  { %s11736_s20 = scalar_lea.hbm %s13982_s27, 16 }
 0x19f   :  { %p11737_p12 = scmp.ne.s32.totalorder %s13982_s27, %s11736_s20  ;;  %p11740_p13 = scmp.lt.u32.totalorder %s11736_s20, %s13982_s27 }
 0x1a1   :  { %p11742_p0 = pnand %p11740_p13, %p11737_p12 }
 0x1a3   :  { %11745 = shalt.err (!%p11742_p0)
}
 0x1a4   :  { %s11746_s10 = scalar_lea.vmem %s269_s9, 16  ;;  %s11750_s11 = scalar_lea.vmem %s269_s9, 32 }
 0x1a5   :  { %p11747_p1 = scmp.ne.s32.totalorder %s269_s9, %s11746_s10  ;;  %p11751_p2 = scmp.lt.s32.totalorder %s269_s9, %s269_s9 }
 0x1a6   :  { %p11752_p3 = scmp.lt.s32.totalorder %s11750_s11, %s11746_s10 }
 0x1a8   :  { %p11753_p4 = por %p11752_p3, %p11751_p2 }
 0x1aa   :  { %p11754_p5 = pnand %p11753_p4, %p11747_p1 }
 0x1ac   :  { %11757 = shalt.err (!%p11754_p5)
}
 0x1ad   :  { %s13983_s21 = sld [smem:[#allocation72_spill]]  ;;  %s11980_s24 = smov [#allocation29]  }
 0x1ae   :  { %271 = dma.hbm_to_vmem [thread:$0]  %s13982_s27, 16, %s269_s9, [#allocation25]  }
 0x1af   :  { %s292_s16 = sshll.u32 %s11980_s24, 4  ;;  %s11981_s18 = smov [#allocation32]   ;;  %s293_s16 = int_to_ptr.vmem [resolvable:$true] %s292_s16 }
 0x1b0   :  { %s313_s22 = sshll.u32 %s11981_s18, 4  ;;  %s314_s22 = int_to_ptr.vmem [resolvable:$true] %s313_s22 }
 0x1b3   :  { %s11758_s19 = scalar_lea.hbm %s13983_s21, 16 }
 0x1b4   :  { %p11759_p6 = scmp.ne.s32.totalorder %s13983_s21, %s11758_s19  ;;  %p11762_p7 = scmp.lt.u32.totalorder %s11758_s19, %s13983_s21 }
 0x1b6   :  { %p11764_p8 = pnand %p11762_p7, %p11759_p6 }
 0x1b8   :  { %11767 = shalt.err (!%p11764_p8)
}
 0x1b9   :  { %s11768_s3 = scalar_lea.vmem %s293_s16, 16  ;;  %s11772_s14 = scalar_lea.vmem %s293_s16, 32 }
 0x1ba   :  { %p11769_p9 = scmp.ne.s32.totalorder %s293_s16, %s11768_s3  ;;  %p11773_p10 = scmp.lt.s32.totalorder %s293_s16, %s293_s16 }
 0x1bb   :  { %p11774_p11 = scmp.lt.s32.totalorder %s11772_s14, %s11768_s3 }
 0x1bd   :  { %p11775_p12 = por %p11774_p11, %p11773_p10 }
 0x1bf   :  { %p11776_p13 = pnand %p11775_p12, %p11769_p9 }
 0x1c1   :  { %11779 = shalt.err (!%p11776_p13)
}
 0x1c2   :  { %s13984_s23 = sld [smem:[#allocation74_spill]] }
 0x1c3   :  { %295 = dma.hbm_to_vmem [thread:$0]  %s13983_s21, 16, %s293_s16, [#allocation28]  }
 0x1c8   :  { %s11780_s4 = scalar_lea.hbm %s13984_s23, 1024 }
 0x1c9   :  { %p11781_p0 = scmp.ne.s32.totalorder %s13984_s23, %s11780_s4  ;;  %p11784_p1 = scmp.lt.u32.totalorder %s11780_s4, %s13984_s23 }
 0x1cb   :  { %p11786_p2 = pnand %p11784_p1, %p11781_p0 }
 0x1cd   :  { %11789 = shalt.err (!%p11786_p2)
}
 0x1ce   :  { %s11790_s26 = scalar_lea.vmem %s314_s22, 1024  ;;  %p11795_p4 = scmp.lt.s32.totalorder %s314_s22, %s314_s22 }
 0x1cf   :  { %p11791_p3 = scmp.ne.s32.totalorder %s314_s22, %s11790_s26  ;;  %p11796_p5 = scmp.lt.s32.totalorder %s11790_s26, %s11790_s26 }
 0x1d1   :  { %p11797_p6 = por %p11796_p5, %p11795_p4 }
 0x1d3   :  { %p11798_p7 = pnand %p11797_p6, %p11791_p3 }
 0x1d5   :  { %11801 = shalt.err (!%p11798_p7)
}
 0x1d6   :  { %s13985_s28 = sld [smem:[#allocation75_spill]]  ;;  %s11982_s8 = smov [#allocation35]  }
 0x1d7   :  { %319 = dma.hbm_to_vmem [thread:$0]  %s13984_s23, 1024, %s314_s22, [#allocation31], %s11958_s1, %s11958_s1, %s11959_s17  }
 0x1d8   :  { %s337_s2 = sshll.u32 %s11982_s8, 4  ;;  %s11983_s6 = smov [#allocation38]   ;;  %s338_s2 = int_to_ptr.vmem [resolvable:$true] %s337_s2 }
 0x1d9   :  { %s361_s13 = sshll.u32 %s11983_s6, 4  ;;  %s362_s13 = int_to_ptr.vmem [resolvable:$true] %s361_s13 }
 0x1dc   :  { %s11802_s7 = scalar_lea.hbm %s13985_s28, 256 }
 0x1dd   :  { %p11803_p8 = scmp.ne.s32.totalorder %s13985_s28, %s11802_s7  ;;  %p11806_p9 = scmp.lt.u32.totalorder %s11802_s7, %s13985_s28 }
 0x1df   :  { %p11808_p10 = pnand %p11806_p9, %p11803_p8 }
 0x1e1   :  { %11811 = shalt.err (!%p11808_p10)
}
 0x1e2   :  { %s11812_s25 = scalar_lea.vmem %s338_s2, 256  ;;  %p11817_p12 = scmp.lt.s32.totalorder %s338_s2, %s338_s2 }
 0x1e3   :  { %p11813_p11 = scmp.ne.s32.totalorder %s338_s2, %s11812_s25  ;;  %p11818_p13 = scmp.lt.s32.totalorder %s11812_s25, %s11812_s25 }
 0x1e5   :  { %p11819_p0 = por %p11818_p13, %p11817_p12 }
 0x1e7   :  { %p11820_p1 = pnand %p11819_p0, %p11813_p11 }
 0x1e9   :  { %11823 = shalt.err (!%p11820_p1)
}
 0x1ea   :  { %343 = dma.hbm_to_vmem [thread:$0]  %s13985_s28, 256, %s338_s2, [#allocation34], %s11958_s1, %s11958_s1, %s11959_s17  }
 0x1eb   :  { %s11824_s9 = scalar_lea.hbm %s12170_s12, 1024 }
 0x1ec   :  { %p11825_p2 = scmp.ne.s32.totalorder %s12170_s12, %s11824_s9  ;;  %p11828_p3 = scmp.lt.u32.totalorder %s11824_s9, %s12170_s12 }
 0x1ee   :  { %p11830_p4 = pnand %p11828_p3, %p11825_p2 }
 0x1f0   :  { %11833 = shalt.err (!%p11830_p4)
}
 0x1f1   :  { %s11834_s0 = scalar_lea.vmem %s362_s13, 1024  ;;  %p11839_p6 = scmp.lt.s32.totalorder %s362_s13, %s362_s13 }
 0x1f2   :  { %p11835_p5 = scmp.ne.s32.totalorder %s362_s13, %s11834_s0  ;;  %p11840_p7 = scmp.lt.s32.totalorder %s11834_s0, %s11834_s0 }
 0x1f4   :  { %p11841_p8 = por %p11840_p7, %p11839_p6 }
 0x1f6   :  { %p11842_p9 = pnand %p11841_p8, %p11835_p5 }
 0x1f8   :  { %11845 = shalt.err (!%p11842_p9)
}
 0x1f9   :  { %367 = dma.hbm_to_vmem [thread:$0]  %s12170_s12, 1024, %s362_s13, [#allocation37], %s11958_s1, %s11958_s1, %s11959_s17  }
 0x1fa   :  { %s11984_s5 = smov [#allocation41]   ;;  %s11846_s20 = scalar_lea.hbm %s12180_s30, 256 }
 0x1fb   :  { %s386_s27 = sshll.u32 %s11984_s5, 4  ;;  %p11847_p10 = scmp.ne.s32.totalorder %s12180_s30, %s11846_s20  ;;  %s387_s27 = int_to_ptr.vmem [resolvable:$true] %s386_s27 }
 0x1fc   :  { %p11850_p11 = scmp.lt.u32.totalorder %s11846_s20, %s12180_s30 }
 0x1fe   :  { %p11852_p12 = pnand %p11850_p11, %p11847_p10 }
 0x200   :  { %11855 = shalt.err (!%p11852_p12)
}
 0x201   :  { %s11856_s10 = scalar_lea.vmem %s387_s27, 256  ;;  %p11861_p0 = scmp.lt.s32.totalorder %s387_s27, %s387_s27 }
 0x202   :  { %p11857_p13 = scmp.ne.s32.totalorder %s387_s27, %s11856_s10  ;;  %p11862_p1 = scmp.lt.s32.totalorder %s11856_s10, %s11856_s10 }
 0x204   :  { %p11863_p2 = por %p11862_p1, %p11861_p0 }
 0x206   :  { %p11864_p3 = pnand %p11863_p2, %p11857_p13 }
 0x208   :  { %11867 = shalt.err (!%p11864_p3)
}
 0x209   :  { %389 = dma.hbm_to_vmem [thread:$0]  %s12180_s30, 256, %s387_s27, [#allocation40]  }
 0x20a   :  { %11890 = dma.done.wait [#allocation4], 1536  }
 0x20b   :  { %11891 = vsyncadd [#allocation4], 4294965760 }
 0x20c   :  { %11892 = dma.done.wait [#allocation7], 32  }
 0x20d   :  { %11893 = vsyncadd [#allocation7], 4294967264 }
 0x20e   :  { %11894 = dma.done.wait [#allocation10], 1568  }
 0x20f   :  { %11895 = vsyncadd [#allocation10], 4294965728 }
 0x210   :  { %11896 = dma.done.wait [#allocation13], 12320  }
 0x211   :  { %11897 = vsyncadd [#allocation13], 4294954976 }
 0x212   :  { %11898 = dma.done.wait [#allocation16], 6160  }
 0x213   :  { %11899 = vsyncadd [#allocation16], 4294961136 }
 0x214   :  { %11900 = dma.done.wait [#allocation19], 3088  }
 0x215   :  { %11901 = vsyncadd [#allocation19], 4294964208 }
 0x216   :  { %11902 = dma.done.wait [#allocation22], 3088  }
 0x217   :  { %11903 = vsyncadd [#allocation22], 4294964208 }
 0x218   :  { %11904 = dma.done.wait [#allocation25], 32  }
 0x219   :  { %11905 = vsyncadd [#allocation25], 4294967264 }
 0x21a   :  { %11906 = dma.done.wait [#allocation28], 32  }
 0x21b   :  { %11907 = vsyncadd [#allocation28], 4294967264 }
 0x21c   :  { %11908 = dma.done.wait [#allocation31], 1040  }
 0x21d   :  { %11909 = vsyncadd [#allocation31], 4294966256 }
 0x21e   :  { %11910 = dma.done.wait [#allocation34], 768  }
 0x21f   :  { %11911 = vsyncadd [#allocation34], 4294966528 }
 0x220   :  { %11912 = dma.done.wait [#allocation37], 1152  }
 0x221   :  { %11913 = vsyncadd [#allocation37], 4294966144 }
 0x222   :  { %11914 = dma.done.wait [#allocation40], 8448  }
 0x223   :  { %11915 = vsyncadd [#allocation40], 4294958848  ;;  %v482_v0 = vld [vmem:[#allocation3] sm:$0xff]  ;;  %v483_v1 = vld [vmem:[#allocation3 + $0x8] sm:$0xff]  ;;  %s13986_s30 = sld [smem:[#allocation57_spill]]  ;;  %s13987_s12 = sld [smem:[#allocation58_spill]] }
 0x224   :  { %v683_v2 = vld [vmem:[#allocation3 + $0x30] sm:$0xff]  ;;  %v10291_v3 = vpack.c.bf16 %v483_v1, %v482_v0  ;;  %v684_v4 = vld [vmem:[#allocation3 + $0x38] sm:$0xff]  ;;  %v685_v9 = vld [vmem:[#allocation3 + $0x40] sm:$0xff]  ;;  %vm488_vm0 = vcmask 392192   ;;  %vm13955_vm1 = vcmask 523264   ;;  %vm13953_vm3 = vcmask 516096  }
 0x225   :  { %v484_v5 = vld [vmem:[#allocation3 + $0x10] sm:$0xff]  ;;  %v485_v6 = vld [vmem:[#allocation3 + $0x18] sm:$0xff]  ;;  %v10303_v7 = vpack.c.bf16 %v684_v4, %v683_v2  ;;  %v686_v10 = vld [vmem:[#allocation3 + $0x48] sm:$0xff]  ;;  %vm1292_vm2 = vsmask.f32 7938  ;;  %s11985_s1 = smov 32  }
 0x226   :  { %v10295_v8 = vpack.c.bf16 %v485_v6, %v484_v5  ;;  %v486_v11 = vld [vmem:[#allocation3 + $0x20] sm:$0xff]  ;;  %10292 = vmatprep.subr.bf16.mxu0 %v10291_v3  ;;  %v10307_v12 = vpack.c.bf16 %v686_v10, %v685_v9  ;;  %v487_v13 = vld [vmem:[#allocation3 + $0x28] sm:$0xff]  ;;  %v687_v14 = vld [vmem:[#allocation3 + $0x50] sm:$0xff]  ;;  %vm1351_vm5 = vsmask.f32 7424  ;;  %vm1291_vm6 = vcmask 261120  }
 0x227   :  { %v688_v15 = vld [vmem:[#allocation3 + $0x58] sm:$0xff]  ;;  %10304 = vmatprep.subr.bf16.mxu1 %v10303_v7  ;;  %10294 = vmatpush3.bf16.msra.mxu0 %v10291_v3  ;;  %v10299_v17 = vpack.c.bf16 %v487_v13, %v486_v11  ;;  %vm12406_vm4 = vmand %vm13953_vm3, %vm1292_vm2  ;;  %vm13954_vm7 = vsmask.f32 256  ;;  %vm1305_vm8 = vcmask 253952   ;;  %s13994_s17 = sld [smem:[#allocation60_spill]]  ;;  %vm1342_vm11 = vcmask 523520  }
 0x228   :  { %10306 = vmatpush3.bf16.msra.mxu1 %v10303_v7  ;;  %10296 = vmatprep.subr.bf16.mxu0 %v10295_v8  ;;  %v10311_v18 = vpack.c.bf16 %v688_v15, %v687_v14  ;;  %vm12487_vm9 = vmand %vm1291_vm6, %vm1292_vm2  ;;  %vm1408_vm12 = vcmask 785920   ;;  %vm1525_vm13 = vcmask 785408   ;;  %vm1402_vm14 = vcmask 785927   ;;  %s13997_s11 = sld [smem:[#allocation59_spill]]  ;;  %s14006_s21 = sld [smem:[#allocation61_spill]] }
 0x229   :  { %v466_v16 = vld [vmem:[%s13986_s30] sm:$0xff]  ;;  %10308 = vmatprep.subr.bf16.mxu1 %v10307_v12  ;;  %v883_v20 = vld [vmem:[%s13987_s12 + $0x8] sm:$0xff]  ;;  %v884_v23 = vld [vmem:[%s13987_s12 + $0x10] sm:$0xff]  ;;  %vm1403_vm15 = vsmask.f32 7966  ;;  %s14007_s24 = sld [smem:[#allocation62_spill]] }
 0x22a   :  { %10088 = vmatprep.mubr.msk.f32.mxu0 %vm488_vm0, %v466_v16  ;;  %10124 = vmatprep.mubr.msk.f32.mxu1 %vm488_vm0, %v466_v16  ;;  %v882_v19 = vld [vmem:[%s13987_s12] sm:$0xff]  ;;  %v467_v21 = vld [vmem:[%s13986_s30 + $0x8] sm:$0xff]  ;;  %v468_v24 = vld [vmem:[%s13986_s30 + $0x10] sm:$0xff]  ;;  %s14008_s16 = sld [smem:[#allocation65_spill]]  ;;  %s14013_s18 = sld [smem:[#allocation68_spill]] }
 0x22b   :  { %10298 = vmatpush3.bf16.msra.mxu0 %v10295_v8  ;;  %v10315_v22 = vpack.c.bf16 %v883_v20, %v882_v19  ;;  %v885_v25 = vld [vmem:[%s13987_s12 + $0x18] sm:$0xff]  ;;  %v886_v26 = vld [vmem:[%s13987_s12 + $0x20] sm:$0xff]  ;;  %v887_v27 = vld [vmem:[%s13987_s12 + $0x28] sm:$0xff]  ;;  %s14015_s22 = sld [smem:[#allocation70_spill]]  ;;  %s14029_s19 = sld [smem:[#allocation76_spill]] }
 0x22c   :  { %10310 = vmatpush3.bf16.msra.mxu1 %v10307_v12  ;;  %10300 = vmatprep.subr.bf16.mxu0 %v10299_v17  ;;  %v469_v28 = vld [vmem:[%s13986_s30 + $0x18] sm:$0xff]  ;;  %v10319_v29 = vpack.c.bf16 %v885_v25, %v884_v23  ;;  %v470_v30 = vld [vmem:[%s13986_s30 + $0x20] sm:$0xff]  ;;  %v471_v31 = vld [vmem:[%s13986_s30 + $0x28] sm:$0xff]  ;;  %v10323_v32 = vpack.c.bf16 %v887_v27, %v886_v26  ;;  %s14030_s3 = sld [smem:[#allocation71_spill]]  ;;  %s14036_s14 = sld [smem:[#allocation73_spill]] }
 0x22d   :  { %10312 = vmatprep.subr.bf16.mxu1 %v10311_v18  ;;  %v472_v33 = vld [vmem:[%s13986_s30 + $0x30] sm:$0xff]  ;;  %v473_v34 = vld [vmem:[%s13986_s30 + $0x38] sm:$0xff]  ;;  %v474_v35 = vld [vmem:[%s13986_s30 + $0x40] sm:$0xff] }
 0x22e   :  { %v475_v36 = vld [vmem:[%s13986_s30 + $0x48] sm:$0xff]  ;;  %v476_v37 = vld [vmem:[%s13986_s30 + $0x50] sm:$0xff]  ;;  %v477_v38 = vld [vmem:[%s13986_s30 + $0x58] sm:$0xff] }
 0x22f   :  { %10302 = vmatpush3.bf16.msra.mxu0 %v10299_v17  ;;  %v478_v39 = vld [vmem:[%s13986_s30 + $0x60] sm:$0xff]  ;;  %v479_v40 = vld [vmem:[%s13986_s30 + $0x68] sm:$0xff]  ;;  %v480_v41 = vld [vmem:[%s13986_s30 + $0x70] sm:$0xff] }
 0x230   :  { %10314 = vmatpush3.bf16.msra.mxu1 %v10311_v18  ;;  %10316 = vmatprep.subr.bf16.mxu0 %v10315_v22  ;;  %v481_v42 = vld [vmem:[%s13986_s30 + $0x78] sm:$0xff]  ;;  %v888_v43 = vld [vmem:[%s13987_s12 + $0x30] sm:$0xff]  ;;  %vm12517_vm10 = vmand %vm1305_vm8, %vm13954_vm7 }
 0x231   :  { %v889_v44 = vld [vmem:[%s13987_s12 + $0x38] sm:$0xff]  ;;  %vm1417_vm8 = vmand %vm1408_vm12, %vm1351_vm5 }
 0x232   :  { %10089 = vmatmul.mubr.msk.f32.vlgmr.msra.gmra.mrb[0].mxu0 %vm488_vm0, %v467_v21  ;;  %v10327_v45 = vpack.c.bf16 %v889_v44, %v888_v43 }
 0x233   :  { %10125 = vmatmul.mubr.msk.f32.vlgmr.msra.gmra.mrb[0].mxu1 %vm488_vm0, %v467_v21  ;;  %10091 = vmatprep.mubr.msk.f32.mxu0 %vm488_vm0, %v468_v24 }
 0x234   :  { %10127 = vmatprep.mubr.msk.f32.mxu1 %vm488_vm0, %v468_v24  ;;  %10318 = vmatpush3.bf16.msra.mxu0 %v10315_v22 }
 0x235   :  { %10320 = vmatprep.subr.bf16.mxu0 %v10319_v29 }
 0x236   :  { %10092 = vmatmul.mubr.msk.f32.gmra.mrb[2].mxu0 %vm488_vm0, %v469_v28 }
 0x237   :  { %10128 = vmatmul.mubr.msk.f32.gmra.mrb[2].mxu1 %vm488_vm0, %v469_v28  ;;  %10094 = vmatprep.mubr.msk.f32.mxu0 %vm488_vm0, %v470_v30 }
 0x238   :  { %10130 = vmatprep.mubr.msk.f32.mxu1 %vm488_vm0, %v470_v30  ;;  %10322 = vmatpush3.bf16.msra.mxu0 %v10319_v29 }
 0x239   :  { %10324 = vmatprep.subr.bf16.mxu0 %v10323_v32 }
 0x23a   :  { %10095 = vmatmul.mubr.msk.f32.gmra.mrb[4].mxu0 %vm488_vm0, %v471_v31 }
 0x23b   :  { %10131 = vmatmul.mubr.msk.f32.gmra.mrb[4].mxu1 %vm488_vm0, %v471_v31  ;;  %10097 = vmatprep.mubr.msk.f32.mxu0 %vm488_vm0, %v472_v33 }
 0x23c   :  { %10133 = vmatprep.mubr.msk.f32.mxu1 %vm488_vm0, %v472_v33  ;;  %10326 = vmatpush3.bf16.msra.mxu0 %v10323_v32 }
 0x23d   :  { %10328 = vmatprep.subr.bf16.mxu0 %v10327_v45 }
 0x23e   :  { %10098 = vmatmul.mubr.msk.f32.gmra.mrb[6].mxu0 %vm488_vm0, %v473_v34 }
 0x23f   :  { %10134 = vmatmul.mubr.msk.f32.gmra.mrb[6].mxu1 %vm488_vm0, %v473_v34  ;;  %10100 = vmatprep.mubr.msk.f32.mxu0 %vm488_vm0, %v474_v35 }
 0x240   :  { %10136 = vmatprep.mubr.msk.f32.mxu1 %vm488_vm0, %v474_v35  ;;  %10330 = vmatpush3.bf16.msra.mxu0 %v10327_v45 }
 0x242   :  { %10101 = vmatmul.mubr.msk.f32.gmra.mrb[8].mxu0 %vm488_vm0, %v475_v36 }
 0x243   :  { %10137 = vmatmul.mubr.msk.f32.gmra.mrb[8].mxu1 %vm488_vm0, %v475_v36  ;;  %10103 = vmatprep.mubr.msk.f32.mxu0 %vm488_vm0, %v476_v37 }
 0x244   :  { %10139 = vmatprep.mubr.msk.f32.mxu1 %vm488_vm0, %v476_v37 }
 0x246   :  { %10104 = vmatmul.mubr.msk.f32.gmra.mrb[10].mxu0 %vm488_vm0, %v477_v38 }
 0x247   :  { %10140 = vmatmul.mubr.msk.f32.gmra.mrb[10].mxu1 %vm488_vm0, %v477_v38  ;;  %10106 = vmatprep.mubr.msk.f32.mxu0 %vm488_vm0, %v478_v39 }
 0x248   :  { %10142 = vmatprep.mubr.msk.f32.mxu1 %vm488_vm0, %v478_v39 }
 0x24a   :  { %10107 = vmatmul.mubr.msk.f32.gmra.mrb[12].mxu0 %vm488_vm0, %v479_v40 }
 0x24b   :  { %10143 = vmatmul.mubr.msk.f32.gmra.mrb[12].mxu1 %vm488_vm0, %v479_v40  ;;  %10109 = vmatprep.mubr.msk.f32.mxu0 %vm488_vm0, %v480_v41 }
 0x24c   :  { %10145 = vmatprep.mubr.msk.f32.mxu1 %vm488_vm0, %v480_v41 }
 0x24e   :  { %10110 = vmatmul.mubr.msk.f32.gmra.mrb[14].mxu0 %vm488_vm0, %v481_v42 }
 0x24f   :  { %10146 = vmatmul.mubr.msk.f32.gmra.mrb[14].mxu1 %vm488_vm0, %v481_v42  ;;  %vm12573_vm0 = vmand %vm1402_vm14, %vm1403_vm15 }
 0x305   :  { %v10090_v46 = vpop.f32.mrb[0].mxu0 }
 0x306   :  { %v835_v47 = vmul.f32 %v10090_v46, %v10090_v46  ;;  %v10126_v48 = vpop.f32.mrb[0].mxu1  ;;  %v603_v49 = vpop.f32.mrb[1].mxu0 }
 0x307   :  { %v851_v50 = vmul.f32 %v10126_v48, %v10126_v48  ;;  %v834_v51 = vmul.f32 %v603_v49, %v603_v49  ;;  %v755_v52 = vpop.f32.mrb[1].mxu1 }
 0x308   :  { %v850_v53 = vmul.f32 %v755_v52, %v755_v52 }
 0x309   :  { %v867_v54 = vadd.f32 %v851_v50, %v835_v47  ;;  %v10093_v55 = vpop.f32.mrb[2].mxu0 }
 0x30a   :  { %v866_v56 = vadd.f32 %v850_v53, %v834_v51  ;;  %v837_v57 = vmul.f32 %v10093_v55, %v10093_v55  ;;  %v10129_v58 = vpop.f32.mrb[2].mxu1  ;;  %v613_v59 = vpop.f32.mrb[3].mxu0 }
 0x30b   :  { %v853_v60 = vmul.f32 %v10129_v58, %v10129_v58  ;;  %v836_v61 = vmul.f32 %v613_v59, %v613_v59  ;;  %v765_v62 = vpop.f32.mrb[3].mxu1 }
 0x30c   :  { %v852_v63 = vmul.f32 %v765_v62, %v765_v62  ;;  %10164 = vmatprep.mubr.msk.f32.mxu0 %vm13955_vm1, %v866_v56 }
 0x30d   :  { %v869_v0 = vadd.f32 %v853_v60, %v837_v57  ;;  %10165 = vmatmul.mubr.msk.f32.vlgmr.msra.gmra.mrb[16].mxu0 %vm13955_vm1, %v867_v54  ;;  %v10096_v1 = vpop.f32.mrb[4].mxu0 }
 0x30e   :  { %v868_v2 = vadd.f32 %v852_v63, %v836_v61  ;;  %v839_v3 = vmul.f32 %v10096_v1, %v10096_v1  ;;  %v10132_v4 = vpop.f32.mrb[4].mxu1  ;;  %v623_v5 = vpop.f32.mrb[5].mxu0 }
 0x30f   :  { %v855_v6 = vmul.f32 %v10132_v4, %v10132_v4  ;;  %v838_v7 = vmul.f32 %v623_v5, %v623_v5  ;;  %v775_v8 = vpop.f32.mrb[5].mxu1 }
 0x310   :  { %v854_v9 = vmul.f32 %v775_v8, %v775_v8  ;;  %10167 = vmatprep.mubr.msk.f32.mxu0 %vm13955_vm1, %v868_v2 }
 0x311   :  { %v871_v10 = vadd.f32 %v855_v6, %v839_v3  ;;  %10168 = vmatmul.mubr.msk.f32.gmra.mrb[18].mxu0 %vm13955_vm1, %v869_v0  ;;  %v10099_v11 = vpop.f32.mrb[6].mxu0 }
 0x312   :  { %v870_v12 = vadd.f32 %v854_v9, %v838_v7  ;;  %v841_v13 = vmul.f32 %v10099_v11, %v10099_v11  ;;  %v10135_v14 = vpop.f32.mrb[6].mxu1  ;;  %v633_v15 = vpop.f32.mrb[7].mxu0 }
 0x313   :  { %v857_v16 = vmul.f32 %v10135_v14, %v10135_v14  ;;  %v840_v17 = vmul.f32 %v633_v15, %v633_v15  ;;  %v785_v18 = vpop.f32.mrb[7].mxu1 }
 0x314   :  { %v856_v19 = vmul.f32 %v785_v18, %v785_v18  ;;  %10170 = vmatprep.mubr.msk.f32.mxu0 %vm13955_vm1, %v870_v12  ;;  %v10656_v18 = vld [vmem:[#allocation9] ss:$8 sps:$4 sm:$0xff]  }
 0x315   :  { %v873_v20 = vadd.f32 %v857_v16, %v841_v13  ;;  %10171 = vmatmul.mubr.msk.f32.gmra.mrb[20].mxu0 %vm13955_vm1, %v871_v10  ;;  %v10102_v21 = vpop.f32.mrb[8].mxu0 }
 0x316   :  { %v872_v22 = vadd.f32 %v856_v19, %v840_v17  ;;  %v843_v23 = vmul.f32 %v10102_v21, %v10102_v21  ;;  %v10138_v24 = vpop.f32.mrb[8].mxu1  ;;  %v643_v25 = vpop.f32.mrb[9].mxu0 }
 0x317   :  { %v859_v26 = vmul.f32 %v10138_v24, %v10138_v24  ;;  %v842_v27 = vmul.f32 %v643_v25, %v643_v25  ;;  %v795_v28 = vpop.f32.mrb[9].mxu1 }
 0x318   :  { %v858_v29 = vmul.f32 %v795_v28, %v795_v28  ;;  %10173 = vmatprep.mubr.msk.f32.mxu0 %vm13955_vm1, %v872_v22  ;;  %v12410_v22 = vld [vmem:[#allocation6] ss:$0 sm:$0xff] }
 0x319   :  { %v875_v30 = vadd.f32 %v859_v26, %v843_v23  ;;  %10174 = vmatmul.mubr.msk.f32.gmra.mrb[22].mxu0 %vm13955_vm1, %v873_v20  ;;  %v10105_v31 = vpop.f32.mrb[10].mxu0  ;;  %v10658_v20 = vld [vmem:[#allocation9 + $0x4] ss:$8 sps:$4 sm:$0xff]   ;;  %v12412_v26 = vld [vmem:[#allocation8] ss:$0 sm:$0xff] }
 0x31a   :  { %v874_v32 = vadd.f32 %v858_v29, %v842_v27  ;;  %v845_v33 = vmul.f32 %v10105_v31, %v10105_v31  ;;  %v10141_v34 = vpop.f32.mrb[10].mxu1  ;;  %v653_v35 = vpop.f32.mrb[11].mxu0  ;;  %1550 = vmatprep.subr.bf16.mxu1 %v10658_v20 }
 0x31b   :  { %v861_v36 = vmul.f32 %v10141_v34, %v10141_v34  ;;  %v844_v37 = vmul.f32 %v653_v35, %v653_v35  ;;  %v805_v38 = vpop.f32.mrb[11].mxu1  ;;  %1551 = vmatpush1.bf16.msra.mxu1 %v10656_v18  ;;  %v10659_v35 = vld [vmem:[#allocation9 + $0x10] ss:$8 sps:$4 sm:$0xff]  }
 0x31c   :  { %v860_v39 = vmul.f32 %v805_v38, %v805_v38  ;;  %10176 = vmatprep.mubr.msk.f32.mxu0 %vm13955_vm1, %v874_v32 }
 0x31d   :  { %v877_v40 = vadd.f32 %v861_v36, %v845_v33  ;;  %10177 = vmatmul.mubr.msk.f32.gmra.mrb[24].mxu0 %vm13955_vm1, %v875_v30  ;;  %v10108_v41 = vpop.f32.mrb[12].mxu0 }
 0x31e   :  { %v876_v42 = vadd.f32 %v860_v39, %v844_v37  ;;  %v847_v43 = vmul.f32 %v10108_v41, %v10108_v41  ;;  %v10144_v44 = vpop.f32.mrb[12].mxu1  ;;  %v663_v45 = vpop.f32.mrb[13].mxu0  ;;  %v10661_v39 = vld [vmem:[#allocation9 + $0x14] ss:$8 sps:$4 sm:$0xff]  }
 0x31f   :  { %v863_v46 = vmul.f32 %v10144_v44, %v10144_v44  ;;  %v846_v47 = vmul.f32 %v663_v45, %v663_v45  ;;  %v815_v48 = vpop.f32.mrb[13].mxu1  ;;  %1552 = vmatprep.subr.bf16.mxu1 %v10661_v39 }
 0x320   :  { %10179 = vmatprep.mubr.msk.f32.mxu0 %vm13955_vm1, %v876_v42  ;;  %v862_v49 = vmul.f32 %v815_v48, %v815_v48  ;;  %1553 = vmatpush1.bf16.msra.mxu1 %v10659_v35 }
 0x321   :  { %10180 = vmatmul.mubr.msk.f32.gmra.mrb[26].mxu0 %vm13955_vm1, %v877_v40  ;;  %v879_v50 = vadd.f32 %v863_v46, %v847_v43  ;;  %v10111_v51 = vpop.f32.mrb[14].mxu0 }
 0x322   :  { %v878_v52 = vadd.f32 %v862_v49, %v846_v47  ;;  %v849_v53 = vmul.f32 %v10111_v51, %v10111_v51  ;;  %v10147_v54 = vpop.f32.mrb[14].mxu1  ;;  %v673_v55 = vpop.f32.mrb[15].mxu0 }
 0x323   :  { %v865_v56 = vmul.f32 %v10147_v54, %v10147_v54  ;;  %v848_v57 = vmul.f32 %v673_v55, %v673_v55  ;;  %v825_v58 = vpop.f32.mrb[15].mxu1 }
 0x324   :  { %v864_v59 = vmul.f32 %v825_v58, %v825_v58  ;;  %10182 = vmatprep.mubr.msk.f32.mxu0 %vm13955_vm1, %v878_v52 }
 0x325   :  { %v881_v60 = vadd.f32 %v865_v56, %v849_v53  ;;  %10183 = vmatmul.mubr.msk.f32.gmra.mrb[28].mxu0 %vm13955_vm1, %v879_v50 }
 0x326   :  { %v880_v61 = vadd.f32 %v864_v59, %v848_v57 }
 0x328   :  { %10185 = vmatprep.mubr.msk.f32.mxu0 %vm13955_vm1, %v880_v61 }
 0x329   :  { %10186 = vmatmul.mubr.msk.f32.gmra.mrb[30].mxu0 %vm13955_vm1, %v881_v60 }
 0x3e0   :  { %v10166_v63 = vpop.f32.mrb[16].mxu0 }
 0x3e1   :  { %v1085_v0 = vmax.f32 %v10166_v63, 1e-10  ;;  %v1005_v1 = vpop.f32.mrb[17].mxu0 }
 0x3e2   :  { %v1084_v2 = vmax.f32 %v1005_v1, 1e-10 }
 0x3e3   :  { %11286 = vlog2.f32 %v1085_v0 }
 0x3e4   :  { %11288 = vlog2.f32 %v1084_v2  ;;  %v10169_v3 = vpop.f32.mrb[18].mxu0 }
 0x3e5   :  { %v1087_v4 = vmax.f32 %v10169_v3, 1e-10  ;;  %v1015_v5 = vpop.f32.mrb[19].mxu0 }
 0x3e6   :  { %v1086_v6 = vmax.f32 %v1015_v5, 1e-10 }
 0x3e7   :  { %11290 = vlog2.f32 %v1087_v4 }
 0x3e8   :  { %11292 = vlog2.f32 %v1086_v6  ;;  %v10172_v7 = vpop.f32.mrb[20].mxu0 }
 0x3e9   :  { %v1089_v8 = vmax.f32 %v10172_v7, 1e-10  ;;  %v1025_v9 = vpop.f32.mrb[21].mxu0 }
 0x3ea   :  { %v1088_v10 = vmax.f32 %v1025_v9, 1e-10 }
 0x3eb   :  { %11294 = vlog2.f32 %v1089_v8 }
 0x3ec   :  { %11296 = vlog2.f32 %v1088_v10  ;;  %v10175_v11 = vpop.f32.mrb[22].mxu0 }
 0x3ed   :  { %v11287_v12 = vpop.eup %11286  ;;  %v1091_v13 = vmax.f32 %v10175_v11, 1e-10  ;;  %v1035_v14 = vpop.f32.mrb[23].mxu0 }
 0x3ee   :  { %v11289_v15 = vpop.eup %11288  ;;  %v1103_v16 = vmul.f32 0.6931472, %v11287_v12  ;;  %v1090_v17 = vmax.f32 %v1035_v14, 1e-10 }
 0x3ef   :  { %v1101_v19 = vmul.f32 0.6931472, %v11289_v15  ;;  %11298 = vlog2.f32 %v1091_v13 }
 0x3f0   :  { %v1133_v21 = vmul.f32 0.4342945, %v1103_v16  ;;  %11300 = vlog2.f32 %v1090_v17  ;;  %v10178_v23 = vpop.f32.mrb[24].mxu0 }
 0x3f1   :  { %v11291_v24 = vpop.eup %11290  ;;  %v1132_v25 = vmul.f32 0.4342945, %v1101_v19  ;;  %v1093_v27 = vmax.f32 %v10178_v23, 1e-10  ;;  %v1045_v28 = vpop.f32.mrb[25].mxu0 }
 0x3f2   :  { %v11293_v29 = vpop.eup %11292  ;;  %v1149_v30 = vmul.f32 10.0, %v1133_v21  ;;  %v1107_v31 = vmul.f32 0.6931472, %v11291_v24  ;;  %v1092_v32 = vmax.f32 %v1045_v28, 1e-10 }
 0x3f3   :  { %v1148_v33 = vmul.f32 10.0, %v1132_v25  ;;  %v1105_v34 = vmul.f32 0.6931472, %v11293_v29  ;;  %11302 = vlog2.f32 %v1093_v27 }
 0x3f4   :  { %v1172_v36 = vmul.f32 %v12410_v22, %v1149_v30  ;;  %v1135_v37 = vmul.f32 0.4342945, %v1107_v31  ;;  %11304 = vlog2.f32 %v1092_v32  ;;  %v10181_v38 = vpop.f32.mrb[26].mxu0 }
 0x3f5   :  { %v11295_v40 = vpop.eup %11294  ;;  %v1171_v41 = vmul.f32 %v12410_v22, %v1148_v33  ;;  %v1134_v42 = vmul.f32 0.4342945, %v1105_v34  ;;  %v1095_v43 = vmax.f32 %v10181_v38, 1e-10  ;;  %v1055_v44 = vpop.f32.mrb[27].mxu0 }
 0x3f6   :  { %v11297_v45 = vpop.eup %11296  ;;  %v1151_v46 = vmul.f32 10.0, %v1135_v37  ;;  %v1111_v47 = vmul.f32 0.6931472, %v11295_v40  ;;  %v1094_v48 = vmax.f32 %v1055_v44, 1e-10  ;;  %v1195_v49 = vadd.f32 %v12412_v26, %v1172_v36 }
 0x3f7   :  { %v1150_v50 = vmul.f32 10.0, %v1134_v42  ;;  %v1109_v51 = vmul.f32 0.6931472, %v11297_v45  ;;  %11306 = vlog2.f32 %v1095_v43  ;;  %v1194_v52 = vadd.f32 %v12412_v26, %v1171_v41 }
 0x3f8   :  { %v1174_v53 = vmul.f32 %v12410_v22, %v1151_v46  ;;  %v1137_v54 = vmul.f32 0.4342945, %v1111_v47  ;;  %11308 = vlog2.f32 %v1094_v48  ;;  %v10184_v55 = vpop.f32.mrb[28].mxu0  ;;  %v10662_v48 = vld [vmem:[#allocation9 + $0x20] ss:$8 sps:$4 sm:$0xff]  }
 0x3f9   :  { %v11299_v56 = vpop.eup %11298  ;;  %v1173_v57 = vmul.f32 %v12410_v22, %v1150_v50  ;;  %v1136_v58 = vmul.f32 0.4342945, %v1109_v51  ;;  %v1210_v59 = vpack.c.bf16 %v1195_v49, %v1194_v52  ;;  %v1097_v60 = vmax.f32 %v10184_v55, 1e-10  ;;  %v1065_v61 = vpop.f32.mrb[29].mxu0 }
 0x3fa   :  { %v11301_v63 = vpop.eup %11300  ;;  %v1153_v0 = vmul.f32 10.0, %v1137_v54  ;;  %v1115_v1 = vmul.f32 0.6931472, %v11299_v56  ;;  %v1197_v2 = vadd.f32 %v12412_v26, %v1174_v53  ;;  %v1096_v3 = vmax.f32 %v1065_v61, 1e-10 }
 0x3fb   :  { %v1152_v4 = vmul.f32 10.0, %v1136_v58  ;;  %v1113_v5 = vmul.f32 0.6931472, %v11301_v63  ;;  %1318 = vrot.lane.b32.xlu0 %v1210_v59, %s11985_s1  ;;  %v1223_v6 = vshll.u32 %v1210_v59, 16  ;;  %v1196_v7 = vadd.f32 %v12412_v26, %v1173_v57  ;;  %v10664_v53 = vld [vmem:[#allocation9 + $0x24] ss:$8 sps:$4 sm:$0xff]  }
 0x3fc   :  { %v1176_v8 = vmul.f32 %v12410_v22, %v1153_v0  ;;  %v1139_v9 = vmul.f32 0.4342945, %v1115_v1  ;;  %11310 = vlog2.f32 %v1097_v60  ;;  %v10187_v10 = vpop.f32.mrb[30].mxu0  ;;  %v1220_v11 = vshrl.u32 %v1210_v59, 16  ;;  %v10667_v59 = vld [vmem:[#allocation9 + $0x34] ss:$8 sps:$4 sm:$0xff]   ;;  %1554 = vmatprep.subr.bf16.mxu1 %v10664_v53 }
 0x3fd   :  { %v11303_v12 = vpop.eup %11302  ;;  %v1175_v13 = vmul.f32 %v12410_v22, %v1152_v4  ;;  %v1138_v14 = vmul.f32 0.4342945, %v1113_v5  ;;  %v1211_v15 = vpack.c.bf16 %v1197_v2, %v1196_v7  ;;  %11312 = vlog2.f32 %v1096_v3  ;;  %v1075_v16 = vpop.f32.mrb[31].mxu0  ;;  %1555 = vmatpush1.bf16.msra.mxu1 %v10662_v48 }
 0x3fe   :  { %v11305_v17 = vpop.eup %11304  ;;  %v1199_v18 = vadd.f32 %v12412_v26, %v1176_v8  ;;  %v1155_v19 = vmul.f32 10.0, %v1139_v9  ;;  %v1119_v20 = vmul.f32 0.6931472, %v11303_v12  ;;  %v1099_v21 = vmax.f32 %v10187_v10, 1e-10  ;;  %1556 = vmatprep.subr.bf16.mxu1 %v10667_v59 }
 0x3ff   :  { %v1198_v23 = vadd.f32 %v12412_v26, %v1175_v13  ;;  %v1154_v24 = vmul.f32 10.0, %v1138_v14  ;;  %v1117_v25 = vmul.f32 0.6931472, %v11305_v17  ;;  %1320 = vrot.lane.b32.xlu1 %v1211_v15, %s11985_s1  ;;  %v1098_v27 = vmax.f32 %v1075_v16, 1e-10 }
 0x400   :  { %v1178_v28 = vmul.f32 %v12410_v22, %v1155_v19  ;;  %v1141_v29 = vmul.f32 0.4342945, %v1119_v20  ;;  %11314 = vlog2.f32 %v1099_v21  ;;  %v12429_v30 = vrot.slane %v1220_v11, 7 }
 0x401   :  { %v11307_v31 = vpop.eup %11306  ;;  %v12431_v32 = vpack.c.bf16 %v1199_v18, %v1198_v23  ;;  %v1177_v33 = vmul.f32 %v12410_v22, %v1154_v24  ;;  %v1140_v34 = vmul.f32 0.4342945, %v1117_v25  ;;  %11316 = vlog2.f32 %v1098_v27 }
 0x402   :  { %v11309_v35 = vpop.eup %11308  ;;  %v1157_v36 = vmul.f32 10.0, %v1141_v29  ;;  %v1123_v37 = vmul.f32 0.6931472, %v11307_v31  ;;  %v12435_v38 = vor.u32 %v1223_v6, %v12429_v30  ;;  %v1230_v39 = vshll.u32 %v1211_v15, 16  ;;  %v10668_v29 = vld [vmem:[#allocation9 + $0x40] ss:$8 sps:$4 sm:$0xff]  }
 0x403   :  { %v1156_v40 = vmul.f32 10.0, %v1140_v34  ;;  %v1121_v41 = vmul.f32 0.6931472, %v11309_v35  ;;  %v12437_v42 = vrot.slane %v1223_v6, 1  ;;  %v1227_v43 = vshrl.u32 %v1211_v15, 16 }
 0x404   :  { %v1180_v44 = vmul.f32 %v12410_v22, %v1157_v36  ;;  %v1143_v45 = vmul.f32 0.4342945, %v1123_v37  ;;  %v1354_v46 = vrot.slane %v1230_v39, 1  ;;  %v1238_v47 = vshll.u32 %v12431_v32, 16  ;;  %v10665_v6 = vld [vmem:[#allocation9 + $0x30] ss:$8 sps:$4 sm:$0xff]  }
 0x405   :  { %v1179_v49 = vmul.f32 %v12410_v22, %v1156_v40  ;;  %v1142_v50 = vmul.f32 0.4342945, %v1121_v41  ;;  %v1353_v51 = vor.u32 %v12437_v42, %v1220_v11  ;;  %v12443_v52 = vrot.slane %v1227_v43, 7  ;;  %v10670_v11 = vld [vmem:[#allocation9 + $0x44] ss:$8 sps:$4 sm:$0xff]   ;;  %1557 = vmatpush1.bf16.msra.mxu1 %v10665_v6 }
 0x406   :  { %v11311_v54 = vpop.eup %11310  ;;  %v1203_v55 = vadd.f32 %v12412_v26, %v1180_v44  ;;  %v1159_v56 = vmul.f32 10.0, %v1143_v45  ;;  %v1356_v57 = vor.u32 %v1354_v46, %v1227_v43  ;;  %v1357_v58 = vrot.slane %v1238_v47, 1  ;;  %1558 = vmatprep.subr.bf16.mxu1 %v10670_v11 }
 0x407   :  { %v11313_v60 = vpop.eup %11312  ;;  %v1202_v61 = vadd.f32 %v12412_v26, %v1179_v49  ;;  %v1158_v63 = vmul.f32 10.0, %v1142_v50  ;;  %v1127_v0 = vmul.f32 0.6931472, %v11311_v54  ;;  %v1355_v1 = vsel %vm1351_vm5, %v1353_v51, %v1354_v46 }
 0x408   :  { %v1182_v2 = vmul.f32 %v12410_v22, %v1159_v56  ;;  %v1125_v3 = vmul.f32 0.6931472, %v11313_v60  ;;  %1377 = vrot.lane.b32.xlu0 %v1355_v1, %s11961_s15  ;;  %v12453_v4 = vor.u32 %v1230_v39, %v12443_v52  ;;  %v1358_v5 = vsel %vm1351_vm5, %v1356_v57, %v1357_v58  ;;  %v1294_v1 = vld [vmem:[#allocation2 + $0x30] sm:$0xff] }
 0x409   :  { %v12456_v7 = vpack.c.bf16 %v1203_v55, %v1202_v61  ;;  %v1181_v8 = vmul.f32 %v12410_v22, %v1158_v63  ;;  %v1145_v9 = vmul.f32 0.4342945, %v1127_v0  ;;  %1379 = vrot.lane.b32.xlu1 %v1358_v5, %s11961_s15  ;;  %v1200_v10 = vadd.f32 %v12412_v26, %v1177_v33  ;;  %1559 = vmatpush1.bf16.msra.mxu1 %v10668_v29  ;;  %v10671_v55 = vld [vmem:[#allocation9 + $0x50] ss:$8 sps:$4 sm:$0xff]  }
 0x40a   :  { %v11315_v12 = vpop.eup %11314  ;;  %v1205_v13 = vadd.f32 %v12412_v26, %v1182_v2  ;;  %v1144_v14 = vmul.f32 0.4342945, %v1125_v3  ;;  %v1201_v15 = vadd.f32 %v12412_v26, %v1178_v28  ;;  %v1235_v16 = vshrl.u32 %v12431_v32, 16 }
 0x40b   :  { %v11317_v17 = vpop.eup %11316  ;;  %v1204_v18 = vadd.f32 %v12412_v26, %v1181_v8  ;;  %v1161_v19 = vmul.f32 10.0, %v1145_v9  ;;  %v1131_v20 = vmul.f32 0.6931472, %v11315_v12  ;;  %v1254_v21 = vshll.u32 %v12456_v7, 16 }
 0x40c   :  { %v1160_v23 = vmul.f32 10.0, %v1144_v14  ;;  %v1129_v24 = vmul.f32 0.6931472, %v11317_v17  ;;  %v1213_v25 = vpack.c.bf16 %v1201_v15, %v1200_v10  ;;  %v1237_v27 = vrot.slane %v1235_v16, 7 }
 0x40d   :  { %v12466_v31 = vpack.c.bf16 %v1205_v13, %v1204_v18  ;;  %v1184_v28 = vmul.f32 %v12410_v22, %v1161_v19  ;;  %v1147_v33 = vmul.f32 0.4342945, %v1131_v20  ;;  %1322 = vrot.lane.b32.xlu1 %v12431_v32, %s11985_s1  ;;  %v1363_v34 = vrot.slane %v1254_v21, 1 }
 0x40e   :  { %v1183_v35 = vmul.f32 %v12410_v22, %v1160_v23  ;;  %v1146_v36 = vmul.f32 0.4342945, %v1129_v24  ;;  %1324 = vrot.lane.b32.xlu0 %v1213_v25, %s11985_s1  ;;  %v1246_v37 = vshll.u32 %v1213_v25, 16  ;;  %v1243_v39 = vshrl.u32 %v1213_v25, 16 }
 0x40f   :  { %v1207_v40 = vadd.f32 %v12412_v26, %v1184_v28  ;;  %v1163_v41 = vmul.f32 10.0, %v1147_v33  ;;  %v1240_v43 = vor.u32 %v1238_v47, %v1237_v27  ;;  %v1359_v44 = vor.u32 %v1357_v58, %v1235_v16  ;;  %v10673_v58 = vld [vmem:[#allocation9 + $0x54] ss:$8 sps:$4 sm:$0xff]  }
 0x410   :  { %v1206_v45 = vadd.f32 %v12412_v26, %v1183_v35  ;;  %v1162_v46 = vmul.f32 10.0, %v1146_v36  ;;  %v1245_v48 = vrot.slane %v1243_v39, 7  ;;  %v1360_v49 = vrot.slane %v1246_v37, 1  ;;  %1560 = vmatprep.subr.bf16.mxu1 %v10673_v58  ;;  %v10674_v36 = vld [vmem:[%s13994_s17] ss:$8 sps:$4 sm:$0xff]  }
 0x411   :  { %v1186_v50 = vmul.f32 %v12410_v22, %v1163_v41  ;;  %v1251_v51 = vshrl.u32 %v12456_v7, 16  ;;  %v1262_v53 = vshll.u32 %v12466_v31, 16  ;;  %v1259_v54 = vshrl.u32 %v12466_v31, 16  ;;  %1561 = vmatpush1.bf16.msra.mxu1 %v10671_v55  ;;  %v10682_v41 = vld [vmem:[%s13994_s17 + $0x24] ss:$8 sps:$4 sm:$0xff]  }
 0x412   :  { %v12481_v56 = vpack.c.bf16 %v1207_v40, %v1206_v45  ;;  %v1185_v32 = vmul.f32 %v12410_v22, %v1162_v46  ;;  %v1248_v47 = vor.u32 %v1246_v37, %v1245_v48  ;;  %v1362_v57 = vor.u32 %v1360_v49, %v1243_v39  ;;  %v10676_v37 = vld [vmem:[%s13994_s17 + $0x4] ss:$8 sps:$4 sm:$0xff]   ;;  %v10679_v39 = vld [vmem:[%s13994_s17 + $0x14] ss:$8 sps:$4 sm:$0xff]   ;;  %v10677_v40 = vld [vmem:[%s13994_s17 + $0x10] ss:$8 sps:$4 sm:$0xff]  }
 0x413   :  { %v1361_v59 = vsel %vm1351_vm5, %v1359_v44, %v1360_v49  ;;  %v1253_v60 = vrot.slane %v1251_v51, 7  ;;  %v1365_v61 = vor.u32 %v1363_v34, %v1251_v51  ;;  %v1366_v63 = vrot.slane %v1262_v53, 1  ;;  %2654 = vmatprep.subr.bf16.mxu0 %v10676_v37  ;;  %v10685_v44 = vld [vmem:[%s13994_s17 + $0x34] ss:$8 sps:$4 sm:$0xff]   ;;  %v10683_v45 = vld [vmem:[%s13994_s17 + $0x30] ss:$8 sps:$4 sm:$0xff]  }
 0x414   :  { %v1364_v2 = vsel %vm1351_vm5, %v1362_v57, %v1363_v34  ;;  %1381 = vrot.lane.b32.xlu1 %v1361_v59, %s11961_s15  ;;  %v1208_v22 = vadd.f32 %v12412_v26, %v1185_v32  ;;  %v1209_v3 = vadd.f32 %v12412_v26, %v1186_v50  ;;  %v1261_v5 = vrot.slane %v1259_v54, 7  ;;  %2655 = vmatpush1.bf16.msra.mxu0 %v10674_v36  ;;  %v10688_v46 = vld [vmem:[%s13994_s17 + $0x44] ss:$8 sps:$4 sm:$0xff]   ;;  %v10691_v49 = vld [vmem:[%s13994_s17 + $0x54] ss:$8 sps:$4 sm:$0xff]  }
 0x415   :  { %1383 = vrot.lane.b32.xlu0 %v1364_v2, %s11961_s15  ;;  %v1256_v6 = vor.u32 %v1254_v21, %v1253_v60  ;;  %v1367_v8 = vsel %vm1351_vm5, %v1365_v61, %v1366_v63  ;;  %v1270_v9 = vshll.u32 %v12481_v56, 16  ;;  %v1368_v10 = vor.u32 %v1366_v63, %v1259_v54  ;;  %2656 = vmatprep.subr.bf16.mxu0 %v10679_v39  ;;  %v10689_v50 = vld [vmem:[%s13994_s17 + $0x50] ss:$8 sps:$4 sm:$0xff]   ;;  %v10694_v51 = vld [vmem:[%s13994_s17 + $0x64] ss:$8 sps:$4 sm:$0xff]  }
 0x416   :  { %v1217_v11 = vpack.c.bf16 %v1209_v3, %v1208_v22  ;;  %v1264_v12 = vor.u32 %v1262_v53, %v1261_v5  ;;  %v1267_v13 = vshrl.u32 %v12481_v56, 16  ;;  %v1295_v14 = vsel %vm12487_vm9, %v12435_v38, %v1294_v1  ;;  %v10692_v53 = vld [vmem:[%s13994_s17 + $0x60] ss:$8 sps:$4 sm:$0xff]   ;;  %v10697_v54 = vld [vmem:[%s13994_s17 + $0x74] ss:$8 sps:$4 sm:$0xff]  }
 0x417   :  { %v1369_v26 = vrot.slane %v1270_v9, 1  ;;  %1296 = vst [vmem:[#allocation2 + $0x30] sm:$0xff] %v1295_v14  ;;  %v1233_v15 = vsel %vm13954_vm7, %v12429_v30, %v12453_v4  ;;  %v1241_v16 = vsel %vm13954_vm7, %v12443_v52, %v1240_v43  ;;  %v1249_v17 = vsel %vm13954_vm7, %v1237_v27, %v1248_v47  ;;  %v1307_v52 = vld [vmem:[#allocation2 + $0x1b0] sm:$0x1]  ;;  %v10680_v43 = vld [vmem:[%s13994_s17 + $0x20] ss:$8 sps:$4 sm:$0xff]  }
 0x418   :  { %1385 = vrot.lane.b32.xlu1 %v1367_v8, %s11961_s15  ;;  %v1275_v18 = vshrl.u32 %v1217_v11, 16  ;;  %v1278_v19 = vshll.u32 %v1217_v11, 16  ;;  %v1269_v20 = vrot.slane %v1267_v13, 7  ;;  %1298 = vst.msk [vmem:[#allocation2 + $0x60] sm:$0xff] %vm1291_vm6, %v1233_v15  ;;  %1299 = vst.msk [vmem:[#allocation2 + $0x90] sm:$0xff] %vm1291_vm6, %v1241_v16  ;;  %v1257_v25 = vsel %vm13954_vm7, %v1245_v48, %v1256_v6  ;;  %2657 = vmatpush1.bf16.msra.mxu0 %v10677_v40 }
 0x419   :  { %1300 = vst.msk [vmem:[#allocation2 + $0xc0] sm:$0xff] %vm1291_vm6, %v1249_v17  ;;  %1326 = vrot.lane.b32.xlu0 %v12456_v7, %s11985_s1  ;;  %v1370_v30 = vsel %vm1351_vm5, %v1368_v10, %v1369_v26  ;;  %v1371_v4 = vor.u32 %v1369_v26, %v1267_v13  ;;  %1301 = vst.msk [vmem:[#allocation2 + $0xf0] sm:$0xff] %vm1291_vm6, %v1257_v25  ;;  %v1265_v27 = vsel %vm13954_vm7, %v1253_v60, %v1264_v12  ;;  %v13950_v34 = vmov 0   ;;  %v10686_v48 = vld [vmem:[%s13994_s17 + $0x40] ss:$8 sps:$4 sm:$0xff]  }
 0x41a   :  { %v1372_v21 = vrot.slane %v1278_v19, 1  ;;  %v1277_v23 = vrot.slane %v1275_v18, 7  ;;  %v1272_v24 = vor.u32 %v1270_v9, %v1269_v20  ;;  %1302 = vst.msk [vmem:[#allocation2 + $0x120] sm:$0xff] %vm1291_vm6, %v1265_v27  ;;  %1582 = vmatprep.mubr.bf16.mxu1 %v13950_v34  ;;  %2658 = vmatprep.subr.bf16.mxu0 %v10682_v41  ;;  %v10695_v55 = vld [vmem:[%s13994_s17 + $0x70] ss:$8 sps:$4 sm:$0xff]   ;;  %vm1965_vm9 = vcmask 1047559  }
 0x41b   :  { %v10703_v25 = vld [vmem:[%s13994_s17 + $0x94] ss:$8 sps:$4 sm:$0xff]   ;;  %v10701_v27 = vld [vmem:[%s13994_s17 + $0x90] ss:$8 sps:$4 sm:$0xff]   ;;  %v10718_v39 = vld [vmem:[%s13994_s17 + $0xe4] ss:$8 sps:$4 sm:$0xff]  }
 0x41c   :  { %1328 = vrot.lane.b32.xlu1 %v12466_v31, %s11985_s1  ;;  %v1374_v7 = vor.u32 %v1372_v21, %v1275_v18  ;;  %v1280_v29 = vor.u32 %v1278_v19, %v1277_v23  ;;  %v1308_v28 = vsel %vm12517_vm10, %v1277_v23, %v1307_v52  ;;  %v1373_v33 = vsel %vm1351_vm5, %v1371_v4, %v1372_v21  ;;  %v10700_v23 = vld [vmem:[%s13994_s17 + $0x84] ss:$8 sps:$4 sm:$0xff]   ;;  %v10715_v36 = vld [vmem:[%s13994_s17 + $0xd4] ss:$8 sps:$4 sm:$0xff]   ;;  %v10713_v37 = vld [vmem:[%s13994_s17 + $0xd0] ss:$8 sps:$4 sm:$0xff]  }
 0x41d   :  { %1332 = vrot.lane.b32.xlu0 %v1217_v11, %s11985_s1  ;;  %1309 = vst [vmem:[#allocation2 + $0x1b0] sm:$0x1] %v1308_v28  ;;  %v1273_v31 = vsel %vm13954_vm7, %v1261_v5, %v1272_v24  ;;  %2659 = vmatpush1.bf16.msra.mxu0 %v10680_v43  ;;  %v10698_v24 = vld [vmem:[%s13994_s17 + $0x80] ss:$8 sps:$4 sm:$0xff]   ;;  %v10709_v28 = vld [vmem:[%s13994_s17 + $0xb4] ss:$8 sps:$4 sm:$0xff]  }
 0x41e   :  { %v1281_v35 = vsel %vm13954_vm7, %v1269_v20, %v1280_v29  ;;  %1303 = vst.msk [vmem:[#allocation2 + $0x150] sm:$0xff] %vm1291_vm6, %v1273_v31  ;;  %2660 = vmatprep.subr.bf16.mxu0 %v10685_v44  ;;  %v10706_v29 = vld [vmem:[%s13994_s17 + $0xa4] ss:$8 sps:$4 sm:$0xff]   ;;  %v10716_v40 = vld [vmem:[%s13994_s17 + $0xe0] ss:$8 sps:$4 sm:$0xff]  }
 0x41f   :  { %1304 = vst.msk [vmem:[#allocation2 + $0x180] sm:$0xff] %vm1291_vm6, %v1281_v35  ;;  %v10712_v31 = vld [vmem:[%s13994_s17 + $0xc4] ss:$8 sps:$4 sm:$0xff]   ;;  %v10710_v35 = vld [vmem:[%s13994_s17 + $0xc0] ss:$8 sps:$4 sm:$0xff]  }
 0x420   :  { %1391 = vrot.lane.b32.xlu1 %v1374_v7, %s11961_s15  ;;  %v10704_v7 = vld [vmem:[%s13994_s17 + $0xa0] ss:$8 sps:$4 sm:$0xff]   ;;  %v10721_v41 = vld [vmem:[%s13994_s17 + $0xf4] ss:$8 sps:$4 sm:$0xff]   ;;  %v10719_v43 = vld [vmem:[%s13994_s17 + $0xf0] ss:$8 sps:$4 sm:$0xff]  }
 0x421   :  { %1387 = vrot.lane.b32.xlu0 %v1370_v30, %s11961_s15  ;;  %2661 = vmatpush1.bf16.msra.mxu0 %v10683_v45  ;;  %v10724_v44 = vld [vmem:[%s13994_s17 + $0x104] ss:$8 sps:$4 sm:$0xff]   ;;  %v1455_v45 = vlaneseq }
 0x422   :  { %2662 = vmatprep.subr.bf16.mxu0 %v10688_v46 }
 0x423   :  { %v12622_v46 = vshrl.u32 %v1455_v45, 7 }
 0x424   :  { %1389 = vrot.lane.b32.xlu1 %v1373_v33, %s11961_s15  ;;  %v10707_v33 = vld [vmem:[%s13994_s17 + $0xb0] ss:$8 sps:$4 sm:$0xff]  }
 0x425   :  { %1330 = vrot.lane.b32.xlu0 %v12481_v56, %s11985_s1  ;;  %2663 = vmatpush1.bf16.msra.mxu0 %v10686_v48  ;;  %v12625_v48 = vsub.s32 0, %v12622_v46 }
 0x426   :  { %2664 = vmatprep.subr.bf16.mxu0 %v10691_v49  ;;  %v1453_v49 = vld [vmem:[%s13997_s11] sm:$0x3] }
 0x429   :  { %2665 = vmatpush1.bf16.msra.mxu0 %v10689_v50  ;;  %v12629_v50 = vsub.s32 1, %v12622_v46 }
 0x42a   :  { %2666 = vmatprep.subr.bf16.mxu0 %v10694_v51  ;;  %v12632_v51 = vrot.slane %v1453_v49, %v12625_v48 }
 0x42d   :  { %2667 = vmatpush1.bf16.msra.mxu0 %v10692_v53  ;;  %v12635_v53 = vrot.slane %v1453_v49, %v12629_v50 }
 0x42e   :  { %2668 = vmatprep.subr.bf16.mxu0 %v10697_v54 }
 0x431   :  { %2669 = vmatpush1.bf16.msra.mxu0 %v10695_v55 }
 0x432   :  { %2670 = vmatprep.subr.bf16.mxu0 %v10700_v23 }
 0x435   :  { %2671 = vmatpush1.bf16.msra.mxu0 %v10698_v24  ;;  %v1860_v24 = vld [vmem:[#allocation2 + $0x38] sm:$0xff] }
 0x436   :  { %2672 = vmatprep.subr.bf16.mxu0 %v10703_v25 }
 0x439   :  { %2673 = vmatpush1.bf16.msra.mxu0 %v10701_v27 }
 0x43a   :  { %2674 = vmatprep.subr.bf16.mxu0 %v10706_v29 }
 0x43d   :  { %2675 = vmatpush1.bf16.msra.mxu0 %v10704_v7 }
 0x43e   :  { %2676 = vmatprep.subr.bf16.mxu0 %v10709_v28 }
 0x441   :  { %2677 = vmatpush1.bf16.msra.mxu0 %v10707_v33 }
 0x442   :  { %2678 = vmatprep.subr.bf16.mxu0 %v10712_v31 }
 0x445   :  { %2679 = vmatpush1.bf16.msra.mxu0 %v10710_v35 }
 0x446   :  { %2680 = vmatprep.subr.bf16.mxu0 %v10715_v36 }
 0x449   :  { %2681 = vmatpush1.bf16.msra.mxu0 %v10713_v37 }
 0x44a   :  { %2682 = vmatprep.subr.bf16.mxu0 %v10718_v39 }
 0x44d   :  { %2683 = vmatpush1.bf16.msra.mxu0 %v10716_v40 }
 0x44e   :  { %2684 = vmatprep.subr.bf16.mxu0 %v10721_v41 }
 0x451   :  { %2685 = vmatpush1.bf16.msra.mxu0 %v10719_v43 }
 0x452   :  { %2767 = vmatprep.subr.bf16.mxu0 %v10724_v44 }
 0x46d   :  { %v1319_v56 = vpop.permute.xlu0 %1318 }
 0x46e   :  { %1343 = vst.msk [vmem:[#allocation2 + $0x30] sm:$0xff] %vm1342_vm11, %v1319_v56 }
 0x471   :  { %v1321_v32 = vpop.permute.xlu1 %1320 }
 0x472   :  { %1344 = vst.msk [vmem:[#allocation2 + $0x60] sm:$0xff] %vm1342_vm11, %v1321_v32 }
 0x47a   :  { %v1378_v47 = vpop.permute.xlu0 %1377 }
 0x47b   :  { %1409 = vst.msk [vmem:[#allocation2 + $0x30] sm:$0xff] %vm1408_vm12, %v1378_v47  ;;  %v1380_v57 = vpop.permute.xlu1 %1379 }
 0x47c   :  { %1410 = vst.msk [vmem:[#allocation2 + $0x60] sm:$0xff] %vm1408_vm12, %v1380_v57 }
 0x47f   :  { %v1323_v58 = vpop.permute.xlu1 %1322 }
 0x480   :  { %1345 = vst.msk [vmem:[#allocation2 + $0x90] sm:$0xff] %vm1342_vm11, %v1323_v58  ;;  %v1325_v59 = vpop.permute.xlu0 %1324 }
 0x481   :  { %1346 = vst.msk [vmem:[#allocation2 + $0xc0] sm:$0xff] %vm1342_vm11, %v1325_v59 }
 0x482   :  { %v1421_v60 = vld [vmem:[#allocation2 + $0x30] sm:$0x1] }
 0x483   :  { %v1422_v61 = vsel %vm12517_vm10, 0, %v1421_v60  ;;  %v1434_v11 = vld [vmem:[#allocation2 + $0x60] sm:$0xff] }
 0x484   :  { %1423 = vst [vmem:[#allocation2 + $0x30] sm:$0x1] %v1422_v61 }
 0x486   :  { %v1382_v63 = vpop.permute.xlu1 %1381 }
 0x487   :  { %v1384_v0 = vpop.permute.xlu0 %1383  ;;  %1411 = vst.msk [vmem:[#allocation2 + $0x90] sm:$0xff] %vm1408_vm12, %v1382_v63 }
 0x488   :  { %1412 = vst.msk [vmem:[#allocation2 + $0xc0] sm:$0xff] %vm1408_vm12, %v1384_v0 }
 0x48a   :  { %v1386_v1 = vpop.permute.xlu1 %1385 }
 0x48b   :  { %v1327_v2 = vpop.permute.xlu0 %1326  ;;  %v12567_v22 = vld [vmem:[#allocation2 + $0x30] sm:$0xff] }
 0x48c   :  { %1347 = vst.msk [vmem:[#allocation2 + $0xf0] sm:$0xff] %vm1342_vm11, %v1327_v2  ;;  %9215 = vmatmul.mubr.msk.bf16.vlgmr.msra.gmra.mrb[16].mxu1 %vm1525_vm13, %v12567_v22 }
 0x48d   :  { %1413 = vst.msk [vmem:[#allocation2 + $0xf0] sm:$0xff] %vm1408_vm12, %v1386_v1  ;;  %1592 = vmatprep.mubr.bf16.mxu1 %v13950_v34 }
 0x48e   :  { %v1329_v5 = vpop.permute.xlu1 %1328  ;;  %v1435_v18 = vld [vmem:[#allocation2 + $0x90] sm:$0xff] }
 0x48f   :  { %v1424_v6 = vld [vmem:[#allocation2 + $0xc0] sm:$0x80]  ;;  %1348 = vst.msk [vmem:[#allocation2 + $0x120] sm:$0xff] %vm1342_vm11, %v1329_v5  ;;  %v1333_v8 = vpop.permute.xlu0 %1332 }
 0x490   :  { %v1425_v9 = vsel %vm12573_vm0, 0, %v1424_v6  ;;  %1350 = vst.msk [vmem:[#allocation2 + $0x180] sm:$0xff] %vm1342_vm11, %v1333_v8 }
 0x491   :  { %1426 = vst [vmem:[#allocation2 + $0xc0] sm:$0x80] %v1425_v9 }
 0x492   :  { %v1392_v10 = vpop.permute.xlu1 %1391 }
 0x493   :  { %v1388_v12 = vpop.permute.xlu0 %1387 }
 0x494   :  { %v1427_v13 = vld [vmem:[#allocation2 + $0xf0] sm:$0x1]  ;;  %9216 = vmatmul.mubr.msk.bf16.gmra.mrb[20].mxu1 %vm1525_vm13, %v1434_v11  ;;  %1414 = vst.msk [vmem:[#allocation2 + $0x120] sm:$0xff] %vm1408_vm12, %v1388_v12  ;;  %v1967_v12 = vld [vmem:[#allocation2 + $0x20] sm:$0x80] }
 0x495   :  { %v1428_v14 = vsel %vm12517_vm10, 0, %v1427_v13  ;;  %1602 = vmatprep.mubr.bf16.mxu1 %v13950_v34  ;;  %vm1855_vm10 = vcmask 1047552  }
 0x496   :  { %1429 = vst [vmem:[#allocation2 + $0xf0] sm:$0x1] %v1428_v14  ;;  %v1390_v26 = vpop.permute.xlu1 %1389  ;;  %vm12898_vm14 = vmand %vm1855_vm10, %vm1351_vm5 }
 0x497   :  { %v1418_v15 = vld [vmem:[#allocation2 + $0x180] sm:$0xff]  ;;  %v1331_v16 = vpop.permute.xlu0 %1330 }
 0x498   :  { %v1419_v17 = vsel %vm1417_vm8, %v1392_v10, %v1418_v15  ;;  %1349 = vst.msk [vmem:[#allocation2 + $0x150] sm:$0xff] %vm1342_vm11, %v1331_v16  ;;  %v1436_v30 = vld [vmem:[#allocation2 + $0xc0] sm:$0xff]  ;;  %vm12649_vm11 = vmand %vm1965_vm9, %vm1403_vm15  ;;  %vm6454_vm8 = vsmask.f32 4352  ;;  %vm6447_vm9 = vcmask 1043459  }
 0x499   :  { %1420 = vst [vmem:[#allocation2 + $0x180] sm:$0xff] %v1419_v17  ;;  %1415 = vst.msk [vmem:[#allocation2 + $0x150] sm:$0xff] %vm1408_vm12, %v1390_v26 }
 0x49a   :  { %vm12661_vm12 = vmand %vm1855_vm10, %vm1292_vm2  ;;  %vm13952_vm2 = vcmask 1040384   ;;  %vm13956_vm10 = vsmask.f32 7950 }
 0x49b   :  { %v1438_v52 = vld [vmem:[#allocation2 + $0x120] sm:$0xff]  ;;  %vm13589_vm3 = vmand %vm6447_vm9, %vm13956_vm10  ;;  %vm7187_vm10 = vsmask.f32 2304 }
 0x49c   :  { %9217 = vmatmul.mubr.msk.bf16.gmra.mrb[24].mxu1 %vm1525_vm13, %v1435_v18  ;;  %v1970_v18 = vld [vmem:[#allocation2 + $0x28] sm:$0x80] }
 0x49d   :  { %1612 = vmatprep.mubr.bf16.mxu1 %v13950_v34  ;;  %v1437_v38 = vld [vmem:[#allocation2 + $0xf0] sm:$0xff] }
 0x4a0   :  { %v1430_v19 = vld [vmem:[#allocation2 + $0x180] sm:$0x80]  ;;  %v1439_v4 = vld [vmem:[#allocation2 + $0x150] sm:$0xff] }
 0x4a1   :  { %v1431_v20 = vsel %vm12573_vm0, 0, %v1430_v19 }
 0x4a2   :  { %1432 = vst [vmem:[#allocation2 + $0x180] sm:$0x80] %v1431_v20 }
 0x4a4   :  { %9218 = vmatmul.mubr.msk.bf16.gmra.mrb[28].mxu1 %vm1525_vm13, %v1436_v30 }
 0x4a5   :  { %1622 = vmatprep.mubr.bf16.mxu1 %v13950_v34 }
 0x4a9   :  { %v1440_v21 = vld [vmem:[#allocation2 + $0x180] sm:$0xff] }
 0x4ac   :  { %9219 = vmatmul.mubr.msk.bf16.gmra.mrb[32].mxu1 %vm1525_vm13, %v1437_v38 }
 0x4ad   :  { %1632 = vmatprep.mubr.bf16.mxu1 %v13950_v34 }
 0x4b4   :  { %9220 = vmatmul.mubr.msk.bf16.gmra.mrb[36].mxu1 %vm1525_vm13, %v1438_v52 }
 0x4b5   :  { %1642 = vmatprep.mubr.bf16.mxu1 %v13950_v34 }
 0x4bc   :  { %9221 = vmatmul.mubr.msk.bf16.gmra.mrb[40].mxu1 %vm1525_vm13, %v1439_v4 }
 0x4bd   :  { %1652 = vmatprep.mubr.bf16.mxu1 %v13950_v34  ;;  %v1991_v34 = vld [vmem:[#allocation2 + $0x1a8] sm:$0xff] }
 0x4c4   :  { %9222 = vmatmul.mubr.msk.bf16.gmra.mrb[44].mxu1 %vm1525_vm13, %v1440_v21  ;;  %vm12695_vm13 = vmand %vm13952_vm2, %vm13954_vm7 }
 0x55f   :  { %v1584_v54 = vpop.f32.mrb[16].mxu1 }
 0x560   :  { %v1585_v55 = vadd.f32 %v1584_v54, %v12632_v51  ;;  %v1586_v56 = vpop.f32.mrb[17].mxu1 }
 0x561   :  { %v1587_v32 = vadd.f32 %v1586_v56, %v12635_v53  ;;  %v1588_v47 = vpop.f32.mrb[18].mxu1 }
 0x562   :  { %v1589_v57 = vadd.f32 %v1588_v47, %v12632_v51  ;;  %v1590_v58 = vpop.f32.mrb[19].mxu1  ;;  %v1663_v60 = vmax.f32 %v1585_v55, 0.0 }
 0x563   :  { %v1591_v59 = vadd.f32 %v1590_v58, %v12635_v53  ;;  %v1664_v63 = vmax.f32 %v1587_v32, 0.0 }
 0x564   :  { %v1665_v61 = vmax.f32 %v1589_v57, 0.0 }
 0x565   :  { %v1666_v0 = vmax.f32 %v1591_v59, 0.0 }
 0x566   :  { %v12641_v1 = vpack.c.bf16 %v1665_v61, %v1663_v60  ;;  %v11250_v60 = vld [vmem:[%s14015_s22] sm:$0xff]  }
 0x567   :  { %v12643_v2 = vpack.c.bf16 %v1666_v0, %v1664_v63  ;;  %v1594_v5 = vpop.f32.mrb[20].mxu1 }
 0x568   :  { %v1712_v6 = vshrl.u32 %v12641_v1, 16  ;;  %v1715_v8 = vshll.u32 %v12641_v1, 16  ;;  %v1595_v9 = vadd.f32 %v1594_v5, %v12632_v51  ;;  %v1596_v10 = vpop.f32.mrb[21].mxu1 }
 0x569   :  { %v1719_v13 = vshrl.u32 %v12643_v2, 16  ;;  %v1722_v14 = vshll.u32 %v12643_v2, 16  ;;  %v1597_v26 = vadd.f32 %v1596_v10, %v12635_v53  ;;  %v1598_v15 = vpop.f32.mrb[22].mxu1 }
 0x56a   :  { %v12656_v16 = vrot.slane %v1712_v6, 7  ;;  %v1901_v17 = vrot.slane %v1715_v8, 1  ;;  %v1599_v19 = vadd.f32 %v1598_v15, %v12632_v51  ;;  %v1600_v20 = vpop.f32.mrb[23].mxu1  ;;  %v1667_v25 = vmax.f32 %v1595_v9, 0.0 }
 0x56b   :  { %v12665_v38 = vrot.slane %v1719_v13, 7  ;;  %v1902_v52 = vrot.slane %v1722_v14, 1  ;;  %v1601_v4 = vadd.f32 %v1600_v20, %v12635_v53  ;;  %v1668_v28 = vmax.f32 %v1597_v26, 0.0 }
 0x56c   :  { %v1717_v21 = vor.u32 %v1715_v8, %v12656_v16  ;;  %v1968_v23 = vsel %vm12649_vm11, %v1901_v17, %v1967_v12  ;;  %v1669_v27 = vmax.f32 %v1599_v19, 0.0  ;;  %v1903_v49 = vor.u32 %v1901_v17, %v1712_v6 }
 0x56d   :  { %1969 = vst [vmem:[#allocation2 + $0x20] sm:$0x80] %v1968_v23  ;;  %v1724_v7 = vor.u32 %v1722_v14, %v12665_v38  ;;  %v1971_v29 = vsel %vm12649_vm11, %v1902_v52, %v1970_v18  ;;  %v1670_v33 = vmax.f32 %v1601_v4, 0.0  ;;  %v1906_v47 = vor.u32 %v1902_v52, %v1719_v13 }
 0x56e   :  { %v1858_v31 = vsel %vm12661_vm12, %v1717_v21, %v12567_v22  ;;  %1972 = vst [vmem:[#allocation2 + $0x28] sm:$0x80] %v1971_v29  ;;  %v12677_v35 = vpack.c.bf16 %v1669_v27, %v1667_v25 }
 0x56f   :  { %1859 = vst [vmem:[#allocation2 + $0x30] sm:$0xff] %v1858_v31  ;;  %v1861_v36 = vsel %vm12661_vm12, %v1724_v7, %v1860_v24  ;;  %v12681_v37 = vpack.c.bf16 %v1670_v33, %v1668_v28  ;;  %v1604_v39 = vpop.f32.mrb[24].mxu1 }
 0x570   :  { %1862 = vst [vmem:[#allocation2 + $0x38] sm:$0xff] %v1861_v36  ;;  %v1729_v40 = vshll.u32 %v12677_v35, 16  ;;  %v1605_v41 = vadd.f32 %v1604_v39, %v12632_v51  ;;  %v1606_v43 = vpop.f32.mrb[25].mxu1  ;;  %v1726_v54 = vshrl.u32 %v12677_v35, 16 }
 0x571   :  { %v1737_v44 = vshll.u32 %v12681_v37, 16  ;;  %v1607_v22 = vadd.f32 %v1606_v43, %v12635_v53  ;;  %v1608_v45 = vpop.f32.mrb[26].mxu1  ;;  %v1734_v57 = vshrl.u32 %v12681_v37, 16 }
 0x572   :  { %v1904_v55 = vrot.slane %v1729_v40, 1  ;;  %v1609_v56 = vadd.f32 %v1608_v45, %v12632_v51  ;;  %v1610_v32 = vpop.f32.mrb[27].mxu1  ;;  %v1671_v0 = vmax.f32 %v1605_v41, 0.0  ;;  %v12717_v28 = vrot.slane %v1726_v54, 7 }
 0x573   :  { %v1907_v58 = vrot.slane %v1737_v44, 1  ;;  %v1611_v59 = vadd.f32 %v1610_v32, %v12635_v53  ;;  %v1672_v9 = vmax.f32 %v1607_v22, 0.0  ;;  %v1736_v24 = vrot.slane %v1734_v57, 7 }
 0x574   :  { %v1905_v61 = vsel %vm1351_vm5, %v1903_v49, %v1904_v55  ;;  %v1909_v63 = vor.u32 %v1904_v55, %v1726_v54  ;;  %v1673_v5 = vmax.f32 %v1609_v56, 0.0 }
 0x575   :  { %1973 = vst [vmem:[#allocation2 + $0x50] sm:$0xff] %v1905_v61  ;;  %v1908_v6 = vsel %vm1351_vm5, %v1906_v47, %v1907_v58  ;;  %v1912_v8 = vor.u32 %v1907_v58, %v1734_v57  ;;  %v1674_v10 = vmax.f32 %v1611_v59, 0.0  ;;  %v1739_v56 = vor.u32 %v1737_v44, %v1736_v24  ;;  %v10722_v59 = vld [vmem:[%s13994_s17 + $0x100] ss:$8 sps:$4 sm:$0xff]  }
 0x576   :  { %v1994_v12 = vld [vmem:[#allocation2 + $0x30] sm:$0x1]  ;;  %1974 = vst [vmem:[#allocation2 + $0x58] sm:$0xff] %v1908_v6  ;;  %v12701_v13 = vpack.c.bf16 %v1673_v5, %v1671_v0  ;;  %v10727_v6 = vld [vmem:[%s13994_s17 + $0x114] ss:$8 sps:$4 sm:$0xff]  }
 0x577   :  { %v1995_v14 = vsel %vm12695_vm13, 0, %v1994_v12  ;;  %v1997_v26 = vld [vmem:[#allocation2 + $0x38] sm:$0x1]  ;;  %v12705_v15 = vpack.c.bf16 %v1674_v10, %v1672_v9  ;;  %v1614_v17 = vpop.f32.mrb[28].mxu1 }
 0x578   :  { %1996 = vst [vmem:[#allocation2 + $0x30] sm:$0x1] %v1995_v14  ;;  %v1998_v18 = vsel %vm12695_vm13, 0, %v1997_v26  ;;  %v1745_v19 = vshll.u32 %v12701_v13, 16  ;;  %v1615_v20 = vadd.f32 %v1614_v17, %v12632_v51  ;;  %v1616_v52 = vpop.f32.mrb[29].mxu1  ;;  %v1742_v25 = vshrl.u32 %v12701_v13, 16 }
 0x579   :  { %1999 = vst [vmem:[#allocation2 + $0x38] sm:$0x1] %v1998_v18  ;;  %v1753_v4 = vshll.u32 %v12705_v15, 16  ;;  %v1617_v21 = vadd.f32 %v1616_v52, %v12635_v53  ;;  %v1618_v23 = vpop.f32.mrb[30].mxu1  ;;  %v1750_v33 = vshrl.u32 %v12705_v15, 16  ;;  %v1740_v14 = vsel %vm13954_vm7, %v12665_v38, %v1739_v56 }
 0x57a   :  { %v1910_v27 = vrot.slane %v1745_v19, 1  ;;  %v1619_v7 = vadd.f32 %v1618_v23, %v12632_v51  ;;  %v1620_v29 = vpop.f32.mrb[31].mxu1  ;;  %v1675_v43 = vmax.f32 %v1615_v20, 0.0  ;;  %v12748_v20 = vrot.slane %v1742_v25, 7  ;;  %v10725_v38 = vld [vmem:[%s13994_s17 + $0x110] ss:$8 sps:$4 sm:$0xff]  }
 0x57b   :  { %v1913_v31 = vrot.slane %v1753_v4, 1  ;;  %v1621_v36 = vadd.f32 %v1620_v29, %v12635_v53  ;;  %v1676_v55 = vmax.f32 %v1617_v21, 0.0  ;;  %v12729_v47 = vrot.slane %v1750_v33, 7 }
 0x57c   :  { %v12722_v39 = vsel %vm1351_vm5, %v1909_v63, %v1910_v27  ;;  %v1915_v41 = vor.u32 %v1910_v27, %v1742_v25  ;;  %v1677_v22 = vmax.f32 %v1619_v7, 0.0 }
 0x57d   :  { %v12725_v45 = vsel %vm1351_vm5, %v1912_v8, %v1913_v31  ;;  %v1918_v49 = vor.u32 %v1913_v31, %v1750_v33  ;;  %v1678_v54 = vmax.f32 %v1621_v36, 0.0  ;;  %v1731_v8 = vor.u32 %v1729_v40, %v12717_v28  ;;  %v10730_v31 = vld [vmem:[%s13994_s17 + $0x124] ss:$8 sps:$4 sm:$0xff]  }
 0x57e   :  { %v12727_v32 = vpack.c.bf16 %v1677_v22, %v1675_v43  ;;  %v1755_v52 = vor.u32 %v1753_v4, %v12729_v47 }
 0x57f   :  { %v12731_v57 = vpack.c.bf16 %v1678_v54, %v1676_v55  ;;  %v1624_v58 = vpop.f32.mrb[32].mxu1  ;;  %v2018_v12 = vld [vmem:[#allocation2 + $0x30] sm:$0xff]  ;;  %v1732_v55 = vsel %vm13954_vm7, %v12656_v16, %v1731_v8 }
 0x580   :  { %v1761_v61 = vshll.u32 %v12727_v32, 16  ;;  %v1625_v63 = vadd.f32 %v1624_v58, %v12632_v51  ;;  %v1626_v0 = vpop.f32.mrb[33].mxu1  ;;  %v2019_v5 = vld [vmem:[#allocation2 + $0x38] sm:$0xff]  ;;  %v1758_v27 = vshrl.u32 %v12727_v32, 16  ;;  %v1756_v54 = vsel %vm13954_vm7, %v1736_v24, %v1755_v52 }
 0x581   :  { %v1769_v44 = vshll.u32 %v12731_v57, 16  ;;  %v1627_v9 = vadd.f32 %v1626_v0, %v12635_v53  ;;  %v1628_v10 = vpop.f32.mrb[34].mxu1  ;;  %2686 = vmatprep.mubr.bf16.mxu0 %v2019_v5  ;;  %v1766_v17 = vshrl.u32 %v12731_v57, 16 }
 0x582   :  { %v1916_v26 = vrot.slane %v1761_v61, 1  ;;  %v1629_v18 = vadd.f32 %v1628_v10, %v12632_v51  ;;  %v1630_v40 = vpop.f32.mrb[35].mxu1  ;;  %2687 = vmatmul.mubr.bf16.vlgmr.msra.gmra.mrb[32].mxu0 %v2018_v12  ;;  %v1679_v29 = vmax.f32 %v1625_v63, 0.0 }
 0x583   :  { %v1919_v21 = vrot.slane %v1769_v44, 1  ;;  %v1631_v23 = vadd.f32 %v1630_v40, %v12635_v53  ;;  %2696 = vmatprep.mubr.bf16.mxu0 %v1740_v14  ;;  %2768 = vmatpush1.bf16.msra.mxu0 %v10722_v59  ;;  %v1680_v4 = vmax.f32 %v1627_v9, 0.0  ;;  %v1768_v43 = vrot.slane %v1766_v17, 7 }
 0x584   :  { %v12755_v7 = vsel %vm1351_vm5, %v1915_v41, %v1916_v26  ;;  %v1681_v33 = vmax.f32 %v1629_v18, 0.0  ;;  %2769 = vmatprep.subr.bf16.mxu0 %v10727_v6  ;;  %v1747_v41 = vor.u32 %v1745_v19, %v12748_v20  ;;  %v12772_v59 = vrot.slane %v1758_v27, 7  ;;  %v10733_v6 = vld [vmem:[%s13994_s17 + $0x134] ss:$8 sps:$4 sm:$0xff]  }
 0x585   :  { %v12759_v25 = vsel %vm1351_vm5, %v1918_v49, %v1919_v21  ;;  %v1682_v36 = vmax.f32 %v1631_v23, 0.0  ;;  %v10728_v49 = vld [vmem:[%s13994_s17 + $0x120] ss:$8 sps:$4 sm:$0xff]   ;;  %v1921_v8 = vor.u32 %v1916_v26, %v1758_v27  ;;  %v1771_v12 = vor.u32 %v1769_v44, %v1768_v43 }
 0x586   :  { %v12761_v22 = vpack.c.bf16 %v1681_v33, %v1679_v29  ;;  %v1924_v23 = vor.u32 %v1919_v21, %v1766_v17  ;;  %v10731_v29 = vld [vmem:[%s13994_s17 + $0x130] ss:$8 sps:$4 sm:$0xff]  }
 0x587   :  { %v12769_v56 = vpack.c.bf16 %v1682_v36, %v1680_v4  ;;  %v1634_v58 = vpop.f32.mrb[36].mxu1  ;;  %2770 = vmatpush1.bf16.msra.mxu0 %v10725_v38  ;;  %v10736_v36 = vld [vmem:[%s13994_s17 + $0x144] ss:$8 sps:$4 sm:$0xff]  }
 0x588   :  { %v1774_v63 = vshrl.u32 %v12761_v22, 16  ;;  %v1777_v0 = vshll.u32 %v12761_v22, 16  ;;  %v1635_v5 = vadd.f32 %v1634_v58, %v12632_v51  ;;  %v1636_v16 = vpop.f32.mrb[37].mxu1  ;;  %2771 = vmatprep.subr.bf16.mxu0 %v10730_v31 }
 0x589   :  { %v1782_v19 = vshrl.u32 %v12769_v56, 16  ;;  %v1785_v24 = vshll.u32 %v12769_v56, 16  ;;  %v1637_v9 = vadd.f32 %v1636_v16, %v12635_v53  ;;  %v1638_v10 = vpop.f32.mrb[38].mxu1 }
 0x58a   :  { %v12781_v14 = vrot.slane %v1774_v63, 7  ;;  %v1922_v18 = vrot.slane %v1777_v0, 1  ;;  %v1639_v40 = vadd.f32 %v1638_v10, %v12632_v51  ;;  %v1640_v52 = vpop.f32.mrb[39].mxu1  ;;  %2697 = vmatmul.mubr.bf16.gmra.mrb[36].mxu0 %v1732_v55  ;;  %v1683_v31 = vmax.f32 %v1635_v5, 0.0 }
 0x58b   :  { %v12784_v38 = vrot.slane %v1782_v19, 7  ;;  %v1925_v26 = vrot.slane %v1785_v24, 1  ;;  %v1641_v27 = vadd.f32 %v1640_v52, %v12635_v53  ;;  %2706 = vmatprep.mubr.bf16.mxu0 %v1756_v54  ;;  %2772 = vmatpush1.bf16.msra.mxu0 %v10728_v49  ;;  %v1684_v55 = vmax.f32 %v1637_v9, 0.0 }
 0x58c   :  { %v1779_v33 = vor.u32 %v1777_v0, %v12781_v14  ;;  %v1923_v44 = vsel %vm1351_vm5, %v1921_v8, %v1922_v18  ;;  %v1685_v4 = vmax.f32 %v1639_v40, 0.0  ;;  %2773 = vmatprep.subr.bf16.mxu0 %v10733_v6  ;;  %v1748_v0 = vsel %vm13954_vm7, %v12717_v28, %v1747_v41  ;;  %v10734_v8 = vld [vmem:[%s13994_s17 + $0x140] ss:$8 sps:$4 sm:$0xff]   ;;  %v10739_v28 = vld [vmem:[%s13994_s17 + $0x154] ss:$8 sps:$4 sm:$0xff]  }
 0x58d   :  { %1979 = vst [vmem:[#allocation2 + $0xe0] sm:$0xff] %v1923_v44  ;;  %v1787_v17 = vor.u32 %v1785_v24, %v12784_v38  ;;  %v1926_v21 = vsel %vm1351_vm5, %v1924_v23, %v1925_v26  ;;  %v1686_v58 = vmax.f32 %v1641_v27, 0.0  ;;  %v1772_v24 = vsel %vm13954_vm7, %v12729_v47, %v1771_v12 }
 0x58e   :  { %v1780_v54 = vsel %vm13954_vm7, %v12772_v59, %v1779_v33  ;;  %1980 = vst [vmem:[#allocation2 + $0xe8] sm:$0xff] %v1926_v21  ;;  %v12795_v49 = vpack.c.bf16 %v1685_v4, %v1683_v31  ;;  %v1927_v41 = vor.u32 %v1922_v18, %v1774_v63  ;;  %v1930_v4 = vor.u32 %v1925_v26, %v1782_v19  ;;  %v10742_v19 = vld [vmem:[%s13994_s17 + $0x164] ss:$8 sps:$4 sm:$0xff]  }
 0x58f   :  { %1869 = vst [vmem:[#allocation2 + $0xf0] sm:$0xff] %v1780_v54  ;;  %v1788_v5 = vsel %vm13954_vm7, %v1768_v43, %v1787_v17  ;;  %v12800_v16 = vpack.c.bf16 %v1686_v58, %v1684_v55  ;;  %v1644_v6 = vpop.f32.mrb[40].mxu1  ;;  %2774 = vmatpush1.bf16.msra.mxu0 %v10731_v29  ;;  %v10737_v17 = vld [vmem:[%s13994_s17 + $0x150] ss:$8 sps:$4 sm:$0xff]   ;;  %v1763_v26 = vor.u32 %v1761_v61, %v12772_v59 }
 0x590   :  { %1870 = vst [vmem:[#allocation2 + $0xf8] sm:$0xff] %v1788_v5  ;;  %v1790_v9 = vshrl.u32 %v12795_v49, 16  ;;  %v1793_v10 = vshll.u32 %v12795_v49, 16  ;;  %v1645_v40 = vadd.f32 %v1644_v6, %v12632_v51  ;;  %v1646_v52 = vpop.f32.mrb[41].mxu1  ;;  %2775 = vmatprep.subr.bf16.mxu0 %v10736_v36 }
 0x591   :  { %v1798_v43 = vshrl.u32 %v12800_v16, 16  ;;  %v1801_v23 = vshll.u32 %v12800_v16, 16  ;;  %v1647_v27 = vadd.f32 %v1646_v52, %v12635_v53  ;;  %v1648_v29 = vpop.f32.mrb[42].mxu1 }
 0x592   :  { %v12812_v47 = vrot.slane %v1790_v9, 7  ;;  %v1928_v12 = vrot.slane %v1793_v10, 1  ;;  %v1687_v33 = vmax.f32 %v1645_v40, 0.0  ;;  %v1649_v44 = vadd.f32 %v1648_v29, %v12632_v51  ;;  %v1650_v31 = vpop.f32.mrb[43].mxu1  ;;  %2707 = vmatmul.mubr.bf16.gmra.mrb[40].mxu0 %v1748_v0  ;;  %v10740_v29 = vld [vmem:[%s13994_s17 + $0x160] ss:$8 sps:$4 sm:$0xff]  }
 0x593   :  { %v12817_v63 = vrot.slane %v1798_v43, 7  ;;  %v1931_v18 = vrot.slane %v1801_v23, 1  ;;  %v1651_v36 = vadd.f32 %v1650_v31, %v12635_v53  ;;  %2716 = vmatprep.mubr.bf16.mxu0 %v1772_v24  ;;  %2776 = vmatpush1.bf16.msra.mxu0 %v10734_v8  ;;  %v1688_v54 = vmax.f32 %v1647_v27, 0.0 }
 0x594   :  { %v2000_v21 = vld [vmem:[#allocation2 + $0xe0] sm:$0x80]  ;;  %v1795_v55 = vor.u32 %v1793_v10, %v12812_v47  ;;  %v12823_v58 = vsel %vm1351_vm5, %v1927_v41, %v1928_v12  ;;  %v1689_v5 = vmax.f32 %v1649_v44, 0.0  ;;  %2777 = vmatprep.subr.bf16.mxu0 %v10739_v28 }
 0x595   :  { %v2001_v0 = vsel %vm12649_vm11, 0, %v2000_v21  ;;  %v2003_v6 = vld [vmem:[#allocation2 + $0xe8] sm:$0x80]  ;;  %v1803_v8 = vor.u32 %v1801_v23, %v12817_v63  ;;  %v12833_v24 = vsel %vm1351_vm5, %v1930_v4, %v1931_v18  ;;  %v1690_v59 = vmax.f32 %v1651_v36, 0.0  ;;  %v10745_v36 = vld [vmem:[%s13994_s17 + $0x174] ss:$8 sps:$4 sm:$0xff]  }
 0x596   :  { %2002 = vst [vmem:[#allocation2 + $0xe0] sm:$0x80] %v2001_v0  ;;  %v2006_v10 = vld [vmem:[#allocation2 + $0xf0] sm:$0x1]  ;;  %v2004_v40 = vsel %vm12649_vm11, 0, %v2003_v6  ;;  %v12839_v52 = vsel %vm13954_vm7, %v12781_v14, %v1795_v55  ;;  %v12841_v61 = vpack.c.bf16 %v1689_v5, %v1687_v33 }
 0x597   :  { %v2007_v28 = vsel %vm12695_vm13, 0, %v2006_v10  ;;  %2005 = vst [vmem:[#allocation2 + $0xe8] sm:$0x80] %v2004_v40  ;;  %v2009_v41 = vld [vmem:[#allocation2 + $0xf8] sm:$0x1]  ;;  %1871 = vst [vmem:[#allocation2 + $0x120] sm:$0xff] %v12839_v52  ;;  %v12848_v23 = vsel %vm13954_vm7, %v12784_v38, %v1803_v8  ;;  %2778 = vmatpush1.bf16.msra.mxu0 %v10737_v17  ;;  %v12855_v31 = vpack.c.bf16 %v1690_v59, %v1688_v54 }
 0x598   :  { %v1654_v27 = vpop.f32.mrb[44].mxu1  ;;  %2008 = vst [vmem:[#allocation2 + $0xf0] sm:$0x1] %v2007_v28  ;;  %v2010_v14 = vsel %vm12695_vm13, 0, %v2009_v41  ;;  %v1806_v33 = vshrl.u32 %v12841_v61, 16  ;;  %v1809_v44 = vshll.u32 %v12841_v61, 16  ;;  %2779 = vmatprep.subr.bf16.mxu0 %v10742_v19  ;;  %v1764_v38 = vsel %vm13954_vm7, %v12748_v20, %v1763_v26 }
 0x599   :  { %v1656_v4 = vpop.f32.mrb[45].mxu1  ;;  %2011 = vst [vmem:[#allocation2 + $0xf8] sm:$0x1] %v2010_v14  ;;  %v1933_v17 = vor.u32 %v1928_v12, %v1790_v9  ;;  %v1655_v21 = vadd.f32 %v1654_v27, %v12632_v51  ;;  %v1814_v54 = vshrl.u32 %v12855_v31, 16  ;;  %v1817_v19 = vshll.u32 %v12855_v31, 16 }
 0x59a   :  { %v1657_v55 = vadd.f32 %v1656_v4, %v12635_v53  ;;  %v1658_v5 = vpop.f32.mrb[46].mxu1  ;;  %v12862_v0 = vrot.slane %v1806_v33, 7  ;;  %v1934_v6 = vrot.slane %v1809_v44, 1  ;;  %2717 = vmatmul.mubr.bf16.gmra.mrb[44].mxu0 %v1764_v38  ;;  %v1936_v20 = vor.u32 %v1931_v18, %v1798_v43  ;;  %v10743_v26 = vld [vmem:[%s13994_s17 + $0x170] ss:$8 sps:$4 sm:$0xff]  }
 0x59b   :  { %v1660_v8 = vpop.f32.mrb[47].mxu1  ;;  %v1659_v9 = vadd.f32 %v1658_v5, %v12632_v51  ;;  %2780 = vmatpush1.bf16.msra.mxu0 %v10740_v29  ;;  %v1816_v59 = vrot.slane %v1814_v54, 7  ;;  %v1691_v28 = vmax.f32 %v1655_v21, 0.0  ;;  %v10748_v41 = vld [vmem:[%s13994_s17 + $0x184] ss:$8 sps:$4 sm:$0xff]   ;;  %v1937_v27 = vrot.slane %v1817_v19, 1 }
 0x59c   :  { %v1661_v12 = vadd.f32 %v1660_v8, %v12635_v53  ;;  %v1811_v10 = vor.u32 %v1809_v44, %v12862_v0  ;;  %v12873_v40 = vsel %vm1351_vm5, %v1933_v17, %v1934_v6  ;;  %2781 = vmatprep.subr.bf16.mxu0 %v10745_v36  ;;  %v1692_v14 = vmax.f32 %v1657_v55, 0.0  ;;  %v10746_v36 = vld [vmem:[%s13994_s17 + $0x180] ss:$8 sps:$4 sm:$0xff]   ;;  %v10751_v21 = vld [vmem:[%s13994_s17 + $0x194] ss:$8 sps:$4 sm:$0xff]  }
 0x59d   :  { %v1693_v43 = vmax.f32 %v1659_v9, 0.0  ;;  %v1819_v53 = vor.u32 %v1817_v19, %v1816_v59  ;;  %v12882_v29 = vsel %vm1351_vm5, %v1936_v20, %v1937_v27  ;;  %v1939_v20 = vor.u32 %v1934_v6, %v1806_v33  ;;  %v1882_v9 = vld [vmem:[#allocation2 + $0x1b8] sm:$0x1]  ;;  %v10754_v33 = vld [vmem:[%s13994_s17 + $0x1a4] ss:$8 sps:$4 sm:$0xff]  }
 0x59e   :  { %v1694_v18 = vmax.f32 %v1661_v12, 0.0  ;;  %v12878_v51 = vsel %vm13954_vm7, %v12812_v47, %v1811_v10 }
 0x59f   :  { %1873 = vst [vmem:[#allocation2 + $0x150] sm:$0xff] %v12878_v51  ;;  %v12884_v44 = vpack.c.bf16 %v1693_v43, %v1691_v28  ;;  %2782 = vmatpush1.bf16.msra.mxu0 %v10743_v26  ;;  %v1820_v38 = vsel %vm13954_vm7, %v12817_v63, %v1819_v53  ;;  %v2042_v8 = vld [vmem:[#allocation2 + $0xf0] sm:$0xff] }
 0x5a0   :  { %v12886_v4 = vpack.c.bf16 %v1694_v18, %v1692_v14  ;;  %v2043_v17 = vld [vmem:[#allocation2 + $0xf8] sm:$0xff]  ;;  %2783 = vmatprep.subr.bf16.mxu0 %v10748_v41  ;;  %v1942_v14 = vor.u32 %v1937_v27, %v1814_v54  ;;  %v1879_v43 = vld [vmem:[#allocation2 + $0x1b0] sm:$0x1]  ;;  %v1988_v18 = vld [vmem:[#allocation2 + $0x1a0] sm:$0xff] }
 0x5a1   :  { %v1822_v47 = vshrl.u32 %v12884_v44, 16  ;;  %v1825_v55 = vshll.u32 %v12884_v44, 16  ;;  %2726 = vmatprep.mubr.bf16.mxu0 %v2043_v17  ;;  %v10749_v41 = vld [vmem:[%s13994_s17 + $0x190] ss:$8 sps:$4 sm:$0xff]  }
 0x5a2   :  { %v1830_v5 = vshrl.u32 %v12886_v4, 16  ;;  %v1833_v19 = vshll.u32 %v12886_v4, 16  ;;  %2727 = vmatmul.mubr.bf16.gmra.mrb[48].mxu0 %v2042_v8 }
 0x5a3   :  { %v1824_v12 = vrot.slane %v1822_v47, 7  ;;  %v1940_v26 = vrot.slane %v1825_v55, 1  ;;  %2736 = vmatprep.mubr.bf16.mxu0 %v12848_v23  ;;  %2784 = vmatpush1.bf16.msra.mxu0 %v10746_v36 }
 0x5a4   :  { %v1832_v10 = vrot.slane %v1830_v5, 7  ;;  %v1943_v28 = vrot.slane %v1833_v19, 1  ;;  %2785 = vmatprep.subr.bf16.mxu0 %v10751_v21 }
 0x5a5   :  { %v1827_v6 = vor.u32 %v1825_v55, %v1824_v12  ;;  %v1880_v53 = vsel %vm12695_vm13, %v1824_v12, %v1879_v43  ;;  %v12908_v17 = vsel %vm1351_vm5, %v1939_v20, %v1940_v26  ;;  %v1945_v8 = vor.u32 %v1940_v26, %v1822_v47  ;;  %v10752_v47 = vld [vmem:[%s13994_s17 + $0x1a0] ss:$8 sps:$4 sm:$0xff]   ;;  %v10767_v43 = vld [vmem:[%s13994_s17 + $0x1f0] ss:$8 sps:$4 sm:$0xff]  }
 0x5a6   :  { %1881 = vst [vmem:[#allocation2 + $0x1b0] sm:$0x1] %v1880_v53  ;;  %v1835_v23 = vor.u32 %v1833_v19, %v1832_v10  ;;  %v1883_v54 = vsel %vm12695_vm13, %v1832_v10, %v1882_v9  ;;  %v12913_v27 = vsel %vm1351_vm5, %v1942_v14, %v1943_v28  ;;  %v1946_v36 = vor.u32 %v1943_v28, %v1830_v5  ;;  %v10757_v5 = vld [vmem:[%s13994_s17 + $0x1b4] ss:$8 sps:$4 sm:$0xff]   ;;  %v10760_v9 = vld [vmem:[%s13994_s17 + $0x1c4] ss:$8 sps:$4 sm:$0xff]  }
 0x5a7   :  { %v1828_v21 = vsel %vm13954_vm7, %v12862_v0, %v1827_v6  ;;  %v1989_v55 = vsel %vm12898_vm14, %v1945_v8, %v1988_v18  ;;  %1884 = vst [vmem:[#allocation2 + $0x1b8] sm:$0x1] %v1883_v54  ;;  %2786 = vmatpush1.bf16.msra.mxu0 %v10749_v41  ;;  %v10755_v0 = vld [vmem:[%s13994_s17 + $0x1b0] ss:$8 sps:$4 sm:$0xff]   ;;  %v10763_v10 = vld [vmem:[%s13994_s17 + $0x1d4] ss:$8 sps:$4 sm:$0xff]  }
 0x5a8   :  { %1875 = vst [vmem:[#allocation2 + $0x180] sm:$0xff] %v1828_v21  ;;  %1990 = vst [vmem:[#allocation2 + $0x1a0] sm:$0xff] %v1989_v55  ;;  %v1836_v19 = vsel %vm13954_vm7, %v1816_v59, %v1835_v23  ;;  %v1992_v20 = vsel %vm12898_vm14, %v1946_v36, %v1991_v34  ;;  %2787 = vmatprep.subr.bf16.mxu0 %v10754_v33  ;;  %v10758_v59 = vld [vmem:[%s13994_s17 + $0x1c0] ss:$8 sps:$4 sm:$0xff]   ;;  %v10766_v28 = vld [vmem:[%s13994_s17 + $0x1e4] ss:$8 sps:$4 sm:$0xff]  }
 0x5a9   :  { %1993 = vst [vmem:[#allocation2 + $0x1a8] sm:$0xff] %v1992_v20  ;;  %v10764_v41 = vld [vmem:[%s13994_s17 + $0x1e0] ss:$8 sps:$4 sm:$0xff]   ;;  %v10769_v14 = vld [vmem:[%s13994_s17 + $0x1f4] ss:$8 sps:$4 sm:$0xff]  }
 0x5aa   :  { %2737 = vmatmul.mubr.bf16.gmra.mrb[52].mxu0 %v12839_v52  ;;  %v10770_v18 = vld [vmem:[%s13994_s17 + $0x200] ss:$8 sps:$4 sm:$0xff]   ;;  %v10775_v33 = vld [vmem:[%s13994_s17 + $0x214] ss:$8 sps:$4 sm:$0xff]   ;;  %v10773_v6 = vld [vmem:[%s13994_s17 + $0x210] ss:$8 sps:$4 sm:$0xff]  }
 0x5ab   :  { %2746 = vmatprep.mubr.bf16.mxu0 %v1820_v38  ;;  %2788 = vmatpush1.bf16.msra.mxu0 %v10752_v47  ;;  %v10761_v38 = vld [vmem:[%s13994_s17 + $0x1d0] ss:$8 sps:$4 sm:$0xff]   ;;  %v10776_v53 = vld [vmem:[%s13994_s17 + $0x220] ss:$8 sps:$4 sm:$0xff]   ;;  %v10781_v8 = vld [vmem:[%s13994_s17 + $0x234] ss:$8 sps:$4 sm:$0xff]  }
 0x5ac   :  { %2789 = vmatprep.subr.bf16.mxu0 %v10757_v5  ;;  %v10782_v23 = vld [vmem:[%s13994_s17 + $0x240] ss:$8 sps:$4 sm:$0xff]   ;;  %v10787_v54 = vld [vmem:[%s13994_s17 + $0x254] ss:$8 sps:$4 sm:$0xff]  }
 0x5ad   :  { %v10788_v36 = vld [vmem:[%s13994_s17 + $0x260] ss:$8 sps:$4 sm:$0xff]   ;;  %v10799_v47 = vld [vmem:[%s13994_s17 + $0x294] ss:$8 sps:$4 sm:$0xff]  }
 0x5ae   :  { %v10794_v55 = vld [vmem:[%s13994_s17 + $0x280] ss:$8 sps:$4 sm:$0xff]   ;;  %v10805_v20 = vld [vmem:[%s13994_s17 + $0x2b4] ss:$8 sps:$4 sm:$0xff]  }
 0x5af   :  { %v2012_v12 = vld [vmem:[#allocation2 + $0x1a0] sm:$0x80]  ;;  %2790 = vmatpush1.bf16.msra.mxu0 %v10755_v0  ;;  %v10806_v5 = vld [vmem:[%s13994_s17 + $0x2c0] ss:$8 sps:$4 sm:$0xff]   ;;  %v10811_v0 = vld [vmem:[%s13994_s17 + $0x2d4] ss:$8 sps:$4 sm:$0xff]  }
 0x5b0   :  { %v2013_v34 = vsel %vm12649_vm11, 0, %v2012_v12  ;;  %v2015_v26 = vld [vmem:[#allocation2 + $0x1a8] sm:$0x80]  ;;  %2791 = vmatprep.subr.bf16.mxu0 %v10760_v9  ;;  %v10809_v9 = vld [vmem:[%s13994_s17 + $0x2d0] ss:$8 sps:$4 sm:$0xff]  }
 0x5b1   :  { %2014 = vst [vmem:[#allocation2 + $0x1a0] sm:$0x80] %v2013_v34  ;;  %v2016_v52 = vsel %vm12649_vm11, 0, %v2015_v26  ;;  %v10817_v12 = vld [vmem:[%s13994_s17 + $0x2f4] ss:$8 sps:$4 sm:$0xff]  }
 0x5b2   :  { %2017 = vst [vmem:[#allocation2 + $0x1a8] sm:$0x80] %v2016_v52  ;;  %2747 = vmatmul.mubr.bf16.gmra.mrb[56].mxu0 %v12878_v51  ;;  %v10772_v51 = vld [vmem:[%s13994_s17 + $0x204] ss:$8 sps:$4 sm:$0xff]   ;;  %v10815_v34 = vld [vmem:[%s13994_s17 + $0x2f0] ss:$8 sps:$4 sm:$0xff]  }
 0x5b3   :  { %2756 = vmatprep.mubr.bf16.mxu0 %v1836_v19  ;;  %2792 = vmatpush1.bf16.msra.mxu0 %v10758_v59  ;;  %v10800_v19 = vld [vmem:[%s13994_s17 + $0x2a0] ss:$8 sps:$4 sm:$0xff]   ;;  %v2023_v59 = vld [vmem:[#allocation2 + $0x58] sm:$0xff]  ;;  %v2022_v26 = vld [vmem:[#allocation2 + $0x50] sm:$0xff] }
 0x5b4   :  { %2793 = vmatprep.subr.bf16.mxu0 %v10763_v10 }
 0x5b7   :  { %2794 = vmatpush1.bf16.msra.mxu0 %v10761_v38 }
 0x5b8   :  { %2795 = vmatprep.subr.bf16.mxu0 %v10766_v28 }
 0x5ba   :  { %2757 = vmatmul.mubr.bf16.gmra.mrb[60].mxu0 %v1828_v21  ;;  %v10793_v21 = vld [vmem:[%s13994_s17 + $0x274] ss:$8 sps:$4 sm:$0xff]  }
 0x5bb   :  { %2796 = vmatpush1.bf16.msra.mxu0 %v10764_v41  ;;  %2799 = vmatprep.mubr.bf16.mxu0 %v12643_v2  ;;  %v10778_v2 = vld [vmem:[%s13994_s17 + $0x224] ss:$8 sps:$4 sm:$0xff]  }
 0x5bc   :  { %2797 = vmatprep.subr.bf16.mxu0 %v10769_v14 }
 0x5bf   :  { %2798 = vmatpush1.bf16.msra.mxu0 %v10767_v43 }
 0x5c0   :  { %2880 = vmatprep.subr.bf16.mxu0 %v10772_v51 }
 0x5c2   :  { %2800 = vmatmul.mubr.bf16.vlgmr.msra.gmra.mrb[32].mxu0 %v12641_v1  ;;  %v10779_v1 = vld [vmem:[%s13994_s17 + $0x230] ss:$8 sps:$4 sm:$0xff]  }
 0x5c3   :  { %2809 = vmatprep.mubr.bf16.mxu0 %v12681_v37  ;;  %2881 = vmatpush1.bf16.msra.mxu0 %v10770_v18  ;;  %v10784_v37 = vld [vmem:[%s13994_s17 + $0x244] ss:$8 sps:$4 sm:$0xff]  }
 0x5c4   :  { %2882 = vmatprep.subr.bf16.mxu0 %v10775_v33 }
 0x5c7   :  { %2883 = vmatpush1.bf16.msra.mxu0 %v10773_v6 }
 0x5c8   :  { %2884 = vmatprep.subr.bf16.mxu0 %v10778_v2 }
 0x5ca   :  { %2810 = vmatmul.mubr.bf16.gmra.mrb[36].mxu0 %v12677_v35  ;;  %v10785_v35 = vld [vmem:[%s13994_s17 + $0x250] ss:$8 sps:$4 sm:$0xff]  }
 0x5cb   :  { %2819 = vmatprep.mubr.bf16.mxu0 %v12705_v15  ;;  %2885 = vmatpush1.bf16.msra.mxu0 %v10776_v53  ;;  %v10790_v15 = vld [vmem:[%s13994_s17 + $0x264] ss:$8 sps:$4 sm:$0xff]  }
 0x5cc   :  { %2886 = vmatprep.subr.bf16.mxu0 %v10781_v8 }
 0x5cf   :  { %2887 = vmatpush1.bf16.msra.mxu0 %v10779_v1 }
 0x5d0   :  { %2888 = vmatprep.subr.bf16.mxu0 %v10784_v37 }
 0x5d2   :  { %2820 = vmatmul.mubr.bf16.gmra.mrb[40].mxu0 %v12701_v13  ;;  %v10791_v13 = vld [vmem:[%s13994_s17 + $0x270] ss:$8 sps:$4 sm:$0xff]  }
 0x5d3   :  { %2829 = vmatprep.mubr.bf16.mxu0 %v12731_v57  ;;  %2889 = vmatpush1.bf16.msra.mxu0 %v10782_v23  ;;  %v10796_v57 = vld [vmem:[%s13994_s17 + $0x284] ss:$8 sps:$4 sm:$0xff]  }
 0x5d4   :  { %2890 = vmatprep.subr.bf16.mxu0 %v10787_v54 }
 0x5d7   :  { %2891 = vmatpush1.bf16.msra.mxu0 %v10785_v35 }
 0x5d8   :  { %2892 = vmatprep.subr.bf16.mxu0 %v10790_v15 }
 0x5da   :  { %2830 = vmatmul.mubr.bf16.gmra.mrb[44].mxu0 %v12727_v32  ;;  %v10797_v32 = vld [vmem:[%s13994_s17 + $0x290] ss:$8 sps:$4 sm:$0xff]  }
 0x5db   :  { %2839 = vmatprep.mubr.bf16.mxu0 %v12769_v56  ;;  %2893 = vmatpush1.bf16.msra.mxu0 %v10788_v36  ;;  %v10802_v56 = vld [vmem:[%s13994_s17 + $0x2a4] ss:$8 sps:$4 sm:$0xff]  }
 0x5dc   :  { %2894 = vmatprep.subr.bf16.mxu0 %v10793_v21 }
 0x5df   :  { %2895 = vmatpush1.bf16.msra.mxu0 %v10791_v13 }
 0x5e0   :  { %2896 = vmatprep.subr.bf16.mxu0 %v10796_v57 }
 0x5e2   :  { %2840 = vmatmul.mubr.bf16.gmra.mrb[48].mxu0 %v12761_v22  ;;  %v10803_v22 = vld [vmem:[%s13994_s17 + $0x2b0] ss:$8 sps:$4 sm:$0xff]  }
 0x5e3   :  { %2849 = vmatprep.mubr.bf16.mxu0 %v12800_v16  ;;  %2897 = vmatpush1.bf16.msra.mxu0 %v10794_v55  ;;  %v10808_v16 = vld [vmem:[%s13994_s17 + $0x2c4] ss:$8 sps:$4 sm:$0xff]  }
 0x5e4   :  { %2898 = vmatprep.subr.bf16.mxu0 %v10799_v47 }
 0x5e7   :  { %2899 = vmatpush1.bf16.msra.mxu0 %v10797_v32 }
 0x5e8   :  { %2900 = vmatprep.subr.bf16.mxu0 %v10802_v56 }
 0x5ea   :  { %2850 = vmatmul.mubr.bf16.gmra.mrb[52].mxu0 %v12795_v49  ;;  %v10814_v49 = vld [vmem:[%s13994_s17 + $0x2e4] ss:$8 sps:$4 sm:$0xff]  }
 0x5eb   :  { %2859 = vmatprep.mubr.bf16.mxu0 %v12855_v31  ;;  %2901 = vmatpush1.bf16.msra.mxu0 %v10800_v19  ;;  %v10812_v31 = vld [vmem:[%s13994_s17 + $0x2e0] ss:$8 sps:$4 sm:$0xff]  }
 0x5ec   :  { %2902 = vmatprep.subr.bf16.mxu0 %v10805_v20 }
 0x5ef   :  { %2903 = vmatpush1.bf16.msra.mxu0 %v10803_v22 }
 0x5f0   :  { %2904 = vmatprep.subr.bf16.mxu0 %v10808_v16 }
 0x5f2   :  { %2860 = vmatmul.mubr.bf16.gmra.mrb[56].mxu0 %v12841_v61  ;;  %v12991_v61 = vld [vmem:[#allocation2 + $0xe8] sm:$0xff] }
 0x5f3   :  { %2869 = vmatprep.mubr.bf16.mxu0 %v12886_v4  ;;  %2905 = vmatpush1.bf16.msra.mxu0 %v10806_v5 }
 0x5f4   :  { %2906 = vmatprep.subr.bf16.mxu0 %v10811_v0 }
 0x5f7   :  { %2907 = vmatpush1.bf16.msra.mxu0 %v10809_v9 }
 0x5f8   :  { %2908 = vmatprep.subr.bf16.mxu0 %v10814_v49 }
 0x5fa   :  { %2870 = vmatmul.mubr.bf16.gmra.mrb[60].mxu0 %v12884_v44  ;;  %v12994_v44 = vld [vmem:[#allocation2 + $0xe0] sm:$0xff] }
 0x5fb   :  { %2909 = vmatpush1.bf16.msra.mxu0 %v10812_v31  ;;  %2912 = vmatprep.mubr.bf16.mxu0 %v2023_v59 }
 0x5fc   :  { %2910 = vmatprep.subr.bf16.mxu0 %v10817_v12 }
 0x5ff   :  { %2911 = vmatpush1.bf16.msra.mxu0 %v10815_v34 }
 0x602   :  { %2913 = vmatmul.mubr.bf16.vlgmr.msra.gmra.mrb[32].mxu0 %v2022_v26 }
 0x603   :  { %2922 = vmatprep.mubr.bf16.mxu0 %v12725_v45  ;;  %v2064_v45 = vld [vmem:[#allocation2 + $0x1a0] sm:$0xff] }
 0x60a   :  { %2923 = vmatmul.mubr.bf16.gmra.mrb[36].mxu0 %v12722_v39  ;;  %v2065_v39 = vld [vmem:[#allocation2 + $0x1a8] sm:$0xff] }
 0x60b   :  { %2932 = vmatprep.mubr.bf16.mxu0 %v12759_v25  ;;  %v2162_v25 = vld [vmem:[%s14006_s21] sm:$0x3] }
 0x612   :  { %2933 = vmatmul.mubr.bf16.gmra.mrb[40].mxu0 %v12755_v7  ;;  %v11987_v7 = vmov 0.0  }
 0x613   :  { %2942 = vmatprep.mubr.bf16.mxu0 %v12991_v61  ;;  %3097 = vmatprep.mubr.f32.mxu1 %v11987_v7 }
 0x61a   :  { %2943 = vmatmul.mubr.bf16.gmra.mrb[44].mxu0 %v12994_v44 }
 0x61b   :  { %2952 = vmatprep.mubr.bf16.mxu0 %v12833_v24  ;;  %v13006_v24 = vrot.slane %v2162_v25, %v12625_v48 }
 0x622   :  { %2953 = vmatmul.mubr.bf16.gmra.mrb[48].mxu0 %v12823_v58  ;;  %v13009_v58 = vrot.slane %v2162_v25, %v12629_v50 }
 0x623   :  { %2962 = vmatprep.mubr.bf16.mxu0 %v12882_v29 }
 0x62a   :  { %2963 = vmatmul.mubr.bf16.gmra.mrb[52].mxu0 %v12873_v40 }
 0x62b   :  { %2972 = vmatprep.mubr.bf16.mxu0 %v12913_v27 }
 0x632   :  { %2973 = vmatmul.mubr.bf16.gmra.mrb[56].mxu0 %v12908_v17 }
 0x633   :  { %2982 = vmatprep.mubr.bf16.mxu0 %v2065_v39 }
 0x63a   :  { %2983 = vmatmul.mubr.bf16.gmra.mrb[60].mxu0 %v2064_v45 }
 0x6d5   :  { %v2914_v29 = vpop.f32.mrb[32].mxu0 }
 0x6d6   :  { %v10390_v40 = vadd.f32 %v2914_v29, %v13006_v24  ;;  %v2916_v4 = vpop.f32.mrb[33].mxu0 }
 0x6d7   :  { %v10391_v17 = vadd.f32 %v2916_v4, %v13009_v58  ;;  %v2918_v27 = vpop.f32.mrb[34].mxu0 }
 0x6d8   :  { %v10392_v10 = vadd.f32 %v2918_v27, %v13006_v24  ;;  %v2920_v52 = vpop.f32.mrb[35].mxu0  ;;  %v2993_v28 = vmax.f32 %v10390_v40, 0.0 }
 0x6d9   :  { %v10393_v38 = vadd.f32 %v2920_v52, %v13009_v58  ;;  %v2994_v14 = vmax.f32 %v10391_v17, 0.0 }
 0x6da   :  { %v2995_v41 = vmax.f32 %v10392_v10, 0.0 }
 0x6db   :  { %v2996_v43 = vmax.f32 %v10393_v38, 0.0 }
 0x6dc   :  { %v10333_v51 = vpack.c.bf16 %v2995_v41, %v2993_v28 }
 0x6dd   :  { %v10331_v18 = vpack.c.bf16 %v2996_v43, %v2994_v14  ;;  %v2924_v33 = vpop.f32.mrb[36].mxu0 }
 0x6de   :  { %v10394_v6 = vadd.f32 %v2924_v33, %v13006_v24  ;;  %v2926_v2 = vpop.f32.mrb[37].mxu0 }
 0x6df   :  { %v10395_v53 = vadd.f32 %v2926_v2, %v13009_v58  ;;  %v2928_v8 = vpop.f32.mrb[38].mxu0  ;;  %10332 = vmatprep.subr.bf16.mxu1 %v10331_v18 }
 0x6e0   :  { %v10396_v1 = vadd.f32 %v2928_v8, %v13006_v24  ;;  %v2930_v37 = vpop.f32.mrb[39].mxu0  ;;  %10334 = vmatpush1.bf16.msra.mxu1 %v10333_v51  ;;  %v2997_v54 = vmax.f32 %v10394_v6, 0.0 }
 0x6e1   :  { %v10397_v23 = vadd.f32 %v2930_v37, %v13009_v58  ;;  %v2998_v15 = vmax.f32 %v10395_v53, 0.0 }
 0x6e2   :  { %v2999_v35 = vmax.f32 %v10396_v1, 0.0 }
 0x6e3   :  { %v3000_v36 = vmax.f32 %v10397_v23, 0.0 }
 0x6e4   :  { %v10337_v21 = vpack.c.bf16 %v2999_v35, %v2997_v54 }
 0x6e5   :  { %v10335_v13 = vpack.c.bf16 %v3000_v36, %v2998_v15  ;;  %v2934_v57 = vpop.f32.mrb[40].mxu0 }
 0x6e6   :  { %v10398_v55 = vadd.f32 %v2934_v57, %v13006_v24  ;;  %v2936_v47 = vpop.f32.mrb[41].mxu0 }
 0x6e7   :  { %v10399_v32 = vadd.f32 %v2936_v47, %v13009_v58  ;;  %v2938_v56 = vpop.f32.mrb[42].mxu0  ;;  %10336 = vmatprep.subr.bf16.mxu1 %v10335_v13 }
 0x6e8   :  { %v10400_v19 = vadd.f32 %v2938_v56, %v13006_v24  ;;  %v2940_v20 = vpop.f32.mrb[43].mxu0  ;;  %10338 = vmatpush1.bf16.msra.mxu1 %v10337_v21  ;;  %v3001_v16 = vmax.f32 %v10398_v55, 0.0 }
 0x6e9   :  { %v10401_v22 = vadd.f32 %v2940_v20, %v13009_v58  ;;  %v3002_v0 = vmax.f32 %v10399_v32, 0.0 }
 0x6ea   :  { %v3003_v5 = vmax.f32 %v10400_v19, 0.0 }
 0x6eb   :  { %v3004_v9 = vmax.f32 %v10401_v22, 0.0 }
 0x6ec   :  { %v10341_v49 = vpack.c.bf16 %v3003_v5, %v3001_v16 }
 0x6ed   :  { %v10339_v31 = vpack.c.bf16 %v3004_v9, %v3002_v0  ;;  %v2944_v12 = vpop.f32.mrb[44].mxu0 }
 0x6ee   :  { %v10402_v59 = vadd.f32 %v2944_v12, %v13006_v24  ;;  %v2946_v34 = vpop.f32.mrb[45].mxu0 }
 0x6ef   :  { %v10403_v26 = vadd.f32 %v2946_v34, %v13009_v58  ;;  %v2948_v39 = vpop.f32.mrb[46].mxu0  ;;  %10340 = vmatprep.subr.bf16.mxu1 %v10339_v31 }
 0x6f0   :  { %v10404_v45 = vadd.f32 %v2948_v39, %v13006_v24  ;;  %v2950_v25 = vpop.f32.mrb[47].mxu0  ;;  %10342 = vmatpush1.bf16.msra.mxu1 %v10341_v49  ;;  %v3005_v40 = vmax.f32 %v10402_v59, 0.0 }
 0x6f1   :  { %v10405_v29 = vadd.f32 %v2950_v25, %v13009_v58  ;;  %v3006_v17 = vmax.f32 %v10403_v26, 0.0 }
 0x6f2   :  { %v3007_v4 = vmax.f32 %v10404_v45, 0.0 }
 0x6f3   :  { %v3008_v27 = vmax.f32 %v10405_v29, 0.0 }
 0x6f4   :  { %v10345_v10 = vpack.c.bf16 %v3007_v4, %v3005_v40 }
 0x6f5   :  { %v10343_v52 = vpack.c.bf16 %v3008_v27, %v3006_v17  ;;  %v2954_v38 = vpop.f32.mrb[48].mxu0 }
 0x6f6   :  { %v10406_v28 = vadd.f32 %v2954_v38, %v13006_v24  ;;  %v2956_v41 = vpop.f32.mrb[49].mxu0 }
 0x6f7   :  { %v10407_v14 = vadd.f32 %v2956_v41, %v13009_v58  ;;  %v2958_v43 = vpop.f32.mrb[50].mxu0  ;;  %10344 = vmatprep.subr.bf16.mxu1 %v10343_v52 }
 0x6f8   :  { %v10408_v51 = vadd.f32 %v2958_v43, %v13006_v24  ;;  %v2960_v18 = vpop.f32.mrb[51].mxu0  ;;  %10346 = vmatpush1.bf16.msra.mxu1 %v10345_v10  ;;  %v3009_v6 = vmax.f32 %v10406_v28, 0.0 }
 0x6f9   :  { %v10409_v33 = vadd.f32 %v2960_v18, %v13009_v58  ;;  %v3010_v53 = vmax.f32 %v10407_v14, 0.0 }
 0x6fa   :  { %v3011_v2 = vmax.f32 %v10408_v51, 0.0 }
 0x6fb   :  { %v3012_v8 = vmax.f32 %v10409_v33, 0.0  ;;  %v10820_v33 = vld [vmem:[%s14007_s24 + $0x4] ss:$8 sps:$4 sm:$0xff]  }
 0x6fc   :  { %v10349_v1 = vpack.c.bf16 %v3011_v2, %v3009_v6  ;;  %v3025_v6 = vld [vmem:[#allocation32] sm:$0xff]  ;;  %v10818_v2 = vld [vmem:[%s14007_s24] ss:$8 sps:$4 sm:$0xff]  }
 0x6fd   :  { %v10347_v37 = vpack.c.bf16 %v3012_v8, %v3010_v53  ;;  %v2964_v23 = vpop.f32.mrb[52].mxu0  ;;  %v10821_v53 = vld [vmem:[%s14007_s24 + $0x10] ss:$8 sps:$4 sm:$0xff]   ;;  %v10826_v8 = vld [vmem:[%s14007_s24 + $0x24] ss:$8 sps:$4 sm:$0xff]  }
 0x6fe   :  { %v10410_v54 = vadd.f32 %v2964_v23, %v13006_v24  ;;  %v2966_v35 = vpop.f32.mrb[53].mxu0  ;;  %v10829_v23 = vld [vmem:[%s14007_s24 + $0x34] ss:$8 sps:$4 sm:$0xff]  }
 0x6ff   :  { %v10411_v15 = vadd.f32 %v2966_v35, %v13009_v58  ;;  %v2968_v36 = vpop.f32.mrb[54].mxu0  ;;  %10348 = vmatprep.subr.bf16.mxu1 %v10347_v37  ;;  %v10824_v37 = vld [vmem:[%s14007_s24 + $0x20] ss:$8 sps:$4 sm:$0xff]   ;;  %v10827_v35 = vld [vmem:[%s14007_s24 + $0x30] ss:$8 sps:$4 sm:$0xff]  }
 0x700   :  { %v10412_v21 = vadd.f32 %v2968_v36, %v13006_v24  ;;  %v2970_v13 = vpop.f32.mrb[55].mxu0  ;;  %10350 = vmatpush1.bf16.msra.mxu1 %v10349_v1  ;;  %v3013_v55 = vmax.f32 %v10410_v54, 0.0  ;;  %v3027_v1 = vld [vmem:[#allocation32 + $0x10] sm:$0xff]  ;;  %v3028_v54 = vld [vmem:[#allocation32 + $0x18] sm:$0xff]  ;;  %v3029_v36 = vld [vmem:[#allocation32 + $0x20] sm:$0xff] }
 0x701   :  { %v10413_v57 = vadd.f32 %v2970_v13, %v13009_v58  ;;  %v3014_v32 = vmax.f32 %v10411_v15, 0.0  ;;  %v10832_v15 = vld [vmem:[%s14007_s24 + $0x44] ss:$8 sps:$4 sm:$0xff]   ;;  %v10835_v13 = vld [vmem:[%s14007_s24 + $0x54] ss:$8 sps:$4 sm:$0xff]  }
 0x702   :  { %v3015_v47 = vmax.f32 %v10412_v21, 0.0  ;;  %v10830_v21 = vld [vmem:[%s14007_s24 + $0x40] ss:$8 sps:$4 sm:$0xff]  }
 0x703   :  { %v3016_v56 = vmax.f32 %v10413_v57, 0.0  ;;  %v3030_v57 = vld [vmem:[#allocation32 + $0x28] sm:$0xff] }
 0x704   :  { %v10353_v19 = vpack.c.bf16 %v3015_v47, %v3013_v55  ;;  %v10833_v55 = vld [vmem:[%s14007_s24 + $0x50] ss:$8 sps:$4 sm:$0xff]   ;;  %v10838_v47 = vld [vmem:[%s14007_s24 + $0x64] ss:$8 sps:$4 sm:$0xff]  }
 0x705   :  { %v10351_v20 = vpack.c.bf16 %v3016_v56, %v3014_v32  ;;  %v2974_v22 = vpop.f32.mrb[56].mxu0  ;;  %v3031_v32 = vld [vmem:[#allocation32 + $0x30] sm:$0xff] }
 0x706   :  { %v10414_v16 = vadd.f32 %v2974_v22, %v13006_v24  ;;  %v2976_v5 = vpop.f32.mrb[57].mxu0  ;;  %v10836_v56 = vld [vmem:[%s14007_s24 + $0x60] ss:$8 sps:$4 sm:$0xff]   ;;  %v10839_v22 = vld [vmem:[%s14007_s24 + $0x70] ss:$8 sps:$4 sm:$0xff]  }
 0x707   :  { %v10415_v0 = vadd.f32 %v2976_v5, %v13009_v58  ;;  %v2978_v9 = vpop.f32.mrb[58].mxu0  ;;  %10352 = vmatprep.subr.bf16.mxu1 %v10351_v20  ;;  %v3032_v20 = vld [vmem:[#allocation32 + $0x38] sm:$0xff]  ;;  %v10844_v5 = vld [vmem:[%s14007_s24 + $0x84] ss:$8 sps:$4 sm:$0xff]  }
 0x708   :  { %v10416_v49 = vadd.f32 %v2978_v9, %v13006_v24  ;;  %v2980_v31 = vpop.f32.mrb[59].mxu0  ;;  %10354 = vmatpush1.bf16.msra.mxu1 %v10353_v19  ;;  %v3017_v59 = vmax.f32 %v10414_v16, 0.0  ;;  %v10841_v19 = vld [vmem:[%s14007_s24 + $0x74] ss:$8 sps:$4 sm:$0xff]   ;;  %v10842_v16 = vld [vmem:[%s14007_s24 + $0x80] ss:$8 sps:$4 sm:$0xff]  }
 0x709   :  { %v10417_v12 = vadd.f32 %v2980_v31, %v13009_v58  ;;  %v3018_v26 = vmax.f32 %v10415_v0, 0.0  ;;  %v10847_v0 = vld [vmem:[%s14007_s24 + $0x94] ss:$8 sps:$4 sm:$0xff]   ;;  %v10845_v9 = vld [vmem:[%s14007_s24 + $0x90] ss:$8 sps:$4 sm:$0xff]  }
 0x70a   :  { %v3019_v34 = vmax.f32 %v10416_v49, 0.0  ;;  %v10850_v49 = vld [vmem:[%s14007_s24 + $0xa4] ss:$8 sps:$4 sm:$0xff]   ;;  %v10848_v31 = vld [vmem:[%s14007_s24 + $0xa0] ss:$8 sps:$4 sm:$0xff]  }
 0x70b   :  { %v3020_v39 = vmax.f32 %v10417_v12, 0.0  ;;  %v10853_v12 = vld [vmem:[%s14007_s24 + $0xb4] ss:$8 sps:$4 sm:$0xff]  }
 0x70c   :  { %v10357_v45 = vpack.c.bf16 %v3019_v34, %v3017_v59  ;;  %v10851_v59 = vld [vmem:[%s14007_s24 + $0xb0] ss:$8 sps:$4 sm:$0xff]   ;;  %v10856_v34 = vld [vmem:[%s14007_s24 + $0xc4] ss:$8 sps:$4 sm:$0xff]  }
 0x70d   :  { %v10355_v25 = vpack.c.bf16 %v3020_v39, %v3018_v26  ;;  %v2984_v29 = vpop.f32.mrb[60].mxu0  ;;  %v10854_v26 = vld [vmem:[%s14007_s24 + $0xc0] ss:$8 sps:$4 sm:$0xff]   ;;  %v10859_v39 = vld [vmem:[%s14007_s24 + $0xd4] ss:$8 sps:$4 sm:$0xff]  }
 0x70e   :  { %v10418_v40 = vadd.f32 %v2984_v29, %v13006_v24  ;;  %v2986_v4 = vpop.f32.mrb[61].mxu0  ;;  %v10860_v29 = vld [vmem:[%s14007_s24 + $0xe0] ss:$8 sps:$4 sm:$0xff]  }
 0x70f   :  { %v10419_v17 = vadd.f32 %v2986_v4, %v13009_v58  ;;  %v2988_v27 = vpop.f32.mrb[62].mxu0  ;;  %10356 = vmatprep.subr.bf16.mxu1 %v10355_v25  ;;  %v10862_v25 = vld [vmem:[%s14007_s24 + $0xe4] ss:$8 sps:$4 sm:$0xff]   ;;  %v10863_v4 = vld [vmem:[%s14007_s24 + $0xf0] ss:$8 sps:$4 sm:$0xff]  }
 0x710   :  { %v10420_v10 = vadd.f32 %v2988_v27, %v13006_v24  ;;  %v2990_v52 = vpop.f32.mrb[63].mxu0  ;;  %10358 = vmatpush1.bf16.msra.mxu1 %v10357_v45  ;;  %v3021_v28 = vmax.f32 %v10418_v40, 0.0  ;;  %v10823_v24 = vld [vmem:[%s14007_s24 + $0x14] ss:$8 sps:$4 sm:$0xff]   ;;  %v10857_v45 = vld [vmem:[%s14007_s24 + $0xd0] ss:$8 sps:$4 sm:$0xff]  }
 0x711   :  { %v10421_v38 = vadd.f32 %v2990_v52, %v13009_v58  ;;  %v3022_v14 = vmax.f32 %v10419_v17, 0.0  ;;  %v3026_v58 = vld [vmem:[#allocation32 + $0x8] sm:$0xff]  ;;  %v10865_v40 = vld [vmem:[%s14007_s24 + $0xf4] ss:$8 sps:$4 sm:$0xff]  }
 0x712   :  { %v3023_v41 = vmax.f32 %v10420_v10, 0.0  ;;  %v10868_v17 = vld [vmem:[%s14007_s24 + $0x104] ss:$8 sps:$4 sm:$0xff]  }
 0x713   :  { %v3024_v43 = vmax.f32 %v10421_v38, 0.0 }
 0x714   :  { %v10361_v51 = vpack.c.bf16 %v3023_v41, %v3021_v28 }
 0x715   :  { %v10359_v18 = vpack.c.bf16 %v3024_v43, %v3022_v14 }
 0x717   :  { %10360 = vmatprep.subr.bf16.mxu1 %v10359_v18 }
 0x718   :  { %10362 = vmatpush1.bf16.msra.mxu1 %v10361_v51 }
 0x719   :  { %3938 = vmatprep.subr.bf16.mxu1 %v10820_v33 }
 0x71b   :  { %3098 = vmatmul.mubr.f32.vlgmr.msra.gmra.mrb[48].mxu1 %v3025_v6 }
 0x71c   :  { %3103 = vmatprep.mubr.f32.mxu1 %v11987_v7  ;;  %3939 = vmatpush1.bf16.msra.mxu1 %v10818_v2 }
 0x71d   :  { %3940 = vmatprep.subr.bf16.mxu1 %v10823_v24 }
 0x71f   :  { %3104 = vmatmul.mubr.f32.gmra.mrb[50].mxu1 %v3026_v58  ;;  %v3284_v58 = vld [vmem:[#allocation2 + $0x20] sm:$0x80] }
 0x720   :  { %3109 = vmatprep.mubr.f32.mxu1 %v11987_v7  ;;  %3941 = vmatpush1.bf16.msra.mxu1 %v10821_v53 }
 0x721   :  { %3942 = vmatprep.subr.bf16.mxu1 %v10826_v8 }
 0x723   :  { %3110 = vmatmul.mubr.f32.gmra.mrb[52].mxu1 %v3027_v1 }
 0x724   :  { %3115 = vmatprep.mubr.f32.mxu1 %v11987_v7  ;;  %3943 = vmatpush1.bf16.msra.mxu1 %v10824_v37 }
 0x725   :  { %3944 = vmatprep.subr.bf16.mxu1 %v10829_v23 }
 0x727   :  { %3116 = vmatmul.mubr.f32.gmra.mrb[54].mxu1 %v3028_v54  ;;  %v3287_v54 = vld [vmem:[#allocation2 + $0x28] sm:$0x80] }
 0x728   :  { %3121 = vmatprep.mubr.f32.mxu1 %v11987_v7  ;;  %3945 = vmatpush1.bf16.msra.mxu1 %v10827_v35  ;;  %v3226_v35 = vld [vmem:[#allocation2 + $0x30] sm:$0xff] }
 0x729   :  { %3946 = vmatprep.subr.bf16.mxu1 %v10832_v15 }
 0x72b   :  { %3122 = vmatmul.mubr.f32.gmra.mrb[56].mxu1 %v3029_v36 }
 0x72c   :  { %3127 = vmatprep.mubr.f32.mxu1 %v11987_v7  ;;  %3947 = vmatpush1.bf16.msra.mxu1 %v10830_v21 }
 0x72d   :  { %3948 = vmatprep.subr.bf16.mxu1 %v10835_v13 }
 0x72f   :  { %3128 = vmatmul.mubr.f32.gmra.mrb[58].mxu1 %v3030_v57 }
 0x730   :  { %3133 = vmatprep.mubr.f32.mxu1 %v11987_v7  ;;  %3949 = vmatpush1.bf16.msra.mxu1 %v10833_v55  ;;  %v3229_v55 = vld [vmem:[#allocation2 + $0x38] sm:$0xff] }
 0x731   :  { %3950 = vmatprep.subr.bf16.mxu1 %v10838_v47 }
 0x733   :  { %3134 = vmatmul.mubr.f32.gmra.mrb[60].mxu1 %v3031_v32 }
 0x734   :  { %3139 = vmatprep.mubr.f32.mxu1 %v11987_v7  ;;  %3951 = vmatpush1.bf16.msra.mxu1 %v10836_v56 }
 0x735   :  { %3952 = vmatprep.subr.bf16.mxu1 %v10841_v19 }
 0x737   :  { %3140 = vmatmul.mubr.f32.gmra.mrb[62].mxu1 %v3032_v20 }
 0x738   :  { %3953 = vmatpush1.bf16.msra.mxu1 %v10839_v22 }
 0x739   :  { %3954 = vmatprep.subr.bf16.mxu1 %v10844_v5 }
 0x73c   :  { %3955 = vmatpush1.bf16.msra.mxu1 %v10842_v16 }
 0x73d   :  { %3956 = vmatprep.subr.bf16.mxu1 %v10847_v0 }
 0x740   :  { %3957 = vmatpush1.bf16.msra.mxu1 %v10845_v9 }
 0x741   :  { %3958 = vmatprep.subr.bf16.mxu1 %v10850_v49 }
 0x744   :  { %3959 = vmatpush1.bf16.msra.mxu1 %v10848_v31 }
 0x745   :  { %3960 = vmatprep.subr.bf16.mxu1 %v10853_v12 }
 0x748   :  { %3961 = vmatpush1.bf16.msra.mxu1 %v10851_v59 }
 0x749   :  { %3962 = vmatprep.subr.bf16.mxu1 %v10856_v34 }
 0x74c   :  { %3963 = vmatpush1.bf16.msra.mxu1 %v10854_v26 }
 0x74d   :  { %3964 = vmatprep.subr.bf16.mxu1 %v10859_v39 }
 0x750   :  { %3965 = vmatpush1.bf16.msra.mxu1 %v10857_v45 }
 0x751   :  { %3966 = vmatprep.subr.bf16.mxu1 %v10862_v25 }
 0x754   :  { %3967 = vmatpush1.bf16.msra.mxu1 %v10860_v29 }
 0x755   :  { %3968 = vmatprep.subr.bf16.mxu1 %v10865_v40 }
 0x758   :  { %3969 = vmatpush1.bf16.msra.mxu1 %v10863_v4 }
 0x759   :  { %4011 = vmatprep.subr.bf16.mxu1 %v10868_v17 }
 0x7ee   :  { %v3099_v27 = vpop.f32.mrb[48].mxu1 }
 0x7ef   :  { %v3101_v10 = vpop.f32.mrb[49].mxu1 }
 0x7f2   :  { %v3105_v52 = vpop.f32.mrb[50].mxu1 }
 0x7f3   :  { %v13083_v38 = vpack.c.bf16 %v3105_v52, %v3099_v27  ;;  %v3107_v28 = vpop.f32.mrb[51].mxu1 }
 0x7f4   :  { %v13085_v41 = vpack.c.bf16 %v3107_v28, %v3101_v10 }
 0x7f5   :  { %v3155_v14 = vshrl.u32 %v13083_v38, 16  ;;  %v3158_v43 = vshll.u32 %v13083_v38, 16 }
 0x7f6   :  { %v3162_v51 = vshrl.u32 %v13085_v41, 16  ;;  %v3165_v18 = vshll.u32 %v13085_v41, 16  ;;  %v3111_v33 = vpop.f32.mrb[52].mxu1 }
 0x7f7   :  { %v13091_v6 = vrot.slane %v3155_v14, 7  ;;  %v3252_v2 = vrot.slane %v3158_v43, 1  ;;  %v3113_v24 = vpop.f32.mrb[53].mxu1 }
 0x7f8   :  { %v13093_v53 = vrot.slane %v3162_v51, 7  ;;  %v3253_v8 = vrot.slane %v3165_v18, 1 }
 0x7f9   :  { %v3160_v1 = vor.u32 %v3158_v43, %v13091_v6  ;;  %v3254_v37 = vor.u32 %v3252_v2, %v3155_v14  ;;  %v3285_v23 = vsel %vm12649_vm11, %v3252_v2, %v3284_v58 }
 0x7fa   :  { %3286 = vst [vmem:[#allocation2 + $0x20] sm:$0x80] %v3285_v23  ;;  %v3167_v15 = vor.u32 %v3165_v18, %v13093_v53  ;;  %v3257_v36 = vor.u32 %v3253_v8, %v3162_v51  ;;  %v3288_v21 = vsel %vm12649_vm11, %v3253_v8, %v3287_v54  ;;  %v3117_v13 = vpop.f32.mrb[54].mxu1 }
 0x7fb   :  { %v3227_v57 = vsel %vm12661_vm12, %v3160_v1, %v3226_v35  ;;  %3289 = vst [vmem:[#allocation2 + $0x28] sm:$0x80] %v3288_v21  ;;  %v13103_v47 = vpack.c.bf16 %v3117_v13, %v3111_v33  ;;  %v3119_v32 = vpop.f32.mrb[55].mxu1 }
 0x7fc   :  { %3228 = vst [vmem:[#allocation2 + $0x30] sm:$0xff] %v3227_v57  ;;  %v3230_v56 = vsel %vm12661_vm12, %v3167_v15, %v3229_v55  ;;  %v13107_v19 = vpack.c.bf16 %v3119_v32, %v3113_v24 }
 0x7fd   :  { %3231 = vst [vmem:[#allocation2 + $0x38] sm:$0xff] %v3230_v56  ;;  %v3172_v20 = vshll.u32 %v13103_v47, 16  ;;  %v3169_v34 = vshrl.u32 %v13103_v47, 16 }
 0x7fe   :  { %v3180_v22 = vshll.u32 %v13107_v19, 16  ;;  %v3123_v16 = vpop.f32.mrb[56].mxu1  ;;  %v3177_v26 = vshrl.u32 %v13107_v19, 16 }
 0x7ff   :  { %v3255_v5 = vrot.slane %v3172_v20, 1  ;;  %v3125_v0 = vpop.f32.mrb[57].mxu1  ;;  %v3171_v8 = vrot.slane %v3169_v34, 7 }
 0x800   :  { %v3258_v9 = vrot.slane %v3180_v22, 1  ;;  %v3179_v51 = vrot.slane %v3177_v26, 7 }
 0x801   :  { %v13114_v49 = vsel %vm1351_vm5, %v3254_v37, %v3255_v5  ;;  %v3260_v17 = vor.u32 %v3255_v5, %v3169_v34 }
 0x802   :  { %v13117_v31 = vsel %vm1351_vm5, %v3257_v36, %v3258_v9  ;;  %v3129_v12 = vpop.f32.mrb[58].mxu1  ;;  %v3263_v52 = vor.u32 %v3258_v9, %v3177_v26  ;;  %v3182_v21 = vor.u32 %v3180_v22, %v3179_v51  ;;  %v10871_v22 = vld [vmem:[%s14007_s24 + $0x114] ss:$8 sps:$4 sm:$0xff]  }
 0x803   :  { %v3302_v59 = vld [vmem:[#allocation2 + $0x30] sm:$0x1]  ;;  %v13121_v39 = vpack.c.bf16 %v3129_v12, %v3123_v16  ;;  %v3131_v45 = vpop.f32.mrb[59].mxu1  ;;  %v10866_v16 = vld [vmem:[%s14007_s24 + $0x100] ss:$8 sps:$4 sm:$0xff]  }
 0x804   :  { %v3303_v25 = vsel %vm12695_vm13, 0, %v3302_v59  ;;  %v3305_v29 = vld [vmem:[#allocation2 + $0x38] sm:$0x1]  ;;  %v13125_v40 = vpack.c.bf16 %v3131_v45, %v3125_v0  ;;  %v3183_v26 = vsel %vm13954_vm7, %v13093_v53, %v3182_v21  ;;  %v10877_v21 = vld [vmem:[%s14007_s24 + $0x134] ss:$8 sps:$4 sm:$0xff]  }
 0x805   :  { %3304 = vst [vmem:[#allocation2 + $0x30] sm:$0x1] %v3303_v25  ;;  %v3306_v4 = vsel %vm12695_vm13, 0, %v3305_v29  ;;  %v3185_v27 = vshrl.u32 %v13121_v39, 16  ;;  %v3188_v10 = vshll.u32 %v13121_v39, 16 }
 0x806   :  { %3307 = vst [vmem:[#allocation2 + $0x38] sm:$0x1] %v3306_v4  ;;  %v3193_v28 = vshrl.u32 %v13125_v40, 16  ;;  %v3196_v14 = vshll.u32 %v13125_v40, 16  ;;  %v3135_v43 = vpop.f32.mrb[60].mxu1 }
 0x807   :  { %v13133_v18 = vrot.slane %v3185_v27, 7  ;;  %v3261_v33 = vrot.slane %v3188_v10, 1  ;;  %v3137_v2 = vpop.f32.mrb[61].mxu1  ;;  %v3238_v29 = vld [vmem:[#allocation2 + $0xf0] sm:$0x1] }
 0x808   :  { %v13135_v24 = vrot.slane %v3193_v28, 7  ;;  %v3264_v58 = vrot.slane %v3196_v14, 1 }
 0x809   :  { %v3190_v1 = vor.u32 %v3188_v10, %v13133_v18  ;;  %v3262_v37 = vsel %vm1351_vm5, %v3260_v17, %v3261_v33  ;;  %v3266_v23 = vor.u32 %v3261_v33, %v3185_v27  ;;  %v10869_v27 = vld [vmem:[%s14007_s24 + $0x110] ss:$8 sps:$4 sm:$0xff]  }
 0x80a   :  { %3292 = vst [vmem:[#allocation2 + $0x80] sm:$0xff] %v3262_v37  ;;  %v3198_v54 = vor.u32 %v3196_v14, %v13135_v24  ;;  %v3265_v35 = vsel %vm1351_vm5, %v3263_v52, %v3264_v58  ;;  %v3269_v15 = vor.u32 %v3264_v58, %v3193_v28  ;;  %v3141_v36 = vpop.f32.mrb[62].mxu1  ;;  %v3241_v14 = vld [vmem:[#allocation2 + $0xf8] sm:$0x1] }
 0x80b   :  { %v3191_v13 = vsel %vm13954_vm7, %v3171_v8, %v3190_v1  ;;  %3293 = vst [vmem:[#allocation2 + $0x88] sm:$0xff] %v3265_v35  ;;  %v13142_v57 = vpack.c.bf16 %v3141_v36, %v3135_v43  ;;  %v3143_v55 = vpop.f32.mrb[63].mxu1  ;;  %v10874_v43 = vld [vmem:[%s14007_s24 + $0x124] ss:$8 sps:$4 sm:$0xff]  }
 0x80c   :  { %3234 = vst [vmem:[#allocation2 + $0x90] sm:$0xff] %v3191_v13  ;;  %v3199_v32 = vsel %vm13954_vm7, %v3179_v51, %v3198_v54  ;;  %v13145_v56 = vpack.c.bf16 %v3143_v55, %v3137_v2  ;;  %v13156_v34 = vld [vmem:[#allocation2 + $0x30] sm:$0xff]  ;;  %v3174_v51 = vor.u32 %v3172_v20, %v3171_v8 }
 0x80d   :  { %3235 = vst [vmem:[#allocation2 + $0x98] sm:$0xff] %v3199_v32  ;;  %v3201_v5 = vshrl.u32 %v13142_v57, 16  ;;  %v3204_v0 = vshll.u32 %v13142_v57, 16  ;;  %v13150_v9 = vld [vmem:[#allocation2 + $0x38] sm:$0xff] }
 0x80e   :  { %v3209_v12 = vshrl.u32 %v13145_v56, 16  ;;  %v3212_v59 = vshll.u32 %v13145_v56, 16  ;;  %3970 = vmatprep.mubr.bf16.mxu1 %v13150_v9  ;;  %v3175_v13 = vsel %vm13954_vm7, %v13091_v6, %v3174_v51  ;;  %v10875_v55 = vld [vmem:[%s14007_s24 + $0x130] ss:$8 sps:$4 sm:$0xff]  }
 0x80f   :  { %v13160_v45 = vrot.slane %v3201_v5, 7  ;;  %v3267_v25 = vrot.slane %v3204_v0, 1  ;;  %3971 = vmatmul.mubr.bf16.vlgmr.msra.gmra.mrb[64].mxu1 %v13156_v34  ;;  %v10970_v51 = vld [vmem:[#allocation12 + $0x24] ss:$8 sps:$4 sm:$0xff]  }
 0x810   :  { %v3211_v4 = vrot.slane %v3209_v12, 7  ;;  %v3270_v17 = vrot.slane %v3212_v59, 1  ;;  %4012 = vmatpush1.bf16.msra.mxu1 %v10866_v16  ;;  %3980 = vmatprep.mubr.bf16.mxu1 %v3183_v26  ;;  %v10880_v16 = vld [vmem:[%s14007_s24 + $0x144] ss:$8 sps:$4 sm:$0xff]  }
 0x811   :  { %v3308_v10 = vld [vmem:[#allocation2 + $0x80] sm:$0x80]  ;;  %v3239_v52 = vsel %vm12695_vm13, %v13160_v45, %v3238_v29  ;;  %v13170_v53 = vsel %vm1351_vm5, %v3266_v23, %v3267_v25  ;;  %v3272_v28 = vor.u32 %v3267_v25, %v3201_v5  ;;  %4013 = vmatprep.subr.bf16.mxu1 %v10871_v22 }
 0x812   :  { %v3309_v33 = vsel %vm12649_vm11, 0, %v3308_v10  ;;  %v3311_v2 = vld [vmem:[#allocation2 + $0x88] sm:$0x80]  ;;  %3240 = vst [vmem:[#allocation2 + $0xf0] sm:$0x1] %v3239_v52  ;;  %v3242_v58 = vsel %vm12695_vm13, %v3211_v4, %v3241_v14  ;;  %v13180_v1 = vsel %vm1351_vm5, %v3269_v15, %v3270_v17  ;;  %v3273_v8 = vor.u32 %v3270_v17, %v3209_v12 }
 0x813   :  { %3310 = vst [vmem:[#allocation2 + $0x80] sm:$0x80] %v3309_v33  ;;  %v3314_v37 = vld [vmem:[#allocation2 + $0x90] sm:$0x1]  ;;  %v3312_v23 = vsel %vm12649_vm11, 0, %v3311_v2  ;;  %v3297_v20 = vsel %vm12898_vm14, %v3272_v28, %v12994_v44  ;;  %v3214_v32 = vor.u32 %v3212_v59, %v3211_v4  ;;  %v3206_v4 = vor.u32 %v3204_v0, %v13160_v45 }
 0x814   :  { %3243 = vst [vmem:[#allocation2 + $0xf8] sm:$0x1] %v3242_v58  ;;  %v3315_v54 = vsel %vm12695_vm13, 0, %v3314_v37  ;;  %3313 = vst [vmem:[#allocation2 + $0x88] sm:$0x80] %v3312_v23  ;;  %4014 = vmatpush1.bf16.msra.mxu1 %v10869_v27  ;;  %v3300_v44 = vsel %vm12898_vm14, %v3273_v8, %v12991_v61 }
 0x815   :  { %v3317_v35 = vld [vmem:[#allocation2 + $0x98] sm:$0x1]  ;;  %3298 = vst [vmem:[#allocation2 + $0xe0] sm:$0xff] %v3297_v20  ;;  %v10872_v15 = vld [vmem:[%s14007_s24 + $0x120] ss:$8 sps:$4 sm:$0xff]   ;;  %4015 = vmatprep.subr.bf16.mxu1 %v10874_v43  ;;  %3301 = vst [vmem:[#allocation2 + $0xe8] sm:$0xff] %v3300_v44  ;;  %v3215_v6 = vsel %vm13954_vm7, %v13135_v24, %v3214_v32  ;;  %v3207_v27 = vsel %vm13954_vm7, %v13133_v18, %v3206_v4 }
 0x816   :  { %3316 = vst [vmem:[#allocation2 + $0x90] sm:$0x1] %v3315_v54  ;;  %v3318_v36 = vsel %vm12695_vm13, 0, %v3317_v35  ;;  %v10878_v61 = vld [vmem:[%s14007_s24 + $0x140] ss:$8 sps:$4 sm:$0xff]  }
 0x817   :  { %3319 = vst [vmem:[#allocation2 + $0x98] sm:$0x1] %v3318_v36  ;;  %3981 = vmatmul.mubr.bf16.gmra.mrb[68].mxu1 %v3175_v13  ;;  %v10883_v59 = vld [vmem:[%s14007_s24 + $0x154] ss:$8 sps:$4 sm:$0xff]   ;;  %v10881_v17 = vld [vmem:[%s14007_s24 + $0x150] ss:$8 sps:$4 sm:$0xff]  }
 0x818   :  { %4016 = vmatpush1.bf16.msra.mxu1 %v10872_v15  ;;  %v10886_v24 = vld [vmem:[%s14007_s24 + $0x164] ss:$8 sps:$4 sm:$0xff]   ;;  %v10884_v10 = vld [vmem:[%s14007_s24 + $0x160] ss:$8 sps:$4 sm:$0xff]   ;;  %v10889_v52 = vld [vmem:[%s14007_s24 + $0x174] ss:$8 sps:$4 sm:$0xff]  }
 0x819   :  { %4017 = vmatprep.subr.bf16.mxu1 %v10877_v21  ;;  %v10962_v28 = vld [vmem:[#allocation12] ss:$8 sps:$4 sm:$0xff]   ;;  %v10964_v14 = vld [vmem:[#allocation12 + $0x4] ss:$8 sps:$4 sm:$0xff]   ;;  %v10967_v45 = vld [vmem:[#allocation12 + $0x14] ss:$8 sps:$4 sm:$0xff]  }
 0x81a   :  { %v10887_v0 = vld [vmem:[%s14007_s24 + $0x170] ss:$8 sps:$4 sm:$0xff]   ;;  %v10892_v43 = vld [vmem:[%s14007_s24 + $0x184] ss:$8 sps:$4 sm:$0xff]   ;;  %4965 = vmatprep.subr.bf16.mxu0 %v10964_v14  ;;  %v10890_v33 = vld [vmem:[%s14007_s24 + $0x180] ss:$8 sps:$4 sm:$0xff]  }
 0x81b   :  { %4966 = vmatpush1.bf16.msra.mxu0 %v10962_v28  ;;  %v10965_v18 = vld [vmem:[#allocation12 + $0x10] ss:$8 sps:$4 sm:$0xff]   ;;  %v10968_v58 = vld [vmem:[#allocation12 + $0x20] ss:$8 sps:$4 sm:$0xff]   ;;  %v10976_v8 = vld [vmem:[#allocation12 + $0x44] ss:$8 sps:$4 sm:$0xff]  }
 0x81c   :  { %v3320_v5 = vld [vmem:[#allocation2 + $0xe0] sm:$0x80]  ;;  %4018 = vmatpush1.bf16.msra.mxu1 %v10875_v55  ;;  %v3323_v26 = vld [vmem:[#allocation2 + $0xe8] sm:$0x80]  ;;  %4967 = vmatprep.subr.bf16.mxu0 %v10967_v45  ;;  %v10895_v2 = vld [vmem:[%s14007_s24 + $0x194] ss:$8 sps:$4 sm:$0xff]  }
 0x81d   :  { %v3321_v22 = vsel %vm12649_vm11, 0, %v3320_v5  ;;  %v3338_v12 = vld [vmem:[#allocation2 + $0x90] sm:$0xff]  ;;  %4019 = vmatprep.subr.bf16.mxu1 %v10880_v16  ;;  %v3324_v29 = vsel %vm12649_vm11, 0, %v3323_v26  ;;  %v10898_v23 = vld [vmem:[%s14007_s24 + $0x1a4] ss:$8 sps:$4 sm:$0xff]  }
 0x81e   :  { %3322 = vst [vmem:[#allocation2 + $0xe0] sm:$0x80] %v3321_v22  ;;  %v3339_v25 = vld [vmem:[#allocation2 + $0x98] sm:$0xff]  ;;  %3325 = vst [vmem:[#allocation2 + $0xe8] sm:$0x80] %v3324_v29 }
 0x81f   :  { %3990 = vmatprep.mubr.bf16.mxu1 %v3339_v25  ;;  %4968 = vmatpush1.bf16.msra.mxu0 %v10965_v18  ;;  %v10893_v37 = vld [vmem:[%s14007_s24 + $0x190] ss:$8 sps:$4 sm:$0xff]   ;;  %v10896_v54 = vld [vmem:[%s14007_s24 + $0x1a0] ss:$8 sps:$4 sm:$0xff]   ;;  %v10901_v35 = vld [vmem:[%s14007_s24 + $0x1b4] ss:$8 sps:$4 sm:$0xff]  }
 0x820   :  { %3991 = vmatmul.mubr.bf16.gmra.mrb[72].mxu1 %v3338_v12  ;;  %4969 = vmatprep.subr.bf16.mxu0 %v10970_v51  ;;  %v10971_v20 = vld [vmem:[#allocation12 + $0x30] ss:$8 sps:$4 sm:$0xff]   ;;  %v10974_v15 = vld [vmem:[#allocation12 + $0x40] ss:$8 sps:$4 sm:$0xff]   ;;  %v10979_v36 = vld [vmem:[#allocation12 + $0x54] ss:$8 sps:$4 sm:$0xff]  }
 0x821   :  { %4020 = vmatpush1.bf16.msra.mxu1 %v10878_v61  ;;  %4000 = vmatprep.mubr.bf16.mxu1 %v3215_v6  ;;  %v10899_v44 = vld [vmem:[%s14007_s24 + $0x1b0] ss:$8 sps:$4 sm:$0xff]   ;;  %v10904_v21 = vld [vmem:[%s14007_s24 + $0x1c4] ss:$8 sps:$4 sm:$0xff]   ;;  %v10902_v32 = vld [vmem:[%s14007_s24 + $0x1c0] ss:$8 sps:$4 sm:$0xff]  }
 0x822   :  { %4021 = vmatprep.subr.bf16.mxu1 %v10883_v59  ;;  %v10977_v13 = vld [vmem:[#allocation12 + $0x50] ss:$8 sps:$4 sm:$0xff]   ;;  %v10982_v55 = vld [vmem:[#allocation12 + $0x64] ss:$8 sps:$4 sm:$0xff]   ;;  %v10980_v5 = vld [vmem:[#allocation12 + $0x60] ss:$8 sps:$4 sm:$0xff]  }
 0x823   :  { %4970 = vmatpush1.bf16.msra.mxu0 %v10968_v58  ;;  %v10907_v16 = vld [vmem:[%s14007_s24 + $0x1d4] ss:$8 sps:$4 sm:$0xff]   ;;  %v10905_v61 = vld [vmem:[%s14007_s24 + $0x1d0] ss:$8 sps:$4 sm:$0xff]   ;;  %v10910_v12 = vld [vmem:[%s14007_s24 + $0x1e4] ss:$8 sps:$4 sm:$0xff]  }
 0x824   :  { %v10985_v22 = vld [vmem:[#allocation12 + $0x74] ss:$8 sps:$4 sm:$0xff]   ;;  %v10983_v6 = vld [vmem:[#allocation12 + $0x70] ss:$8 sps:$4 sm:$0xff]  }
 0x825   :  { %4022 = vmatpush1.bf16.msra.mxu1 %v10881_v17  ;;  %v10908_v26 = vld [vmem:[%s14007_s24 + $0x1e0] ss:$8 sps:$4 sm:$0xff]   ;;  %v10913_v25 = vld [vmem:[%s14007_s24 + $0x1f4] ss:$8 sps:$4 sm:$0xff]   ;;  %v10911_v59 = vld [vmem:[%s14007_s24 + $0x1f0] ss:$8 sps:$4 sm:$0xff]  }
 0x826   :  { %4023 = vmatprep.subr.bf16.mxu1 %v10886_v24  ;;  %v10916_v29 = vld [vmem:[%s14007_s24 + $0x204] ss:$8 sps:$4 sm:$0xff]   ;;  %v10914_v4 = vld [vmem:[%s14007_s24 + $0x200] ss:$8 sps:$4 sm:$0xff]   ;;  %v10919_v17 = vld [vmem:[%s14007_s24 + $0x214] ss:$8 sps:$4 sm:$0xff]  }
 0x827   :  { %v10917_v24 = vld [vmem:[%s14007_s24 + $0x210] ss:$8 sps:$4 sm:$0xff]   ;;  %v10926_v28 = vld [vmem:[%s14007_s24 + $0x240] ss:$8 sps:$4 sm:$0xff]   ;;  %v10931_v14 = vld [vmem:[%s14007_s24 + $0x254] ss:$8 sps:$4 sm:$0xff]  }
 0x828   :  { %4001 = vmatmul.mubr.bf16.gmra.mrb[76].mxu1 %v3207_v27  ;;  %v10922_v27 = vld [vmem:[%s14007_s24 + $0x224] ss:$8 sps:$4 sm:$0xff]   ;;  %v10937_v45 = vld [vmem:[%s14007_s24 + $0x274] ss:$8 sps:$4 sm:$0xff]   ;;  %v10941_v51 = vld [vmem:[%s14007_s24 + $0x290] ss:$8 sps:$4 sm:$0xff]  }
 0x829   :  { %4024 = vmatpush1.bf16.msra.mxu1 %v10884_v10  ;;  %4043 = vmatprep.mubr.bf16.mxu1 %v13085_v41  ;;  %v10973_v41 = vld [vmem:[#allocation12 + $0x34] ss:$8 sps:$4 sm:$0xff]  }
 0x82a   :  { %4025 = vmatprep.subr.bf16.mxu1 %v10889_v52  ;;  %4971 = vmatprep.subr.bf16.mxu0 %v10973_v41  ;;  %v10920_v10 = vld [vmem:[%s14007_s24 + $0x220] ss:$8 sps:$4 sm:$0xff]   ;;  %v10925_v52 = vld [vmem:[%s14007_s24 + $0x234] ss:$8 sps:$4 sm:$0xff]   ;;  %v10952_v58 = vld [vmem:[%s14007_s24 + $0x2c4] ss:$8 sps:$4 sm:$0xff]  }
 0x82b   :  { %4972 = vmatpush1.bf16.msra.mxu0 %v10971_v20  ;;  %v10943_v18 = vld [vmem:[%s14007_s24 + $0x294] ss:$8 sps:$4 sm:$0xff]   ;;  %v10950_v41 = vld [vmem:[%s14007_s24 + $0x2c0] ss:$8 sps:$4 sm:$0xff]   ;;  %v10958_v20 = vld [vmem:[%s14007_s24 + $0x2e4] ss:$8 sps:$4 sm:$0xff]  }
 0x82c   :  { %4973 = vmatprep.subr.bf16.mxu0 %v10976_v8  ;;  %v10956_v8 = vld [vmem:[%s14007_s24 + $0x2e0] ss:$8 sps:$4 sm:$0xff]  }
 0x82d   :  { %4026 = vmatpush1.bf16.msra.mxu1 %v10887_v0  ;;  %v10932_v0 = vld [vmem:[%s14007_s24 + $0x260] ss:$8 sps:$4 sm:$0xff]  }
 0x82e   :  { %4027 = vmatprep.subr.bf16.mxu1 %v10892_v43  ;;  %v10938_v43 = vld [vmem:[%s14007_s24 + $0x280] ss:$8 sps:$4 sm:$0xff]  }
 0x82f   :  { %4974 = vmatpush1.bf16.msra.mxu0 %v10974_v15  ;;  %v3337_v15 = vld [vmem:[#allocation2 + $0x88] sm:$0xff] }
 0x830   :  { %4975 = vmatprep.subr.bf16.mxu0 %v10979_v36  ;;  %v3336_v36 = vld [vmem:[#allocation2 + $0x80] sm:$0xff] }
 0x831   :  { %4028 = vmatpush1.bf16.msra.mxu1 %v10890_v33  ;;  %v10944_v33 = vld [vmem:[%s14007_s24 + $0x2a0] ss:$8 sps:$4 sm:$0xff]  }
 0x832   :  { %4029 = vmatprep.subr.bf16.mxu1 %v10895_v2  ;;  %v10947_v2 = vld [vmem:[%s14007_s24 + $0x2b0] ss:$8 sps:$4 sm:$0xff]  }
 0x833   :  { %4976 = vmatpush1.bf16.msra.mxu0 %v10977_v13  ;;  %v10988_v13 = vld [vmem:[#allocation12 + $0x84] ss:$8 sps:$4 sm:$0xff]  }
 0x834   :  { %4977 = vmatprep.subr.bf16.mxu0 %v10982_v55  ;;  %v10991_v55 = vld [vmem:[#allocation12 + $0x94] ss:$8 sps:$4 sm:$0xff]  }
 0x835   :  { %4030 = vmatpush1.bf16.msra.mxu1 %v10893_v37  ;;  %v10955_v37 = vld [vmem:[%s14007_s24 + $0x2d4] ss:$8 sps:$4 sm:$0xff]  }
 0x836   :  { %4031 = vmatprep.subr.bf16.mxu1 %v10898_v23  ;;  %v10953_v23 = vld [vmem:[%s14007_s24 + $0x2d0] ss:$8 sps:$4 sm:$0xff]  }
 0x837   :  { %4978 = vmatpush1.bf16.msra.mxu0 %v10980_v5  ;;  %v10995_v5 = vld [vmem:[#allocation12 + $0xb0] ss:$8 sps:$4 sm:$0xff]  }
 0x838   :  { %4979 = vmatprep.subr.bf16.mxu0 %v10985_v22  ;;  %v11000_v22 = vld [vmem:[#allocation12 + $0xc4] ss:$8 sps:$4 sm:$0xff]  }
 0x839   :  { %4032 = vmatpush1.bf16.msra.mxu1 %v10896_v54  ;;  %v10961_v54 = vld [vmem:[%s14007_s24 + $0x2f4] ss:$8 sps:$4 sm:$0xff]  }
 0x83a   :  { %4033 = vmatprep.subr.bf16.mxu1 %v10901_v35  ;;  %v10959_v35 = vld [vmem:[%s14007_s24 + $0x2f0] ss:$8 sps:$4 sm:$0xff]  }
 0x83b   :  { %4980 = vmatpush1.bf16.msra.mxu0 %v10983_v6  ;;  %v11001_v6 = vld [vmem:[#allocation12 + $0xd0] ss:$8 sps:$4 sm:$0xff]  }
 0x83c   :  { %4981 = vmatprep.subr.bf16.mxu0 %v10988_v13 }
 0x83d   :  { %4034 = vmatpush1.bf16.msra.mxu1 %v10899_v44  ;;  %v13278_v44 = vld [vmem:[#allocation2 + $0xe8] sm:$0xff] }
 0x83e   :  { %4035 = vmatprep.subr.bf16.mxu1 %v10904_v21  ;;  %v13281_v21 = vld [vmem:[#allocation2 + $0xe0] sm:$0xff] }
 0x841   :  { %4036 = vmatpush1.bf16.msra.mxu1 %v10902_v32  ;;  %v10989_v32 = vld [vmem:[#allocation12 + $0x90] ss:$8 sps:$4 sm:$0xff]  }
 0x842   :  { %4037 = vmatprep.subr.bf16.mxu1 %v10907_v16  ;;  %v10997_v16 = vld [vmem:[#allocation12 + $0xb4] ss:$8 sps:$4 sm:$0xff]  }
 0x845   :  { %4038 = vmatpush1.bf16.msra.mxu1 %v10905_v61  ;;  %v10998_v61 = vld [vmem:[#allocation12 + $0xc0] ss:$8 sps:$4 sm:$0xff]  }
 0x846   :  { %4039 = vmatprep.subr.bf16.mxu1 %v10910_v12  ;;  %v11003_v12 = vld [vmem:[#allocation12 + $0xd4] ss:$8 sps:$4 sm:$0xff]  }
 0x849   :  { %4040 = vmatpush1.bf16.msra.mxu1 %v10908_v26  ;;  %v11006_v26 = vld [vmem:[#allocation12 + $0xe4] ss:$8 sps:$4 sm:$0xff]  }
 0x84a   :  { %4041 = vmatprep.subr.bf16.mxu1 %v10913_v25  ;;  %v11004_v25 = vld [vmem:[#allocation12 + $0xe0] ss:$8 sps:$4 sm:$0xff]  }
 0x84d   :  { %4042 = vmatpush1.bf16.msra.mxu1 %v10911_v59  ;;  %v11009_v59 = vld [vmem:[#allocation12 + $0xf4] ss:$8 sps:$4 sm:$0xff]  }
 0x84e   :  { %4084 = vmatprep.subr.bf16.mxu1 %v10916_v29  ;;  %v11007_v29 = vld [vmem:[#allocation12 + $0xf0] ss:$8 sps:$4 sm:$0xff]  }
 0x850   :  { %4044 = vmatmul.mubr.bf16.vlgmr.msra.gmra.mrb[64].mxu1 %v13083_v38  ;;  %v10923_v38 = vld [vmem:[%s14007_s24 + $0x230] ss:$8 sps:$4 sm:$0xff]  }
 0x851   :  { %4053 = vmatprep.mubr.bf16.mxu1 %v13107_v19  ;;  %4085 = vmatpush1.bf16.msra.mxu1 %v10914_v4  ;;  %v10928_v19 = vld [vmem:[%s14007_s24 + $0x244] ss:$8 sps:$4 sm:$0xff]  }
 0x852   :  { %4086 = vmatprep.subr.bf16.mxu1 %v10919_v17  ;;  %v11012_v4 = vld [vmem:[#allocation12 + $0x104] ss:$8 sps:$4 sm:$0xff]   ;;  %v3446_v17 = vld [vmem:[#allocation11] sm:$0x3] }
 0x855   :  { %4087 = vmatpush1.bf16.msra.mxu1 %v10917_v24  ;;  %v13286_v24 = vrot.slane %v3446_v17, %v12625_v48 }
 0x856   :  { %4088 = vmatprep.subr.bf16.mxu1 %v10922_v27  ;;  %v13289_v27 = vrot.slane %v3446_v17, %v12629_v50 }
 0x858   :  { %4054 = vmatmul.mubr.bf16.gmra.mrb[68].mxu1 %v13103_v47  ;;  %v10929_v47 = vld [vmem:[%s14007_s24 + $0x250] ss:$8 sps:$4 sm:$0xff]  }
 0x859   :  { %4063 = vmatprep.mubr.bf16.mxu1 %v13125_v40  ;;  %4089 = vmatpush1.bf16.msra.mxu1 %v10920_v10  ;;  %v10934_v40 = vld [vmem:[%s14007_s24 + $0x264] ss:$8 sps:$4 sm:$0xff]  }
 0x85a   :  { %4090 = vmatprep.subr.bf16.mxu1 %v10925_v52 }
 0x85d   :  { %4091 = vmatpush1.bf16.msra.mxu1 %v10923_v38 }
 0x85e   :  { %4092 = vmatprep.subr.bf16.mxu1 %v10928_v19 }
 0x860   :  { %4064 = vmatmul.mubr.bf16.gmra.mrb[72].mxu1 %v13121_v39  ;;  %v10935_v39 = vld [vmem:[%s14007_s24 + $0x270] ss:$8 sps:$4 sm:$0xff]  }
 0x861   :  { %4073 = vmatprep.mubr.bf16.mxu1 %v13145_v56  ;;  %4093 = vmatpush1.bf16.msra.mxu1 %v10926_v28  ;;  %v10940_v56 = vld [vmem:[%s14007_s24 + $0x284] ss:$8 sps:$4 sm:$0xff]  }
 0x862   :  { %4094 = vmatprep.subr.bf16.mxu1 %v10931_v14 }
 0x865   :  { %4095 = vmatpush1.bf16.msra.mxu1 %v10929_v47 }
 0x866   :  { %4096 = vmatprep.subr.bf16.mxu1 %v10934_v40 }
 0x868   :  { %4074 = vmatmul.mubr.bf16.gmra.mrb[76].mxu1 %v13142_v57  ;;  %v10946_v57 = vld [vmem:[%s14007_s24 + $0x2a4] ss:$8 sps:$4 sm:$0xff]  }
 0x869   :  { %4097 = vmatpush1.bf16.msra.mxu1 %v10932_v0  ;;  %4116 = vmatprep.mubr.bf16.mxu1 %v13117_v31  ;;  %v10949_v31 = vld [vmem:[%s14007_s24 + $0x2b4] ss:$8 sps:$4 sm:$0xff]  }
 0x86a   :  { %4098 = vmatprep.subr.bf16.mxu1 %v10937_v45 }
 0x86d   :  { %4099 = vmatpush1.bf16.msra.mxu1 %v10935_v39 }
 0x86e   :  { %4100 = vmatprep.subr.bf16.mxu1 %v10940_v56 }
 0x871   :  { %4101 = vmatpush1.bf16.msra.mxu1 %v10938_v43 }
 0x872   :  { %4102 = vmatprep.subr.bf16.mxu1 %v10943_v18 }
 0x875   :  { %4103 = vmatpush1.bf16.msra.mxu1 %v10941_v51 }
 0x876   :  { %4104 = vmatprep.subr.bf16.mxu1 %v10946_v57 }
 0x879   :  { %4105 = vmatpush1.bf16.msra.mxu1 %v10944_v33 }
 0x87a   :  { %4106 = vmatprep.subr.bf16.mxu1 %v10949_v31 }
 0x87d   :  { %4107 = vmatpush1.bf16.msra.mxu1 %v10947_v2 }
 0x87e   :  { %4108 = vmatprep.subr.bf16.mxu1 %v10952_v58 }
 0x881   :  { %4109 = vmatpush1.bf16.msra.mxu1 %v10950_v41 }
 0x882   :  { %4110 = vmatprep.subr.bf16.mxu1 %v10955_v37 }
 0x885   :  { %4111 = vmatpush1.bf16.msra.mxu1 %v10953_v23 }
 0x886   :  { %4112 = vmatprep.subr.bf16.mxu1 %v10958_v20 }
 0x889   :  { %4113 = vmatpush1.bf16.msra.mxu1 %v10956_v8 }
 0x88a   :  { %4114 = vmatprep.subr.bf16.mxu1 %v10961_v54 }
 0x88d   :  { %4115 = vmatpush1.bf16.msra.mxu1 %v10959_v35 }
 0x890   :  { %4117 = vmatmul.mubr.bf16.vlgmr.msra.gmra.mrb[64].mxu1 %v13114_v49  ;;  %v10986_v49 = vld [vmem:[#allocation12 + $0x80] ss:$8 sps:$4 sm:$0xff]  }
 0x891   :  { %4126 = vmatprep.mubr.bf16.mxu1 %v3337_v15  ;;  %4982 = vmatpush1.bf16.msra.mxu0 %v10986_v49 }
 0x892   :  { %4983 = vmatprep.subr.bf16.mxu0 %v10991_v55 }
 0x895   :  { %4984 = vmatpush1.bf16.msra.mxu0 %v10989_v32 }
 0x898   :  { %4127 = vmatmul.mubr.bf16.gmra.mrb[68].mxu1 %v3336_v36  ;;  %v4311_v36 = vld [vmem:[#allocation2 + $0x20] sm:$0x80] }
 0x899   :  { %4136 = vmatprep.mubr.bf16.mxu1 %v13180_v1  ;;  %v10994_v1 = vld [vmem:[#allocation12 + $0xa4] ss:$8 sps:$4 sm:$0xff]  }
 0x89a   :  { %4985 = vmatprep.subr.bf16.mxu0 %v10994_v1 }
 0x8a0   :  { %4137 = vmatmul.mubr.bf16.gmra.mrb[72].mxu1 %v13170_v53  ;;  %v10992_v53 = vld [vmem:[#allocation12 + $0xa0] ss:$8 sps:$4 sm:$0xff]  }
 0x8a1   :  { %4146 = vmatprep.mubr.bf16.mxu1 %v13278_v44  ;;  %4986 = vmatpush1.bf16.msra.mxu0 %v10992_v53 }
 0x8a2   :  { %4987 = vmatprep.subr.bf16.mxu0 %v10997_v16 }
 0x8a5   :  { %4988 = vmatpush1.bf16.msra.mxu0 %v10995_v5  ;;  %v4314_v5 = vld [vmem:[#allocation2 + $0x28] sm:$0x80] }
 0x8a6   :  { %4989 = vmatprep.subr.bf16.mxu0 %v11000_v22 }
 0x8a8   :  { %4147 = vmatmul.mubr.bf16.gmra.mrb[76].mxu1 %v13281_v21 }
 0x8a9   :  { %5280 = vmatprep.mubr.f32.mxu1 %v11987_v7  ;;  %4990 = vmatpush1.bf16.msra.mxu0 %v10998_v61 }
 0x8aa   :  { %4991 = vmatprep.subr.bf16.mxu0 %v11003_v12 }
 0x8ad   :  { %4992 = vmatpush1.bf16.msra.mxu0 %v11001_v6 }
 0x8ae   :  { %4993 = vmatprep.subr.bf16.mxu0 %v11006_v26 }
 0x8b1   :  { %4994 = vmatpush1.bf16.msra.mxu0 %v11004_v25 }
 0x8b2   :  { %4995 = vmatprep.subr.bf16.mxu0 %v11009_v59 }
 0x8b5   :  { %4996 = vmatpush1.bf16.msra.mxu0 %v11007_v29 }
 0x8b6   :  { %5038 = vmatprep.subr.bf16.mxu0 %v11012_v4 }
 0x963   :  { %v4118_v10 = vpop.f32.mrb[64].mxu1 }
 0x964   :  { %v10422_v52 = vadd.f32 %v4118_v10, %v13286_v24  ;;  %v4120_v38 = vpop.f32.mrb[65].mxu1 }
 0x965   :  { %v10423_v19 = vadd.f32 %v4120_v38, %v13289_v27  ;;  %v4122_v28 = vpop.f32.mrb[66].mxu1 }
 0x966   :  { %v10424_v14 = vadd.f32 %v4122_v28, %v13286_v24  ;;  %v4124_v47 = vpop.f32.mrb[67].mxu1  ;;  %v4157_v0 = vmax.f32 %v10422_v52, 0.0 }
 0x967   :  { %v10425_v40 = vadd.f32 %v4124_v47, %v13289_v27  ;;  %v4158_v39 = vmax.f32 %v10423_v19, 0.0 }
 0x968   :  { %v4159_v45 = vmax.f32 %v10424_v14, 0.0 }
 0x969   :  { %v4160_v56 = vmax.f32 %v10425_v40, 0.0 }
 0x96a   :  { %v13295_v43 = vpack.c.bf16 %v4159_v45, %v4157_v0 }
 0x96b   :  { %v13297_v18 = vpack.c.bf16 %v4160_v56, %v4158_v39  ;;  %v4128_v51 = vpop.f32.mrb[68].mxu1 }
 0x96c   :  { %v4182_v57 = vshrl.u32 %v13295_v43, 16  ;;  %v4185_v33 = vshll.u32 %v13295_v43, 16  ;;  %v10426_v31 = vadd.f32 %v4128_v51, %v13286_v24  ;;  %v4130_v2 = vpop.f32.mrb[69].mxu1 }
 0x96d   :  { %v4189_v58 = vshrl.u32 %v13297_v18, 16  ;;  %v4192_v41 = vshll.u32 %v13297_v18, 16  ;;  %v10427_v37 = vadd.f32 %v4130_v2, %v13289_v27  ;;  %v4132_v23 = vpop.f32.mrb[70].mxu1 }
 0x96e   :  { %v13305_v20 = vrot.slane %v4182_v57, 7  ;;  %v4279_v8 = vrot.slane %v4185_v33, 1  ;;  %v4161_v54 = vmax.f32 %v10426_v31, 0.0  ;;  %v10428_v35 = vadd.f32 %v4132_v23, %v13286_v24  ;;  %v4134_v15 = vpop.f32.mrb[71].mxu1 }
 0x96f   :  { %v13308_v13 = vrot.slane %v4189_v58, 7  ;;  %v4280_v49 = vrot.slane %v4192_v41, 1  ;;  %v4162_v55 = vmax.f32 %v10427_v37, 0.0  ;;  %v10429_v32 = vadd.f32 %v4134_v15, %v13289_v27 }
 0x970   :  { %v4187_v1 = vor.u32 %v4185_v33, %v13305_v20  ;;  %v4281_v53 = vor.u32 %v4279_v8, %v4182_v57  ;;  %v4312_v16 = vsel %vm12649_vm11, %v4279_v8, %v4311_v36  ;;  %v4163_v22 = vmax.f32 %v10428_v35, 0.0 }
 0x971   :  { %4313 = vst [vmem:[#allocation2 + $0x20] sm:$0x80] %v4312_v16  ;;  %v4194_v61 = vor.u32 %v4192_v41, %v13308_v13  ;;  %v4284_v12 = vor.u32 %v4280_v49, %v4189_v58  ;;  %v4315_v6 = vsel %vm12649_vm11, %v4280_v49, %v4314_v5  ;;  %v4164_v26 = vmax.f32 %v10429_v32, 0.0 }
 0x972   :  { %v4254_v25 = vsel %vm12661_vm12, %v4187_v1, %v13156_v34  ;;  %4316 = vst [vmem:[#allocation2 + $0x28] sm:$0x80] %v4315_v6  ;;  %v13320_v59 = vpack.c.bf16 %v4163_v22, %v4161_v54 }
 0x973   :  { %4255 = vst [vmem:[#allocation2 + $0x30] sm:$0xff] %v4254_v25  ;;  %v4257_v29 = vsel %vm12661_vm12, %v4194_v61, %v13150_v9  ;;  %v13325_v4 = vpack.c.bf16 %v4164_v26, %v4162_v55  ;;  %v4138_v17 = vpop.f32.mrb[72].mxu1 }
 0x974   :  { %4258 = vst [vmem:[#allocation2 + $0x38] sm:$0xff] %v4257_v29  ;;  %v4199_v10 = vshll.u32 %v13320_v59, 16  ;;  %v10430_v52 = vadd.f32 %v4138_v17, %v13286_v24  ;;  %v4140_v38 = vpop.f32.mrb[73].mxu1  ;;  %v4196_v40 = vshrl.u32 %v13320_v59, 16 }
 0x975   :  { %v4207_v19 = vshll.u32 %v13325_v4, 16  ;;  %v10431_v34 = vadd.f32 %v4140_v38, %v13289_v27  ;;  %v4142_v28 = vpop.f32.mrb[74].mxu1  ;;  %v4204_v57 = vshrl.u32 %v13325_v4, 16 }
 0x976   :  { %v4282_v14 = vrot.slane %v4199_v10, 1  ;;  %v10432_v47 = vadd.f32 %v4142_v28, %v13286_v24  ;;  %v4144_v9 = vpop.f32.mrb[75].mxu1  ;;  %v4165_v56 = vmax.f32 %v10430_v52, 0.0  ;;  %v4198_v8 = vrot.slane %v4196_v40, 7 }
 0x977   :  { %v4285_v0 = vrot.slane %v4207_v19, 1  ;;  %v10433_v45 = vadd.f32 %v4144_v9, %v13289_v27  ;;  %v4166_v31 = vmax.f32 %v10431_v34, 0.0  ;;  %v4206_v1 = vrot.slane %v4204_v57, 7 }
 0x978   :  { %v13337_v39 = vsel %vm1351_vm5, %v4281_v53, %v4282_v14  ;;  %v4167_v51 = vmax.f32 %v10432_v47, 0.0  ;;  %v4287_v61 = vor.u32 %v4282_v14, %v4196_v40 }
 0x979   :  { %v13341_v33 = vsel %vm1351_vm5, %v4284_v12, %v4285_v0  ;;  %v4168_v2 = vmax.f32 %v10433_v45, 0.0  ;;  %v4290_v29 = vor.u32 %v4285_v0, %v4204_v57 }
 0x97a   :  { %v4329_v58 = vld [vmem:[#allocation2 + $0x30] sm:$0x1]  ;;  %v13343_v41 = vpack.c.bf16 %v4167_v51, %v4165_v56  ;;  %v4209_v56 = vor.u32 %v4207_v19, %v4206_v1 }
 0x97b   :  { %v4330_v37 = vsel %vm12695_vm13, 0, %v4329_v58  ;;  %v4332_v23 = vld [vmem:[#allocation2 + $0x38] sm:$0x1]  ;;  %v13347_v54 = vpack.c.bf16 %v4168_v2, %v4166_v31  ;;  %v4148_v35 = vpop.f32.mrb[76].mxu1  ;;  %v11010_v31 = vld [vmem:[#allocation12 + $0x100] ss:$8 sps:$4 sm:$0xff]  }
 0x97c   :  { %4331 = vst [vmem:[#allocation2 + $0x30] sm:$0x1] %v4330_v37  ;;  %v4333_v15 = vsel %vm12695_vm13, 0, %v4332_v23  ;;  %v4212_v36 = vshrl.u32 %v13343_v41, 16  ;;  %v4215_v49 = vshll.u32 %v13343_v41, 16  ;;  %v10434_v55 = vadd.f32 %v4148_v35, %v13286_v24  ;;  %v4150_v32 = vpop.f32.mrb[77].mxu1 }
 0x97d   :  { %4334 = vst [vmem:[#allocation2 + $0x38] sm:$0x1] %v4333_v15  ;;  %v4220_v53 = vshrl.u32 %v13347_v54, 16  ;;  %v4223_v16 = vshll.u32 %v13347_v54, 16  ;;  %v10435_v5 = vadd.f32 %v4150_v32, %v13289_v27  ;;  %v4152_v22 = vpop.f32.mrb[78].mxu1 }
 0x97e   :  { %v13357_v12 = vrot.slane %v4212_v36, 7  ;;  %v4288_v6 = vrot.slane %v4215_v49, 1  ;;  %v10436_v26 = vadd.f32 %v4152_v22, %v13286_v24  ;;  %v4154_v25 = vpop.f32.mrb[79].mxu1  ;;  %v4169_v47 = vmax.f32 %v10434_v55, 0.0  ;;  %v11015_v23 = vld [vmem:[#allocation12 + $0x114] ss:$8 sps:$4 sm:$0xff]  }
 0x97f   :  { %v13360_v17 = vrot.slane %v4220_v53, 7  ;;  %v4291_v52 = vrot.slane %v4223_v16, 1  ;;  %v10437_v38 = vadd.f32 %v4154_v25, %v13289_v27  ;;  %v4170_v45 = vmax.f32 %v10435_v5, 0.0  ;;  %v4265_v22 = vld [vmem:[#allocation2 + $0xf0] sm:$0x1] }
 0x980   :  { %v4217_v34 = vor.u32 %v4215_v49, %v13357_v12  ;;  %v4289_v28 = vsel %vm1351_vm5, %v4287_v61, %v4288_v6  ;;  %v4171_v9 = vmax.f32 %v10436_v26, 0.0  ;;  %v4210_v49 = vsel %vm13954_vm7, %v13308_v13, %v4209_v56  ;;  %v11013_v25 = vld [vmem:[#allocation12 + $0x110] ss:$8 sps:$4 sm:$0xff]  }
 0x981   :  { %4319 = vst [vmem:[#allocation2 + $0x80] sm:$0xff] %v4289_v28  ;;  %v4225_v14 = vor.u32 %v4223_v16, %v13360_v17  ;;  %v4292_v40 = vsel %vm1351_vm5, %v4290_v29, %v4291_v52  ;;  %v4172_v24 = vmax.f32 %v10437_v38, 0.0  ;;  %v4293_v55 = vor.u32 %v4288_v6, %v4212_v36  ;;  %v11018_v28 = vld [vmem:[#allocation12 + $0x124] ss:$8 sps:$4 sm:$0xff]  }
 0x982   :  { %v4218_v0 = vsel %vm13954_vm7, %v4198_v8, %v4217_v34  ;;  %4320 = vst [vmem:[#allocation2 + $0x88] sm:$0xff] %v4292_v40  ;;  %v13368_v51 = vpack.c.bf16 %v4171_v9, %v4169_v47  ;;  %v4201_v16 = vor.u32 %v4199_v10, %v4198_v8  ;;  %v4296_v5 = vor.u32 %v4291_v52, %v4220_v53  ;;  %v4268_v34 = vld [vmem:[#allocation2 + $0xf8] sm:$0x1] }
 0x983   :  { %4261 = vst [vmem:[#allocation2 + $0x90] sm:$0xff] %v4218_v0  ;;  %v4226_v27 = vsel %vm13954_vm7, %v4206_v1, %v4225_v14  ;;  %v13371_v57 = vpack.c.bf16 %v4172_v24, %v4170_v45  ;;  %v13380_v15 = vld [vmem:[#allocation2 + $0x30] sm:$0xff] }
 0x984   :  { %4262 = vst [vmem:[#allocation2 + $0x98] sm:$0xff] %v4226_v27  ;;  %v4228_v2 = vshrl.u32 %v13368_v51, 16  ;;  %v4231_v58 = vshll.u32 %v13368_v51, 16  ;;  %v13375_v37 = vld [vmem:[#allocation2 + $0x38] sm:$0xff] }
 0x985   :  { %v4236_v19 = vshrl.u32 %v13371_v57, 16  ;;  %v4239_v35 = vshll.u32 %v13371_v57, 16  ;;  %4997 = vmatprep.mubr.bf16.mxu0 %v13375_v37 }
 0x986   :  { %v4230_v32 = vrot.slane %v4228_v2, 7  ;;  %v4294_v1 = vrot.slane %v4231_v58, 1  ;;  %4998 = vmatmul.mubr.bf16.vlgmr.msra.gmra.mrb[64].mxu0 %v13380_v15 }
 0x987   :  { %v4238_v61 = vrot.slane %v4236_v19, 7  ;;  %v4297_v26 = vrot.slane %v4239_v35, 1  ;;  %5039 = vmatpush1.bf16.msra.mxu0 %v11010_v31  ;;  %5007 = vmatprep.mubr.bf16.mxu0 %v4210_v49  ;;  %v11016_v31 = vld [vmem:[#allocation12 + $0x120] ss:$8 sps:$4 sm:$0xff]  }
 0x988   :  { %v4335_v29 = vld [vmem:[#allocation2 + $0x80] sm:$0x80]  ;;  %v4233_v38 = vor.u32 %v4231_v58, %v4230_v32  ;;  %v4266_v13 = vsel %vm12695_vm13, %v4230_v32, %v4265_v22  ;;  %v13390_v36 = vsel %vm1351_vm5, %v4293_v55, %v4294_v1  ;;  %v4299_v6 = vor.u32 %v4294_v1, %v4228_v2  ;;  %5040 = vmatprep.subr.bf16.mxu0 %v11015_v23  ;;  %v11021_v2 = vld [vmem:[#allocation12 + $0x134] ss:$8 sps:$4 sm:$0xff]   ;;  %v11024_v23 = vld [vmem:[#allocation12 + $0x144] ss:$8 sps:$4 sm:$0xff]  }
 0x989   :  { %v4336_v10 = vsel %vm12649_vm11, 0, %v4335_v29  ;;  %v4338_v8 = vld [vmem:[#allocation2 + $0x88] sm:$0x80]  ;;  %4267 = vst [vmem:[#allocation2 + $0xf0] sm:$0x1] %v4266_v13  ;;  %v4241_v53 = vor.u32 %v4239_v35, %v4238_v61  ;;  %v4269_v52 = vsel %vm12695_vm13, %v4238_v61, %v4268_v34  ;;  %v13397_v47 = vsel %vm1351_vm5, %v4296_v5, %v4297_v26 }
 0x98a   :  { %4337 = vst [vmem:[#allocation2 + $0x80] sm:$0x80] %v4336_v10  ;;  %v4341_v9 = vld [vmem:[#allocation2 + $0x90] sm:$0x1]  ;;  %v4339_v14 = vsel %vm12649_vm11, 0, %v4338_v8  ;;  %v4234_v40 = vsel %vm13954_vm7, %v13357_v12, %v4233_v38  ;;  %v4324_v45 = vsel %vm12898_vm14, %v4299_v6, %v13281_v21  ;;  %v4300_v24 = vor.u32 %v4297_v26, %v4236_v19 }
 0x98b   :  { %4270 = vst [vmem:[#allocation2 + $0xf8] sm:$0x1] %v4269_v52  ;;  %v4342_v56 = vsel %vm12695_vm13, 0, %v4341_v9  ;;  %4340 = vst [vmem:[#allocation2 + $0x88] sm:$0x80] %v4339_v14  ;;  %v4242_v27 = vsel %vm13954_vm7, %v13360_v17, %v4241_v53  ;;  %5041 = vmatpush1.bf16.msra.mxu0 %v11013_v25  ;;  %v4202_v58 = vsel %vm13954_vm7, %v13305_v20, %v4201_v16 }
 0x98c   :  { %v4344_v0 = vld [vmem:[#allocation2 + $0x98] sm:$0x1]  ;;  %4263 = vst [vmem:[#allocation2 + $0xc0] sm:$0xff] %v4234_v40  ;;  %4325 = vst [vmem:[#allocation2 + $0xe0] sm:$0xff] %v4324_v45  ;;  %v4327_v21 = vsel %vm12898_vm14, %v4300_v24, %v13278_v44  ;;  %5042 = vmatprep.subr.bf16.mxu0 %v11018_v28  ;;  %v11022_v35 = vld [vmem:[#allocation12 + $0x140] ss:$8 sps:$4 sm:$0xff]  }
 0x98d   :  { %4343 = vst [vmem:[#allocation2 + $0x90] sm:$0x1] %v4342_v56  ;;  %v4345_v12 = vsel %vm12695_vm13, 0, %v4344_v0  ;;  %4328 = vst [vmem:[#allocation2 + $0xe8] sm:$0xff] %v4327_v21  ;;  %v11019_v17 = vld [vmem:[#allocation12 + $0x130] ss:$8 sps:$4 sm:$0xff]  }
 0x98e   :  { %4346 = vst [vmem:[#allocation2 + $0x98] sm:$0x1] %v4345_v12  ;;  %5008 = vmatmul.mubr.bf16.gmra.mrb[68].mxu0 %v4202_v58  ;;  %v11027_v44 = vld [vmem:[#allocation12 + $0x154] ss:$8 sps:$4 sm:$0xff]   ;;  %v11025_v16 = vld [vmem:[#allocation12 + $0x150] ss:$8 sps:$4 sm:$0xff]  }
 0x98f   :  { %5043 = vmatpush1.bf16.msra.mxu0 %v11016_v31  ;;  %v11030_v5 = vld [vmem:[#allocation12 + $0x164] ss:$8 sps:$4 sm:$0xff]   ;;  %v11028_v22 = vld [vmem:[#allocation12 + $0x160] ss:$8 sps:$4 sm:$0xff]   ;;  %v11033_v61 = vld [vmem:[#allocation12 + $0x174] ss:$8 sps:$4 sm:$0xff]  }
 0x990   :  { %5044 = vmatprep.subr.bf16.mxu0 %v11021_v2  ;;  %v11031_v26 = vld [vmem:[#allocation12 + $0x170] ss:$8 sps:$4 sm:$0xff]   ;;  %v11036_v25 = vld [vmem:[#allocation12 + $0x184] ss:$8 sps:$4 sm:$0xff]   ;;  %v11034_v29 = vld [vmem:[#allocation12 + $0x180] ss:$8 sps:$4 sm:$0xff]  }
 0x991   :  { %v11039_v38 = vld [vmem:[#allocation12 + $0x194] ss:$8 sps:$4 sm:$0xff]   ;;  %v11037_v13 = vld [vmem:[#allocation12 + $0x190] ss:$8 sps:$4 sm:$0xff]   ;;  %v11042_v6 = vld [vmem:[#allocation12 + $0x1a4] ss:$8 sps:$4 sm:$0xff]  }
 0x992   :  { %v11040_v34 = vld [vmem:[#allocation12 + $0x1a0] ss:$8 sps:$4 sm:$0xff]   ;;  %v11045_v28 = vld [vmem:[#allocation12 + $0x1b4] ss:$8 sps:$4 sm:$0xff]   ;;  %v11043_v10 = vld [vmem:[#allocation12 + $0x1b0] ss:$8 sps:$4 sm:$0xff]  }
 0x993   :  { %v4347_v19 = vld [vmem:[#allocation2 + $0xe0] sm:$0x80]  ;;  %5045 = vmatpush1.bf16.msra.mxu0 %v11019_v17  ;;  %v11048_v8 = vld [vmem:[#allocation12 + $0x1c4] ss:$8 sps:$4 sm:$0xff]   ;;  %v11051_v53 = vld [vmem:[#allocation12 + $0x1d4] ss:$8 sps:$4 sm:$0xff]  }
 0x994   :  { %v4348_v49 = vsel %vm12649_vm11, 0, %v4347_v19  ;;  %5046 = vmatprep.subr.bf16.mxu0 %v11024_v23  ;;  %v4350_v32 = vld [vmem:[#allocation2 + $0xe8] sm:$0x80]  ;;  %v4365_v20 = vld [vmem:[#allocation2 + $0x90] sm:$0xff]  ;;  %v11063_v0 = vld [vmem:[#allocation12 + $0x214] ss:$8 sps:$4 sm:$0xff]  }
 0x995   :  { %v4366_v55 = vld [vmem:[#allocation2 + $0x98] sm:$0xff]  ;;  %4349 = vst [vmem:[#allocation2 + $0xe0] sm:$0x80] %v4348_v49  ;;  %v4351_v1 = vsel %vm12649_vm11, 0, %v4350_v32  ;;  %v11054_v9 = vld [vmem:[#allocation12 + $0x1e4] ss:$8 sps:$4 sm:$0xff]  }
 0x996   :  { %5017 = vmatprep.mubr.bf16.mxu0 %v4366_v55  ;;  %4352 = vst [vmem:[#allocation2 + $0xe8] sm:$0x80] %v4351_v1  ;;  %v11049_v52 = vld [vmem:[#allocation12 + $0x1d0] ss:$8 sps:$4 sm:$0xff]   ;;  %v11052_v14 = vld [vmem:[#allocation12 + $0x1e0] ss:$8 sps:$4 sm:$0xff]  }
 0x997   :  { %5018 = vmatmul.mubr.bf16.gmra.mrb[72].mxu0 %v4365_v20  ;;  %v11055_v45 = vld [vmem:[#allocation12 + $0x1f0] ss:$8 sps:$4 sm:$0xff]   ;;  %v11060_v24 = vld [vmem:[#allocation12 + $0x204] ss:$8 sps:$4 sm:$0xff]   ;;  %v11058_v56 = vld [vmem:[#allocation12 + $0x200] ss:$8 sps:$4 sm:$0xff]  }
 0x998   :  { %5047 = vmatpush1.bf16.msra.mxu0 %v11022_v35  ;;  %5027 = vmatprep.mubr.bf16.mxu0 %v4242_v27  ;;  %v11061_v27 = vld [vmem:[#allocation12 + $0x210] ss:$8 sps:$4 sm:$0xff]   ;;  %v11066_v31 = vld [vmem:[#allocation12 + $0x224] ss:$8 sps:$4 sm:$0xff]   ;;  %v11064_v12 = vld [vmem:[#allocation12 + $0x220] ss:$8 sps:$4 sm:$0xff]  }
 0x999   :  { %5048 = vmatprep.subr.bf16.mxu0 %v11027_v44  ;;  %v11069_v21 = vld [vmem:[#allocation12 + $0x234] ss:$8 sps:$4 sm:$0xff]   ;;  %v11067_v2 = vld [vmem:[#allocation12 + $0x230] ss:$8 sps:$4 sm:$0xff]   ;;  %v11072_v58 = vld [vmem:[#allocation12 + $0x244] ss:$8 sps:$4 sm:$0xff]  }
 0x99a   :  { %v11073_v17 = vld [vmem:[#allocation12 + $0x250] ss:$8 sps:$4 sm:$0xff]   ;;  %v11078_v23 = vld [vmem:[#allocation12 + $0x264] ss:$8 sps:$4 sm:$0xff]   ;;  %v11088_v44 = vld [vmem:[#allocation12 + $0x2a0] ss:$8 sps:$4 sm:$0xff]  }
 0x99b   :  { %v11079_v19 = vld [vmem:[#allocation12 + $0x270] ss:$8 sps:$4 sm:$0xff]   ;;  %v11084_v35 = vld [vmem:[#allocation12 + $0x284] ss:$8 sps:$4 sm:$0xff]   ;;  %v11093_v32 = vld [vmem:[#allocation12 + $0x2b4] ss:$8 sps:$4 sm:$0xff]  }
 0x99c   :  { %5049 = vmatpush1.bf16.msra.mxu0 %v11025_v16  ;;  %v11085_v49 = vld [vmem:[#allocation12 + $0x290] ss:$8 sps:$4 sm:$0xff]   ;;  %v11090_v55 = vld [vmem:[#allocation12 + $0x2a4] ss:$8 sps:$4 sm:$0xff]   ;;  %v11099_v1 = vld [vmem:[#allocation12 + $0x2d4] ss:$8 sps:$4 sm:$0xff]  }
 0x99d   :  { %5050 = vmatprep.subr.bf16.mxu0 %v11030_v5  ;;  %v11096_v20 = vld [vmem:[#allocation12 + $0x2c4] ss:$8 sps:$4 sm:$0xff]   ;;  %v11097_v16 = vld [vmem:[#allocation12 + $0x2d0] ss:$8 sps:$4 sm:$0xff]  }
 0x99e   :  { %v11102_v5 = vld [vmem:[#allocation12 + $0x2e4] ss:$8 sps:$4 sm:$0xff]  }
 0x99f   :  { %5028 = vmatmul.mubr.bf16.gmra.mrb[76].mxu0 %v4234_v40  ;;  %v11057_v40 = vld [vmem:[#allocation12 + $0x1f4] ss:$8 sps:$4 sm:$0xff]  }
 0x9a0   :  { %5051 = vmatpush1.bf16.msra.mxu0 %v11028_v22  ;;  %5070 = vmatprep.mubr.bf16.mxu0 %v13297_v18  ;;  %v11046_v18 = vld [vmem:[#allocation12 + $0x1c0] ss:$8 sps:$4 sm:$0xff]  }
 0x9a1   :  { %5052 = vmatprep.subr.bf16.mxu0 %v11033_v61  ;;  %v11100_v22 = vld [vmem:[#allocation12 + $0x2e0] ss:$8 sps:$4 sm:$0xff]   ;;  %v11105_v61 = vld [vmem:[#allocation12 + $0x2f4] ss:$8 sps:$4 sm:$0xff]  }
 0x9a4   :  { %5053 = vmatpush1.bf16.msra.mxu0 %v11031_v26  ;;  %v11103_v26 = vld [vmem:[#allocation12 + $0x2f0] ss:$8 sps:$4 sm:$0xff]  }
 0x9a5   :  { %5054 = vmatprep.subr.bf16.mxu0 %v11036_v25  ;;  %v13431_v25 = vld [vmem:[#allocation2 + $0x88] sm:$0xff] }
 0x9a8   :  { %5055 = vmatpush1.bf16.msra.mxu0 %v11034_v29  ;;  %v13434_v29 = vld [vmem:[#allocation2 + $0x80] sm:$0xff] }
 0x9a9   :  { %5056 = vmatprep.subr.bf16.mxu0 %v11039_v38  ;;  %v4376_v38 = vld [vmem:[#allocation2 + $0xe8] sm:$0xff] }
 0x9ac   :  { %5057 = vmatpush1.bf16.msra.mxu0 %v11037_v13  ;;  %v4375_v13 = vld [vmem:[#allocation2 + $0xe0] sm:$0xff] }
 0x9ad   :  { %5058 = vmatprep.subr.bf16.mxu0 %v11042_v6  ;;  %v4473_v6 = vld [vmem:[#allocation14] sm:$0x3] }
 0x9b0   :  { %5059 = vmatpush1.bf16.msra.mxu0 %v11040_v34  ;;  %v4478_v34 = vrot.slane %v4473_v6, %v12625_v48 }
 0x9b1   :  { %5060 = vmatprep.subr.bf16.mxu0 %v11045_v28 }
 0x9b4   :  { %5061 = vmatpush1.bf16.msra.mxu0 %v11043_v10 }
 0x9b5   :  { %5062 = vmatprep.subr.bf16.mxu0 %v11048_v8 }
 0x9b8   :  { %5063 = vmatpush1.bf16.msra.mxu0 %v11046_v18 }
 0x9b9   :  { %5064 = vmatprep.subr.bf16.mxu0 %v11051_v53 }
 0x9bc   :  { %5065 = vmatpush1.bf16.msra.mxu0 %v11049_v52 }
 0x9bd   :  { %5066 = vmatprep.subr.bf16.mxu0 %v11054_v9 }
 0x9c0   :  { %5067 = vmatpush1.bf16.msra.mxu0 %v11052_v14 }
 0x9c1   :  { %5068 = vmatprep.subr.bf16.mxu0 %v11057_v40 }
 0x9c4   :  { %5069 = vmatpush1.bf16.msra.mxu0 %v11055_v45 }
 0x9c5   :  { %5111 = vmatprep.subr.bf16.mxu0 %v11060_v24 }
 0x9c7   :  { %5071 = vmatmul.mubr.bf16.vlgmr.msra.gmra.mrb[64].mxu0 %v13295_v43  ;;  %v11070_v43 = vld [vmem:[#allocation12 + $0x240] ss:$8 sps:$4 sm:$0xff]  }
 0x9c8   :  { %5080 = vmatprep.mubr.bf16.mxu0 %v13325_v4  ;;  %5112 = vmatpush1.bf16.msra.mxu0 %v11058_v56  ;;  %v11075_v4 = vld [vmem:[#allocation12 + $0x254] ss:$8 sps:$4 sm:$0xff]  }
 0x9c9   :  { %5113 = vmatprep.subr.bf16.mxu0 %v11063_v0 }
 0x9cc   :  { %5114 = vmatpush1.bf16.msra.mxu0 %v11061_v27 }
 0x9cd   :  { %5115 = vmatprep.subr.bf16.mxu0 %v11066_v31 }
 0x9cf   :  { %5081 = vmatmul.mubr.bf16.gmra.mrb[68].mxu0 %v13320_v59  ;;  %v11076_v59 = vld [vmem:[#allocation12 + $0x260] ss:$8 sps:$4 sm:$0xff]  }
 0x9d0   :  { %5090 = vmatprep.mubr.bf16.mxu0 %v13347_v54  ;;  %5116 = vmatpush1.bf16.msra.mxu0 %v11064_v12  ;;  %v11081_v54 = vld [vmem:[#allocation12 + $0x274] ss:$8 sps:$4 sm:$0xff]  }
 0x9d1   :  { %5117 = vmatprep.subr.bf16.mxu0 %v11069_v21 }
 0x9d4   :  { %5118 = vmatpush1.bf16.msra.mxu0 %v11067_v2 }
 0x9d5   :  { %5119 = vmatprep.subr.bf16.mxu0 %v11072_v58 }
 0x9d7   :  { %5091 = vmatmul.mubr.bf16.gmra.mrb[72].mxu0 %v13343_v41  ;;  %v11082_v41 = vld [vmem:[#allocation12 + $0x280] ss:$8 sps:$4 sm:$0xff]  }
 0x9d8   :  { %5100 = vmatprep.mubr.bf16.mxu0 %v13371_v57  ;;  %5120 = vmatpush1.bf16.msra.mxu0 %v11070_v43  ;;  %v11087_v57 = vld [vmem:[#allocation12 + $0x294] ss:$8 sps:$4 sm:$0xff]  }
 0x9d9   :  { %5121 = vmatprep.subr.bf16.mxu0 %v11075_v4 }
 0x9dc   :  { %5122 = vmatpush1.bf16.msra.mxu0 %v11073_v17 }
 0x9dd   :  { %5123 = vmatprep.subr.bf16.mxu0 %v11078_v23 }
 0x9df   :  { %5101 = vmatmul.mubr.bf16.gmra.mrb[76].mxu0 %v13368_v51  ;;  %v11091_v51 = vld [vmem:[#allocation12 + $0x2b0] ss:$8 sps:$4 sm:$0xff]  }
 0x9e0   :  { %5124 = vmatpush1.bf16.msra.mxu0 %v11076_v59  ;;  %5143 = vmatprep.mubr.bf16.mxu0 %v13341_v33  ;;  %v11094_v33 = vld [vmem:[#allocation12 + $0x2c0] ss:$8 sps:$4 sm:$0xff]  }
 0x9e1   :  { %5125 = vmatprep.subr.bf16.mxu0 %v11081_v54 }
 0x9e4   :  { %5126 = vmatpush1.bf16.msra.mxu0 %v11079_v19 }
 0x9e5   :  { %5127 = vmatprep.subr.bf16.mxu0 %v11084_v35 }
 0x9e8   :  { %5128 = vmatpush1.bf16.msra.mxu0 %v11082_v41 }
 0x9e9   :  { %5129 = vmatprep.subr.bf16.mxu0 %v11087_v57 }
 0x9ec   :  { %5130 = vmatpush1.bf16.msra.mxu0 %v11085_v49 }
 0x9ed   :  { %5131 = vmatprep.subr.bf16.mxu0 %v11090_v55 }
 0x9f0   :  { %5132 = vmatpush1.bf16.msra.mxu0 %v11088_v44 }
 0x9f1   :  { %5133 = vmatprep.subr.bf16.mxu0 %v11093_v32 }
 0x9f4   :  { %5134 = vmatpush1.bf16.msra.mxu0 %v11091_v51 }
 0x9f5   :  { %5135 = vmatprep.subr.bf16.mxu0 %v11096_v20 }
 0x9f8   :  { %5136 = vmatpush1.bf16.msra.mxu0 %v11094_v33 }
 0x9f9   :  { %5137 = vmatprep.subr.bf16.mxu0 %v11099_v1 }
 0x9fc   :  { %5138 = vmatpush1.bf16.msra.mxu0 %v11097_v16 }
 0x9fd   :  { %5139 = vmatprep.subr.bf16.mxu0 %v11102_v5 }
 0xa00   :  { %5140 = vmatpush1.bf16.msra.mxu0 %v11100_v22 }
 0xa01   :  { %5141 = vmatprep.subr.bf16.mxu0 %v11105_v61 }
 0xa04   :  { %5142 = vmatpush1.bf16.msra.mxu0 %v11103_v26 }
 0xa07   :  { %5144 = vmatmul.mubr.bf16.vlgmr.msra.gmra.mrb[64].mxu0 %v13337_v39  ;;  %v4482_v39 = vrot.slane %v4473_v6, %v12629_v50 }
 0xa08   :  { %5153 = vmatprep.mubr.bf16.mxu0 %v13431_v25 }
 0xa0f   :  { %5154 = vmatmul.mubr.bf16.gmra.mrb[68].mxu0 %v13434_v29 }
 0xa10   :  { %5163 = vmatprep.mubr.bf16.mxu0 %v13397_v47 }
 0xa17   :  { %5164 = vmatmul.mubr.bf16.gmra.mrb[72].mxu0 %v13390_v36 }
 0xa18   :  { %5173 = vmatprep.mubr.bf16.mxu0 %v4376_v38 }
 0xa1f   :  { %5174 = vmatmul.mubr.bf16.gmra.mrb[76].mxu0 %v4375_v13 }
 0xada   :  { %v5145_v28 = vpop.f32.mrb[64].mxu0 }
 0xadb   :  { %v10438_v10 = vadd.f32 %v5145_v28, %v4478_v34  ;;  %v5147_v8 = vpop.f32.mrb[65].mxu0 }
 0xadc   :  { %v10439_v18 = vadd.f32 %v5147_v8, %v4482_v39  ;;  %v5149_v53 = vpop.f32.mrb[66].mxu0 }
 0xadd   :  { %v10440_v52 = vadd.f32 %v5149_v53, %v4478_v34  ;;  %v5151_v9 = vpop.f32.mrb[67].mxu0  ;;  %v5184_v47 = vmax.f32 %v10438_v10, 0.0 }
 0xade   :  { %v10441_v14 = vadd.f32 %v5151_v9, %v4482_v39  ;;  %v5185_v36 = vmax.f32 %v10439_v18, 0.0 }
 0xadf   :  { %v5186_v40 = vmax.f32 %v10440_v52, 0.0 }
 0xae0   :  { %v5187_v45 = vmax.f32 %v10441_v14, 0.0 }
 0xae1   :  { %v10365_v24 = vpack.c.bf16 %v5186_v40, %v5184_v47  ;;  %v5200_v40 = vld [vmem:[#allocation33] sm:$0xff] }
 0xae2   :  { %v10363_v56 = vpack.c.bf16 %v5187_v45, %v5185_v36  ;;  %v5155_v0 = vpop.f32.mrb[68].mxu0  ;;  %v5201_v36 = vld [vmem:[#allocation33 + $0x8] sm:$0xff]  ;;  %v11106_v45 = vld [vmem:[#allocation15 + $0x40] sm:$0xff]  }
 0xae3   :  { %v10442_v27 = vadd.f32 %v5155_v0, %v4478_v34  ;;  %v5157_v31 = vpop.f32.mrb[69].mxu0  ;;  %v11109_v0 = vld [vmem:[#allocation15 + $0x8] sm:$0xff]  }
 0xae4   :  { %v10443_v12 = vadd.f32 %v5157_v31, %v4482_v39  ;;  %v5159_v21 = vpop.f32.mrb[70].mxu0  ;;  %10364 = vmatprep.subr.bf16.mxu1 %v10363_v56  ;;  %v11108_v56 = vld [vmem:[#allocation15 + $0x48] sm:$0xff]   ;;  %v11111_v31 = vld [vmem:[#allocation15 + $0x10] sm:$0xff]  }
 0xae5   :  { %v10444_v2 = vadd.f32 %v5159_v21, %v4478_v34  ;;  %v5161_v58 = vpop.f32.mrb[71].mxu0  ;;  %10366 = vmatpush1.bf16.msra.mxu1 %v10365_v24  ;;  %v5188_v4 = vmax.f32 %v10442_v27, 0.0  ;;  %v11107_v24 = vld [vmem:[#allocation15] sm:$0xff]   ;;  %v11110_v27 = vld [vmem:[#allocation15 + $0x50] sm:$0xff]   ;;  %v11113_v21 = vld [vmem:[#allocation15 + $0x18] sm:$0xff]  }
 0xae6   :  { %v10445_v43 = vadd.f32 %v5161_v58, %v4482_v39  ;;  %v5189_v23 = vmax.f32 %v10443_v12, 0.0  ;;  %v11112_v12 = vld [vmem:[#allocation15 + $0x58] sm:$0xff]   ;;  %v11115_v58 = vld [vmem:[#allocation15 + $0x20] sm:$0xff]  }
 0xae7   :  { %v5190_v17 = vmax.f32 %v10444_v2, 0.0  ;;  %v11114_v2 = vld [vmem:[#allocation15 + $0x60] sm:$0xff]  }
 0xae8   :  { %v5191_v59 = vmax.f32 %v10445_v43, 0.0  ;;  %v11116_v43 = vld [vmem:[#allocation15 + $0x68] sm:$0xff]  }
 0xae9   :  { %v10369_v54 = vpack.c.bf16 %v5190_v17, %v5188_v4  ;;  %v11117_v4 = vld [vmem:[#allocation15 + $0x28] sm:$0xff]   ;;  %v11118_v17 = vld [vmem:[#allocation15 + $0x70] sm:$0xff]  }
 0xaea   :  { %v10367_v19 = vpack.c.bf16 %v5191_v59, %v5189_v23  ;;  %v5165_v35 = vpop.f32.mrb[72].mxu0  ;;  %v11119_v23 = vld [vmem:[#allocation15 + $0x30] sm:$0xff]   ;;  %v11120_v59 = vld [vmem:[#allocation15 + $0x78] sm:$0xff]  }
 0xaeb   :  { %v10446_v41 = vadd.f32 %v5165_v35, %v4478_v34  ;;  %v5167_v57 = vpop.f32.mrb[73].mxu0 }
 0xaec   :  { %v10447_v49 = vadd.f32 %v5167_v57, %v4482_v39  ;;  %v5169_v55 = vpop.f32.mrb[74].mxu0  ;;  %10368 = vmatprep.subr.bf16.mxu1 %v10367_v19  ;;  %v11122_v19 = vld [vmem:[#allocation15 + $0xc0] sm:$0xff]  }
 0xaed   :  { %v10448_v44 = vadd.f32 %v5169_v55, %v4478_v34  ;;  %v5171_v32 = vpop.f32.mrb[75].mxu0  ;;  %10370 = vmatpush1.bf16.msra.mxu1 %v10369_v54  ;;  %v5192_v20 = vmax.f32 %v10446_v41, 0.0  ;;  %v11121_v54 = vld [vmem:[#allocation15 + $0x38] sm:$0xff]  }
 0xaee   :  { %v10449_v51 = vadd.f32 %v5171_v32, %v4482_v39  ;;  %v5193_v1 = vmax.f32 %v10447_v49, 0.0 }
 0xaef   :  { %v5194_v33 = vmax.f32 %v10448_v44, 0.0 }
 0xaf0   :  { %v5195_v16 = vmax.f32 %v10449_v51, 0.0 }
 0xaf1   :  { %v10373_v5 = vpack.c.bf16 %v5194_v33, %v5192_v20 }
 0xaf2   :  { %v10371_v22 = vpack.c.bf16 %v5195_v16, %v5193_v1  ;;  %v5175_v61 = vpop.f32.mrb[76].mxu0 }
 0xaf3   :  { %v10450_v26 = vadd.f32 %v5175_v61, %v4478_v34  ;;  %v5177_v38 = vpop.f32.mrb[77].mxu0  ;;  %v5379_v61 = vld [vmem:[#allocation2 + $0x20] sm:$0x80] }
 0xaf4   :  { %v10451_v13 = vadd.f32 %v5177_v38, %v4482_v39  ;;  %v5179_v6 = vpop.f32.mrb[78].mxu0  ;;  %10372 = vmatprep.subr.bf16.mxu1 %v10371_v22 }
 0xaf5   :  { %v10452_v28 = vadd.f32 %v5179_v6, %v4478_v34  ;;  %v5181_v10 = vpop.f32.mrb[79].mxu0  ;;  %10374 = vmatpush1.bf16.msra.mxu1 %v10373_v5  ;;  %v5196_v18 = vmax.f32 %v10450_v26, 0.0  ;;  %v5202_v34 = vld [vmem:[#allocation33 + $0x10] sm:$0xff] }
 0xaf6   :  { %v10453_v8 = vadd.f32 %v5181_v10, %v4482_v39  ;;  %v5197_v52 = vmax.f32 %v10451_v13, 0.0  ;;  %v5203_v39 = vld [vmem:[#allocation33 + $0x18] sm:$0xff] }
 0xaf7   :  { %v5198_v53 = vmax.f32 %v10452_v28, 0.0  ;;  %v5382_v28 = vld [vmem:[#allocation2 + $0x28] sm:$0x80] }
 0xaf8   :  { %v5199_v9 = vmax.f32 %v10453_v8, 0.0 }
 0xaf9   :  { %v10377_v14 = vpack.c.bf16 %v5198_v53, %v5196_v18 }
 0xafa   :  { %v10375_v47 = vpack.c.bf16 %v5199_v9, %v5197_v52 }
 0xafc   :  { %10376 = vmatprep.subr.bf16.mxu1 %v10375_v47 }
 0xafd   :  { %10378 = vmatpush1.bf16.msra.mxu1 %v10377_v14 }
 0xafe   :  { %9850 = vmatprep.subr.bf16.mxu1 %v11106_v45 }
 0xb00   :  { %9511 = vmatmul.mubr.msk.f32.vlgmr.msra.gmra.mrb[80].mxu1 %vm13955_vm1, %v5200_v40 }
 0xb01   :  { %5286 = vmatprep.mubr.f32.mxu1 %v11987_v7  ;;  %9851 = vmatpush3.bf16.msra.mxu1 %v11107_v24 }
 0xb02   :  { %9852 = vmatprep.subr.bf16.mxu1 %v11108_v56 }
 0xb04   :  { %9512 = vmatmul.mubr.msk.f32.gmra.mrb[82].mxu1 %vm13955_vm1, %v5201_v36 }
 0xb05   :  { %5292 = vmatprep.mubr.f32.mxu1 %v11987_v7  ;;  %9853 = vmatpush3.bf16.msra.mxu1 %v11109_v0  ;;  %v5353_v0 = vld [vmem:[#allocation2 + $0x90] sm:$0x1] }
 0xb06   :  { %9854 = vmatprep.subr.bf16.mxu1 %v11110_v27 }
 0xb08   :  { %9513 = vmatmul.mubr.msk.f32.gmra.mrb[84].mxu1 %vm13955_vm1, %v5202_v34 }
 0xb09   :  { %5298 = vmatprep.mubr.f32.mxu1 %v11987_v7  ;;  %9855 = vmatpush3.bf16.msra.mxu1 %v11111_v31 }
 0xb0a   :  { %9856 = vmatprep.subr.bf16.mxu1 %v11112_v12 }
 0xb0c   :  { %9514 = vmatmul.mubr.msk.f32.gmra.mrb[86].mxu1 %vm13955_vm1, %v5203_v39  ;;  %vm7181_vm1 = vsmask.f32 7942 }
 0xb0d   :  { %9857 = vmatpush3.bf16.msra.mxu1 %v11113_v21 }
 0xb0e   :  { %9858 = vmatprep.subr.bf16.mxu1 %v11114_v2 }
 0xb11   :  { %9859 = vmatpush3.bf16.msra.mxu1 %v11115_v58  ;;  %v5356_v58 = vld [vmem:[#allocation2 + $0x98] sm:$0x1] }
 0xb12   :  { %9860 = vmatprep.subr.bf16.mxu1 %v11116_v43 }
 0xb15   :  { %9861 = vmatpush3.bf16.msra.mxu1 %v11117_v4 }
 0xb16   :  { %9862 = vmatprep.subr.bf16.mxu1 %v11118_v17 }
 0xb19   :  { %9863 = vmatpush3.bf16.msra.mxu1 %v11119_v23 }
 0xb1a   :  { %9864 = vmatprep.subr.bf16.mxu1 %v11120_v59 }
 0xb1d   :  { %9865 = vmatpush3.bf16.msra.mxu1 %v11121_v54 }
 0xb1e   :  { %9878 = vmatprep.subr.bf16.mxu1 %v11122_v19 }
 0xbd3   :  { %v5282_v35 = vpop.f32.mrb[80].mxu1 }
 0xbd4   :  { %v5284_v41 = vpop.f32.mrb[81].mxu1 }
 0xbd7   :  { %v5288_v57 = vpop.f32.mrb[82].mxu1 }
 0xbd8   :  { %v13448_v49 = vpack.c.bf16 %v5288_v57, %v5282_v35  ;;  %v5290_v55 = vpop.f32.mrb[83].mxu1 }
 0xbd9   :  { %v13450_v44 = vpack.c.bf16 %v5290_v55, %v5284_v41 }
 0xbda   :  { %v5310_v32 = vshrl.u32 %v13448_v49, 16  ;;  %v5313_v51 = vshll.u32 %v13448_v49, 16 }
 0xbdb   :  { %v5317_v20 = vshrl.u32 %v13450_v44, 16  ;;  %v5320_v33 = vshll.u32 %v13450_v44, 16  ;;  %v5294_v1 = vpop.f32.mrb[84].mxu1 }
 0xbdc   :  { %v5312_v16 = vrot.slane %v5310_v32, 7  ;;  %v5363_v5 = vrot.slane %v5313_v51, 1  ;;  %v5296_v22 = vpop.f32.mrb[85].mxu1 }
 0xbdd   :  { %v5319_v26 = vrot.slane %v5317_v20, 7  ;;  %v5364_v38 = vrot.slane %v5320_v33, 1 }
 0xbde   :  { %v5315_v13 = vor.u32 %v5313_v51, %v5312_v16  ;;  %v5380_v6 = vsel %vm12649_vm11, %v5363_v5, %v5379_v61  ;;  %v5365_v39 = vor.u32 %v5363_v5, %v5310_v32 }
 0xbdf   :  { %5381 = vst [vmem:[#allocation2 + $0x20] sm:$0x80] %v5380_v6  ;;  %v5322_v10 = vor.u32 %v5320_v33, %v5319_v26  ;;  %v5383_v8 = vsel %vm12649_vm11, %v5364_v38, %v5382_v28  ;;  %v5300_v18 = vpop.f32.mrb[86].mxu1  ;;  %v5368_v56 = vor.u32 %v5364_v38, %v5317_v20 }
 0xbe0   :  { %v5346_v53 = vsel %vm12661_vm12, %v5315_v13, %v13380_v15  ;;  %5384 = vst [vmem:[#allocation2 + $0x28] sm:$0x80] %v5383_v8  ;;  %v13463_v52 = vpack.c.bf16 %v5300_v18, %v5294_v1  ;;  %v5302_v9 = vpop.f32.mrb[87].mxu1  ;;  %v11124_v13 = vld [vmem:[#allocation15 + $0xc8] sm:$0xff]   ;;  %v11126_v18 = vld [vmem:[#allocation15 + $0xd0] sm:$0xff]  }
 0xbe1   :  { %5347 = vst [vmem:[#allocation2 + $0x30] sm:$0xff] %v5346_v53  ;;  %v5349_v14 = vsel %vm12661_vm12, %v5322_v10, %v13375_v37  ;;  %v13468_v47 = vpack.c.bf16 %v5302_v9, %v5296_v22  ;;  %v11123_v22 = vld [vmem:[#allocation15 + $0x80] sm:$0xff]   ;;  %v11125_v8 = vld [vmem:[#allocation15 + $0x88] sm:$0xff]   ;;  %v11127_v53 = vld [vmem:[#allocation15 + $0x90] sm:$0xff]  }
 0xbe2   :  { %5350 = vst [vmem:[#allocation2 + $0x38] sm:$0xff] %v5349_v14  ;;  %v5324_v40 = vshrl.u32 %v13463_v52, 16  ;;  %v5327_v36 = vshll.u32 %v13463_v52, 16  ;;  %v11128_v14 = vld [vmem:[#allocation15 + $0xd8] sm:$0xff]  }
 0xbe3   :  { %v5332_v34 = vshrl.u32 %v13468_v47, 16  ;;  %v5335_v15 = vshll.u32 %v13468_v47, 16 }
 0xbe4   :  { %v5326_v45 = vrot.slane %v5324_v40, 7  ;;  %v5366_v24 = vrot.slane %v5327_v36, 1 }
 0xbe5   :  { %v5334_v27 = vrot.slane %v5332_v34, 7  ;;  %v5369_v31 = vrot.slane %v5335_v15, 1 }
 0xbe6   :  { %v5329_v12 = vor.u32 %v5327_v36, %v5326_v45  ;;  %v5354_v37 = vsel %vm12695_vm13, %v5326_v45, %v5353_v0  ;;  %v5367_v21 = vsel %vm1351_vm5, %v5365_v39, %v5366_v24  ;;  %v5371_v2 = vor.u32 %v5366_v24, %v5324_v40  ;;  %v11129_v36 = vld [vmem:[#allocation15 + $0x98] sm:$0xff]   ;;  %v11132_v39 = vld [vmem:[#allocation15 + $0xe8] sm:$0xff]   ;;  %v11134_v24 = vld [vmem:[#allocation15 + $0xf0] sm:$0xff]  }
 0xbe7   :  { %5355 = vst [vmem:[#allocation2 + $0x90] sm:$0x1] %v5354_v37  ;;  %5385 = vst [vmem:[#allocation2 + $0x50] sm:$0xff] %v5367_v21  ;;  %v5337_v43 = vor.u32 %v5335_v15, %v5334_v27  ;;  %v5357_v4 = vsel %vm12695_vm13, %v5334_v27, %v5356_v58  ;;  %v5370_v17 = vsel %vm1351_vm5, %v5368_v56, %v5369_v31  ;;  %v11131_v15 = vld [vmem:[#allocation15 + $0xa0] sm:$0xff]   ;;  %v11133_v45 = vld [vmem:[#allocation15 + $0xa8] sm:$0xff]  }
 0xbe8   :  { %v5372_v23 = vor.u32 %v5369_v31, %v5332_v34  ;;  %v5393_v59 = vld [vmem:[#allocation2 + $0x30] sm:$0x1]  ;;  %v5330_v54 = vsel %vm13954_vm7, %v5312_v16, %v5329_v12  ;;  %v5388_v19 = vsel %vm12898_vm14, %v5371_v2, %v13434_v29  ;;  %5358 = vst [vmem:[#allocation2 + $0x98] sm:$0x1] %v5357_v4  ;;  %5386 = vst [vmem:[#allocation2 + $0x58] sm:$0xff] %v5370_v17  ;;  %v11130_v34 = vld [vmem:[#allocation15 + $0xe0] sm:$0xff]  }
 0xbe9   :  { %v5394_v35 = vsel %vm12695_vm13, 0, %v5393_v59  ;;  %v5396_v41 = vld [vmem:[#allocation2 + $0x38] sm:$0x1]  ;;  %5351 = vst [vmem:[#allocation2 + $0x60] sm:$0xff] %v5330_v54  ;;  %5389 = vst [vmem:[#allocation2 + $0x80] sm:$0xff] %v5388_v19  ;;  %v5338_v57 = vsel %vm13954_vm7, %v5319_v26, %v5337_v43  ;;  %v11136_v0 = vld [vmem:[#allocation15 + $0xf8] sm:$0xff]  }
 0xbea   :  { %v5391_v55 = vsel %vm12898_vm14, %v5372_v23, %v13431_v25  ;;  %5395 = vst [vmem:[#allocation2 + $0x30] sm:$0x1] %v5394_v35  ;;  %v5397_v32 = vsel %vm12695_vm13, 0, %v5396_v41  ;;  %5352 = vst [vmem:[#allocation2 + $0x68] sm:$0xff] %v5338_v57  ;;  %v11135_v56 = vld [vmem:[#allocation15 + $0xb0] sm:$0xff]   ;;  %v11137_v27 = vld [vmem:[#allocation15 + $0xb8] sm:$0xff]  }
 0xbeb   :  { %5392 = vst [vmem:[#allocation2 + $0x88] sm:$0xff] %v5391_v55  ;;  %5398 = vst [vmem:[#allocation2 + $0x38] sm:$0x1] %v5397_v32  ;;  %v11138_v31 = vld [vmem:[#allocation15 + $0x140] sm:$0xff]   ;;  %v11140_v12 = vld [vmem:[#allocation15 + $0x148] sm:$0xff]  }
 0xbec   :  { %v11141_v37 = vld [vmem:[#allocation15 + $0x108] sm:$0xff]   ;;  %v11142_v21 = vld [vmem:[#allocation15 + $0x150] sm:$0xff]   ;;  %v11144_v58 = vld [vmem:[#allocation15 + $0x158] sm:$0xff]  }
 0xbed   :  { %v11143_v2 = vld [vmem:[#allocation15 + $0x110] sm:$0xff]   ;;  %v11145_v4 = vld [vmem:[#allocation15 + $0x118] sm:$0xff]   ;;  %v11146_v17 = vld [vmem:[#allocation15 + $0x160] sm:$0xff]  }
 0xbee   :  { %v5399_v29 = vld [vmem:[#allocation2 + $0x50] sm:$0x80]  ;;  %v11150_v59 = vld [vmem:[#allocation15 + $0x170] sm:$0xff]   ;;  %v11152_v19 = vld [vmem:[#allocation15 + $0x178] sm:$0xff]  }
 0xbef   :  { %v5400_v51 = vsel %vm12649_vm11, 0, %v5399_v29  ;;  %v5402_v20 = vld [vmem:[#allocation2 + $0x58] sm:$0x80]  ;;  %v11149_v23 = vld [vmem:[#allocation15 + $0x128] sm:$0xff]   ;;  %v11153_v35 = vld [vmem:[#allocation15 + $0x138] sm:$0xff]  }
 0xbf0   :  { %5401 = vst [vmem:[#allocation2 + $0x50] sm:$0x80] %v5400_v51  ;;  %v5405_v33 = vld [vmem:[#allocation2 + $0x60] sm:$0x1]  ;;  %v5403_v1 = vsel %vm12649_vm11, 0, %v5402_v20  ;;  %v11151_v54 = vld [vmem:[#allocation15 + $0x130] sm:$0xff]  }
 0xbf1   :  { %v5411_v16 = vld [vmem:[#allocation2 + $0x80] sm:$0x80]  ;;  %v5406_v25 = vsel %vm12695_vm13, 0, %v5405_v33  ;;  %5404 = vst [vmem:[#allocation2 + $0x58] sm:$0x80] %v5403_v1  ;;  %v13504_v10 = vld [vmem:[#allocation2 + $0x30] sm:$0xff] }
 0xbf2   :  { %v5408_v5 = vld [vmem:[#allocation2 + $0x68] sm:$0x1]  ;;  %v5414_v61 = vld [vmem:[#allocation2 + $0x88] sm:$0x80]  ;;  %5407 = vst [vmem:[#allocation2 + $0x60] sm:$0x1] %v5406_v25 }
 0xbf3   :  { %v5409_v26 = vsel %vm12695_vm13, 0, %v5408_v5  ;;  %v5418_v38 = vld [vmem:[#allocation2 + $0x38] sm:$0xff]  ;;  %v5415_v6 = vsel %vm12649_vm11, 0, %v5414_v61  ;;  %v5412_v28 = vsel %vm12649_vm11, 0, %v5411_v16  ;;  %v11154_v32 = vld [vmem:[%s14008_s16 + $0x40] sm:$0xff]   ;;  %v11156_v51 = vld [vmem:[%s14008_s16 + $0x48] sm:$0xff]  }
 0xbf4   :  { %5410 = vst [vmem:[#allocation2 + $0x68] sm:$0x1] %v5409_v26  ;;  %5852 = vmatprep.mubr.bf16.mxu1 %v5418_v38  ;;  %5416 = vst [vmem:[#allocation2 + $0x88] sm:$0x80] %v5415_v6  ;;  %v11155_v29 = vld [vmem:[%s14008_s16] sm:$0xff]   ;;  %9934 = vmatprep.subr.bf16.mxu0 %v11154_v32  ;;  %v11157_v20 = vld [vmem:[%s14008_s16 + $0x8] sm:$0xff]  }
 0xbf5   :  { %5413 = vst [vmem:[#allocation2 + $0x80] sm:$0x80] %v5412_v28  ;;  %5853 = vmatmul.mubr.bf16.vlgmr.msra.gmra.mrb[88].mxu1 %v13504_v10  ;;  %9935 = vmatpush3.bf16.msra.mxu0 %v11155_v29  ;;  %v11158_v33 = vld [vmem:[%s14008_s16 + $0x50] sm:$0xff]   ;;  %v11159_v1 = vld [vmem:[%s14008_s16 + $0x80] sm:$0xff]   ;;  %v11161_v25 = vld [vmem:[%s14008_s16 + $0x58] sm:$0xff]  }
 0xbf6   :  { %9879 = vmatpush3.bf16.msra.mxu1 %v11123_v22  ;;  %9936 = vmatprep.subr.bf16.mxu0 %v11156_v51  ;;  %v11160_v16 = vld [vmem:[%s14008_s16 + $0x10] sm:$0xff]   ;;  %v11162_v5 = vld [vmem:[%s14008_s16 + $0x88] sm:$0xff]   ;;  %v11163_v22 = vld [vmem:[%s14008_s16 + $0x18] sm:$0xff]  }
 0xbf7   :  { %9880 = vmatprep.subr.bf16.mxu1 %v11124_v13  ;;  %v5421_v41 = vld [vmem:[#allocation2 + $0x50] sm:$0xff]  ;;  %v11164_v61 = vld [vmem:[%s14008_s16 + $0x60] sm:$0xff]   ;;  %v11167_v13 = vld [vmem:[%s14008_s16 + $0x68] sm:$0xff]  }
 0xbf8   :  { %v5422_v43 = vld [vmem:[#allocation2 + $0x58] sm:$0xff]  ;;  %v11165_v26 = vld [vmem:[%s14008_s16 + $0x90] sm:$0xff]   ;;  %v11166_v38 = vld [vmem:[%s14008_s16 + $0x20] sm:$0xff]  }
 0xbf9   :  { %v5423_v40 = vld [vmem:[#allocation2 + $0x60] sm:$0xff]  ;;  %9937 = vmatpush3.bf16.msra.mxu0 %v11157_v20  ;;  %v11168_v6 = vld [vmem:[%s14008_s16 + $0x98] sm:$0xff]   ;;  %v11169_v28 = vld [vmem:[%s14008_s16 + $0x28] sm:$0xff]  }
 0xbfa   :  { %9881 = vmatpush3.bf16.msra.mxu1 %v11125_v8  ;;  %9938 = vmatprep.subr.bf16.mxu0 %v11158_v33  ;;  %v11170_v8 = vld [vmem:[%s14008_s16 + $0x70] sm:$0xff]  }
 0xbfb   :  { %v5424_v9 = vld [vmem:[#allocation2 + $0x68] sm:$0xff]  ;;  %9882 = vmatprep.subr.bf16.mxu1 %v11126_v18  ;;  %v11171_v18 = vld [vmem:[%s14008_s16 + $0xa0] sm:$0xff]  }
 0xbfc   :  { %5860 = vmatprep.mubr.bf16.mxu1 %v5424_v9  ;;  %v5428_v57 = vld [vmem:[#allocation2 + $0x88] sm:$0xff]  ;;  %v5427_v55 = vld [vmem:[#allocation2 + $0x80] sm:$0xff]  ;;  %v11173_v9 = vld [vmem:[%s14008_s16 + $0x78] sm:$0xff]  }
 0xbfd   :  { %5861 = vmatmul.mubr.bf16.gmra.mrb[92].mxu1 %v5423_v40  ;;  %9939 = vmatpush3.bf16.msra.mxu0 %v11160_v16  ;;  %v11175_v40 = vld [vmem:[%s14008_s16 + $0x38] sm:$0xff]  }
 0xbfe   :  { %9883 = vmatpush3.bf16.msra.mxu1 %v11127_v53  ;;  %5901 = vmatprep.mubr.bf16.mxu1 %v13450_v44  ;;  %v11139_v44 = vld [vmem:[#allocation15 + $0x100] sm:$0xff]   ;;  %v11172_v53 = vld [vmem:[%s14008_s16 + $0x30] sm:$0xff]  }
 0xbff   :  { %9884 = vmatprep.subr.bf16.mxu1 %v11128_v14  ;;  %9940 = vmatprep.subr.bf16.mxu0 %v11161_v25  ;;  %v11174_v14 = vld [vmem:[%s14008_s16 + $0xa8] sm:$0xff]  }
 0xc01   :  { %9941 = vmatpush3.bf16.msra.mxu0 %v11163_v22 }
 0xc02   :  { %9885 = vmatpush3.bf16.msra.mxu1 %v11129_v36  ;;  %9942 = vmatprep.subr.bf16.mxu0 %v11164_v61  ;;  %v11176_v36 = vld [vmem:[%s14008_s16 + $0xb0] sm:$0xff]  }
 0xc03   :  { %9886 = vmatprep.subr.bf16.mxu1 %v11130_v34  ;;  %v11177_v34 = vld [vmem:[%s14008_s16 + $0xb8] sm:$0xff]  }
 0xc05   :  { %9943 = vmatpush3.bf16.msra.mxu0 %v11166_v38 }
 0xc06   :  { %9887 = vmatpush3.bf16.msra.mxu1 %v11131_v15  ;;  %9944 = vmatprep.subr.bf16.mxu0 %v11167_v13 }
 0xc07   :  { %9888 = vmatprep.subr.bf16.mxu1 %v11132_v39 }
 0xc09   :  { %9945 = vmatpush3.bf16.msra.mxu0 %v11169_v28 }
 0xc0a   :  { %9889 = vmatpush3.bf16.msra.mxu1 %v11133_v45  ;;  %9946 = vmatprep.subr.bf16.mxu0 %v11170_v8 }
 0xc0b   :  { %9890 = vmatprep.subr.bf16.mxu1 %v11134_v24 }
 0xc0d   :  { %9947 = vmatpush3.bf16.msra.mxu0 %v11172_v53 }
 0xc0e   :  { %9891 = vmatpush3.bf16.msra.mxu1 %v11135_v56  ;;  %9948 = vmatprep.subr.bf16.mxu0 %v11173_v9 }
 0xc0f   :  { %9892 = vmatprep.subr.bf16.mxu1 %v11136_v0 }
 0xc11   :  { %9949 = vmatpush3.bf16.msra.mxu0 %v11175_v40 }
 0xc12   :  { %9893 = vmatpush3.bf16.msra.mxu1 %v11137_v27 }
 0xc13   :  { %9906 = vmatprep.subr.bf16.mxu1 %v11138_v31 }
 0xc15   :  { %5902 = vmatmul.mubr.bf16.vlgmr.msra.gmra.mrb[96].mxu1 %v13448_v49  ;;  %v11147_v49 = vld [vmem:[#allocation15 + $0x120] sm:$0xff]  }
 0xc16   :  { %5909 = vmatprep.mubr.bf16.mxu1 %v13468_v47  ;;  %9907 = vmatpush3.bf16.msra.mxu1 %v11139_v44  ;;  %v11148_v47 = vld [vmem:[#allocation15 + $0x168] sm:$0xff]  }
 0xc17   :  { %9908 = vmatprep.subr.bf16.mxu1 %v11140_v12 }
 0xc1a   :  { %9909 = vmatpush3.bf16.msra.mxu1 %v11141_v37 }
 0xc1b   :  { %9910 = vmatprep.subr.bf16.mxu1 %v11142_v21 }
 0xc1d   :  { %5910 = vmatmul.mubr.bf16.gmra.mrb[100].mxu1 %v13463_v52 }
 0xc1e   :  { %9911 = vmatpush3.bf16.msra.mxu1 %v11143_v2  ;;  %5950 = vmatprep.mubr.bf16.mxu1 %v5422_v43  ;;  %v9515_v2 = vld [vmem:[#allocation17] ss:$0 sm:$0xff] }
 0xc1f   :  { %9912 = vmatprep.subr.bf16.mxu1 %v11144_v58 }
 0xc22   :  { %9913 = vmatpush3.bf16.msra.mxu1 %v11145_v4 }
 0xc23   :  { %9914 = vmatprep.subr.bf16.mxu1 %v11146_v17 }
 0xc26   :  { %9915 = vmatpush3.bf16.msra.mxu1 %v11147_v49 }
 0xc27   :  { %9916 = vmatprep.subr.bf16.mxu1 %v11148_v47 }
 0xc2a   :  { %9917 = vmatpush3.bf16.msra.mxu1 %v11149_v23 }
 0xc2b   :  { %9918 = vmatprep.subr.bf16.mxu1 %v11150_v59 }
 0xc2e   :  { %9919 = vmatpush3.bf16.msra.mxu1 %v11151_v54 }
 0xc2f   :  { %9920 = vmatprep.subr.bf16.mxu1 %v11152_v19 }
 0xc32   :  { %9921 = vmatpush3.bf16.msra.mxu1 %v11153_v35 }
 0xc33   :  { %10188 = vmatprep.subr.bf16.mxu1 %v11159_v1 }
 0xc35   :  { %5951 = vmatmul.mubr.bf16.vlgmr.msra.gmra.mrb[104].mxu1 %v5421_v41 }
 0xc36   :  { %5958 = vmatprep.mubr.bf16.mxu1 %v5428_v57  ;;  %10189 = vmatpush3.bf16.msra.mxu1 %v11159_v1 }
 0xc37   :  { %10190 = vmatprep.subr.bf16.mxu1 %v11162_v5 }
 0xc3a   :  { %10191 = vmatpush3.bf16.msra.mxu1 %v11162_v5 }
 0xc3b   :  { %10192 = vmatprep.subr.bf16.mxu1 %v11165_v26 }
 0xc3d   :  { %5959 = vmatmul.mubr.bf16.gmra.mrb[108].mxu1 %v5427_v55 }
 0xc3e   :  { %10193 = vmatpush3.bf16.msra.mxu1 %v11165_v26 }
 0xc3f   :  { %10194 = vmatprep.subr.bf16.mxu1 %v11168_v6 }
 0xc42   :  { %10195 = vmatpush3.bf16.msra.mxu1 %v11168_v6 }
 0xc43   :  { %10196 = vmatprep.subr.bf16.mxu1 %v11171_v18 }
 0xc46   :  { %10197 = vmatpush3.bf16.msra.mxu1 %v11171_v18 }
 0xc47   :  { %10198 = vmatprep.subr.bf16.mxu1 %v11174_v14 }
 0xc4a   :  { %10199 = vmatpush3.bf16.msra.mxu1 %v11174_v14 }
 0xc4b   :  { %10200 = vmatprep.subr.bf16.mxu1 %v11176_v36 }
 0xc4e   :  { %10201 = vmatpush3.bf16.msra.mxu1 %v11176_v36 }
 0xc4f   :  { %10202 = vmatprep.subr.bf16.mxu1 %v11177_v34 }
 0xc52   :  { %10203 = vmatpush3.bf16.msra.mxu1 %v11177_v34 }
 0xcc8   :  { %v9866_v15 = vpop.f32.mrb[88].mxu1 }
 0xcc9   :  { %v9867_v39 = vpop.f32.mrb[89].mxu1 }
 0xcca   :  { %v9868_v45 = vadd.f32 %v9867_v39, %v9866_v15  ;;  %v9869_v24 = vpop.f32.mrb[90].mxu1 }
 0xccb   :  { %v9870_v56 = vpop.f32.mrb[91].mxu1 }
 0xccc   :  { %v9871_v0 = vadd.f32 %v9870_v56, %v9869_v24  ;;  %v5855_v4 = vadd.f32 %v9868_v45, %v9515_v2  ;;  %v6008_v45 = vld [vmem:[#allocation2 + $0x10] sm:$0x80] }
 0xcce   :  { %v5858_v23 = vadd.f32 %v9871_v0, %v9515_v2 }
 0xcd0   :  { %v9872_v27 = vpop.f32.mrb[92].mxu1 }
 0xcd1   :  { %v9873_v31 = vpop.f32.mrb[93].mxu1 }
 0xcd2   :  { %v9874_v44 = vadd.f32 %v9873_v31, %v9872_v27  ;;  %v9875_v12 = vpop.f32.mrb[94].mxu1 }
 0xcd3   :  { %v9876_v37 = vpop.f32.mrb[95].mxu1 }
 0xcd4   :  { %v9877_v21 = vadd.f32 %v9876_v37, %v9875_v12  ;;  %v5863_v57 = vadd.f32 %v9874_v44, %v9515_v2 }
 0xcd6   :  { %v5866_v51 = vadd.f32 %v9877_v21, %v9515_v2 }
 0xce8   :  { %v9894_v58 = vpop.f32.mrb[96].mxu1 }
 0xce9   :  { %v9895_v43 = vpop.f32.mrb[97].mxu1 }
 0xcea   :  { %v9896_v17 = vadd.f32 %v9895_v43, %v9894_v58  ;;  %v9897_v49 = vpop.f32.mrb[98].mxu1 }
 0xceb   :  { %v9898_v47 = vpop.f32.mrb[99].mxu1 }
 0xcec   :  { %v5904_v59 = vadd.f32 %v9896_v17, %v5855_v4  ;;  %v9899_v54 = vadd.f32 %v9898_v47, %v9897_v49  ;;  %v5995_v49 = vld [vmem:[#allocation2 + $0x90] sm:$0x1] }
 0xcee   :  { %v5907_v19 = vadd.f32 %v9899_v54, %v5858_v23 }
 0xcf0   :  { %v9900_v35 = vpop.f32.mrb[100].mxu1 }
 0xcf1   :  { %v9901_v41 = vpop.f32.mrb[101].mxu1 }
 0xcf2   :  { %v9902_v55 = vadd.f32 %v9901_v41, %v9900_v35  ;;  %v9903_v32 = vpop.f32.mrb[102].mxu1 }
 0xcf3   :  { %v9904_v29 = vpop.f32.mrb[103].mxu1 }
 0xcf4   :  { %v5912_v20 = vadd.f32 %v9902_v55, %v5863_v57  ;;  %v9905_v33 = vadd.f32 %v9904_v29, %v9903_v32 }
 0xcf6   :  { %v5915_v1 = vadd.f32 %v9905_v33, %v5866_v51 }
 0xd08   :  { %v9922_v16 = vpop.f32.mrb[104].mxu1 }
 0xd09   :  { %v9923_v25 = vpop.f32.mrb[105].mxu1 }
 0xd0a   :  { %v9924_v5 = vadd.f32 %v9923_v25, %v9922_v16  ;;  %v9925_v22 = vpop.f32.mrb[106].mxu1  ;;  %v6334_v25 = vld [vmem:[#allocation35] sm:$0xff] }
 0xd0b   :  { %v9926_v61 = vpop.f32.mrb[107].mxu1 }
 0xd0c   :  { %v5953_v26 = vadd.f32 %v9924_v5, %v5904_v59  ;;  %v9927_v38 = vadd.f32 %v9926_v61, %v9925_v22  ;;  %v11178_v5 = vld [vmem:[#allocation20 + $0x40] sm:$0xff]  }
 0xd0d   :  { %v11179_v22 = vld [vmem:[#allocation20] sm:$0xff]   ;;  %9978 = vmatprep.subr.bf16.mxu0 %v11178_v5  ;;  %v11197_v5 = vld [vmem:[#allocation20 + $0x30] sm:$0xff]  }
 0xd0e   :  { %v5956_v13 = vadd.f32 %v9927_v38, %v5907_v19  ;;  %v5967_v6 = vmax.f32 %v5953_v26, 0.0 }
 0xd10   :  { %v5968_v28 = vmax.f32 %v5956_v13, 0.0  ;;  %v9928_v8 = vpop.f32.mrb[108].mxu1 }
 0xd11   :  { %v9929_v18 = vpop.f32.mrb[109].mxu1 }
 0xd12   :  { %v5971_v53 = vpack.c.bf16 %v5968_v28, %v5967_v6  ;;  %v9930_v9 = vadd.f32 %v9929_v18, %v9928_v8  ;;  %v9931_v14 = vpop.f32.mrb[110].mxu1  ;;  %v9564_v8 = vld [vmem:[#allocation18] ss:$0 sm:$0xff] }
 0xd13   :  { %v9932_v40 = vpop.f32.mrb[111].mxu1 }
 0xd14   :  { %v5974_v36 = vshrl.u32 %v5971_v53, 16  ;;  %v5977_v34 = vshll.u32 %v5971_v53, 16  ;;  %v5961_v15 = vadd.f32 %v9930_v9, %v5912_v20  ;;  %v9933_v39 = vadd.f32 %v9932_v40, %v9931_v14  ;;  %6264 = vmatprep.mubr.bf16.mxu0 %v5971_v53 }
 0xd16   :  { %v5976_v24 = vrot.slane %v5974_v36, 7  ;;  %v6000_v56 = vrot.slane %v5977_v34, 1  ;;  %v5964_v0 = vadd.f32 %v9933_v39, %v5915_v1  ;;  %v5969_v44 = vmax.f32 %v5961_v15, 0.0 }
 0xd18   :  { %v5979_v27 = vor.u32 %v5977_v34, %v5976_v24  ;;  %v6009_v31 = vsel %vm12649_vm11, %v6000_v56, %v6008_v45  ;;  %v5970_v12 = vmax.f32 %v5964_v0, 0.0  ;;  %v6001_v43 = vor.u32 %v6000_v56, %v5974_v36 }
 0xd19   :  { %6010 = vst [vmem:[#allocation2 + $0x10] sm:$0x80] %v6009_v31 }
 0xd1a   :  { %v5992_v37 = vsel %vm12661_vm12, %v5979_v27, %v13504_v10  ;;  %v5972_v21 = vpack.c.bf16 %v5970_v12, %v5969_v44 }
 0xd1b   :  { %5993 = vst [vmem:[#allocation2 + $0x30] sm:$0xff] %v5992_v37 }
 0xd1c   :  { %v5981_v2 = vshrl.u32 %v5972_v21, 16  ;;  %v5984_v58 = vshll.u32 %v5972_v21, 16  ;;  %5999 = vst [vmem:[#allocation2 + $0x68] sm:$0xff] %v5972_v21 }
 0xd1e   :  { %v5983_v4 = vrot.slane %v5981_v2, 7  ;;  %v6002_v17 = vrot.slane %v5984_v58, 1 }
 0xd20   :  { %v5986_v47 = vor.u32 %v5984_v58, %v5983_v4  ;;  %v5996_v23 = vsel %vm12695_vm13, %v5983_v4, %v5995_v49  ;;  %v6003_v59 = vsel %vm1351_vm5, %v6001_v43, %v6002_v17  ;;  %v6004_v54 = vor.u32 %v6002_v17, %v5981_v2  ;;  %v6335_v49 = vld [vmem:[#allocation35 + $0x8] sm:$0xff] }
 0xd21   :  { %5997 = vst [vmem:[#allocation2 + $0x90] sm:$0x1] %v5996_v23  ;;  %6011 = vst [vmem:[#allocation2 + $0x40] sm:$0xff] %v6003_v59  ;;  %v11181_v23 = vld [vmem:[#allocation20 + $0x48] sm:$0xff]   ;;  %vm11988_vm5 = vmmov 0  }
 0xd22   :  { %v6015_v19 = vld [vmem:[#allocation2 + $0x30] sm:$0x1]  ;;  %v5987_v10 = vsel %vm13954_vm7, %v5976_v24, %v5986_v47  ;;  %v6013_v35 = vsel %vm12898_vm14, %v6004_v54, %v13463_v52  ;;  %v11182_v59 = vld [vmem:[#allocation20 + $0x8] sm:$0xff]   ;;  %vm7180_vm7 = vcmask 1041409  }
 0xd23   :  { %v6016_v41 = vsel %vm12695_vm13, 0, %v6015_v19  ;;  %5994 = vst [vmem:[#allocation2 + $0x60] sm:$0xff] %v5987_v10  ;;  %6014 = vst [vmem:[#allocation2 + $0x70] sm:$0xff] %v6013_v35  ;;  %v11180_v47 = vld [vmem:[#allocation20 + $0x80] sm:$0xff]   ;;  %v11183_v54 = vld [vmem:[#allocation20 + $0x88] sm:$0xff]  }
 0xd24   :  { %6017 = vst [vmem:[#allocation2 + $0x30] sm:$0x1] %v6016_v41  ;;  %v11184_v19 = vld [vmem:[#allocation20 + $0x50] sm:$0xff]   ;;  %v11187_v41 = vld [vmem:[#allocation20 + $0x58] sm:$0xff]  }
 0xd25   :  { %v11185_v10 = vld [vmem:[#allocation20 + $0x10] sm:$0xff]  }
 0xd26   :  { %v11186_v35 = vld [vmem:[#allocation20 + $0x90] sm:$0xff]  }
 0xd28   :  { %v6018_v57 = vld [vmem:[#allocation2 + $0x40] sm:$0x80] }
 0xd29   :  { %v6019_v55 = vsel %vm12649_vm11, 0, %v6018_v57  ;;  %v11188_v57 = vld [vmem:[#allocation20 + $0x18] sm:$0xff]  }
 0xd2a   :  { %6020 = vst [vmem:[#allocation2 + $0x40] sm:$0x80] %v6019_v55  ;;  %v6021_v32 = vld [vmem:[#allocation2 + $0x60] sm:$0x1]  ;;  %v6024_v29 = vld [vmem:[#allocation2 + $0x70] sm:$0x80] }
 0xd2b   :  { %v6022_v51 = vsel %vm12695_vm13, 0, %v6021_v32  ;;  %v6025_v20 = vsel %vm12649_vm11, 0, %v6024_v29  ;;  %v13555_v52 = vld [vmem:[#allocation2 + $0x30] sm:$0xff]  ;;  %v11189_v55 = vld [vmem:[#allocation20 + $0x98] sm:$0xff]  }
 0xd2c   :  { %6023 = vst [vmem:[#allocation2 + $0x60] sm:$0x1] %v6022_v51  ;;  %6026 = vst [vmem:[#allocation2 + $0x70] sm:$0x80] %v6025_v20  ;;  %6265 = vmatmul.mubr.bf16.vlgmr.msra.gmra.mrb[80].mxu0 %v13555_v52  ;;  %v11190_v32 = vld [vmem:[#allocation20 + $0x60] sm:$0xff]   ;;  %v11193_v20 = vld [vmem:[#allocation20 + $0x68] sm:$0xff]  }
 0xd2d   :  { %6272 = vmatprep.mubr.bf16.mxu0 %v5972_v21  ;;  %9979 = vmatpush3.bf16.msra.mxu0 %v11179_v22  ;;  %v11191_v29 = vld [vmem:[#allocation20 + $0x20] sm:$0xff]   ;;  %v11198_v22 = vld [vmem:[#allocation20 + $0xb0] sm:$0xff]  }
 0xd2e   :  { %9980 = vmatprep.subr.bf16.mxu0 %v11181_v23  ;;  %v11192_v51 = vld [vmem:[#allocation20 + $0xa0] sm:$0xff]   ;;  %v11207_v23 = vld [vmem:[#allocation23 + $0x88] sm:$0xff]  }
 0xd31   :  { %v13558_v33 = vld [vmem:[#allocation2 + $0x40] sm:$0xff]  ;;  %9981 = vmatpush3.bf16.msra.mxu0 %v11182_v59 }
 0xd32   :  { %10204 = vmatprep.mubr.bf16.mxu1 %v13558_v33  ;;  %9982 = vmatprep.subr.bf16.mxu0 %v11184_v19  ;;  %v11208_v59 = vld [vmem:[#allocation23 + $0x50] sm:$0xff]  }
 0xd33   :  { %v6030_v1 = vld [vmem:[#allocation2 + $0x60] sm:$0xff]  ;;  %v6032_v16 = vld [vmem:[#allocation2 + $0x70] sm:$0xff] }
 0xd34   :  { %6273 = vmatmul.mubr.bf16.gmra.mrb[84].mxu0 %v6030_v1  ;;  %10205 = vmatmul.mubr.bf16.vlgmr.msra.gmra.mrb[112].mxu1 %v6032_v16  ;;  %v11194_v1 = vld [vmem:[#allocation20 + $0x28] sm:$0xff]   ;;  %v11210_v19 = vld [vmem:[#allocation23 + $0x90] sm:$0xff]  }
 0xd35   :  { %10216 = vmatprep.mubr.msk.f32.mxu1 %vm1291_vm6, %v6334_v25  ;;  %9983 = vmatpush3.bf16.msra.mxu0 %v11185_v10  ;;  %v11195_v16 = vld [vmem:[#allocation20 + $0xa8] sm:$0xff]   ;;  %v11196_v25 = vld [vmem:[#allocation20 + $0x70] sm:$0xff]   ;;  %v11211_v10 = vld [vmem:[#allocation23 + $0x58] sm:$0xff]  }
 0xd36   :  { %9984 = vmatprep.subr.bf16.mxu0 %v11187_v41  ;;  %v11213_v41 = vld [vmem:[#allocation23 + $0x98] sm:$0xff]  }
 0xd39   :  { %9985 = vmatpush3.bf16.msra.mxu0 %v11188_v57  ;;  %v11214_v57 = vld [vmem:[#allocation23 + $0x60] sm:$0xff]  }
 0xd3a   :  { %9986 = vmatprep.subr.bf16.mxu0 %v11190_v32  ;;  %v11216_v32 = vld [vmem:[#allocation23 + $0xa0] sm:$0xff]  }
 0xd3d   :  { %9987 = vmatpush3.bf16.msra.mxu0 %v11191_v29  ;;  %v11217_v29 = vld [vmem:[#allocation23 + $0x68] sm:$0xff]  }
 0xd3e   :  { %9988 = vmatprep.subr.bf16.mxu0 %v11193_v20  ;;  %v11219_v20 = vld [vmem:[#allocation23 + $0xa8] sm:$0xff]  }
 0xd41   :  { %9989 = vmatpush3.bf16.msra.mxu0 %v11194_v1  ;;  %v11220_v1 = vld [vmem:[#allocation23 + $0x70] sm:$0xff]  }
 0xd42   :  { %9990 = vmatprep.subr.bf16.mxu0 %v11196_v25  ;;  %v11222_v25 = vld [vmem:[#allocation23 + $0xb0] sm:$0xff]  }
 0xd45   :  { %9991 = vmatpush3.bf16.msra.mxu0 %v11197_v5  ;;  %v11223_v5 = vld [vmem:[#allocation23 + $0x78] sm:$0xff]  }
 0xdff   :  { %v9950_v61 = vpop.f32.mrb[80].mxu0 }
 0xe00   :  { %v9951_v26 = vpop.f32.mrb[81].mxu0 }
 0xe01   :  { %v9952_v38 = vadd.f32 %v9951_v26, %v9950_v61  ;;  %v9953_v13 = vpop.f32.mrb[82].mxu0  ;;  %v11199_v61 = vld [vmem:[#allocation20 + $0x78] sm:$0xff]  }
 0xe02   :  { %v9954_v6 = vpop.f32.mrb[83].mxu0  ;;  %v11200_v26 = vld [vmem:[#allocation20 + $0x38] sm:$0xff]   ;;  %9992 = vmatprep.subr.bf16.mxu0 %v11199_v61 }
 0xe03   :  { %v9955_v28 = vadd.f32 %v9954_v6, %v9953_v13  ;;  %v6267_v9 = vadd.f32 %v9952_v38, %v9564_v8  ;;  %v11201_v38 = vld [vmem:[#allocation20 + $0xb8] sm:$0xff]   ;;  %9993 = vmatpush3.bf16.msra.mxu0 %v11200_v26 }
 0xe04   :  { %v11225_v61 = vld [vmem:[#allocation23 + $0xb8] sm:$0xff]  }
 0xe05   :  { %v6270_v45 = vadd.f32 %v9955_v28, %v9564_v8 }
 0xe07   :  { %v9956_v18 = vpop.f32.mrb[84].mxu0  ;;  %v10206_v53 = vpop.f32.mrb[112].mxu1 }
 0xe08   :  { %v9957_v14 = vpop.f32.mrb[85].mxu0  ;;  %v6315_v40 = vpop.f32.mrb[113].mxu1 }
 0xe09   :  { %v9958_v36 = vadd.f32 %v9957_v14, %v9956_v18  ;;  %v6316_v34 = vadd.f32 %v6315_v40, %v6267_v9  ;;  %v9959_v15 = vpop.f32.mrb[86].mxu0  ;;  %v10207_v39 = vpop.f32.mrb[114].mxu1  ;;  %v6430_v14 = vld [vmem:[#allocation2 + $0x60] sm:$0x1]  ;;  %v6438_v40 = vld [vmem:[#allocation2 + $0x10] sm:$0x80] }
 0xe0a   :  { %v9960_v24 = vpop.f32.mrb[87].mxu0  ;;  %v6318_v56 = vpop.f32.mrb[115].mxu1 }
 0xe0b   :  { %v6275_v0 = vadd.f32 %v9958_v36, %v9564_v8  ;;  %v9961_v27 = vadd.f32 %v9960_v24, %v9959_v15  ;;  %v6319_v31 = vadd.f32 %v6318_v56, %v6270_v45  ;;  %v6330_v12 = vmax.f32 %v6316_v34, 0.0 }
 0xe0c   :  { %v11989_v56 = vmov 0.0|0.0  }
 0xe0d   :  { %v6324_v44 = vadd.f32 %v10206_v53, %v6275_v0  ;;  %v6278_v37 = vadd.f32 %v9961_v27, %v9564_v8  ;;  %v6331_v21 = vmax.f32 %v6319_v31, 0.0  ;;  %v11252_v0 = vld [vmem:[%s14015_s22 + $0x10] sm:$0xff]  }
 0xe0f   :  { %v6327_v2 = vadd.f32 %v10207_v39, %v6278_v37  ;;  %v10379_v58 = vpack.c.bf16 %v6331_v21, %v6330_v12  ;;  %v6332_v43 = vmax.f32 %v6324_v44, 0.0 }
 0xe11   :  { %v6333_v4 = vmax.f32 %v6327_v2, 0.0  ;;  %10380 = vmatprep.subr.bf16.mxu1 %v10379_v58 }
 0xe12   :  { %10382 = vmatpush3.bf16.msra.mxu1 %v10379_v58 }
 0xe13   :  { %v10383_v17 = vpack.c.bf16 %v6333_v4, %v6332_v43  ;;  %v11202_v43 = vld [vmem:[#allocation23 + $0x40] sm:$0xff]  }
 0xe14   :  { %v11203_v4 = vld [vmem:[#allocation23] sm:$0xff]   ;;  %10009 = vmatprep.subr.bf16.mxu0 %v11202_v43 }
 0xe15   :  { %10384 = vmatprep.subr.bf16.mxu1 %v10383_v17 }
 0xe16   :  { %10386 = vmatpush3.bf16.msra.mxu1 %v10383_v17  ;;  %v11204_v17 = vld [vmem:[#allocation23 + $0x80] sm:$0xff]  }
 0xe17   :  { %10219 = vmatprep.subr.bf16.mxu1 %v11987_v7 }
 0xe19   :  { %10217 = vmatmul.mubr.msk.f32.vlgmr.msra.gmra.mrb[116].mxu1 %vm1291_vm6, %v6335_v49  ;;  %vm6453_vm6 = vcmask 1044484   ;;  %v11205_v49 = vld [vmem:[#allocation23 + $0x48] sm:$0xff]  }
 0xe1a   :  { %10220 = vmatpush3.bf16.msra.mxu1 %v11180_v47  ;;  %10235 = vmatprep.mubr.msk.bf16.mxu1 %vm11988_vm5, %v11987_v7  ;;  %vm13584_vm2 = vmand %vm6453_vm6, %vm6454_vm8  ;;  %v11206_v47 = vld [vmem:[#allocation23 + $0x8] sm:$0xff]   ;;  %vm7171_vm6 = vcmask 1043456   ;;  %vm13957_vm8 = vsmask.f32 3328 }
 0xe1b   :  { %10221 = vmatprep.subr.bf16.mxu1 %v11987_v7 }
 0xe1e   :  { %10222 = vmatpush3.bf16.msra.mxu1 %v11183_v54  ;;  %v11209_v54 = vld [vmem:[#allocation23 + $0x10] sm:$0xff]  }
 0xe1f   :  { %10223 = vmatprep.subr.bf16.mxu1 %v11987_v7 }
 0xe22   :  { %10224 = vmatpush3.bf16.msra.mxu1 %v11186_v35  ;;  %v11212_v35 = vld [vmem:[#allocation23 + $0x18] sm:$0xff]  }
 0xe23   :  { %10225 = vmatprep.subr.bf16.mxu1 %v11987_v7 }
 0xe26   :  { %10226 = vmatpush3.bf16.msra.mxu1 %v11189_v55  ;;  %v11215_v55 = vld [vmem:[#allocation23 + $0x20] sm:$0xff]  }
 0xe27   :  { %10227 = vmatprep.subr.bf16.mxu1 %v11987_v7 }
 0xe2a   :  { %10228 = vmatpush3.bf16.msra.mxu1 %v11192_v51  ;;  %v11218_v51 = vld [vmem:[#allocation23 + $0x28] sm:$0xff]  }
 0xe2b   :  { %10229 = vmatprep.subr.bf16.mxu1 %v11987_v7 }
 0xe2e   :  { %10230 = vmatpush3.bf16.msra.mxu1 %v11195_v16  ;;  %v11221_v16 = vld [vmem:[#allocation23 + $0x30] sm:$0xff]  }
 0xe2f   :  { %10231 = vmatprep.subr.bf16.mxu1 %v11987_v7 }
 0xe32   :  { %10232 = vmatpush3.bf16.msra.mxu1 %v11198_v22  ;;  %v11224_v22 = vld [vmem:[#allocation23 + $0x38] sm:$0xff]  }
 0xe33   :  { %10233 = vmatprep.subr.bf16.mxu1 %v11987_v7 }
 0xe36   :  { %10234 = vmatpush3.bf16.msra.mxu1 %v11201_v38 }
 0xe37   :  { %10239 = vmatprep.subr.bf16.mxu1 %v11987_v7 }
 0xeec   :  { %v10218_v13 = vpop.f32.mrb[116].mxu1 }
 0xeed   :  { %v6408_v6 = vpop.f32.mrb[117].mxu1 }
 0xeee   :  { %v6417_v28 = vpack.c.bf16 %v10218_v13, %v6408_v6  ;;  %v9591_v13 = vld [vmem:[#allocation21] ss:$0 sm:$0xff] }
 0xef0   :  { %v6419_v8 = vshrl.u32 %v6417_v28, 16  ;;  %v6422_v18 = vshll.u32 %v6417_v28, 16  ;;  %6696 = vmatprep.mubr.bf16.mxu0 %v6417_v28 }
 0xef2   :  { %v6421_v53 = vrot.slane %v6419_v8, 7  ;;  %v6434_v9 = vrot.slane %v6422_v18, 1 }
 0xef4   :  { %v6424_v36 = vor.u32 %v6422_v18, %v6421_v53  ;;  %v6431_v34 = vsel %vm12695_vm13, %v6421_v53, %v6430_v14  ;;  %v6435_v15 = vor.u32 %v6434_v9, %v6419_v8  ;;  %v6439_v39 = vsel %vm12649_vm11, %v6434_v9, %v6438_v40 }
 0xef5   :  { %6432 = vst [vmem:[#allocation2 + $0x60] sm:$0x1] %v6431_v34  ;;  %6440 = vst [vmem:[#allocation2 + $0x10] sm:$0x80] %v6439_v39 }
 0xef6   :  { %v6428_v45 = vsel %vm12661_vm12, %v6424_v36, %v13555_v52  ;;  %v6442_v24 = vsel %vm12898_vm14, %v6435_v15, %v13558_v33 }
 0xef7   :  { %6429 = vst [vmem:[#allocation2 + $0x30] sm:$0xff] %v6428_v45  ;;  %6443 = vst [vmem:[#allocation2 + $0x40] sm:$0xff] %v6442_v24 }
 0xefe   :  { %v6444_v52 = vld [vmem:[#allocation2 + $0x30] sm:$0x1]  ;;  %v6456_v27 = vld [vmem:[#allocation2 + $0x30] sm:$0x10]  ;;  %v6450_v31 = vld [vmem:[#allocation2 + $0x40] sm:$0x8] }
 0xeff   :  { %v6445_v33 = vsel %vm12695_vm13, 0, %v6444_v52  ;;  %v6457_v44 = vsel %vm13584_vm2, 0, %v6456_v27  ;;  %v6451_v12 = vsel %vm13589_vm3, 0, %v6450_v31  ;;  %v6459_v37 = vld [vmem:[#allocation2 + $0x40] sm:$0x80] }
 0xf00   :  { %6446 = vst [vmem:[#allocation2 + $0x30] sm:$0x1] %v6445_v33  ;;  %6458 = vst [vmem:[#allocation2 + $0x30] sm:$0x10] %v6457_v44  ;;  %v6460_v21 = vsel %vm12649_vm11, 0, %v6459_v37 }
 0xf01   :  { %6452 = vst [vmem:[#allocation2 + $0x40] sm:$0x8] %v6451_v12  ;;  %6461 = vst [vmem:[#allocation2 + $0x40] sm:$0x80] %v6460_v21  ;;  %v6761_v12 = vld [vmem:[#allocation2 + $0x60] sm:$0x1] }
 0xf02   :  { %v6769_v37 = vld [vmem:[#allocation2 + $0x10] sm:$0x80] }
 0xf07   :  { %v13601_v2 = vld [vmem:[#allocation2 + $0x30] sm:$0xff] }
 0xf08   :  { %6697 = vmatmul.mubr.bf16.vlgmr.msra.gmra.mrb[88].mxu0 %v13601_v2  ;;  %v13604_v58 = vld [vmem:[#allocation2 + $0x40] sm:$0xff] }
 0xf09   :  { %10236 = vmatmul.mubr.bf16.vlgmr.msra.gmra.mrb[120].mxu1 %v13604_v58  ;;  %10010 = vmatpush3.bf16.msra.mxu0 %v11203_v4 }
 0xf0a   :  { %10255 = vmatprep.mubr.msk.bf16.mxu1 %vm11988_vm5, %v11987_v7  ;;  %10240 = vmatpush3.bf16.msra.mxu1 %v11204_v17 }
 0xf0b   :  { %10241 = vmatprep.subr.bf16.mxu1 %v11987_v7  ;;  %10011 = vmatprep.subr.bf16.mxu0 %v11205_v49 }
 0xf0d   :  { %10012 = vmatpush3.bf16.msra.mxu0 %v11206_v47 }
 0xf0e   :  { %10242 = vmatpush3.bf16.msra.mxu1 %v11207_v23  ;;  %10013 = vmatprep.subr.bf16.mxu0 %v11208_v59 }
 0xf0f   :  { %10243 = vmatprep.subr.bf16.mxu1 %v11987_v7 }
 0xf11   :  { %10014 = vmatpush3.bf16.msra.mxu0 %v11209_v54 }
 0xf12   :  { %10244 = vmatpush3.bf16.msra.mxu1 %v11210_v19  ;;  %10015 = vmatprep.subr.bf16.mxu0 %v11211_v10 }
 0xf13   :  { %10245 = vmatprep.subr.bf16.mxu1 %v11987_v7 }
 0xf15   :  { %10016 = vmatpush3.bf16.msra.mxu0 %v11212_v35 }
 0xf16   :  { %10246 = vmatpush3.bf16.msra.mxu1 %v11213_v41  ;;  %10017 = vmatprep.subr.bf16.mxu0 %v11214_v57  ;;  %v11228_v41 = vld [vmem:[%s14013_s18 + $0x80] sm:$0xff]  }
 0xf17   :  { %10247 = vmatprep.subr.bf16.mxu1 %v11987_v7 }
 0xf19   :  { %10018 = vmatpush3.bf16.msra.mxu0 %v11215_v55 }
 0xf1a   :  { %10248 = vmatpush3.bf16.msra.mxu1 %v11216_v32  ;;  %10019 = vmatprep.subr.bf16.mxu0 %v11217_v29  ;;  %v9616_v32 = vld [vmem:[#allocation24] ss:$0 sm:$0xff] }
 0xf1b   :  { %10249 = vmatprep.subr.bf16.mxu1 %v11987_v7 }
 0xf1d   :  { %10020 = vmatpush3.bf16.msra.mxu0 %v11218_v51 }
 0xf1e   :  { %10250 = vmatpush3.bf16.msra.mxu1 %v11219_v20  ;;  %10021 = vmatprep.subr.bf16.mxu0 %v11220_v1 }
 0xf1f   :  { %10251 = vmatprep.subr.bf16.mxu1 %v11987_v7 }
 0xf21   :  { %10022 = vmatpush3.bf16.msra.mxu0 %v11221_v16 }
 0xf22   :  { %10252 = vmatpush3.bf16.msra.mxu1 %v11222_v25  ;;  %10023 = vmatprep.subr.bf16.mxu0 %v11223_v5 }
 0xf23   :  { %10253 = vmatprep.subr.bf16.mxu1 %v11987_v7 }
 0xf25   :  { %10024 = vmatpush3.bf16.msra.mxu0 %v11224_v22 }
 0xf26   :  { %10254 = vmatpush3.bf16.msra.mxu1 %v11225_v61  ;;  %10387 = vmatprep.subr.bf16.mxu0 %v11989_v56 }
 0xf27   :  { %10266 = vmatprep.subr.bf16.mxu1 %v11987_v7 }
 0xfdb   :  { %v9994_v26 = vpop.f32.mrb[88].mxu0 }
 0xfdc   :  { %v6739_v38 = vpop.f32.mrb[120].mxu1  ;;  %v9995_v6 = vpop.f32.mrb[89].mxu0 }
 0xfdd   :  { %v9996_v28 = vadd.f32 %v9995_v6, %v9994_v26  ;;  %v10237_v8 = vpop.f32.mrb[121].mxu1  ;;  %v9997_v18 = vpop.f32.mrb[90].mxu0 }
 0xfde   :  { %v6742_v53 = vpop.f32.mrb[122].mxu1  ;;  %v9998_v9 = vpop.f32.mrb[91].mxu0  ;;  %v11226_v8 = vld [vmem:[%s14013_s18 + $0x40] sm:$0xff]  }
 0xfdf   :  { %v6699_v14 = vadd.f32 %v9996_v28, %v9591_v13  ;;  %v9999_v40 = vadd.f32 %v9998_v9, %v9997_v18  ;;  %v10238_v36 = vpop.f32.mrb[123].mxu1  ;;  %v11227_v9 = vld [vmem:[%s14013_s18] sm:$0xff]  }
 0xfe0   :  { %v11231_v36 = vld [vmem:[%s14013_s18 + $0x88] sm:$0xff]  }
 0xfe1   :  { %v6740_v34 = vadd.f32 %v6739_v38, %v6699_v14  ;;  %v6702_v15 = vadd.f32 %v9999_v40, %v9591_v13  ;;  %v11229_v14 = vld [vmem:[%s14013_s18 + $0x48] sm:$0xff]  }
 0xfe2   :  { %v11230_v40 = vld [vmem:[%s14013_s18 + $0x8] sm:$0xff]  }
 0xfe3   :  { %v6743_v39 = vadd.f32 %v6742_v53, %v6702_v15  ;;  %v6746_v45 = vmax.f32 %v6740_v34, 0.0  ;;  %v7073_v53 = vld [vmem:[#allocation36] sm:$0xff]  ;;  %v11232_v34 = vld [vmem:[%s14013_s18 + $0x50] sm:$0xff]  }
 0xfe4   :  { %v11233_v15 = vld [vmem:[%s14013_s18 + $0x10] sm:$0xff]  }
 0xfe5   :  { %v6747_v24 = vmax.f32 %v6743_v39, 0.0  ;;  %v11234_v39 = vld [vmem:[%s14013_s18 + $0x90] sm:$0xff]  }
 0xfe7   :  { %v6748_v52 = vpack.c.bf16 %v6747_v24, %v6746_v45  ;;  %v11235_v45 = vld [vmem:[%s14013_s18 + $0x58] sm:$0xff]  }
 0xfe8   :  { %v11236_v24 = vld [vmem:[%s14013_s18 + $0x18] sm:$0xff]  }
 0xfe9   :  { %v6750_v27 = vshrl.u32 %v6748_v52, 16  ;;  %v6753_v31 = vshll.u32 %v6748_v52, 16  ;;  %6764 = vst [vmem:[#allocation2 + $0x38] sm:$0xff] %v6748_v52  ;;  %7021 = vmatprep.mubr.bf16.mxu0 %v6748_v52  ;;  %v11237_v52 = vld [vmem:[%s14013_s18 + $0x98] sm:$0xff]  }
 0xfeb   :  { %v6752_v33 = vrot.slane %v6750_v27, 7  ;;  %v6765_v44 = vrot.slane %v6753_v31, 1 }
 0xfed   :  { %v6755_v21 = vor.u32 %v6753_v31, %v6752_v33  ;;  %v6762_v43 = vsel %vm12695_vm13, %v6752_v33, %v6761_v12  ;;  %v6766_v4 = vor.u32 %v6765_v44, %v6750_v27  ;;  %v6770_v17 = vsel %vm12649_vm11, %v6765_v44, %v6769_v37  ;;  %v11238_v27 = vld [vmem:[%s14013_s18 + $0x60] sm:$0xff]   ;;  %v11241_v44 = vld [vmem:[%s14013_s18 + $0x68] sm:$0xff]  }
 0xfee   :  { %6763 = vst [vmem:[#allocation2 + $0x60] sm:$0x1] %v6762_v43  ;;  %6771 = vst [vmem:[#allocation2 + $0x10] sm:$0x80] %v6770_v17  ;;  %v11239_v31 = vld [vmem:[%s14013_s18 + $0x20] sm:$0xff]   ;;  %v11242_v12 = vld [vmem:[%s14013_s18 + $0x28] sm:$0xff]  }
 0xfef   :  { %v6759_v49 = vsel %vm12661_vm12, %v6755_v21, %v13601_v2  ;;  %v6773_v47 = vsel %vm12898_vm14, %v6766_v4, %v13604_v58  ;;  %vm7074_vm12 = vcmask 130048   ;;  %v11240_v33 = vld [vmem:[%s14013_s18 + $0xa0] sm:$0xff]   ;;  %v11243_v37 = vld [vmem:[%s14013_s18 + $0xa8] sm:$0xff]   ;;  %v11244_v21 = vld [vmem:[%s14013_s18 + $0x70] sm:$0xff]   ;;  %vm7158_vm14 = vsmask.f32 4354 }
 0xff0   :  { %6760 = vst [vmem:[#allocation2 + $0x30] sm:$0xff] %v6759_v49  ;;  %6774 = vst [vmem:[#allocation2 + $0x40] sm:$0xff] %v6773_v47  ;;  %v11245_v43 = vld [vmem:[%s14013_s18 + $0x30] sm:$0xff]   ;;  %v11247_v17 = vld [vmem:[%s14013_s18 + $0x78] sm:$0xff]  }
 0xff1   :  { %v11246_v4 = vld [vmem:[%s14013_s18 + $0xb0] sm:$0xff]   ;;  %v11248_v49 = vld [vmem:[%s14013_s18 + $0x38] sm:$0xff]  }
 0xff2   :  { %v11249_v47 = vld [vmem:[%s14013_s18 + $0xb8] sm:$0xff]  }
 0xff7   :  { %v6775_v23 = vld [vmem:[#allocation2 + $0x30] sm:$0x1]  ;;  %v6781_v59 = vld [vmem:[#allocation2 + $0x30] sm:$0x10]  ;;  %v6778_v54 = vld [vmem:[#allocation2 + $0x40] sm:$0x8] }
 0xff8   :  { %v6776_v19 = vsel %vm12695_vm13, 0, %v6775_v23  ;;  %v6782_v10 = vsel %vm13584_vm2, 0, %v6781_v59  ;;  %v6779_v30 = vsel %vm13589_vm3, 0, %v6778_v54  ;;  %v6784_v2 = vld [vmem:[#allocation2 + $0x40] sm:$0x80]  ;;  %v14014_v23 = vmov 0  }
 0xff9   :  { %6777 = vst [vmem:[#allocation2 + $0x30] sm:$0x1] %v6776_v19  ;;  %6783 = vst [vmem:[#allocation2 + $0x30] sm:$0x10] %v6782_v10  ;;  %v6785_v63 = vsel %vm12649_vm11, 0, %v6784_v2  ;;  %vm7157_vm2 = vcmask 1044480  }
 0xffa   :  { %6780 = vst [vmem:[#allocation2 + $0x40] sm:$0x8] %v6779_v30  ;;  %6786 = vst [vmem:[#allocation2 + $0x40] sm:$0x80] %v6785_v63 }
 0xffb   :  { %vm7159_vm9 = vmand %vm7157_vm2, %vm7158_vm14  ;;  %vm7186_vm2 = vcmask 1042434  }
0x1000   :  { %v6787_v58 = vld [vmem:[#allocation2 + $0x30] sm:$0xff] }
0x1001   :  { %7022 = vmatmul.mubr.bf16.vlgmr.msra.gmra.mrb[92].mxu0 %v6787_v58  ;;  %v6789_v35 = vld [vmem:[#allocation2 + $0x40] sm:$0xff]  ;;  %v7168_v58 = vld [vmem:[#allocation2 + $0x10] sm:$0x80] }
0x1002   :  { %10256 = vmatmul.mubr.bf16.vlgmr.msra.gmra.mrb[124].mxu1 %v6789_v35  ;;  %10263 = vmatprep.mubr.msk.f32.mxu0 %vm11988_vm5, %v11987_v7 }
0x1003   :  { %10282 = vmatprep.mubr.msk.bf16.mxu1 %vm11988_vm5, %v11987_v7  ;;  %10267 = vmatpush3.bf16.msra.mxu1 %v11228_v41 }
0x1004   :  { %10268 = vmatprep.subr.bf16.mxu1 %v11987_v7 }
0x1007   :  { %10269 = vmatpush3.bf16.msra.mxu1 %v11231_v36 }
0x1008   :  { %10270 = vmatprep.subr.bf16.mxu1 %v11987_v7 }
0x100b   :  { %10271 = vmatpush3.bf16.msra.mxu1 %v11234_v39 }
0x100c   :  { %10272 = vmatprep.subr.bf16.mxu1 %v11987_v7 }
0x100f   :  { %10273 = vmatpush3.bf16.msra.mxu1 %v11237_v52 }
0x1010   :  { %10274 = vmatprep.subr.bf16.mxu1 %v11987_v7 }
0x1013   :  { %10275 = vmatpush3.bf16.msra.mxu1 %v11240_v33  ;;  %v11258_v33 = vld [vmem:[%s14015_s22 + $0x40] sm:$0xff]  }
0x1014   :  { %10276 = vmatprep.subr.bf16.mxu1 %v11987_v7 }
0x1017   :  { %10277 = vmatpush3.bf16.msra.mxu1 %v11243_v37 }
0x1018   :  { %10278 = vmatprep.subr.bf16.mxu1 %v11987_v7 }
0x101b   :  { %10279 = vmatpush3.bf16.msra.mxu1 %v11246_v4  ;;  %v7504_v4 = vld [vmem:[#allocation2 + $0x8] sm:$0x80] }
0x101c   :  { %10280 = vmatprep.subr.bf16.mxu1 %v11987_v7 }
0x101f   :  { %10281 = vmatpush3.bf16.msra.mxu1 %v11249_v47 }
0x1020   :  { %10286 = vmatprep.subr.mxu1 %v11987_v7 }
0x10d4   :  { %v10025_v57 = vpop.f32.mrb[92].mxu0 }
0x10d5   :  { %v7064_v55 = vpop.f32.mrb[124].mxu1  ;;  %v10026_v29 = vpop.f32.mrb[93].mxu0 }
0x10d6   :  { %v10027_v51 = vadd.f32 %v10026_v29, %v10025_v57  ;;  %v10257_v20 = vpop.f32.mrb[125].mxu1  ;;  %v10028_v1 = vpop.f32.mrb[94].mxu0  ;;  %v7160_v57 = vld [vmem:[#allocation2 + $0x30] sm:$0x1f] }
0x10d7   :  { %v7067_v16 = vpop.f32.mrb[126].mxu1  ;;  %v10029_v25 = vpop.f32.mrb[95].mxu0 }
0x10d8   :  { %v7024_v5 = vadd.f32 %v10027_v51, %v9616_v32  ;;  %v10030_v22 = vadd.f32 %v10029_v25, %v10028_v1  ;;  %v10258_v61 = vpop.f32.mrb[127].mxu1 }
0x10da   :  { %v7065_v26 = vadd.f32 %v7064_v55, %v7024_v5  ;;  %v7027_v38 = vadd.f32 %v10030_v22, %v9616_v32  ;;  %v7174_v55 = vld [vmem:[#allocation2 + $0x40] sm:$0xf] }
0x10dc   :  { %v7068_v13 = vadd.f32 %v7067_v16, %v7027_v38  ;;  %v7071_v6 = vmax.f32 %v7065_v26, 0.0 }
0x10de   :  { %v7072_v28 = vmax.f32 %v7068_v13, 0.0  ;;  %v11251_v13 = vld [vmem:[%s14015_s22 + $0x8] sm:$0xff]  }
0x10e0   :  { %v10388_v18 = vpack.c.bf16 %v7072_v28, %v7071_v6  ;;  %v11253_v6 = vld [vmem:[%s14015_s22 + $0x18] sm:$0xff]   ;;  %v11254_v28 = vld [vmem:[%s14015_s22 + $0x20] sm:$0xff]  }
0x10e2   :  { %10389 = vmatpush3.bf16.msra.mxu0 %v10388_v18  ;;  %v11257_v18 = vld [vmem:[%s14015_s22 + $0x38] sm:$0xff]  }
0x10e3   :  { %10043 = vmatprep.subr.bf16.mxu0 %v11226_v8  ;;  %v11256_v8 = vld [vmem:[%s14015_s22 + $0x30] sm:$0xff]  }
0x10e5   :  { %10264 = vmatmul.mubr.msk.f32.vlgmr.msra.gmra.mrb[96].mxu0 %vm7074_vm12, %v7073_v53  ;;  %vm7173_vm12 = vmand %vm7171_vm6, %vm13957_vm8 }
0x10e6   :  { %10044 = vmatpush3.bf16.msra.mxu0 %v11227_v9  ;;  %vm7182_vm6 = vmand %vm7180_vm7, %vm7181_vm1  ;;  %vm7487_vm7 = vcmask 520192  }
0x10e7   :  { %10045 = vmatprep.subr.bf16.mxu0 %v11229_v14  ;;  %vm7188_vm8 = vmand %vm7186_vm2, %vm7187_vm10  ;;  %v9642_v14 = vld [vmem:[#allocation26] ss:$0 sm:$0xff] }
0x10ea   :  { %10046 = vmatpush3.bf16.msra.mxu0 %v11230_v40 }
0x10eb   :  { %10047 = vmatprep.subr.bf16.mxu0 %v11232_v34 }
0x10ee   :  { %10048 = vmatpush3.bf16.msra.mxu0 %v11233_v15 }
0x10ef   :  { %10049 = vmatprep.subr.bf16.mxu0 %v11235_v45 }
0x10f2   :  { %10050 = vmatpush3.bf16.msra.mxu0 %v11236_v24 }
0x10f3   :  { %10051 = vmatprep.subr.bf16.mxu0 %v11238_v27 }
0x10f6   :  { %10052 = vmatpush3.bf16.msra.mxu0 %v11239_v31 }
0x10f7   :  { %10053 = vmatprep.subr.bf16.mxu0 %v11241_v44 }
0x10fa   :  { %10054 = vmatpush3.bf16.msra.mxu0 %v11242_v12  ;;  %v11259_v12 = vld [vmem:[%s14015_s22 + $0x48] sm:$0xff]  }
0x10fb   :  { %10055 = vmatprep.subr.bf16.mxu0 %v11244_v21 }
0x10fe   :  { %10056 = vmatpush3.bf16.msra.mxu0 %v11245_v43 }
0x10ff   :  { %10057 = vmatprep.subr.bf16.mxu0 %v11247_v17 }
0x1102   :  { %10058 = vmatpush3.bf16.msra.mxu0 %v11248_v49 }
0x1103   :  { %7640 = vmatprep.subr.bf16.mxu0 %v14014_v23 }
0x11b8   :  { %v7144_v59 = vpop.f32.mrb[96].mxu0 }
0x11b9   :  { %v7148_v54 = vpack.c.bf16 %v7144_v59, %v7144_v59  ;;  %v10265_v19 = vpop.f32.mrb[97].mxu0  ;;  %v11260_v59 = vld [vmem:[%s14015_s22 + $0x50] sm:$0xff]  }
0x11bb   :  { %v7150_v10 = vshrl.u32 %v7148_v54, 16  ;;  %v7153_v30 = vshll.u32 %v7148_v54, 16  ;;  %7163 = vst [vmem:[#allocation2 + $0x38] sm:$0xf] %v7148_v54 }
0x11bd   :  { %v7152_v2 = vrot.slane %v7150_v10, 7  ;;  %v7164_v63 = vrot.slane %v7153_v30, 1 }
0x11bf   :  { %v7155_v35 = vor.u32 %v7153_v30, %v7152_v2  ;;  %v7165_v56 = vor.u32 %v7164_v63, %v7150_v10  ;;  %v7169_v41 = vsel %vm12649_vm11, %v7164_v63, %v7168_v58  ;;  %vm7507_vm11 = vcmask 519168  }
0x11c0   :  { %7170 = vst [vmem:[#allocation2 + $0x10] sm:$0x80] %v7169_v41 }
0x11c1   :  { %v7161_v32 = vsel %vm7159_vm9, %v7155_v35, %v7160_v57  ;;  %v7175_v29 = vsel %vm7173_vm12, %v7165_v56, %v7174_v55  ;;  %v11261_v35 = vld [vmem:[%s14015_s22 + $0x58] sm:$0xff]   ;;  %vm14021_vm12 = vsmask.f32 7950 }
0x11c2   :  { %7162 = vst [vmem:[#allocation2 + $0x30] sm:$0x1f] %v7161_v32  ;;  %7176 = vst [vmem:[#allocation2 + $0x40] sm:$0xf] %v7175_v29  ;;  %v7196_v51 = vld [vmem:[#allocation2 + $0x38] sm:$0xf] }
0x11c3   :  { %7429 = vmatprep.mubr.bf16.mxu0 %v7196_v51  ;;  %v7509_v2 = vld [vmem:[#allocation2 + $0x38] sm:$0xf] }
0x11c9   :  { %v7177_v20 = vld [vmem:[#allocation2 + $0x30] sm:$0x1]  ;;  %v7183_v11 = vld [vmem:[#allocation2 + $0x40] sm:$0x2]  ;;  %v7189_v1 = vld [vmem:[#allocation2 + $0x30] sm:$0x4] }
0x11ca   :  { %v7178_v16 = vsel %vm12695_vm13, 0, %v7177_v20  ;;  %v7184_v25 = vsel %vm7182_vm6, 0, %v7183_v11  ;;  %v7190_v5 = vsel %vm7188_vm8, 0, %v7189_v1  ;;  %v7192_v22 = vld [vmem:[#allocation2 + $0x40] sm:$0x8]  ;;  %v8198_v20 = vld [vmem:[#allocation39 + $0x80] sm:$0xff] }
0x11cb   :  { %7179 = vst [vmem:[#allocation2 + $0x30] sm:$0x1] %v7178_v16  ;;  %7185 = vst [vmem:[#allocation2 + $0x40] sm:$0x2] %v7184_v25  ;;  %v7193_v61 = vsel %vm13589_vm3, 0, %v7192_v22  ;;  %vm7502_vm3 = vcmask 523271  }
0x11cc   :  { %7191 = vst [vmem:[#allocation2 + $0x30] sm:$0x4] %v7190_v5  ;;  %7194 = vst [vmem:[#allocation2 + $0x40] sm:$0x8] %v7193_v61  ;;  %vm14020_vm8 = vsmask.f32 3328 }
0x11cd   :  { %vm13705_vm13 = vmand %vm7502_vm3, %vm1403_vm15  ;;  %vm7527_vm15 = vcmask 519171   ;;  %vm14024_vm3 = vcmask 523264   ;;  %v9667_v22 = vld [vmem:[#allocation27] ss:$0 sm:$0xff] }
0x11ce   :  { %vm7508_vm9 = vmand %vm7507_vm11, %vm14020_vm8  ;;  %vm7522_vm11 = vcmask 518146  }
0x11cf   :  { %vm7528_vm2 = vmand %vm7527_vm15, %vm14021_vm12  ;;  %vm7765_vm15 = vcmask 518144   ;;  %vm7766_vm12 = vsmask.f32 2306 }
0x11d3   :  { %v7195_v26 = vld [vmem:[#allocation2 + $0x30] sm:$0xf]  ;;  %v7197_v38 = vld [vmem:[#allocation2 + $0x40] sm:$0xf] }
0x11d4   :  { %7430 = vmatmul.mubr.bf16.vlgmr.msra.gmra.mrb[100].mxu0 %v7195_v26  ;;  %10283 = vmatmul.mubr.bf16.vlgmr.msra.gmra.mrb[128].mxu1 %v7197_v38  ;;  %v7489_v30 = vld [vmem:[#allocation2 + $0x30] sm:$0x1f] }
0x11d5   :  { %10288 = vmatprep.mubr.msk.f32.mxu1 %vm11988_vm5, %v11987_v7  ;;  %7641 = vmatpush1.bf16.msra.mxu0 %v11250_v60  ;;  %v11255_v7 = vld [vmem:[%s14015_s22 + $0x28] sm:$0xff]   ;;  %vm13710_vm5 = vmand %vm7487_vm7, %vm7158_vm14  ;;  %vm7517_vm14 = vcmask 517121   ;;  %vm7496_vm7 = vcmask 1043968  }
0x11d6   :  { %7642 = vmatprep.subr.bf16.mxu0 %v14014_v23  ;;  %vm13727_vm6 = vmand %vm7517_vm14, %vm7181_vm1  ;;  %vm14026_vm1 = vcmask 516096  }
0x11d9   :  { %7643 = vmatpush1.bf16.msra.mxu0 %v11251_v13 }
0x11da   :  { %7644 = vmatprep.subr.bf16.mxu0 %v14014_v23 }
0x11dd   :  { %7645 = vmatpush1.bf16.msra.mxu0 %v11252_v0 }
0x11de   :  { %7646 = vmatprep.subr.bf16.mxu0 %v14014_v23 }
0x11e1   :  { %7647 = vmatpush1.bf16.msra.mxu0 %v11253_v6  ;;  %v7681_v6 = vld [vmem:[%s14029_s19] sm:$0xf] }
0x11e2   :  { %7648 = vmatprep.subr.bf16.mxu0 %v14014_v23 }
0x11e5   :  { %7649 = vmatpush1.bf16.msra.mxu0 %v11254_v28  ;;  %v11262_v28 = vld [vmem:[%s14030_s3] sm:$0xff]  }
0x11e6   :  { %7650 = vmatprep.subr.bf16.mxu0 %v14014_v23 }
0x11e9   :  { %7651 = vmatpush1.bf16.msra.mxu0 %v11255_v7  ;;  %v11263_v7 = vld [vmem:[%s14030_s3 + $0x8] sm:$0xff]  }
0x11ea   :  { %7652 = vmatprep.subr.bf16.mxu0 %v14014_v23 }
0x11ed   :  { %7653 = vmatpush1.bf16.msra.mxu0 %v11256_v8  ;;  %v11264_v8 = vld [vmem:[%s14030_s3 + $0x10] sm:$0xff]  }
0x11ee   :  { %7654 = vmatprep.subr.bf16.mxu0 %v14014_v23 }
0x11f1   :  { %7655 = vmatpush1.bf16.msra.mxu0 %v11257_v18  ;;  %v11265_v18 = vld [vmem:[%s14030_s3 + $0x18] sm:$0xff]  }
0x11f2   :  { %7656 = vmatprep.subr.bf16.mxu0 %v14014_v23 }
0x11f5   :  { %7657 = vmatpush1.bf16.msra.mxu0 %v11258_v33 }
0x11f6   :  { %7658 = vmatprep.subr.bf16.mxu0 %v14014_v23 }
0x11f9   :  { %7659 = vmatpush1.bf16.msra.mxu0 %v11259_v12 }
0x11fa   :  { %7660 = vmatprep.subr.bf16.mxu0 %v14014_v23 }
0x11fd   :  { %7661 = vmatpush1.bf16.msra.mxu0 %v11260_v59 }
0x11fe   :  { %7662 = vmatprep.subr.bf16.mxu0 %v14014_v23 }
0x1201   :  { %7663 = vmatpush1.bf16.msra.mxu0 %v11261_v35  ;;  %v1405_v35 = vld [vmem:[#allocation2] sm:$0x80] }
0x1202   :  { %8100 = vmatprep.subr.bf16.mxu0 %v14014_v23 }
0x12a7   :  { %v10059_v53 = vpop.f32.mrb[100].mxu0  ;;  %v7471_v9 = vpop.f32.mrb[128].mxu1 }
0x12a8   :  { %v10060_v40 = vpop.f32.mrb[101].mxu0  ;;  %v10284_v34 = vpop.f32.mrb[129].mxu1 }
0x12a9   :  { %v10061_v36 = vadd.f32 %v10060_v40, %v10059_v53  ;;  %v10062_v15 = vpop.f32.mrb[102].mxu0  ;;  %v7474_v39 = vpop.f32.mrb[130].mxu1  ;;  %v11266_v53 = vld [vmem:[%s14030_s3 + $0x20] sm:$0xff]   ;;  %v11269_v40 = vld [vmem:[%s14030_s3 + $0x38] sm:$0xff]   ;;  %v11271_v34 = vld [vmem:[%s14030_s3 + $0x48] sm:$0xff]  }
0x12aa   :  { %v10063_v45 = vpop.f32.mrb[103].mxu0  ;;  %v10285_v52 = vpop.f32.mrb[131].mxu1 }
0x12ab   :  { %v7432_v24 = vadd.f32 %v10061_v36, %v9642_v14  ;;  %v11268_v14 = vld [vmem:[%s14030_s3 + $0x30] sm:$0xff]   ;;  %v11270_v36 = vld [vmem:[%s14030_s3 + $0x40] sm:$0xff]  }
0x12ad   :  { %v7472_v27 = vadd.f32 %v7471_v9, %v7432_v24  ;;  %v11267_v9 = vld [vmem:[%s14030_s3 + $0x28] sm:$0xff]  }
0x12af   :  { %v7477_v31 = vmax.f32 %v7472_v27, 0.0  ;;  %v11272_v27 = vld [vmem:[%s14030_s3 + $0x50] sm:$0xff]  }
0x12b1   :  { %v7478_v44 = vpack.c.bf16 %v7477_v31, %v7477_v31 }
0x12b3   :  { %7493 = vrot.lane.b32.xlu0 %v7478_v44, %s11961_s15  ;;  %v7480_v37 = vshrl.u32 %v7478_v44, 16  ;;  %v7483_v21 = vshll.u32 %v7478_v44, 16 }
0x12b5   :  { %v7482_v49 = vrot.slane %v7480_v37, 7  ;;  %v7498_v47 = vrot.slane %v7483_v21, 1 }
0x12b7   :  { %v7485_v54 = vor.u32 %v7483_v21, %v7482_v49  ;;  %v7499_v19 = vor.u32 %v7498_v47, %v7480_v37  ;;  %v7505_v10 = vsel %vm13705_vm13, %v7498_v47, %v7504_v4  ;;  %v11273_v49 = vld [vmem:[%s14030_s3 + $0x58] sm:$0xff]  }
0x12b8   :  { %7506 = vst [vmem:[#allocation2 + $0x8] sm:$0x80] %v7505_v10 }
0x12b9   :  { %v7490_v63 = vsel %vm13710_vm5, %v7485_v54, %v7489_v30  ;;  %v7510_v58 = vsel %vm7508_vm9, %v7499_v19, %v7509_v2  ;;  %vm14025_vm5 = vsmask.f32 256  ;;  %vm7523_vm9 = vmand %vm7522_vm11, %vm7187_vm10  ;;  %vm7682_vm10 = vcmask 64512  }
0x12ba   :  { %7511 = vst [vmem:[#allocation2 + $0x38] sm:$0xf] %v7510_v58  ;;  %7491 = vst [vmem:[#allocation2 + $0x30] sm:$0x1f] %v7490_v63 }
0x12bb   :  { %vm13736_vm8 = vmand %vm14026_vm1, %vm14025_vm5  ;;  %vm14035_vm5 = vcmask 523264   ;;  %vm7775_vm1 = vcmask 1041920  }
0x12bf   :  { %v7781_v12 = vld [vmem:[#allocation2 + $0x8] sm:$0x80] }
0x12c1   :  { %v7519_v41 = vld [vmem:[#allocation2 + $0x38] sm:$0x2]  ;;  %v7529_v57 = vld [vmem:[#allocation2 + $0x38] sm:$0x8] }
0x12c2   :  { %v7520_v55 = vsel %vm13727_vm6, 0, %v7519_v41  ;;  %v7530_v32 = vsel %vm7528_vm2, 0, %v7529_v57  ;;  %vm7784_vm2 = vcmask 517120  }
0x12c3   :  { %7521 = vst [vmem:[#allocation2 + $0x38] sm:$0x2] %v7520_v55  ;;  %7531 = vst [vmem:[#allocation2 + $0x38] sm:$0x8] %v7530_v32 }
0x12ca   :  { %v7533_v29 = vld [vmem:[#allocation2 + $0x38] sm:$0xf] }
0x12cb   :  { %9680 = vmatprep.mubr.msk.bf16.mxu0 %vm14024_vm3, %v7533_v29  ;;  %vm7785_vm3 = vsmask.f32 1280  ;;  %v7787_v59 = vld [vmem:[#allocation2 + $0x38] sm:$0x3] }
0x12cc   :  { %vm13773_vm11 = vmand %vm7784_vm2, %vm7785_vm3 }
0x1325   :  { %v7494_v51 = vpop.permute.xlu0 %7493 }
0x1326   :  { %7497 = vst.msk [vmem:[#allocation2 + $0x30] sm:$0xf] %vm7496_vm7, %v7494_v51  ;;  %vm13767_vm7 = vmand %vm7765_vm15, %vm7766_vm12 }
0x132d   :  { %v7514_v11 = vld [vmem:[#allocation2 + $0x30] sm:$0x1]  ;;  %v7524_v1 = vld [vmem:[#allocation2 + $0x30] sm:$0x4] }
0x132e   :  { %v7525_v16 = vsel %vm7523_vm9, 0, %v7524_v1  ;;  %v7515_v25 = vsel %vm13736_vm8, 0, %v7514_v11  ;;  %vm13797_vm9 = vmand %vm7517_vm14, %vm7785_vm3  ;;  %v11274_v1 = vld [vmem:[%s14036_s14] sm:$0xff]  }
0x132f   :  { %7526 = vst [vmem:[#allocation2 + $0x30] sm:$0x4] %v7525_v16  ;;  %7516 = vst [vmem:[#allocation2 + $0x30] sm:$0x1] %v7515_v25  ;;  %v11275_v16 = vld [vmem:[%s14036_s14 + $0x8] sm:$0xff]   ;;  %v11276_v25 = vld [vmem:[%s14036_s14 + $0x10] sm:$0xff]  }
0x1336   :  { %v7532_v5 = vld [vmem:[#allocation2 + $0x30] sm:$0xf] }
0x1337   :  { %7673 = vmatmul.mubr.bf16.vlgmr.msra.gmra.mrb[104].mxu0 %v7532_v5  ;;  %v7768_v47 = vld [vmem:[#allocation2 + $0x30] sm:$0x7]  ;;  %v11277_v5 = vld [vmem:[%s14036_s14 + $0x18] sm:$0xff]  }
0x1338   :  { %8101 = vmatpush1.bf16.msra.mxu0 %v11274_v1 }
0x1339   :  { %8102 = vmatprep.subr.bf16.mxu0 %v14014_v23 }
0x133c   :  { %8103 = vmatpush1.bf16.msra.mxu0 %v11275_v16 }
0x133d   :  { %8104 = vmatprep.subr.bf16.mxu0 %v14014_v23 }
0x1340   :  { %8105 = vmatpush1.bf16.msra.mxu0 %v11276_v25  ;;  %v8217_v25 = vld [vmem:[#allocation39 + $0x118] sm:$0xff] }
0x1341   :  { %8106 = vmatprep.subr.bf16.mxu0 %v14014_v23 }
0x1344   :  { %8107 = vmatpush1.bf16.msra.mxu0 %v11277_v5  ;;  %v8225_v5 = vld [vmem:[#allocation39 + $0x158] sm:$0xff] }
0x1345   :  { %8108 = vmatprep.subr.bf16.mxu0 %v14014_v23 }
0x140a   :  { %v7674_v61 = vpop.f32.mrb[104].mxu0 }
0x140b   :  { %v7675_v26 = vadd.f32 %v9667_v22, %v7674_v61  ;;  %v7676_v38 = vpop.f32.mrb[105].mxu0  ;;  %v11278_v22 = vld [vmem:[%s14036_s14 + $0x20] sm:$0xff]   ;;  %v11279_v61 = vld [vmem:[%s14036_s14 + $0x28] sm:$0xff]  }
0x140c   :  { %v7677_v60 = vpop.f32.mrb[106].mxu0  ;;  %8109 = vmatpush1.bf16.msra.mxu0 %v11278_v22  ;;  %v11281_v38 = vld [vmem:[%s14036_s14 + $0x38] sm:$0xff]   ;;  %v8230_v22 = vld [vmem:[#allocation39 + $0x180] sm:$0xff] }
0x140d   :  { %v7680_v13 = vmax.f32 %v7675_v26, 0.0  ;;  %v7678_v0 = vpop.f32.mrb[107].mxu0  ;;  %8110 = vmatprep.subr.bf16.mxu0 %v14014_v23  ;;  %v11280_v26 = vld [vmem:[%s14036_s14 + $0x30] sm:$0xff]   ;;  %v11282_v60 = vld [vmem:[%s14036_s14 + $0x40] sm:$0xff]  }
0x140e   :  { %v9682_v0 = vld [vmem:[#allocation29] ss:$0 sm:$0xff] }
0x140f   :  { %10287 = vmatpush3.msra.mxu1 %v7680_v13  ;;  %v11283_v13 = vld [vmem:[%s14036_s14 + $0x48] sm:$0xff]  }
0x1410   :  { %10289 = vmatmul.mubr.msk.f32.vlgmr.msra.gmra.mrb[118].mxu1 %vm7682_vm10, %v7681_v6  ;;  %7912 = vmatprep.subr.bf16.mxu1 %v14014_v23 }
0x1411   :  { %7913 = vmatpush1.bf16.msra.mxu1 %v11262_v28  ;;  %8111 = vmatpush1.bf16.msra.mxu0 %v11279_v61  ;;  %v11284_v28 = vld [vmem:[%s14036_s14 + $0x50] sm:$0xff]   ;;  %v9749_v61 = vcombine.high %v8217_v25, %v8225_v5 }
0x1412   :  { %7914 = vmatprep.subr.bf16.mxu1 %v14014_v23  ;;  %8112 = vmatprep.subr.bf16.mxu0 %v14014_v23 }
0x1415   :  { %7915 = vmatpush1.bf16.msra.mxu1 %v11263_v7  ;;  %8113 = vmatpush1.bf16.msra.mxu0 %v11280_v26  ;;  %v8238_v26 = vld [vmem:[#allocation39 + $0x1c0] sm:$0xff] }
0x1416   :  { %7916 = vmatprep.subr.bf16.mxu1 %v14014_v23  ;;  %8114 = vmatprep.subr.bf16.mxu0 %v14014_v23 }
0x1419   :  { %7917 = vmatpush1.bf16.msra.mxu1 %v11264_v8  ;;  %8115 = vmatpush1.bf16.msra.mxu0 %v11281_v38  ;;  %v8233_v38 = vld [vmem:[#allocation39 + $0x198] sm:$0xff] }
0x141a   :  { %7918 = vmatprep.subr.bf16.mxu1 %v14014_v23  ;;  %8116 = vmatprep.subr.bf16.mxu0 %v14014_v23 }
0x141d   :  { %7919 = vmatpush1.bf16.msra.mxu1 %v11265_v18  ;;  %8117 = vmatpush1.bf16.msra.mxu0 %v11282_v60  ;;  %v8241_v60 = vld [vmem:[#allocation39 + $0x1d8] sm:$0xff] }
0x141e   :  { %7920 = vmatprep.subr.bf16.mxu1 %v14014_v23  ;;  %8118 = vmatprep.subr.bf16.mxu0 %v14014_v23 }
0x1421   :  { %7921 = vmatpush1.bf16.msra.mxu1 %v11266_v53  ;;  %8119 = vmatpush1.bf16.msra.mxu0 %v11283_v13 }
0x1422   :  { %7922 = vmatprep.subr.bf16.mxu1 %v14014_v23  ;;  %8120 = vmatprep.subr.bf16.mxu0 %v14014_v23 }
0x1425   :  { %7923 = vmatpush1.bf16.msra.mxu1 %v11267_v9  ;;  %8121 = vmatpush1.bf16.msra.mxu0 %v11284_v28  ;;  %v13851_v28 = vld [vmem:[#allocation39 + $0x28] sm:$0xff] }
0x1426   :  { %7924 = vmatprep.subr.bf16.mxu1 %v14014_v23  ;;  %8122 = vmatprep.subr.bf16.mxu0 %v14014_v23 }
0x1429   :  { %7925 = vmatpush1.bf16.msra.mxu1 %v11268_v14  ;;  %v11285_v14 = vld [vmem:[%s14036_s14 + $0x58] sm:$0xff]  }
0x142a   :  { %7926 = vmatprep.subr.bf16.mxu1 %v14014_v23  ;;  %8123 = vmatpush1.bf16.msra.mxu0 %v11285_v14 }
0x142d   :  { %7927 = vmatpush1.bf16.msra.mxu1 %v11269_v40 }
0x142e   :  { %7928 = vmatprep.subr.bf16.mxu1 %v14014_v23 }
0x1431   :  { %7929 = vmatpush1.bf16.msra.mxu1 %v11270_v36 }
0x1432   :  { %7930 = vmatprep.subr.bf16.mxu1 %v14014_v23 }
0x1435   :  { %7931 = vmatpush1.bf16.msra.mxu1 %v11271_v34 }
0x1436   :  { %7932 = vmatprep.subr.bf16.mxu1 %v14014_v23 }
0x1439   :  { %7933 = vmatpush1.bf16.msra.mxu1 %v11272_v27 }
0x143a   :  { %7934 = vmatprep.subr.bf16.mxu1 %v14014_v23 }
0x143d   :  { %7935 = vmatpush1.bf16.msra.mxu1 %v11273_v49 }
0x14e3   :  { %v7752_v15 = vpop.f32.mrb[118].mxu1 }
0x14e4   :  { %v7756_v39 = vpack.c.bf16 %v7752_v15, %v7752_v15  ;;  %v10290_v45 = vpop.f32.mrb[119].mxu1 }
0x14e6   :  { %v7758_v24 = vshrl.u32 %v7756_v39, 16  ;;  %v7761_v52 = vshll.u32 %v7756_v39, 16  ;;  %7772 = vrot.lane.b32.xlu1 %v7756_v39, %s11961_s15 }
0x14e8   :  { %v7760_v31 = vrot.slane %v7758_v24, 7  ;;  %v7777_v44 = vrot.slane %v7761_v52, 1 }
0x14ea   :  { %v7763_v21 = vor.u32 %v7761_v52, %v7760_v31  ;;  %v7778_v4 = vor.u32 %v7777_v44, %v7758_v24  ;;  %v7782_v17 = vsel %vm13705_vm13, %v7777_v44, %v7781_v12  ;;  %1375 = vrot.lane.b32.xlu1 %v12437_v42, %s11961_s15 }
0x14eb   :  { %7783 = vst [vmem:[#allocation2 + $0x8] sm:$0x80] %v7782_v17 }
0x14ec   :  { %v7769_v54 = vsel %vm13767_vm7, %v7763_v21, %v7768_v47  ;;  %v7788_v19 = vsel %vm13773_vm11, %v7778_v4, %v7787_v59 }
0x14ed   :  { %7770 = vst [vmem:[#allocation2 + $0x30] sm:$0x7] %v7769_v54  ;;  %7789 = vst [vmem:[#allocation2 + $0x38] sm:$0x3] %v7788_v19  ;;  %v8182_v19 = vld [vmem:[#allocation39] sm:$0xff] }
0x14f2   :  { %v7974_v45 = vld [vmem:[#allocation2 + $0x8] sm:$0x80] }
0x14f4   :  { %v7794_v10 = vld [vmem:[#allocation2 + $0x38] sm:$0x1]  ;;  %v7801_v30 = vld [vmem:[#allocation2 + $0x38] sm:$0x2] }
0x14f5   :  { %v7795_v42 = vsel %vm12406_vm4, 0, %v7794_v10  ;;  %v7802_v2 = vsel %vm13727_vm6, 0, %v7801_v30  ;;  %v8190_v10 = vld [vmem:[#allocation39 + $0x40] sm:$0xff]  ;;  %v8185_v30 = vld [vmem:[#allocation39 + $0x18] sm:$0xff] }
0x14f6   :  { %7796 = vst [vmem:[#allocation2 + $0x38] sm:$0x1] %v7795_v42  ;;  %7803 = vst [vmem:[#allocation2 + $0x38] sm:$0x2] %v7802_v2  ;;  %v9711_v42 = vcombine.high %v8182_v19, %v8190_v10  ;;  %v8193_v2 = vld [vmem:[#allocation39 + $0x58] sm:$0xff] }
0x14f8   :  { %8653 = vmatprep.subr.bf16.mxu1 %v9711_v42 }
0x14fd   :  { %v7805_v63 = vld [vmem:[#allocation2 + $0x38] sm:$0x3] }
0x14fe   :  { %9695 = vmatprep.mubr.msk.bf16.mxu1 %vm14035_vm5, %v7805_v63  ;;  %v7977_v44 = vld [vmem:[#allocation2 + $0x38] sm:$0x3]  ;;  %v9710_v63 = vcombine.low %v8182_v19, %v8190_v10 }
0x1558   :  { %v7773_v58 = vpop.permute.xlu1 %7772 }
0x1559   :  { %7776 = vst.msk [vmem:[#allocation2 + $0x30] sm:$0x3] %vm7775_vm1, %v7773_v58  ;;  %v9716_v58 = vcombine.low %v8185_v30, %v8193_v2 }
0x155c   :  { %v1376_v41 = vpop.permute.xlu1 %1375 }
0x155d   :  { %v1406_v57 = vsel %vm12573_vm0, %v1376_v41, %v1405_v35  ;;  %vm14039_vm0 = vmmov %vm14035_vm5  ;;  %v9717_v35 = vcombine.high %v8185_v30, %v8193_v2  ;;  %v8206_v41 = vld [vmem:[#allocation39 + $0xc0] sm:$0xff] }
0x155e   :  { %1407 = vst [vmem:[#allocation2] sm:$0x80] %v1406_v57  ;;  %v8201_v57 = vld [vmem:[#allocation39 + $0x98] sm:$0xff]  ;;  %v9726_v55 = vcombine.low %v8198_v20, %v8206_v41  ;;  %vm14041_vm14 = vmmov %vm14039_vm0 }
0x155f   :  { %8776 = vmatprep.subr.bf16.mxu0 %v9717_v35  ;;  %vm14044_vm10 = vmmov %vm14039_vm0 }
0x1560   :  { %v7790_v32 = vld [vmem:[#allocation2 + $0x30] sm:$0x1]  ;;  %v7798_v29 = vld [vmem:[#allocation2 + $0x30] sm:$0x2]  ;;  %vm14045_vm15 = vmmov %vm14039_vm0 }
0x1561   :  { %v7791_v51 = vsel %vm13736_vm8, 0, %v7790_v32  ;;  %v7799_v11 = vsel %vm13797_vm9, 0, %v7798_v29  ;;  %v9727_v32 = vcombine.high %v8198_v20, %v8206_v41  ;;  %v8209_v29 = vld [vmem:[#allocation39 + $0xd8] sm:$0xff]  ;;  %vm14046_vm12 = vmmov %vm14039_vm0 }
0x1562   :  { %7792 = vst [vmem:[#allocation2 + $0x30] sm:$0x1] %v7791_v51  ;;  %7800 = vst [vmem:[#allocation2 + $0x30] sm:$0x2] %v7799_v11  ;;  %v8214_v51 = vld [vmem:[#allocation39 + $0x100] sm:$0xff]  ;;  %v9733_v1 = vcombine.high %v8201_v57, %v8209_v29 }
0x1563   :  { %v8222_v11 = vld [vmem:[#allocation39 + $0x140] sm:$0xff]  ;;  %vm14048_vm3 = vmmov %vm14039_vm0 }
0x1564   :  { %v9743_v16 = vcombine.high %v8214_v51, %v8222_v11  ;;  %v9742_v13 = vcombine.low %v8214_v51, %v8222_v11 }
0x1569   :  { %v7804_v3 = vld [vmem:[#allocation2 + $0x30] sm:$0x3] }
0x156a   :  { %7945 = vmatmul.mubr.bf16.vlgmr.msra.gmra.mrb[132].mxu1 %v7804_v3  ;;  %v7962_v31 = vld [vmem:[#allocation2 + $0x30] sm:$0x7]  ;;  %v9732_v3 = vcombine.low %v8201_v57, %v8209_v29 }
0x156b   :  { %8685 = vmatprep.mubr.bf16.mxu1 %v14014_v23  ;;  %8654 = vmatpush1.bf16.msra.mxu1 %v9710_v63 }
0x156c   :  { %8655 = vmatprep.subr.bf16.mxu1 %v9727_v32 }
0x156f   :  { %8656 = vmatpush1.bf16.msra.mxu1 %v9726_v55 }
0x1570   :  { %8657 = vmatprep.subr.bf16.mxu1 %v9743_v16  ;;  %v8199_v16 = vld [vmem:[#allocation39 + $0x88] sm:$0xff] }
0x1573   :  { %8658 = vmatpush1.bf16.msra.mxu1 %v9742_v13 }
0x163d   :  { %v7946_v6 = vpop.f32.mrb[132].mxu1 }
0x163e   :  { %v7947_v7 = vadd.f32 %v9682_v0, %v7946_v6  ;;  %v7948_v8 = vpop.f32.mrb[133].mxu1  ;;  %v13847_v0 = vld [vmem:[#allocation39 + $0x8] sm:$0xff] }
0x163f   :  { %v7949_v18 = vpop.f32.mrb[134].mxu1  ;;  %v13849_v6 = vld [vmem:[#allocation39 + $0x48] sm:$0xff]  ;;  %v9759_v8 = vcombine.high %v8230_v22, %v8238_v26 }
0x1640   :  { %v7952_v53 = vmax.f32 %v7947_v7, 0.0  ;;  %v7950_v9 = vpop.f32.mrb[135].mxu1  ;;  %v9748_v7 = vcombine.low %v8217_v25, %v8225_v5  ;;  %v9712_v18 = vcombine.low %v13847_v0, %v13849_v6 }
0x1641   :  { %v9765_v9 = vcombine.high %v8233_v38, %v8241_v60  ;;  %8659 = vmatprep.subr.bf16.mxu1 %v9759_v8  ;;  %v8215_v8 = vld [vmem:[#allocation39 + $0x108] sm:$0xff] }
0x1642   :  { %v7953_v40 = vpack.c.bf16 %v7952_v53, %v7952_v53  ;;  %v13855_v53 = vld [vmem:[#allocation39 + $0x68] sm:$0xff] }
0x1643   :  { %v9720_v14 = vcombine.low %v13851_v28, %v13855_v53 }
0x1644   :  { %v7955_v36 = vshrl.u32 %v7953_v40, 16  ;;  %v7958_v34 = vshll.u32 %v7953_v40, 16  ;;  %7966 = vrot.lane.b32.xlu0 %v7953_v40, %s11961_s15  ;;  %v9758_v40 = vcombine.low %v8230_v22, %v8238_v26  ;;  %v8207_v22 = vld [vmem:[#allocation39 + $0xc8] sm:$0xff]  ;;  %s11991_s15 = smov [#allocation42]  }
0x1645   :  { %v8211_v26 = vld [vmem:[#allocation39 + $0xe8] sm:$0xff]  ;;  %v9729_v13 = vcombine.high %v8199_v16, %v8207_v22  ;;  %s9095_s23 = sshll.u32 %s11991_s15, 4  ;;  %s9096_s23 = int_to_ptr.vmem [resolvable:$true] %s9095_s23 }
0x1646   :  { %v7957_v15 = vrot.slane %v7955_v36, 7  ;;  %v7970_v39 = vrot.slane %v7958_v34, 1  ;;  %8660 = vmatpush1.bf16.msra.mxu1 %v9758_v40  ;;  %v8219_v40 = vld [vmem:[#allocation39 + $0x128] sm:$0xff]  ;;  %s11868_s4 = scalar_lea.vmem %s9096_s23, 512  ;;  %p11873_p5 = scmp.lt.s32.totalorder %s9096_s23, %s9096_s23 }
0x1647   :  { %p11869_p4 = scmp.ne.s32.totalorder %s9096_s23, %s11868_s4  ;;  %p11874_p6 = scmp.lt.s32.totalorder %s11868_s4, %s11868_s4 }
0x1648   :  { %v7960_v24 = vor.u32 %v7958_v34, %v7957_v15  ;;  %v7971_v52 = vor.u32 %v7970_v39, %v7955_v36  ;;  %v7975_v27 = vsel %vm13705_vm13, %v7970_v39, %v7974_v45  ;;  %v9764_v36 = vcombine.low %v8233_v38, %v8241_v60  ;;  %v9696_v39 = vld [vmem:[#allocation30] ss:$0 sm:$0xff] }
0x1649   :  { %7976 = vst [vmem:[#allocation2 + $0x8] sm:$0x80] %v7975_v27  ;;  %v9713_v34 = vcombine.high %v13847_v0, %v13849_v6  ;;  %v9721_v15 = vcombine.high %v13851_v28, %v13855_v53  ;;  %vm14040_vm13 = vcmask 1040384   ;;  %v8184_v53 = vld [vmem:[#allocation39 + $0x10] sm:$0xff]  ;;  %p11875_p7 = por %p11874_p6, %p11873_p5 }
0x164a   :  { %v7963_v12 = vsel %vm13767_vm7, %v7960_v24, %v7962_v31  ;;  %v7978_v21 = vsel %vm13773_vm11, %v7971_v52, %v7977_v44 }
0x164b   :  { %7964 = vst [vmem:[#allocation2 + $0x30] sm:$0x7] %v7963_v12  ;;  %7979 = vst [vmem:[#allocation2 + $0x38] sm:$0x3] %v7978_v21  ;;  %8694 = vmatprep.subr.bf16.mxu1 %v9713_v34  ;;  %v9728_v34 = vcombine.low %v8199_v16, %v8207_v22  ;;  %v8202_v22 = vld [vmem:[#allocation39 + $0xa0] sm:$0xff]  ;;  %p11876_p8 = pnand %p11875_p7, %p11869_p4 }
0x1652   :  { %v7983_v4 = vld [vmem:[#allocation2 + $0x38] sm:$0x1]  ;;  %v7989_v17 = vld [vmem:[#allocation2 + $0x38] sm:$0x2] }
0x1653   :  { %v7984_v49 = vsel %vm12406_vm4, 0, %v7983_v4  ;;  %v7990_v43 = vsel %vm13727_vm6, 0, %v7989_v17  ;;  %vm8159_vm4 = vcmask 519170   ;;  %vm14042_vm6 = vmmov %vm14039_vm0 }
0x1654   :  { %7985 = vst [vmem:[#allocation2 + $0x38] sm:$0x1] %v7984_v49  ;;  %7991 = vst [vmem:[#allocation2 + $0x38] sm:$0x2] %v7990_v43 }
0x165b   :  { %v7993_v47 = vld [vmem:[#allocation2 + $0x38] sm:$0x3] }
0x165c   :  { %9709 = vmatprep.mubr.msk.bf16.mxu0 %vm14039_vm0, %v7993_v47 }
0x16b6   :  { %v7967_v33 = vpop.permute.xlu0 %7966 }
0x16b7   :  { %7969 = vst.msk [vmem:[#allocation2 + $0x30] sm:$0x3] %vm7775_vm1, %v7967_v33 }
0x16be   :  { %v7980_v37 = vld [vmem:[#allocation2 + $0x30] sm:$0x1]  ;;  %v7986_v59 = vld [vmem:[#allocation2 + $0x30] sm:$0x2] }
0x16bf   :  { %v7981_v54 = vsel %vm13736_vm8, 0, %v7980_v37  ;;  %v7987_v62 = vsel %vm13797_vm9, 0, %v7986_v59  ;;  %vm14043_vm8 = vmmov %vm14039_vm0 }
0x16c0   :  { %7982 = vst [vmem:[#allocation2 + $0x30] sm:$0x1] %v7981_v54  ;;  %7988 = vst [vmem:[#allocation2 + $0x30] sm:$0x2] %v7987_v62 }
0x16c7   :  { %v7992_v56 = vld [vmem:[#allocation2 + $0x30] sm:$0x3] }
0x16c8   :  { %8133 = vmatmul.mubr.bf16.vlgmr.msra.gmra.mrb[108].mxu0 %v7992_v56 }
0x16c9   :  { %8808 = vmatprep.mubr.bf16.mxu0 %v14014_v23  ;;  %8777 = vmatpush1.bf16.msra.mxu0 %v9716_v58 }
0x16ca   :  { %8778 = vmatprep.subr.bf16.mxu0 %v9733_v1 }
0x16cd   :  { %8779 = vmatpush1.bf16.msra.mxu0 %v9732_v3 }
0x16ce   :  { %8780 = vmatprep.subr.bf16.mxu0 %v9749_v61  ;;  %v8203_v61 = vld [vmem:[#allocation39 + $0xa8] sm:$0xff] }
0x16d1   :  { %8781 = vmatpush1.bf16.msra.mxu0 %v9748_v7  ;;  %v9737_v7 = vcombine.high %v8203_v61, %v8211_v26 }
0x16d2   :  { %8782 = vmatprep.subr.bf16.mxu0 %v9765_v9  ;;  %v8223_v9 = vld [vmem:[#allocation39 + $0x148] sm:$0xff] }
0x16d3   :  { %v9744_v0 = vcombine.low %v8215_v8, %v8223_v9 }
0x16d5   :  { %8783 = vmatpush1.bf16.msra.mxu0 %v9764_v36  ;;  %v8227_v36 = vld [vmem:[#allocation39 + $0x168] sm:$0xff] }
0x16d6   :  { %8858 = vmatprep.subr.bf16.mxu0 %v9721_v15  ;;  %v9736_v15 = vcombine.low %v8203_v61, %v8211_v26  ;;  %v9752_v6 = vcombine.low %v8219_v40, %v8227_v36  ;;  %v8210_v61 = vld [vmem:[#allocation39 + $0xe0] sm:$0xff] }
0x179b   :  { %v8134_v45 = vpop.f32.mrb[108].mxu0 }
0x179c   :  { %v8135_v24 = vadd.f32 %v9696_v39, %v8134_v45  ;;  %v8136_v52 = vpop.f32.mrb[109].mxu0  ;;  %v9745_v39 = vcombine.high %v8215_v8, %v8223_v9  ;;  %v9753_v45 = vcombine.high %v8219_v40, %v8227_v36  ;;  %v9734_v8 = vcombine.low %v8202_v22, %v8210_v61  ;;  %v8234_v40 = vld [vmem:[#allocation39 + $0x1a0] sm:$0xff] }
0x179d   :  { %v8137_v27 = vpop.f32.mrb[110].mxu0  ;;  %v8239_v52 = vld [vmem:[#allocation39 + $0x1c8] sm:$0xff]  ;;  %v8242_v36 = vld [vmem:[#allocation39 + $0x1e0] sm:$0xff] }
0x179e   :  { %v8140_v31 = vmax.f32 %v8135_v24, 0.0  ;;  %v8138_v44 = vpop.f32.mrb[111].mxu0  ;;  %v8231_v24 = vld [vmem:[#allocation39 + $0x188] sm:$0xff] }
0x179f   :  { %v8235_v27 = vld [vmem:[#allocation39 + $0x1a8] sm:$0xff]  ;;  %v9761_v28 = vcombine.high %v8231_v24, %v8239_v52  ;;  %v8189_v44 = vld [vmem:[#allocation39 + $0x38] sm:$0xff] }
0x17a0   :  { %v8142_v12 = vsel %vm7784_vm2, %v8140_v31, -inf  ;;  %v8149_v21 = vsel %vm7784_vm2, %v8140_v31, 0.0  ;;  %v8160_v4 = vsel %vm8159_vm4, %v8140_v31, -inf  ;;  %v8168_v17 = vrot.slane %v8140_v31, 2  ;;  %v8243_v31 = vld [vmem:[#allocation39 + $0x1e8] sm:$0xff] }
0x17a1   :  { %v8143_v49 = vrot.slane %v8142_v12, 4  ;;  %v8150_v43 = vrot.slane %v8149_v21, 4  ;;  %v8161_v47 = vrot.slane %v8160_v4, 4 }
0x17a2   :  { %v8170_v33 = vsel %vm7784_vm2, %v8168_v17, 0.0  ;;  %vm14047_vm2 = vmmov %vm14039_vm0 }
0x17a3   :  { %v8144_v37 = vmax.f32 %v8142_v12, %v8143_v49  ;;  %v8151_v59 = vadd.f32 %v8150_v43, %v8149_v21  ;;  %v8162_v54 = vmax.f32 %v8160_v4, %v8161_v47  ;;  %v8171_v62 = vrot.slane %v8170_v33, 4  ;;  %v8197_v12 = vld [vmem:[#allocation39 + $0x78] sm:$0xff]  ;;  %v8200_v43 = vld [vmem:[#allocation39 + $0x90] sm:$0xff] }
0x17a4   :  { %v9760_v21 = vcombine.low %v8231_v24, %v8239_v52  ;;  %v9768_v4 = vcombine.low %v8235_v27, %v8243_v31  ;;  %v9725_v49 = vcombine.high %v8189_v44, %v8197_v12  ;;  %v8208_v47 = vld [vmem:[#allocation39 + $0xd0] sm:$0xff]  ;;  %v9766_v24 = vcombine.low %v8234_v40, %v8242_v36 }
0x17a5   :  { %v8145_v56 = vrot.slane %v8144_v37, 2  ;;  %v8152_v19 = vrot.slane %v8151_v59, 2  ;;  %v8163_v10 = vrot.slane %v8162_v54, 2  ;;  %v8172_v30 = vadd.f32 %v8171_v62, %v8170_v33  ;;  %v8205_v33 = vld [vmem:[#allocation39 + $0xb8] sm:$0xff] }
0x17a6   :  { %v9731_v62 = vcombine.high %v8200_v43, %v8208_v47 }
0x17a7   :  { %v8146_v42 = vmax.f32 %v8144_v37, %v8145_v56  ;;  %v8153_v2 = vadd.f32 %v8152_v19, %v8151_v59  ;;  %v8164_v63 = vmax.f32 %v8162_v54, %v8163_v10  ;;  %v8173_v58 = vrot.slane %v8172_v30, 2  ;;  %v8213_v37 = vld [vmem:[#allocation39 + $0xf8] sm:$0xff]  ;;  %v8216_v19 = vld [vmem:[#allocation39 + $0x110] sm:$0xff] }
0x17a8   :  { %v9724_v54 = vcombine.low %v8189_v44, %v8197_v12  ;;  %v9741_v56 = vcombine.high %v8205_v33, %v8213_v37  ;;  %v8224_v10 = vld [vmem:[#allocation39 + $0x150] sm:$0xff] }
0x17a9   :  { %v8154_v35 = vrot.slane %v8153_v2, 1  ;;  %v8174_v20 = vadd.f32 %v8173_v58, %v8172_v30  ;;  %v8147_v41 = vrot.slane %v8146_v42, 1  ;;  %v8165_v55 = vrot.slane %v8164_v63, 1  ;;  %v8221_v30 = vld [vmem:[#allocation39 + $0x138] sm:$0xff]  ;;  %v8236_v44 = vld [vmem:[#allocation39 + $0x1b0] sm:$0xff] }
0x17aa   :  { %v9747_v58 = vcombine.high %v8216_v19, %v8224_v10  ;;  %v8244_v12 = vld [vmem:[#allocation39 + $0x1f0] sm:$0xff] }
0x17ab   :  { %v8155_v57 = vadd.f32 %v8154_v35, %v8153_v2  ;;  %v8175_v32 = vrot.slane %v8174_v20, 1  ;;  %v8148_v11 = vmax.f32 %v8146_v42, %v8147_v41  ;;  %v8166_v3 = vmax.f32 %v8164_v63, %v8165_v55  ;;  %v8229_v42 = vld [vmem:[#allocation39 + $0x178] sm:$0xff]  ;;  %v8240_v41 = vld [vmem:[#allocation39 + $0x1d0] sm:$0xff] }
0x17ac   :  { %v9730_v2 = vcombine.low %v8200_v43, %v8208_v47  ;;  %v9740_v63 = vcombine.low %v8205_v33, %v8213_v37  ;;  %v9757_v35 = vcombine.high %v8221_v30, %v8229_v42  ;;  %v8245_v55 = vld [vmem:[#allocation39 + $0x1f8] sm:$0xff]  ;;  %v8246_v43 = vld [vmem:[#allocation41] sm:$0xff] }
0x17ad   :  { %v8157_v29 = vmul.f32 0.5, %v8155_v57  ;;  %v8176_v51 = vadd.f32 %v8175_v32, %v8174_v20  ;;  %v8232_v20 = vld [vmem:[#allocation39 + $0x190] sm:$0xff]  ;;  %v8237_v57 = vld [vmem:[#allocation39 + $0x1b8] sm:$0xff]  ;;  %v9746_v32 = vcombine.low %v8216_v19, %v8224_v10  ;;  %v8253_v47 = vrot.slane %v8246_v43, %v12625_v48 }
0x17ae   :  { %v9762_v16 = vcombine.low %v8232_v20, %v8240_v41  ;;  %v8257_v37 = vrot.slane %v8246_v43, %v12629_v50 }
0x17af   :  { %v8177_v1 = vmul.f32 0.5, %v8176_v51  ;;  %v8158_v25 = vadd.f32 %v8157_v29, %v8148_v11  ;;  %v9756_v29 = vcombine.low %v8221_v30, %v8229_v42  ;;  %v9763_v51 = vcombine.high %v8232_v20, %v8240_v41 }
0x17b0   :  { %v9773_v11 = vcombine.high %v8237_v57, %v8245_v55 }
0x17b1   :  { %v8178_v5 = vadd.f32 %v8177_v1, %v8166_v3  ;;  %v8186_v3 = vld [vmem:[#allocation39 + $0x20] sm:$0xff] }
0x17b2   :  { %v8194_v1 = vld [vmem:[#allocation39 + $0x60] sm:$0xff] }
0x17b3   :  { %v8180_v38 = vsel %vm14040_vm13, %v8158_v25, %v8178_v5  ;;  %v9772_v25 = vcombine.low %v8237_v57, %v8245_v55  ;;  %v9719_v5 = vcombine.high %v8186_v3, %v8194_v1  ;;  %v9718_v26 = vcombine.low %v8186_v3, %v8194_v1 }
0x17b4   :  { %v13867_v60 = vpack.c.bf16 %v8180_v38, %v8180_v38  ;;  %v9735_v38 = vcombine.high %v8202_v22, %v8210_v61  ;;  %v8264_v3 = vsub.s32 3, %v12622_v46  ;;  %v11990_v1 = vmov 1983009808  }
0x17b6   :  { %9774 = vmatmul.mubr.msk.bf16.vlgmr.msra.gmra.mrb[136].mxu1 %vm14041_vm14, %v13867_v60  ;;  %9777 = vmatmul.mubr.msk.bf16.vlgmr.msra.gmra.mrb[112].mxu0 %vm14042_vm6, %v13867_v60  ;;  %v8265_v22 = vrot.slane %v8246_v43, %v8264_v3 }
0x17b7   :  { %8695 = vmatpush1.bf16.msra.mxu1 %v9712_v18  ;;  %8859 = vmatpush1.bf16.msra.mxu0 %v9720_v14  ;;  %v9769_v18 = vcombine.high %v8235_v27, %v8243_v31  ;;  %v8192_v14 = vld [vmem:[#allocation39 + $0x50] sm:$0xff] }
0x17b8   :  { %8696 = vmatprep.subr.bf16.mxu1 %v9729_v13  ;;  %8860 = vmatprep.subr.bf16.mxu0 %v9737_v7  ;;  %v9715_v17 = vcombine.high %v8184_v53, %v8192_v14  ;;  %v9714_v59 = vcombine.low %v8184_v53, %v8192_v14  ;;  %v8218_v13 = vld [vmem:[#allocation39 + $0x120] sm:$0xff]  ;;  %v8204_v27 = vld [vmem:[#allocation39 + $0xb0] sm:$0xff] }
0x17b9   :  { %8726 = vmatprep.mubr.bf16.mxu1 %v14014_v23  ;;  %8890 = vmatprep.mubr.bf16.mxu0 %v14014_v23  ;;  %v8226_v7 = vld [vmem:[#allocation39 + $0x160] sm:$0xff]  ;;  %v8212_v31 = vld [vmem:[#allocation39 + $0xf0] sm:$0xff] }
0x17ba   :  { %v9751_v9 = vcombine.high %v8218_v13, %v8226_v7  ;;  %v9738_v53 = vcombine.low %v8204_v27, %v8212_v31 }
0x17bb   :  { %8697 = vmatpush1.bf16.msra.mxu1 %v9728_v34  ;;  %8861 = vmatpush1.bf16.msra.mxu0 %v9736_v15  ;;  %v9750_v34 = vcombine.low %v8218_v13, %v8226_v7  ;;  %v9767_v15 = vcombine.high %v8234_v40, %v8242_v36 }
0x17bc   :  { %8698 = vmatprep.subr.bf16.mxu1 %v9745_v39  ;;  %8862 = vmatprep.subr.bf16.mxu0 %v9753_v45  ;;  %v8188_v39 = vld [vmem:[#allocation39 + $0x30] sm:$0xff] }
0x17bd   :  { %v8196_v45 = vld [vmem:[#allocation39 + $0x70] sm:$0xff] }
0x17be   :  { %v9723_v52 = vcombine.high %v8188_v39, %v8196_v45 }
0x17bf   :  { %8699 = vmatpush1.bf16.msra.mxu1 %v9744_v0  ;;  %8863 = vmatpush1.bf16.msra.mxu0 %v9752_v6  ;;  %v9722_v0 = vcombine.low %v8188_v39, %v8196_v45  ;;  %v9739_v6 = vcombine.high %v8204_v27, %v8212_v31 }
0x17c0   :  { %8700 = vmatprep.subr.bf16.mxu1 %v9761_v28  ;;  %8864 = vmatprep.subr.bf16.mxu0 %v9769_v18  ;;  %v8220_v28 = vld [vmem:[#allocation39 + $0x130] sm:$0xff] }
0x17c1   :  { %v8228_v18 = vld [vmem:[#allocation39 + $0x170] sm:$0xff] }
0x17c2   :  { %v9755_v14 = vcombine.high %v8220_v28, %v8228_v18 }
0x17c3   :  { %8701 = vmatpush1.bf16.msra.mxu1 %v9760_v21  ;;  %8865 = vmatpush1.bf16.msra.mxu0 %v9768_v4  ;;  %v9754_v21 = vcombine.low %v8220_v28, %v8228_v18  ;;  %v9771_v4 = vcombine.high %v8236_v44, %v8244_v12 }
0x17c4   :  { %8735 = vmatprep.subr.bf16.mxu1 %v9715_v17  ;;  %8940 = vmatprep.subr.bf16.mxu0 %v9725_v49  ;;  %v9770_v17 = vcombine.low %v8236_v44, %v8244_v12  ;;  %v8276_v49 = vsub.s32 6, %v12622_v46  ;;  %v8268_v44 = vsub.s32 4, %v12622_v46 }
0x17c6   :  { %9775 = vmatmul.mubr.msk.bf16.vlgmr.msra.gmra.mrb[140].mxu1 %vm14043_vm8, %v13867_v60  ;;  %9779 = vmatmul.mubr.msk.bf16.vlgmr.msra.gmra.mrb[116].mxu0 %vm14044_vm10, %v13867_v60  ;;  %v8277_v33 = vrot.slane %v8246_v43, %v8276_v49 }
0x17c7   :  { %8736 = vmatpush1.bf16.msra.mxu1 %v9714_v59  ;;  %8941 = vmatpush1.bf16.msra.mxu0 %v9724_v54 }
0x17c8   :  { %8737 = vmatprep.subr.bf16.mxu1 %v9731_v62  ;;  %8942 = vmatprep.subr.bf16.mxu0 %v9741_v56 }
0x17c9   :  { %8767 = vmatprep.mubr.bf16.mxu1 %v14014_v23  ;;  %8972 = vmatprep.mubr.bf16.mxu0 %v14014_v23 }
0x17cb   :  { %8738 = vmatpush1.bf16.msra.mxu1 %v9730_v2  ;;  %8943 = vmatpush1.bf16.msra.mxu0 %v9740_v63 }
0x17cc   :  { %8739 = vmatprep.subr.bf16.mxu1 %v9747_v58  ;;  %8944 = vmatprep.subr.bf16.mxu0 %v9757_v35 }
0x17cf   :  { %8740 = vmatpush1.bf16.msra.mxu1 %v9746_v32  ;;  %8945 = vmatpush1.bf16.msra.mxu0 %v9756_v29 }
0x17d0   :  { %8741 = vmatprep.subr.bf16.mxu1 %v9763_v51  ;;  %8946 = vmatprep.subr.bf16.mxu0 %v9773_v11  ;;  %v8260_v51 = vsub.s32 2, %v12622_v46  ;;  %v13902_v11 = vld [vmem:[#allocation41 + $0x8] sm:$0xff] }
0x17d1   :  { %v8297_v61 = vrot.slane %v13902_v11, %v8264_v3 }
0x17d3   :  { %8742 = vmatpush1.bf16.msra.mxu1 %v9762_v16  ;;  %8947 = vmatpush1.bf16.msra.mxu0 %v9772_v25  ;;  %v9016_v16 = vunpack.c.l.s4 %v11990_v1  ;;  %v8261_v25 = vrot.slane %v8246_v43, %v8260_v51 }
0x17d4   :  { %8817 = vmatprep.subr.bf16.mxu1 %v9719_v5  ;;  %v8293_v5 = vrot.slane %v13902_v11, %v8260_v51 }
0x17d6   :  { %9776 = vmatmul.mubr.msk.bf16.vlgmr.msra.gmra.mrb[144].mxu1 %vm14045_vm15, %v13867_v60  ;;  %9781 = vmatmul.mubr.msk.bf16.vlgmr.msra.gmra.mrb[120].mxu0 %vm14046_vm12, %v13867_v60 }
0x17d7   :  { %8818 = vmatpush1.bf16.msra.mxu1 %v9718_v26  ;;  %8849 = vmatprep.mubr.bf16.mxu1 %v14014_v23  ;;  %v9017_v26 = vunpack.c.0.s8 %v9016_v16 }
0x17d8   :  { %8819 = vmatprep.subr.bf16.mxu1 %v9735_v38 }
0x17d9   :  { %v13908_v31 = vsub.s32 %v9017_v26, %v12622_v46 }
0x17db   :  { %8820 = vmatpush1.bf16.msra.mxu1 %v9734_v8 }
0x17dc   :  { %8821 = vmatprep.subr.bf16.mxu1 %v9751_v9 }
0x17df   :  { %8822 = vmatpush1.bf16.msra.mxu1 %v9750_v34 }
0x17e0   :  { %8823 = vmatprep.subr.bf16.mxu1 %v9767_v15 }
0x17e3   :  { %8824 = vmatpush1.bf16.msra.mxu1 %v9766_v24 }
0x17e4   :  { %8899 = vmatprep.subr.bf16.mxu1 %v9723_v52 }
0x17e6   :  { %9778 = vmatmul.mubr.msk.bf16.vlgmr.msra.gmra.mrb[148].mxu1 %vm14047_vm2, %v13867_v60 }
0x17e7   :  { %8900 = vmatpush1.bf16.msra.mxu1 %v9722_v0  ;;  %8931 = vmatprep.mubr.bf16.mxu1 %v14014_v23  ;;  %v8280_v23 = vsub.s32 7, %v12622_v46 }
0x17e8   :  { %8901 = vmatprep.subr.bf16.mxu1 %v9739_v6 }
0x17e9   :  { %v8281_v59 = vrot.slane %v8246_v43, %v8280_v23 }
0x17eb   :  { %8902 = vmatpush1.bf16.msra.mxu1 %v9738_v53 }
0x17ec   :  { %8903 = vmatprep.subr.bf16.mxu1 %v9755_v14 }
0x17ef   :  { %8904 = vmatpush1.bf16.msra.mxu1 %v9754_v21  ;;  %v8272_v21 = vsub.s32 5, %v12622_v46 }
0x17f0   :  { %8905 = vmatprep.subr.bf16.mxu1 %v9771_v4  ;;  %v8269_v4 = vrot.slane %v8246_v43, %v8268_v44 }
0x17f3   :  { %8906 = vmatpush1.bf16.msra.mxu1 %v9770_v17  ;;  %v8309_v17 = vrot.slane %v13902_v11, %v8276_v49 }
0x17f6   :  { %9780 = vmatmul.mubr.msk.bf16.vlgmr.msra.gmra.mrb[152].mxu1 %vm14048_vm3, %v13867_v60 }
0x1889   :  { %v8687_v54 = vpop.f32.mrb[136].mxu1  ;;  %v8810_v62 = vpop.f32.mrb[112].mxu0 }
0x188a   :  { %v8688_v56 = vadd.f32 %v8687_v54, %v8253_v47  ;;  %v8811_v19 = vadd.f32 %v8810_v62, %v8277_v33  ;;  %v8689_v10 = vpop.f32.mrb[137].mxu1  ;;  %v8812_v30 = vpop.f32.mrb[113].mxu0  ;;  %v8273_v47 = vrot.slane %v8246_v43, %v8272_v21  ;;  %v8313_v33 = vrot.slane %v13902_v11, %v8280_v23 }
0x188b   :  { %v8690_v42 = vadd.f32 %v8689_v10, %v8257_v37  ;;  %v8813_v2 = vadd.f32 %v8812_v30, %v8281_v59  ;;  %v8691_v60 = vpop.f32.mrb[138].mxu1  ;;  %v8814_v63 = vpop.f32.mrb[114].mxu0 }
0x188c   :  { %v8981_v58 = vmax.f32 %v8688_v56, 0.0  ;;  %v8987_v35 = vmax.f32 %v8811_v19, 0.0  ;;  %v8692_v20 = vpop.f32.mrb[139].mxu1  ;;  %v8815_v41 = vpop.f32.mrb[115].mxu0 }
0x188d   :  { %v8982_v57 = vmax.f32 %v8690_v42, 0.0  ;;  %v8988_v55 = vmax.f32 %v8813_v2, 0.0 }
0x188f   :  { %v9013_v32 = vcombine.low %v8981_v58, %v8982_v57  ;;  %v9031_v29 = vcombine.low %v8987_v35, %v8988_v55  ;;  %v8285_v55 = vrot.slane %v13902_v11, %v12625_v48  ;;  %v8301_v48 = vrot.slane %v13902_v11, %v8268_v44 }
0x1891   :  { %v9021_v53 = vrot.slane %v9013_v32, %v13908_v31  ;;  %v9045_v23 = vrot.slane %v9031_v29, %v13908_v31  ;;  %v8289_v32 = vrot.slane %v13902_v11, %v12629_v50 }
0x1899   :  { %v8728_v38 = vpop.f32.mrb[140].mxu1  ;;  %v8892_v13 = vpop.f32.mrb[116].mxu0 }
0x189a   :  { %v8729_v7 = vadd.f32 %v8728_v38, %v8261_v25  ;;  %v8893_v8 = vadd.f32 %v8892_v13, %v8293_v5  ;;  %v8730_v9 = vpop.f32.mrb[141].mxu1  ;;  %v8894_v40 = vpop.f32.mrb[117].mxu0 }
0x189b   :  { %v8731_v36 = vadd.f32 %v8730_v9, %v8265_v22  ;;  %v8895_v34 = vadd.f32 %v8894_v40, %v8297_v61  ;;  %v8732_v15 = vpop.f32.mrb[142].mxu1  ;;  %v8896_v39 = vpop.f32.mrb[118].mxu0 }
0x189c   :  { %v8983_v45 = vmax.f32 %v8729_v7, 0.0  ;;  %v8991_v24 = vmax.f32 %v8893_v8, 0.0  ;;  %v8733_v52 = vpop.f32.mrb[143].mxu1  ;;  %v8897_v27 = vpop.f32.mrb[119].mxu0  ;;  %v8305_v7 = vrot.slane %v13902_v11, %v8272_v21 }
0x189d   :  { %v8984_v0 = vmax.f32 %v8731_v36, 0.0  ;;  %v8992_v6 = vmax.f32 %v8895_v34, 0.0 }
0x189f   :  { %v9014_v28 = vcombine.low %v8983_v45, %v8984_v0  ;;  %v9048_v18 = vcombine.low %v8991_v24, %v8992_v6 }
0x18a1   :  { %v9028_v14 = vrot.slane %v9014_v28, %v13908_v31  ;;  %v9062_v29 = vrot.slane %v9048_v18, %v13908_v31 }
0x18a3   :  { %v9029_v12 = vcombine.low %v9021_v53, %v9028_v14 }
0x18a5   :  { %9085 = vst [vmem:[#allocation42] sm:$0xff] %v9029_v12 }
0x18a9   :  { %v8769_v37 = vpop.f32.mrb[144].mxu1  ;;  %v8974_v59 = vpop.f32.mrb[120].mxu0 }
0x18aa   :  { %v8770_v54 = vadd.f32 %v8769_v37, %v8269_v4  ;;  %v8975_v62 = vadd.f32 %v8974_v59, %v8309_v17  ;;  %v8771_v56 = vpop.f32.mrb[145].mxu1  ;;  %v8976_v19 = vpop.f32.mrb[121].mxu0 }
0x18ab   :  { %v8772_v10 = vadd.f32 %v8771_v56, %v8273_v47  ;;  %v8977_v30 = vadd.f32 %v8976_v19, %v8313_v33  ;;  %v8773_v42 = vpop.f32.mrb[146].mxu1  ;;  %v8978_v2 = vpop.f32.mrb[122].mxu0 }
0x18ac   :  { %v8985_v60 = vmax.f32 %v8770_v54, 0.0  ;;  %v8995_v63 = vmax.f32 %v8975_v62, 0.0  ;;  %v8774_v46 = vpop.f32.mrb[147].mxu1  ;;  %v8979_v58 = vpop.f32.mrb[123].mxu0 }
0x18ad   :  { %v8986_v35 = vmax.f32 %v8772_v10, 0.0  ;;  %v8996_v20 = vmax.f32 %v8977_v30, 0.0 }
0x18af   :  { %v9030_v49 = vcombine.low %v8985_v60, %v8986_v35  ;;  %v9065_v43 = vcombine.low %v8995_v63, %v8996_v20 }
0x18b1   :  { %v9038_v41 = vrot.slane %v9030_v49, %v13908_v31  ;;  %v9079_v24 = vrot.slane %v9065_v43, %v13908_v31 }
0x18b3   :  { %v9046_v57 = vcombine.low %v9038_v41, %v9045_v23 }
0x18b5   :  { %9086 = vst [vmem:[#allocation42 + $0x8] sm:$0xff] %v9046_v57 }
0x18b9   :  { %v8851_v51 = vpop.f32.mrb[148].mxu1 }
0x18ba   :  { %v8852_v3 = vadd.f32 %v8851_v51, %v8285_v55  ;;  %v8853_v1 = vpop.f32.mrb[149].mxu1 }
0x18bb   :  { %v8854_v16 = vadd.f32 %v8853_v1, %v8289_v32  ;;  %v8855_v25 = vpop.f32.mrb[150].mxu1 }
0x18bc   :  { %v8989_v5 = vmax.f32 %v8852_v3, 0.0  ;;  %v8856_v22 = vpop.f32.mrb[151].mxu1 }
0x18bd   :  { %v8990_v61 = vmax.f32 %v8854_v16, 0.0 }
0x18bf   :  { %v9047_v26 = vcombine.low %v8989_v5, %v8990_v61 }
0x18c1   :  { %v9055_v38 = vrot.slane %v9047_v26, %v13908_v31 }
0x18c3   :  { %v9063_v13 = vcombine.low %v9055_v38, %v9062_v29 }
0x18c5   :  { %9087 = vst [vmem:[#allocation42 + $0x10] sm:$0xff] %v9063_v13 }
0x18c9   :  { %v8933_v50 = vpop.f32.mrb[152].mxu1 }
0x18ca   :  { %v8934_v8 = vadd.f32 %v8933_v50, %v8301_v48  ;;  %v8935_v9 = vpop.f32.mrb[153].mxu1 }
0x18cb   :  { %v8936_v40 = vadd.f32 %v8935_v9, %v8305_v7  ;;  %v8937_v36 = vpop.f32.mrb[154].mxu1 }
0x18cc   :  { %v8993_v34 = vmax.f32 %v8934_v8, 0.0  ;;  %v8938_v15 = vpop.f32.mrb[155].mxu1 }
0x18cd   :  { %v8994_v39 = vmax.f32 %v8936_v40, 0.0 }
0x18cf   :  { %v9064_v45 = vcombine.low %v8993_v34, %v8994_v39 }
0x18d1   :  { %v9072_v52 = vrot.slane %v9064_v45, %v13908_v31 }
0x18d3   :  { %v9080_v27 = vcombine.low %v9072_v52, %v9079_v24 }
0x18d5   :  { %9088 = vst [vmem:[#allocation42 + $0x18] sm:$0xff] %v9080_v27 }
0x18d6   :  { %11879 = shalt.err (!%p11876_p8)
}
0x18d7   :  { %s11880_s26 = scalar_lea.hbm %s12185_s29, 512 }
0x18d8   :  { %p11881_p9 = scmp.ne.s32.totalorder %s12185_s29, %s11880_s26  ;;  %p11884_p10 = scmp.lt.u32.totalorder %s11880_s26, %s12185_s29 }
0x18da   :  { %p11886_p11 = pnand %p11884_p10, %p11881_p9 }
0x18dc   :  { %11889 = shalt.err (!%p11886_p11)
}
0x18dd   :  { %9098 = dma.vmem_to_hbm [thread:$0]  %s9096_s23, 512, %s12185_s29, [#allocation5]  }
0x18de   :  { %11916 = dma.done.wait [#allocation5], 512  }
0x18df   :  { %11917 = vsyncadd [#allocation5], 4294966784 }
0x18e0   :  { %9102 = vsyncpa [#allocation4], 1 }
0x18e1   :  { %9103 = vsyncpa [#allocation7], 1 }
0x18e2   :  { %9104 = vsyncpa [#allocation10], 1 }
0x18e3   :  { %9105 = vsyncpa [#allocation13], 1 }
0x18e4   :  { %9106 = vsyncpa [#allocation16], 1 }
0x18e5   :  { %9107 = vsyncpa [#allocation19], 1 }
0x18e6   :  { %9108 = vsyncpa [#allocation22], 1 }
0x18e7   :  { %9109 = vsyncpa [#allocation25], 1 }
0x18e8   :  { %9110 = vsyncpa [#allocation28], 1 }
0x18e9   :  { %9111 = vsyncpa [#allocation31], 1 }
0x18ea   :  { %9112 = vsyncpa [#allocation34], 1 }
0x18eb   :  { %9113 = vsyncpa [#allocation37], 1 }
0x18ec   :  { %9114 = vsyncpa [#allocation40], 1 }
0x18ed   :  { %9115 = vsyncpa [#allocation5], 1 }

</bundles_post_ra>
